<compile_context>
chip_gen: v7x
topology: tpu7x:2x2x1
jax: 0.10.0
libtpu: 0.0.40
codegen_flags: <defaults>
</compile_context>

<pallas_src>
import functools

import numpy as np
import jax
import jax.numpy as jnp
from jax.experimental import pallas as pl
from jax.experimental.pallas import tpu as pltpu

_LANES = 128


# --------------------------------------------------------------------------- #
# Pallas kernel: Gauss-Jordan elimination with partial pivoting on a           #
# lane-dense augmented matrix [K | rhs | 0-pad] of shape (nrows, 128).         #
# --------------------------------------------------------------------------- #
def _gauss_jordan_kernel(aug_ref, out_ref, *, n_sys):
    nrows, lanes = aug_ref.shape
    A = aug_ref[...]                                              # (nrows, lanes) f32
    row_ids = jax.lax.broadcasted_iota(jnp.int32, (nrows, 1), 0)

    # n_sys is a static Python int -> fully unrolled loop; every per-step
    # extraction indexed by k below is a cheap static slice.
    for k in range(n_sys):
        col_k = A[:, k:k + 1]                                     # (nrows, 1)
        k_sel = row_ids == k

        # ---- partial pivoting: row in [k, n_sys) with max |A[row, k]| ------
        valid = jnp.logical_and(row_ids >= k, row_ids < n_sys)
        cand = jnp.where(valid, jnp.abs(col_k), -1.0)
        piv_idx = jnp.min(jnp.where(cand == jnp.max(cand), row_ids, nrows))
        piv_sel = row_ids == piv_idx

        # pivot row: dynamic row index -> masked sublane reduction (XLU)
        piv_row = jnp.sum(jnp.where(piv_sel, A, 0.0), axis=0, keepdims=True)
        k_row = A[k:k + 1, :]                                     # static slice

        # pivot value / elimination factors (scalars; exact divide on purpose)
        piv_val = jnp.sum(piv_row[:, k:k + 1])
        norm_row = piv_row * (1.0 / piv_val)                      # (1, lanes)
        ck = jnp.sum(col_k[k:k + 1, :])                           # old A[k, k]
        factors = jnp.where(piv_sel, ck, col_k)                   # column after swap
        factors = jnp.where(k_sel, 0.0, factors)

        # fused row-swap + elimination + pivot-row normalization
        A = jnp.where(piv_sel, k_row, A) - factors * norm_row
        A = jnp.where(k_sel, norm_row, A)

    out_ref[...] = A                                              # lane-dense store


def _gauss_jordan_batch(aug, n_sys):
    """Reduce a (B, nrows, 128) stack of augmented systems in one pallas_call."""
    B, nrows, lanes = aug.shape
    kernel = functools.partial(_gauss_jordan_kernel, n_sys=n_sys)
    return pl.pallas_call(
        kernel,
        out_shape=jax.ShapeDtypeStruct((B, nrows, lanes), jnp.float32),
        grid=(B,),
        in_specs=[pl.BlockSpec((None, nrows, lanes), lambda b: (b, 0, 0))],
        out_specs=pl.BlockSpec((None, nrows, lanes), lambda b: (b, 0, 0)),
        compiler_params=pltpu.CompilerParams(
            dimension_semantics=("parallel",)),
    )(aug)


def kkt_solve(K, rhs):
    """Solve K @ Z = rhs on TPU (K: (N,N) f32, rhs: (N,R) f32, N+R <= 128)."""
    K = jnp.asarray(K, jnp.float32)
    rhs = jnp.asarray(rhs, jnp.float32)
    N = K.shape[0]
    R = rhs.shape[1]
    nrows = -(-N // 8) * 8
    aug = jnp.zeros((1, nrows, _LANES), jnp.float32)
    aug = aug.at[0, :N, :N].set(K).at[0, :N, N:N + R].set(rhs)
    sol = _gauss_jordan_batch(aug, n_sys=N)
    return sol[0, :N, N:N + R]


# --------------------------------------------------------------------------- #
# Device-side (jitted / vmapped) assembly of the augmented KKT system.         #
# --------------------------------------------------------------------------- #
def _time_vector(t, order, d):
    vals = []
    for i in range(1, order + 2):
        if i >= d + 1:
            coef = float(np.prod(np.arange(i - d, i, dtype=np.float64)))
            vals.append(jnp.asarray(coef * t ** (i - d - 1), jnp.float32))
        else:
            vals.append(jnp.zeros((), jnp.float32))
    return jnp.stack(vals)


def _q_matrix(order, d, t0, t1):
    npow = (order - d) * 2 + 1
    tdp = [t1 ** (i + 1) - t0 ** (i + 1) for i in range(npow)]
    zero = jnp.zeros((), jnp.float32)
    Q = [[zero for _ in range(order + 1)] for _ in range(order + 1)]
    for i in range(d + 1, order + 2):
        for j in range(i, order + 2):
            k1 = i - d - 1
            k2 = j - d - 1
            kk = k1 + k2 + 1
            p1 = float(np.prod(np.arange(k1 + 1, k1 + d + 1, dtype=np.float64)))
            p2 = float(np.prod(np.arange(k2 + 1, k2 + d + 1, dtype=np.float64)))
            val = jnp.asarray((p1 * p2 / kk) * tdp[kk - 1], jnp.float32)
            Q[i - 1][j - 1] = val
            Q[j - 1][i - 1] = val
    return jnp.stack([jnp.stack(r) for r in Q])


def _assemble_aug(T, rhs_const, *, poly_order, ns):
    """Build the lane-dense augmented KKT matrix [K | rhs | 0] for one T."""
    f32 = jnp.float32
    nc = poly_order + 1
    n_coef = nc * ns
    n_con = 4 * ns + 2
    n_kkt = n_coef + n_con
    nrows = -(-n_kkt // 8) * 8
    r = rhs_const.shape[1]

    # -- block-diagonal Q (snap cost Hessian) + tiny regularization -----------
    zero_blk = jnp.zeros((nc, nc), f32)
    q_rows = []
    for i in range(ns):
        Qi = _q_matrix(poly_order, 3, T[i], T[i + 1])
        q_rows.append(jnp.concatenate(
            [Qi if j == i else zero_blk for j in range(ns)], axis=1))
    Q_all = jnp.concatenate(q_rows, axis=0) + 1e-6 * jnp.eye(n_coef, dtype=f32)

    # -- equality constraints Aeq ----------------------------------------------
    def placed(vec, col0):
        parts = []
        if col0 > 0:
            parts.append(jnp.zeros((col0,), f32))
        parts.append(vec.astype(f32))
        right = n_coef - col0 - vec.shape[0]
        if right > 0:
            parts.append(jnp.zeros((right,), f32))
        return jnp.concatenate(parts) if len(parts) > 1 else parts[0]

    rows = []
    for d in range(3):                                   # start pos/vel/acc
        rows.append(placed(_time_vector(T[0], poly_order, d), 0))
    for d in range(3):                                   # end pos/vel/acc
        rows.append(placed(_time_vector(T[ns], poly_order, d), n_coef - nc))
    for i in range(1, ns):                               # intermediate positions
        rows.append(placed(_time_vector(T[i], poly_order, 0), i * nc))
    for i in range(1, ns):                               # C0/C1/C2 continuity
        for d in range(3):
            tv = _time_vector(T[i], poly_order, d)
            rows.append(placed(jnp.concatenate([tv, -tv]), (i - 1) * nc))
    Aeq = jnp.stack(rows)                                # (n_con, n_coef)

    # -- KKT matrix [[Q, Aeq^T], [Aeq, 0]], augmented with the rhs lanes -------
    top = jnp.concatenate([Q_all, Aeq.T], axis=1)
    bot = jnp.concatenate([Aeq, jnp.zeros((n_con, n_con), f32)], axis=1)
    K = jnp.concatenate([top, bot], axis=0)              # (n_kkt, n_kkt)
    aug = jnp.concatenate(
        [K, rhs_const.astype(f32),
         jnp.zeros((n_kkt, _LANES - n_kkt - r), f32)], axis=1)
    if nrows > n_kkt:
        aug = jnp.concatenate(
            [aug, jnp.zeros((nrows - n_kkt, _LANES), f32)], axis=0)
    return aug


def _batched_costs(T_batch, rhs_const, *, poly_order, ns):
    """Minimum-snap cost of every candidate time vector: (B, ns+1) -> (B,)."""
    nc = poly_order + 1
    n_coef = nc * ns
    n_kkt = n_coef + 4 * ns + 2
    aug = jax.vmap(
        lambda T: _assemble_aug(T, rhs_const, poly_order=poly_order, ns=ns)
    )(T_batch)                                            # (B, nrows, 128)
    sol = _gauss_jordan_batch(aug, n_sys=n_kkt)
    cx = sol[:, :n_coef, n_kkt]                           # x-axis coefficients
    cy = sol[:, :n_coef, n_kkt + 1]                       # y-axis coefficients
    px = cx.reshape(cx.shape[0], ns, nc)
    py = cy.reshape(cy.shape[0], ns, nc)
    dt = T_batch[:, 1:] - T_batch[:, :-1]
    return jnp.sum((px[:, :, 5] ** 2 + py[:, :, 5] ** 2) * dt, axis=1)


def _solve_polys(T, rhs_const, *, poly_order, ns):
    """Minimum-snap coefficients (nc, ns) for both axes at one time vector."""
    nc = poly_order + 1
    n_coef = nc * ns
    n_kkt = n_coef + 4 * ns + 2
    aug = _assemble_aug(T, rhs_const, poly_order=poly_order, ns=ns)[None]
    sol = _gauss_jordan_batch(aug, n_sys=n_kkt)[0]
    px = sol[:n_coef, n_kkt].reshape(ns, nc).T
    py = sol[:n_coef, n_kkt + 1].reshape(ns, nc).T
    return px, py


# --------------------------------------------------------------------------- #
# UAVTrajectoryPlanner (forward-pass semantics of the PyTorch module).          #
# --------------------------------------------------------------------------- #
class UAVTrajectoryPlanner:
    MAX_ITERATIONS = 50
    # TODO(synk): reference uses an unbounded `while True` line search; capped here.
    LINE_SEARCH_MAX_HALVINGS = 12

    def __init__(self, waypoints, total_time, poly_order,
                 start_vel, start_acc, end_vel, end_acc):
        self.waypoints = np.asarray(waypoints, dtype=np.float64)
        self.total_time = float(total_time)
        self.poly_order = int(poly_order)
        self.start_vel = [float(v) for v in start_vel]
        self.start_acc = [float(v) for v in start_acc]
        self.end_vel = [float(v) for v in end_vel]
        self.end_acc = [float(v) for v in end_acc]

        self._ns = self.waypoints.shape[1] - 1
        self._nc = self.poly_order + 1
        self._n_coef = self._nc * self._ns
        self._n_con = 4 * self._ns + 2
        self._n_kkt = self._n_coef + self._n_con
        assert self._n_kkt + 2 <= _LANES, "KKT system exceeds one 128-lane tile"

        self._cost_fn = jax.jit(functools.partial(
            _batched_costs, poly_order=self.poly_order, ns=self._ns))
        self._solve_fn = jax.jit(functools.partial(
            _solve_polys, poly_order=self.poly_order, ns=self._ns))

    # -- constant part of the KKT rhs: [-b; beq] for x (lane 0) and y (lane 1) --
    def _build_rhs(self, waypoints_2d):
        wp = np.asarray(waypoints_2d, dtype=np.float64)
        rhs = np.zeros((self._n_kkt, 2), dtype=np.float32)
        for ax in range(2):
            beq = np.zeros(self._n_con, dtype=np.float64)
            beq[0:6] = [wp[ax, 0], self.start_vel[ax], self.start_acc[ax],
                        wp[ax, -1], self.end_vel[ax], self.end_acc[ax]]
            beq[6:6 + self._ns - 1] = wp[ax, 1:self._ns]
            rhs[self._n_coef:, ax] = beq.astype(np.float32)
        return rhs

    # -- time-segment initialisation ------------------------------------------
    def init_time_segments(self, waypoints, total_time):
        wp = np.asarray(waypoints, dtype=np.float64)
        diffs = wp[:, 1:] - wp[:, :-1]
        dists = np.sqrt(np.sum(diffs ** 2, axis=0))
        frac = total_time / np.sum(dists)
        return np.concatenate([[0.0], np.cumsum(dists * frac)])

    # -- single-axis minimum-snap solve (API parity with the reference) --------
    def solve_minimum_snap(self, waypoints, time_stamps, poly_order,
                           start_vel, start_acc, end_vel, end_acc):
        assert int(poly_order) == self.poly_order
        wp = np.asarray(waypoints, dtype=np.float64)
        beq = np.zeros(self._n_con, dtype=np.float64)
        beq[0:6] = [wp[0], start_vel, start_acc, wp[-1], end_vel, end_acc]
        beq[6:6 + self._ns - 1] = wp[1:self._ns]
        rhs = np.zeros((self._n_kkt, 2), dtype=np.float32)
        rhs[self._n_coef:, 0] = beq
        rhs[self._n_coef:, 1] = beq
        px, _ = self._solve_fn(jnp.asarray(time_stamps, jnp.float32),
                               jnp.asarray(rhs))
        return np.asarray(px)

    # -- cost of a candidate time allocation ------------------------------------
    def evaluate_cost_function(self, polys_x, polys_y, T):
        total = 0.0
        for s in range(np.asarray(polys_x).shape[1]):
            dt = float(T[s + 1] - T[s])
            total += (float(polys_x[5, s]) ** 2 + float(polys_y[5, s]) ** 2) * dt
        return float(total)

    def evaluate_trajectory(self, T, plot_trajectory=False, iteration=None):
        # TODO(synk): plotting side effect of the reference (TrajectoryPlotter) omitted.
        rhs = jnp.asarray(self._build_rhs(self.waypoints))
        T32 = jnp.asarray(np.asarray(T, dtype=np.float64)[None, :], jnp.float32)
        return float(np.asarray(self._cost_fn(T32, rhs))[0])

    # -- finite-difference time-segment optimisation ----------------------------
    def optimize_time_segments(self, waypoints, total_time):
        T = self.init_time_segments(waypoints, total_time)
        rhs = jnp.asarray(self._build_rhs(self.waypoints))
        h = 1e-05
        lr = 0.1
        n_t = len(T)
        loss_history = []
        for _ in range(self.MAX_ITERATIONS):
            # baseline + all FD perturbations in ONE batched device call
            cands = [T]
            for i in range(n_t - 1):
                gi = np.ones_like(T) * (-1.0 / (n_t - 2))
                gi[i] = 1.0
                cands.append(T + h * gi)
            costs = np.asarray(self._cost_fn(
                jnp.asarray(np.stack(cands), jnp.float32), rhs))
            loss = float(costs[0])
            gradients = np.zeros_like(T)
            gradients[:n_t - 1] = (costs[1:] - loss) / h

            # backtracking line search: batch all halvings of one index per call
            step_size = lr
            for i in range(n_t - 1):
                cand_T = []
                for j in range(self.LINE_SEARCH_MAX_HALVINGS):
                    new_T = T.copy()
                    new_T[i] -= (step_size * (0.5 ** j)) * gradients[i]
                    new_T = np.clip(new_T, 0.0, None)
                    new_T = new_T / new_T.sum() * total_time
                    cand_T.append(new_T)
                cand_costs = np.asarray(self._cost_fn(
                    jnp.asarray(np.stack(cand_T), jnp.float32), rhs))
                accepted = np.nonzero(cand_costs < loss)[0]
                if accepted.size > 0:
                    j = int(accepted[0])
                    T = cand_T[j]
                    step_size *= 0.5 ** j
                else:
                    step_size *= 0.5 ** self.LINE_SEARCH_MAX_HALVINGS
            T = np.clip(T, 0.0, None)
            T = T / T.sum() * total_time
            loss_history.append(loss)
        return T, loss_history

    # -- forward -----------------------------------------------------------------
    def forward(self, waypoints, total_time):
        wp = np.asarray(waypoints, dtype=np.float64)
        opt_T, loss_history = self.optimize_time_segments(wp, float(total_time))
        rhs = jnp.asarray(self._build_rhs(wp))
        polys_x, polys_y = self._solve_fn(jnp.asarray(opt_T, jnp.float32), rhs)
        return (jnp.asarray(polys_x, jnp.float32),
                jnp.asarray(polys_y, jnp.float32),
                jnp.asarray(opt_T, jnp.float32),
                loss_history)


# --------------------------------------------------------------------------- #
if __name__ == "__main__":
    key = jax.random.PRNGKey(0)
    k1, k2, k3, k4 = jax.random.split(key, 4)

    # Sanity-check the Pallas augmented Gauss-Jordan solver (2 rhs lanes).
    N = 32
    A_test = jax.random.normal(k1, (N, N), jnp.float32) + 32.0 * jnp.eye(N, dtype=jnp.float32)
    b_test = jax.random.normal(k2, (N, 2), jnp.float32)
    x_test = jax.block_until_ready(kkt_solve(A_test, b_test))
    np.testing.assert_allclose(np.asarray(A_test) @ np.asarray(x_test),
                               np.asarray(b_test), rtol=1e-3, atol=1e-3)

    # Deterministic example: 4 waypoints in 2D with increasing coordinates.
    wpx = jnp.cumsum(jax.random.uniform(k3, (4,), minval=0.5, maxval=1.5))
    wpy = jnp.cumsum(jax.random.uniform(k4, (4,), minval=0.5, maxval=1.5))
    waypoints = jnp.stack([wpx, wpy])            # shape (2, 4)
    total_time = 5.0

    planner = UAVTrajectoryPlanner(
        waypoints, total_time, poly_order=5,
        start_vel=(0.0, 0.0), start_acc=(0.0, 0.0),
        end_vel=(0.0, 0.0), end_acc=(0.0, 0.0))

    polys_x, polys_y, opt_T, loss_history = planner.forward(waypoints, total_time)
    jax.block_until_ready((polys_x, polys_y, opt_T))

    assert polys_x.shape == (6, 3) and polys_y.shape == (6, 3) and opt_T.shape == (4,)
    assert len(loss_history) == UAVTrajectoryPlanner.MAX_ITERATIONS
    print("KERNEL_OK")
</pallas_src>

<mosaic_0001>
module attributes {stable_mosaic.version = 11 : i64} {
  func.func @_gauss_jordan_kernel(%arg0: i32, %arg1: memref<1x32x128xf32, #tpu.memory_space<vmem>>, %arg2: memref<1x32x128xf32, #tpu.memory_space<vmem>>) attributes {dimension_semantics = [#tpu.dimension_semantics<parallel>], iteration_bounds = array<i64: 1>, scalar_prefetch = 0 : i64, scratch_operands = 0 : i64, tpu.core_type = #tpu.core_type<tc>, window_params = [{transform_indices = @transform_0, window_bounds = array<i64: 1, 32, 128>}, {transform_indices = @transform_1, window_bounds = array<i64: 1, 32, 128>}]} {
    %c0 = arith.constant 0 : index
    %c0_0 = arith.constant 0 : index
    %c0_1 = arith.constant 0 : index
    %0 = vector.load %arg1[%c0, %c0_0, %c0_1] : memref<1x32x128xf32, #tpu.memory_space<vmem>>, vector<1x32x128xf32>
    %1 = vector.shape_cast %0 : vector<1x32x128xf32> to vector<32x128xf32>
    %2 = tpu.iota {dimensions = array<i32: 0>} : vector<32x1xi32>
    %3 = vector.extract_strided_slice %1 {offsets = [0, 0], sizes = [32, 1], strides = [1, 1]} : vector<32x128xf32> to vector<32x1xf32>
    %c0_i32 = arith.constant 0 : i32
    %4 = vector.broadcast %c0_i32 : i32 to vector<32x1xi32>
    %5 = arith.cmpi eq, %2, %4 : vector<32x1xi32>
    %c0_i32_2 = arith.constant 0 : i32
    %6 = vector.broadcast %c0_i32_2 : i32 to vector<32x1xi32>
    %7 = arith.cmpi sge, %2, %6 : vector<32x1xi32>
    %c32_i32 = arith.constant 32 : i32
    %8 = vector.broadcast %c32_i32 : i32 to vector<32x1xi32>
    %9 = arith.cmpi slt, %2, %8 : vector<32x1xi32>
    %10 = arith.andi %7, %9 : vector<32x1xi1>
    %11 = math.absf %3 : vector<32x1xf32>
    %cst = arith.constant -1.000000e+00 : f32
    %12 = vector.broadcast %cst : f32 to vector<32x1xf32>
    %13 = arith.select %10, %11, %12 : vector<32x1xi1>, vector<32x1xf32>
    %14 = vector.shape_cast %13 : vector<32x1xf32> to vector<1x32x1xf32>
    %cst_3 = arith.constant dense<0xFF800000> : vector<1xf32>
    %15 = vector.multi_reduction <maximumf>, %14, %cst_3 [1, 2] : vector<1x32x1xf32> to vector<1xf32>
    %16 = vector.shape_cast %15 : vector<1xf32> to vector<1x1x1xf32>
    %17 = vector.extract %16[0, 0, 0] : f32 from vector<1x1x1xf32>
    %18 = vector.broadcast %17 : f32 to vector<32x1xf32>
    %19 = arith.cmpf oeq, %13, %18 : vector<32x1xf32>
    %c32_i32_4 = arith.constant 32 : i32
    %20 = vector.broadcast %c32_i32_4 : i32 to vector<32x1xi32>
    %21 = arith.select %19, %2, %20 : vector<32x1xi1>, vector<32x1xi32>
    %22 = vector.shape_cast %21 : vector<32x1xi32> to vector<1x32x1xi32>
    %cst_5 = arith.constant dense<2147483647> : vector<1xi32>
    %23 = vector.multi_reduction <minsi>, %22, %cst_5 [1, 2] : vector<1x32x1xi32> to vector<1xi32>
    %24 = vector.shape_cast %23 : vector<1xi32> to vector<1x1x1xi32>
    %25 = vector.extract %24[0, 0, 0] : i32 from vector<1x1x1xi32>
    %26 = vector.broadcast %25 : i32 to vector<32x1xi32>
    %27 = arith.cmpi eq, %2, %26 : vector<32x1xi32>
    %cst_6 = arith.constant 0.000000e+00 : f32
    %28 = vector.shape_cast %27 : vector<32x1xi1> to vector<32x1xi1>
    %29 = vector.broadcast %28 : vector<32x1xi1> to vector<32x128xi1>
    %30 = vector.broadcast %cst_6 : f32 to vector<32x128xf32>
    %31 = arith.select %29, %1, %30 : vector<32x128xi1>, vector<32x128xf32>
    %cst_7 = arith.constant dense<0.000000e+00> : vector<128xf32>
    %32 = vector.multi_reduction <add>, %31, %cst_7 [0] : vector<32x128xf32> to vector<128xf32>
    %33 = vector.shape_cast %32 : vector<128xf32> to vector<1x128xf32>
    %34 = vector.extract_strided_slice %1 {offsets = [0, 0], sizes = [1, 128], strides = [1, 1]} : vector<32x128xf32> to vector<1x128xf32>
    %35 = vector.extract_strided_slice %33 {offsets = [0, 0], sizes = [1, 1], strides = [1, 1]} : vector<1x128xf32> to vector<1x1xf32>
    %36 = vector.shape_cast %35 : vector<1x1xf32> to vector<1x1x1xf32>
    %cst_8 = arith.constant dense<0.000000e+00> : vector<1xf32>
    %37 = vector.multi_reduction <add>, %36, %cst_8 [1, 2] : vector<1x1x1xf32> to vector<1xf32>
    %38 = vector.shape_cast %37 : vector<1xf32> to vector<1x1x1xf32>
    %39 = vector.extract %38[0, 0, 0] : f32 from vector<1x1x1xf32>
    %cst_9 = arith.constant 1.000000e+00 : f32
    %40 = arith.divf %cst_9, %39 : f32
    %41 = vector.broadcast %40 : f32 to vector<1x128xf32>
    %42 = arith.mulf %33, %41 : vector<1x128xf32>
    %43 = vector.extract_strided_slice %3 {offsets = [0, 0], sizes = [1, 1], strides = [1, 1]} : vector<32x1xf32> to vector<1x1xf32>
    %44 = vector.shape_cast %43 : vector<1x1xf32> to vector<1x1x1xf32>
    %cst_10 = arith.constant dense<0.000000e+00> : vector<1xf32>
    %45 = vector.multi_reduction <add>, %44, %cst_10 [1, 2] : vector<1x1x1xf32> to vector<1xf32>
    %46 = vector.shape_cast %45 : vector<1xf32> to vector<1x1x1xf32>
    %47 = vector.extract %46[0, 0, 0] : f32 from vector<1x1x1xf32>
    %48 = vector.broadcast %47 : f32 to vector<32x1xf32>
    %49 = arith.select %27, %48, %3 : vector<32x1xi1>, vector<32x1xf32>
    %cst_11 = arith.constant 0.000000e+00 : f32
    %50 = vector.broadcast %cst_11 : f32 to vector<32x1xf32>
    %51 = arith.select %5, %50, %49 : vector<32x1xi1>, vector<32x1xf32>
    %52 = vector.shape_cast %27 : vector<32x1xi1> to vector<32x1xi1>
    %53 = vector.broadcast %52 : vector<32x1xi1> to vector<32x128xi1>
    %54 = vector.shape_cast %34 : vector<1x128xf32> to vector<1x128xf32>
    %55 = vector.broadcast %54 : vector<1x128xf32> to vector<32x128xf32>
    %56 = arith.select %53, %55, %1 : vector<32x128xi1>, vector<32x128xf32>
    %57 = vector.broadcast %51 : vector<32x1xf32> to vector<32x128xf32>
    %58 = vector.broadcast %42 : vector<1x128xf32> to vector<32x128xf32>
    %59 = arith.mulf %57, %58 : vector<32x128xf32>
    %60 = arith.subf %56, %59 : vector<32x128xf32>
    %61 = vector.shape_cast %5 : vector<32x1xi1> to vector<32x1xi1>
    %62 = vector.broadcast %61 : vector<32x1xi1> to vector<32x128xi1>
    %63 = vector.shape_cast %42 : vector<1x128xf32> to vector<1x128xf32>
    %64 = vector.broadcast %63 : vector<1x128xf32> to vector<32x128xf32>
    %65 = arith.select %62, %64, %60 : vector<32x128xi1>, vector<32x128xf32>
    %66 = vector.extract_strided_slice %65 {offsets = [0, 1], sizes = [32, 1], strides = [1, 1]} : vector<32x128xf32> to vector<32x1xf32>
    %c1_i32 = arith.constant 1 : i32
    %67 = vector.broadcast %c1_i32 : i32 to vector<32x1xi32>
    %68 = arith.cmpi eq, %2, %67 : vector<32x1xi32>
    %c1_i32_12 = arith.constant 1 : i32
    %69 = vector.broadcast %c1_i32_12 : i32 to vector<32x1xi32>
    %70 = arith.cmpi sge, %2, %69 : vector<32x1xi32>
    %c32_i32_13 = arith.constant 32 : i32
    %71 = vector.broadcast %c32_i32_13 : i32 to vector<32x1xi32>
    %72 = arith.cmpi slt, %2, %71 : vector<32x1xi32>
    %73 = arith.andi %70, %72 : vector<32x1xi1>
    %74 = math.absf %66 : vector<32x1xf32>
    %cst_14 = arith.constant -1.000000e+00 : f32
    %75 = vector.broadcast %cst_14 : f32 to vector<32x1xf32>
    %76 = arith.select %73, %74, %75 : vector<32x1xi1>, vector<32x1xf32>
    %77 = vector.shape_cast %76 : vector<32x1xf32> to vector<1x32x1xf32>
    %cst_15 = arith.constant dense<0xFF800000> : vector<1xf32>
    %78 = vector.multi_reduction <maximumf>, %77, %cst_15 [1, 2] : vector<1x32x1xf32> to vector<1xf32>
    %79 = vector.shape_cast %78 : vector<1xf32> to vector<1x1x1xf32>
    %80 = vector.extract %79[0, 0, 0] : f32 from vector<1x1x1xf32>
    %81 = vector.broadcast %80 : f32 to vector<32x1xf32>
    %82 = arith.cmpf oeq, %76, %81 : vector<32x1xf32>
    %c32_i32_16 = arith.constant 32 : i32
    %83 = vector.broadcast %c32_i32_16 : i32 to vector<32x1xi32>
    %84 = arith.select %82, %2, %83 : vector<32x1xi1>, vector<32x1xi32>
    %85 = vector.shape_cast %84 : vector<32x1xi32> to vector<1x32x1xi32>
    %cst_17 = arith.constant dense<2147483647> : vector<1xi32>
    %86 = vector.multi_reduction <minsi>, %85, %cst_17 [1, 2] : vector<1x32x1xi32> to vector<1xi32>
    %87 = vector.shape_cast %86 : vector<1xi32> to vector<1x1x1xi32>
    %88 = vector.extract %87[0, 0, 0] : i32 from vector<1x1x1xi32>
    %89 = vector.broadcast %88 : i32 to vector<32x1xi32>
    %90 = arith.cmpi eq, %2, %89 : vector<32x1xi32>
    %cst_18 = arith.constant 0.000000e+00 : f32
    %91 = vector.shape_cast %90 : vector<32x1xi1> to vector<32x1xi1>
    %92 = vector.broadcast %91 : vector<32x1xi1> to vector<32x128xi1>
    %93 = vector.broadcast %cst_18 : f32 to vector<32x128xf32>
    %94 = arith.select %92, %65, %93 : vector<32x128xi1>, vector<32x128xf32>
    %cst_19 = arith.constant dense<0.000000e+00> : vector<128xf32>
    %95 = vector.multi_reduction <add>, %94, %cst_19 [0] : vector<32x128xf32> to vector<128xf32>
    %96 = vector.shape_cast %95 : vector<128xf32> to vector<1x128xf32>
    %97 = vector.extract_strided_slice %65 {offsets = [1, 0], sizes = [1, 128], strides = [1, 1]} : vector<32x128xf32> to vector<1x128xf32>
    %98 = vector.extract_strided_slice %96 {offsets = [0, 1], sizes = [1, 1], strides = [1, 1]} : vector<1x128xf32> to vector<1x1xf32>
    %99 = vector.shape_cast %98 : vector<1x1xf32> to vector<1x1x1xf32>
    %cst_20 = arith.constant dense<0.000000e+00> : vector<1xf32>
    %100 = vector.multi_reduction <add>, %99, %cst_20 [1, 2] : vector<1x1x1xf32> to vector<1xf32>
    %101 = vector.shape_cast %100 : vector<1xf32> to vector<1x1x1xf32>
    %102 = vector.extract %101[0, 0, 0] : f32 from vector<1x1x1xf32>
    %cst_21 = arith.constant 1.000000e+00 : f32
    %103 = arith.divf %cst_21, %102 : f32
    %104 = vector.broadcast %103 : f32 to vector<1x128xf32>
    %105 = arith.mulf %96, %104 : vector<1x128xf32>
    %106 = vector.extract_strided_slice %66 {offsets = [1, 0], sizes = [1, 1], strides = [1, 1]} : vector<32x1xf32> to vector<1x1xf32>
    %107 = vector.shape_cast %106 : vector<1x1xf32> to vector<1x1x1xf32>
    %cst_22 = arith.constant dense<0.000000e+00> : vector<1xf32>
    %108 = vector.multi_reduction <add>, %107, %cst_22 [1, 2] : vector<1x1x1xf32> to vector<1xf32>
    %109 = vector.shape_cast %108 : vector<1xf32> to vector<1x1x1xf32>
    %110 = vector.extract %109[0, 0, 0] : f32 from vector<1x1x1xf32>
    %111 = vector.broadcast %110 : f32 to vector<32x1xf32>
    %112 = arith.select %90, %111, %66 : vector<32x1xi1>, vector<32x1xf32>
    %cst_23 = arith.constant 0.000000e+00 : f32
    %113 = vector.broadcast %cst_23 : f32 to vector<32x1xf32>
    %114 = arith.select %68, %113, %112 : vector<32x1xi1>, vector<32x1xf32>
    %115 = vector.shape_cast %90 : vector<32x1xi1> to vector<32x1xi1>
    %116 = vector.broadcast %115 : vector<32x1xi1> to vector<32x128xi1>
    %117 = vector.shape_cast %97 : vector<1x128xf32> to vector<1x128xf32>
    %118 = vector.broadcast %117 : vector<1x128xf32> to vector<32x128xf32>
    %119 = arith.select %116, %118, %65 : vector<32x128xi1>, vector<32x128xf32>
    %120 = vector.broadcast %114 : vector<32x1xf32> to vector<32x128xf32>
    %121 = vector.broadcast %105 : vector<1x128xf32> to vector<32x128xf32>
    %122 = arith.mulf %120, %121 : vector<32x128xf32>
    %123 = arith.subf %119, %122 : vector<32x128xf32>
    %124 = vector.shape_cast %68 : vector<32x1xi1> to vector<32x1xi1>
    %125 = vector.broadcast %124 : vector<32x1xi1> to vector<32x128xi1>
    %126 = vector.shape_cast %105 : vector<1x128xf32> to vector<1x128xf32>
    %127 = vector.broadcast %126 : vector<1x128xf32> to vector<32x128xf32>
    %128 = arith.select %125, %127, %123 : vector<32x128xi1>, vector<32x128xf32>
    %129 = vector.extract_strided_slice %128 {offsets = [0, 2], sizes = [32, 1], strides = [1, 1]} : vector<32x128xf32> to vector<32x1xf32>
    %c2_i32 = arith.constant 2 : i32
    %130 = vector.broadcast %c2_i32 : i32 to vector<32x1xi32>
    %131 = arith.cmpi eq, %2, %130 : vector<32x1xi32>
    %c2_i32_24 = arith.constant 2 : i32
    %132 = vector.broadcast %c2_i32_24 : i32 to vector<32x1xi32>
    %133 = arith.cmpi sge, %2, %132 : vector<32x1xi32>
    %c32_i32_25 = arith.constant 32 : i32
    %134 = vector.broadcast %c32_i32_25 : i32 to vector<32x1xi32>
    %135 = arith.cmpi slt, %2, %134 : vector<32x1xi32>
    %136 = arith.andi %133, %135 : vector<32x1xi1>
    %137 = math.absf %129 : vector<32x1xf32>
    %cst_26 = arith.constant -1.000000e+00 : f32
    %138 = vector.broadcast %cst_26 : f32 to vector<32x1xf32>
    %139 = arith.select %136, %137, %138 : vector<32x1xi1>, vector<32x1xf32>
    %140 = vector.shape_cast %139 : vector<32x1xf32> to vector<1x32x1xf32>
    %cst_27 = arith.constant dense<0xFF800000> : vector<1xf32>
    %141 = vector.multi_reduction <maximumf>, %140, %cst_27 [1, 2] : vector<1x32x1xf32> to vector<1xf32>
    %142 = vector.shape_cast %141 : vector<1xf32> to vector<1x1x1xf32>
    %143 = vector.extract %142[0, 0, 0] : f32 from vector<1x1x1xf32>
    %144 = vector.broadcast %143 : f32 to vector<32x1xf32>
    %145 = arith.cmpf oeq, %139, %144 : vector<32x1xf32>
    %c32_i32_28 = arith.constant 32 : i32
    %146 = vector.broadcast %c32_i32_28 : i32 to vector<32x1xi32>
    %147 = arith.select %145, %2, %146 : vector<32x1xi1>, vector<32x1xi32>
    %148 = vector.shape_cast %147 : vector<32x1xi32> to vector<1x32x1xi32>
    %cst_29 = arith.constant dense<2147483647> : vector<1xi32>
    %149 = vector.multi_reduction <minsi>, %148, %cst_29 [1, 2] : vector<1x32x1xi32> to vector<1xi32>
    %150 = vector.shape_cast %149 : vector<1xi32> to vector<1x1x1xi32>
    %151 = vector.extract %150[0, 0, 0] : i32 from vector<1x1x1xi32>
    %152 = vector.broadcast %151 : i32 to vector<32x1xi32>
    %153 = arith.cmpi eq, %2, %152 : vector<32x1xi32>
    %cst_30 = arith.constant 0.000000e+00 : f32
    %154 = vector.shape_cast %153 : vector<32x1xi1> to vector<32x1xi1>
    %155 = vector.broadcast %154 : vector<32x1xi1> to vector<32x128xi1>
    %156 = vector.broadcast %cst_30 : f32 to vector<32x128xf32>
    %157 = arith.select %155, %128, %156 : vector<32x128xi1>, vector<32x128xf32>
    %cst_31 = arith.constant dense<0.000000e+00> : vector<128xf32>
    %158 = vector.multi_reduction <add>, %157, %cst_31 [0] : vector<32x128xf32> to vector<128xf32>
    %159 = vector.shape_cast %158 : vector<128xf32> to vector<1x128xf32>
    %160 = vector.extract_strided_slice %128 {offsets = [2, 0], sizes = [1, 128], strides = [1, 1]} : vector<32x128xf32> to vector<1x128xf32>
    %161 = vector.extract_strided_slice %159 {offsets = [0, 2], sizes = [1, 1], strides = [1, 1]} : vector<1x128xf32> to vector<1x1xf32>
    %162 = vector.shape_cast %161 : vector<1x1xf32> to vector<1x1x1xf32>
    %cst_32 = arith.constant dense<0.000000e+00> : vector<1xf32>
    %163 = vector.multi_reduction <add>, %162, %cst_32 [1, 2] : vector<1x1x1xf32> to vector<1xf32>
    %164 = vector.shape_cast %163 : vector<1xf32> to vector<1x1x1xf32>
    %165 = vector.extract %164[0, 0, 0] : f32 from vector<1x1x1xf32>
    %cst_33 = arith.constant 1.000000e+00 : f32
    %166 = arith.divf %cst_33, %165 : f32
    %167 = vector.broadcast %166 : f32 to vector<1x128xf32>
    %168 = arith.mulf %159, %167 : vector<1x128xf32>
    %169 = vector.extract_strided_slice %129 {offsets = [2, 0], sizes = [1, 1], strides = [1, 1]} : vector<32x1xf32> to vector<1x1xf32>
    %170 = vector.shape_cast %169 : vector<1x1xf32> to vector<1x1x1xf32>
    %cst_34 = arith.constant dense<0.000000e+00> : vector<1xf32>
    %171 = vector.multi_reduction <add>, %170, %cst_34 [1, 2] : vector<1x1x1xf32> to vector<1xf32>
    %172 = vector.shape_cast %171 : vector<1xf32> to vector<1x1x1xf32>
    %173 = vector.extract %172[0, 0, 0] : f32 from vector<1x1x1xf32>
    %174 = vector.broadcast %173 : f32 to vector<32x1xf32>
    %175 = arith.select %153, %174, %129 : vector<32x1xi1>, vector<32x1xf32>
    %cst_35 = arith.constant 0.000000e+00 : f32
    %176 = vector.broadcast %cst_35 : f32 to vector<32x1xf32>
    %177 = arith.select %131, %176, %175 : vector<32x1xi1>, vector<32x1xf32>
    %178 = vector.shape_cast %153 : vector<32x1xi1> to vector<32x1xi1>
    %179 = vector.broadcast %178 : vector<32x1xi1> to vector<32x128xi1>
    %180 = vector.shape_cast %160 : vector<1x128xf32> to vector<1x128xf32>
    %181 = vector.broadcast %180 : vector<1x128xf32> to vector<32x128xf32>
    %182 = arith.select %179, %181, %128 : vector<32x128xi1>, vector<32x128xf32>
    %183 = vector.broadcast %177 : vector<32x1xf32> to vector<32x128xf32>
    %184 = vector.broadcast %168 : vector<1x128xf32> to vector<32x128xf32>
    %185 = arith.mulf %183, %184 : vector<32x128xf32>
    %186 = arith.subf %182, %185 : vector<32x128xf32>
    %187 = vector.shape_cast %131 : vector<32x1xi1> to vector<32x1xi1>
    %188 = vector.broadcast %187 : vector<32x1xi1> to vector<32x128xi1>
    %189 = vector.shape_cast %168 : vector<1x128xf32> to vector<1x128xf32>
    %190 = vector.broadcast %189 : vector<1x128xf32> to vector<32x128xf32>
    %191 = arith.select %188, %190, %186 : vector<32x128xi1>, vector<32x128xf32>
    %192 = vector.extract_strided_slice %191 {offsets = [0, 3], sizes = [32, 1], strides = [1, 1]} : vector<32x128xf32> to vector<32x1xf32>
    %c3_i32 = arith.constant 3 : i32
    %193 = vector.broadcast %c3_i32 : i32 to vector<32x1xi32>
    %194 = arith.cmpi eq, %2, %193 : vector<32x1xi32>
    %c3_i32_36 = arith.constant 3 : i32
    %195 = vector.broadcast %c3_i32_36 : i32 to vector<32x1xi32>
    %196 = arith.cmpi sge, %2, %195 : vector<32x1xi32>
    %c32_i32_37 = arith.constant 32 : i32
    %197 = vector.broadcast %c32_i32_37 : i32 to vector<32x1xi32>
    %198 = arith.cmpi slt, %2, %197 : vector<32x1xi32>
    %199 = arith.andi %196, %198 : vector<32x1xi1>
    %200 = math.absf %192 : vector<32x1xf32>
    %cst_38 = arith.constant -1.000000e+00 : f32
    %201 = vector.broadcast %cst_38 : f32 to vector<32x1xf32>
    %202 = arith.select %199, %200, %201 : vector<32x1xi1>, vector<32x1xf32>
    %203 = vector.shape_cast %202 : vector<32x1xf32> to vector<1x32x1xf32>
    %cst_39 = arith.constant dense<0xFF800000> : vector<1xf32>
    %204 = vector.multi_reduction <maximumf>, %203, %cst_39 [1, 2] : vector<1x32x1xf32> to vector<1xf32>
    %205 = vector.shape_cast %204 : vector<1xf32> to vector<1x1x1xf32>
    %206 = vector.extract %205[0, 0, 0] : f32 from vector<1x1x1xf32>
    %207 = vector.broadcast %206 : f32 to vector<32x1xf32>
    %208 = arith.cmpf oeq, %202, %207 : vector<32x1xf32>
    %c32_i32_40 = arith.constant 32 : i32
    %209 = vector.broadcast %c32_i32_40 : i32 to vector<32x1xi32>
    %210 = arith.select %208, %2, %209 : vector<32x1xi1>, vector<32x1xi32>
    %211 = vector.shape_cast %210 : vector<32x1xi32> to vector<1x32x1xi32>
    %cst_41 = arith.constant dense<2147483647> : vector<1xi32>
    %212 = vector.multi_reduction <minsi>, %211, %cst_41 [1, 2] : vector<1x32x1xi32> to vector<1xi32>
    %213 = vector.shape_cast %212 : vector<1xi32> to vector<1x1x1xi32>
    %214 = vector.extract %213[0, 0, 0] : i32 from vector<1x1x1xi32>
    %215 = vector.broadcast %214 : i32 to vector<32x1xi32>
    %216 = arith.cmpi eq, %2, %215 : vector<32x1xi32>
    %cst_42 = arith.constant 0.000000e+00 : f32
    %217 = vector.shape_cast %216 : vector<32x1xi1> to vector<32x1xi1>
    %218 = vector.broadcast %217 : vector<32x1xi1> to vector<32x128xi1>
    %219 = vector.broadcast %cst_42 : f32 to vector<32x128xf32>
    %220 = arith.select %218, %191, %219 : vector<32x128xi1>, vector<32x128xf32>
    %cst_43 = arith.constant dense<0.000000e+00> : vector<128xf32>
    %221 = vector.multi_reduction <add>, %220, %cst_43 [0] : vector<32x128xf32> to vector<128xf32>
    %222 = vector.shape_cast %221 : vector<128xf32> to vector<1x128xf32>
    %223 = vector.extract_strided_slice %191 {offsets = [3, 0], sizes = [1, 128], strides = [1, 1]} : vector<32x128xf32> to vector<1x128xf32>
    %224 = vector.extract_strided_slice %222 {offsets = [0, 3], sizes = [1, 1], strides = [1, 1]} : vector<1x128xf32> to vector<1x1xf32>
    %225 = vector.shape_cast %224 : vector<1x1xf32> to vector<1x1x1xf32>
    %cst_44 = arith.constant dense<0.000000e+00> : vector<1xf32>
    %226 = vector.multi_reduction <add>, %225, %cst_44 [1, 2] : vector<1x1x1xf32> to vector<1xf32>
    %227 = vector.shape_cast %226 : vector<1xf32> to vector<1x1x1xf32>
    %228 = vector.extract %227[0, 0, 0] : f32 from vector<1x1x1xf32>
    %cst_45 = arith.constant 1.000000e+00 : f32
    %229 = arith.divf %cst_45, %228 : f32
    %230 = vector.broadcast %229 : f32 to vector<1x128xf32>
    %231 = arith.mulf %222, %230 : vector<1x128xf32>
    %232 = vector.extract_strided_slice %192 {offsets = [3, 0], sizes = [1, 1], strides = [1, 1]} : vector<32x1xf32> to vector<1x1xf32>
    %233 = vector.shape_cast %232 : vector<1x1xf32> to vector<1x1x1xf32>
    %cst_46 = arith.constant dense<0.000000e+00> : vector<1xf32>
    %234 = vector.multi_reduction <add>, %233, %cst_46 [1, 2] : vector<1x1x1xf32> to vector<1xf32>
    %235 = vector.shape_cast %234 : vector<1xf32> to vector<1x1x1xf32>
    %236 = vector.extract %235[0, 0, 0] : f32 from vector<1x1x1xf32>
    %237 = vector.broadcast %236 : f32 to vector<32x1xf32>
    %238 = arith.select %216, %237, %192 : vector<32x1xi1>, vector<32x1xf32>
    %cst_47 = arith.constant 0.000000e+00 : f32
    %239 = vector.broadcast %cst_47 : f32 to vector<32x1xf32>
    %240 = arith.select %194, %239, %238 : vector<32x1xi1>, vector<32x1xf32>
    %241 = vector.shape_cast %216 : vector<32x1xi1> to vector<32x1xi1>
    %242 = vector.broadcast %241 : vector<32x1xi1> to vector<32x128xi1>
    %243 = vector.shape_cast %223 : vector<1x128xf32> to vector<1x128xf32>
    %244 = vector.broadcast %243 : vector<1x128xf32> to vector<32x128xf32>
    %245 = arith.select %242, %244, %191 : vector<32x128xi1>, vector<32x128xf32>
    %246 = vector.broadcast %240 : vector<32x1xf32> to vector<32x128xf32>
    %247 = vector.broadcast %231 : vector<1x128xf32> to vector<32x128xf32>
    %248 = arith.mulf %246, %247 : vector<32x128xf32>
    %249 = arith.subf %245, %248 : vector<32x128xf32>
    %250 = vector.shape_cast %194 : vector<32x1xi1> to vector<32x1xi1>
    %251 = vector.broadcast %250 : vector<32x1xi1> to vector<32x128xi1>
    %252 = vector.shape_cast %231 : vector<1x128xf32> to vector<1x128xf32>
    %253 = vector.broadcast %252 : vector<1x128xf32> to vector<32x128xf32>
    %254 = arith.select %251, %253, %249 : vector<32x128xi1>, vector<32x128xf32>
    %255 = vector.extract_strided_slice %254 {offsets = [0, 4], sizes = [32, 1], strides = [1, 1]} : vector<32x128xf32> to vector<32x1xf32>
    %c4_i32 = arith.constant 4 : i32
    %256 = vector.broadcast %c4_i32 : i32 to vector<32x1xi32>
    %257 = arith.cmpi eq, %2, %256 : vector<32x1xi32>
    %c4_i32_48 = arith.constant 4 : i32
    %258 = vector.broadcast %c4_i32_48 : i32 to vector<32x1xi32>
    %259 = arith.cmpi sge, %2, %258 : vector<32x1xi32>
    %c32_i32_49 = arith.constant 32 : i32
    %260 = vector.broadcast %c32_i32_49 : i32 to vector<32x1xi32>
    %261 = arith.cmpi slt, %2, %260 : vector<32x1xi32>
    %262 = arith.andi %259, %261 : vector<32x1xi1>
    %263 = math.absf %255 : vector<32x1xf32>
    %cst_50 = arith.constant -1.000000e+00 : f32
    %264 = vector.broadcast %cst_50 : f32 to vector<32x1xf32>
    %265 = arith.select %262, %263, %264 : vector<32x1xi1>, vector<32x1xf32>
    %266 = vector.shape_cast %265 : vector<32x1xf32> to vector<1x32x1xf32>
    %cst_51 = arith.constant dense<0xFF800000> : vector<1xf32>
    %267 = vector.multi_reduction <maximumf>, %266, %cst_51 [1, 2] : vector<1x32x1xf32> to vector<1xf32>
    %268 = vector.shape_cast %267 : vector<1xf32> to vector<1x1x1xf32>
    %269 = vector.extract %268[0, 0, 0] : f32 from vector<1x1x1xf32>
    %270 = vector.broadcast %269 : f32 to vector<32x1xf32>
    %271 = arith.cmpf oeq, %265, %270 : vector<32x1xf32>
    %c32_i32_52 = arith.constant 32 : i32
    %272 = vector.broadcast %c32_i32_52 : i32 to vector<32x1xi32>
    %273 = arith.select %271, %2, %272 : vector<32x1xi1>, vector<32x1xi32>
    %274 = vector.shape_cast %273 : vector<32x1xi32> to vector<1x32x1xi32>
    %cst_53 = arith.constant dense<2147483647> : vector<1xi32>
    %275 = vector.multi_reduction <minsi>, %274, %cst_53 [1, 2] : vector<1x32x1xi32> to vector<1xi32>
    %276 = vector.shape_cast %275 : vector<1xi32> to vector<1x1x1xi32>
    %277 = vector.extract %276[0, 0, 0] : i32 from vector<1x1x1xi32>
    %278 = vector.broadcast %277 : i32 to vector<32x1xi32>
    %279 = arith.cmpi eq, %2, %278 : vector<32x1xi32>
    %cst_54 = arith.constant 0.000000e+00 : f32
    %280 = vector.shape_cast %279 : vector<32x1xi1> to vector<32x1xi1>
    %281 = vector.broadcast %280 : vector<32x1xi1> to vector<32x128xi1>
    %282 = vector.broadcast %cst_54 : f32 to vector<32x128xf32>
    %283 = arith.select %281, %254, %282 : vector<32x128xi1>, vector<32x128xf32>
    %cst_55 = arith.constant dense<0.000000e+00> : vector<128xf32>
    %284 = vector.multi_reduction <add>, %283, %cst_55 [0] : vector<32x128xf32> to vector<128xf32>
    %285 = vector.shape_cast %284 : vector<128xf32> to vector<1x128xf32>
    %286 = vector.extract_strided_slice %254 {offsets = [4, 0], sizes = [1, 128], strides = [1, 1]} : vector<32x128xf32> to vector<1x128xf32>
    %287 = vector.extract_strided_slice %285 {offsets = [0, 4], sizes = [1, 1], strides = [1, 1]} : vector<1x128xf32> to vector<1x1xf32>
    %288 = vector.shape_cast %287 : vector<1x1xf32> to vector<1x1x1xf32>
    %cst_56 = arith.constant dense<0.000000e+00> : vector<1xf32>
    %289 = vector.multi_reduction <add>, %288, %cst_56 [1, 2] : vector<1x1x1xf32> to vector<1xf32>
    %290 = vector.shape_cast %289 : vector<1xf32> to vector<1x1x1xf32>
    %291 = vector.extract %290[0, 0, 0] : f32 from vector<1x1x1xf32>
    %cst_57 = arith.constant 1.000000e+00 : f32
    %292 = arith.divf %cst_57, %291 : f32
    %293 = vector.broadcast %292 : f32 to vector<1x128xf32>
    %294 = arith.mulf %285, %293 : vector<1x128xf32>
    %295 = vector.extract_strided_slice %255 {offsets = [4, 0], sizes = [1, 1], strides = [1, 1]} : vector<32x1xf32> to vector<1x1xf32>
    %296 = vector.shape_cast %295 : vector<1x1xf32> to vector<1x1x1xf32>
    %cst_58 = arith.constant dense<0.000000e+00> : vector<1xf32>
    %297 = vector.multi_reduction <add>, %296, %cst_58 [1, 2] : vector<1x1x1xf32> to vector<1xf32>
    %298 = vector.shape_cast %297 : vector<1xf32> to vector<1x1x1xf32>
    %299 = vector.extract %298[0, 0, 0] : f32 from vector<1x1x1xf32>
    %300 = vector.broadcast %299 : f32 to vector<32x1xf32>
    %301 = arith.select %279, %300, %255 : vector<32x1xi1>, vector<32x1xf32>
    %cst_59 = arith.constant 0.000000e+00 : f32
    %302 = vector.broadcast %cst_59 : f32 to vector<32x1xf32>
    %303 = arith.select %257, %302, %301 : vector<32x1xi1>, vector<32x1xf32>
    %304 = vector.shape_cast %279 : vector<32x1xi1> to vector<32x1xi1>
    %305 = vector.broadcast %304 : vector<32x1xi1> to vector<32x128xi1>
    %306 = vector.shape_cast %286 : vector<1x128xf32> to vector<1x128xf32>
    %307 = vector.broadcast %306 : vector<1x128xf32> to vector<32x128xf32>
    %308 = arith.select %305, %307, %254 : vector<32x128xi1>, vector<32x128xf32>
    %309 = vector.broadcast %303 : vector<32x1xf32> to vector<32x128xf32>
    %310 = vector.broadcast %294 : vector<1x128xf32> to vector<32x128xf32>
    %311 = arith.mulf %309, %310 : vector<32x128xf32>
    %312 = arith.subf %308, %311 : vector<32x128xf32>
    %313 = vector.shape_cast %257 : vector<32x1xi1> to vector<32x1xi1>
    %314 = vector.broadcast %313 : vector<32x1xi1> to vector<32x128xi1>
    %315 = vector.shape_cast %294 : vector<1x128xf32> to vector<1x128xf32>
    %316 = vector.broadcast %315 : vector<1x128xf32> to vector<32x128xf32>
    %317 = arith.select %314, %316, %312 : vector<32x128xi1>, vector<32x128xf32>
    %318 = vector.extract_strided_slice %317 {offsets = [0, 5], sizes = [32, 1], strides = [1, 1]} : vector<32x128xf32> to vector<32x1xf32>
    %c5_i32 = arith.constant 5 : i32
    %319 = vector.broadcast %c5_i32 : i32 to vector<32x1xi32>
    %320 = arith.cmpi eq, %2, %319 : vector<32x1xi32>
    %c5_i32_60 = arith.constant 5 : i32
    %321 = vector.broadcast %c5_i32_60 : i32 to vector<32x1xi32>
    %322 = arith.cmpi sge, %2, %321 : vector<32x1xi32>
    %c32_i32_61 = arith.constant 32 : i32
    %323 = vector.broadcast %c32_i32_61 : i32 to vector<32x1xi32>
    %324 = arith.cmpi slt, %2, %323 : vector<32x1xi32>
    %325 = arith.andi %322, %324 : vector<32x1xi1>
    %326 = math.absf %318 : vector<32x1xf32>
    %cst_62 = arith.constant -1.000000e+00 : f32
    %327 = vector.broadcast %cst_62 : f32 to vector<32x1xf32>
    %328 = arith.select %325, %326, %327 : vector<32x1xi1>, vector<32x1xf32>
    %329 = vector.shape_cast %328 : vector<32x1xf32> to vector<1x32x1xf32>
    %cst_63 = arith.constant dense<0xFF800000> : vector<1xf32>
    %330 = vector.multi_reduction <maximumf>, %329, %cst_63 [1, 2] : vector<1x32x1xf32> to vector<1xf32>
    %331 = vector.shape_cast %330 : vector<1xf32> to vector<1x1x1xf32>
    %332 = vector.extract %331[0, 0, 0] : f32 from vector<1x1x1xf32>
    %333 = vector.broadcast %332 : f32 to vector<32x1xf32>
    %334 = arith.cmpf oeq, %328, %333 : vector<32x1xf32>
    %c32_i32_64 = arith.constant 32 : i32
    %335 = vector.broadcast %c32_i32_64 : i32 to vector<32x1xi32>
    %336 = arith.select %334, %2, %335 : vector<32x1xi1>, vector<32x1xi32>
    %337 = vector.shape_cast %336 : vector<32x1xi32> to vector<1x32x1xi32>
    %cst_65 = arith.constant dense<2147483647> : vector<1xi32>
    %338 = vector.multi_reduction <minsi>, %337, %cst_65 [1, 2] : vector<1x32x1xi32> to vector<1xi32>
    %339 = vector.shape_cast %338 : vector<1xi32> to vector<1x1x1xi32>
    %340 = vector.extract %339[0, 0, 0] : i32 from vector<1x1x1xi32>
    %341 = vector.broadcast %340 : i32 to vector<32x1xi32>
    %342 = arith.cmpi eq, %2, %341 : vector<32x1xi32>
    %cst_66 = arith.constant 0.000000e+00 : f32
    %343 = vector.shape_cast %342 : vector<32x1xi1> to vector<32x1xi1>
    %344 = vector.broadcast %343 : vector<32x1xi1> to vector<32x128xi1>
    %345 = vector.broadcast %cst_66 : f32 to vector<32x128xf32>
    %346 = arith.select %344, %317, %345 : vector<32x128xi1>, vector<32x128xf32>
    %cst_67 = arith.constant dense<0.000000e+00> : vector<128xf32>
    %347 = vector.multi_reduction <add>, %346, %cst_67 [0] : vector<32x128xf32> to vector<128xf32>
    %348 = vector.shape_cast %347 : vector<128xf32> to vector<1x128xf32>
    %349 = vector.extract_strided_slice %317 {offsets = [5, 0], sizes = [1, 128], strides = [1, 1]} : vector<32x128xf32> to vector<1x128xf32>
    %350 = vector.extract_strided_slice %348 {offsets = [0, 5], sizes = [1, 1], strides = [1, 1]} : vector<1x128xf32> to vector<1x1xf32>
    %351 = vector.shape_cast %350 : vector<1x1xf32> to vector<1x1x1xf32>
    %cst_68 = arith.constant dense<0.000000e+00> : vector<1xf32>
    %352 = vector.multi_reduction <add>, %351, %cst_68 [1, 2] : vector<1x1x1xf32> to vector<1xf32>
    %353 = vector.shape_cast %352 : vector<1xf32> to vector<1x1x1xf32>
    %354 = vector.extract %353[0, 0, 0] : f32 from vector<1x1x1xf32>
    %cst_69 = arith.constant 1.000000e+00 : f32
    %355 = arith.divf %cst_69, %354 : f32
    %356 = vector.broadcast %355 : f32 to vector<1x128xf32>
    %357 = arith.mulf %348, %356 : vector<1x128xf32>
    %358 = vector.extract_strided_slice %318 {offsets = [5, 0], sizes = [1, 1], strides = [1, 1]} : vector<32x1xf32> to vector<1x1xf32>
    %359 = vector.shape_cast %358 : vector<1x1xf32> to vector<1x1x1xf32>
    %cst_70 = arith.constant dense<0.000000e+00> : vector<1xf32>
    %360 = vector.multi_reduction <add>, %359, %cst_70 [1, 2] : vector<1x1x1xf32> to vector<1xf32>
    %361 = vector.shape_cast %360 : vector<1xf32> to vector<1x1x1xf32>
    %362 = vector.extract %361[0, 0, 0] : f32 from vector<1x1x1xf32>
    %363 = vector.broadcast %362 : f32 to vector<32x1xf32>
    %364 = arith.select %342, %363, %318 : vector<32x1xi1>, vector<32x1xf32>
    %cst_71 = arith.constant 0.000000e+00 : f32
    %365 = vector.broadcast %cst_71 : f32 to vector<32x1xf32>
    %366 = arith.select %320, %365, %364 : vector<32x1xi1>, vector<32x1xf32>
    %367 = vector.shape_cast %342 : vector<32x1xi1> to vector<32x1xi1>
    %368 = vector.broadcast %367 : vector<32x1xi1> to vector<32x128xi1>
    %369 = vector.shape_cast %349 : vector<1x128xf32> to vector<1x128xf32>
    %370 = vector.broadcast %369 : vector<1x128xf32> to vector<32x128xf32>
    %371 = arith.select %368, %370, %317 : vector<32x128xi1>, vector<32x128xf32>
    %372 = vector.broadcast %366 : vector<32x1xf32> to vector<32x128xf32>
    %373 = vector.broadcast %357 : vector<1x128xf32> to vector<32x128xf32>
    %374 = arith.mulf %372, %373 : vector<32x128xf32>
    %375 = arith.subf %371, %374 : vector<32x128xf32>
    %376 = vector.shape_cast %320 : vector<32x1xi1> to vector<32x1xi1>
    %377 = vector.broadcast %376 : vector<32x1xi1> to vector<32x128xi1>
    %378 = vector.shape_cast %357 : vector<1x128xf32> to vector<1x128xf32>
    %379 = vector.broadcast %378 : vector<1x128xf32> to vector<32x128xf32>
    %380 = arith.select %377, %379, %375 : vector<32x128xi1>, vector<32x128xf32>
    %381 = vector.extract_strided_slice %380 {offsets = [0, 6], sizes = [32, 1], strides = [1, 1]} : vector<32x128xf32> to vector<32x1xf32>
    %c6_i32 = arith.constant 6 : i32
    %382 = vector.broadcast %c6_i32 : i32 to vector<32x1xi32>
    %383 = arith.cmpi eq, %2, %382 : vector<32x1xi32>
    %c6_i32_72 = arith.constant 6 : i32
    %384 = vector.broadcast %c6_i32_72 : i32 to vector<32x1xi32>
    %385 = arith.cmpi sge, %2, %384 : vector<32x1xi32>
    %c32_i32_73 = arith.constant 32 : i32
    %386 = vector.broadcast %c32_i32_73 : i32 to vector<32x1xi32>
    %387 = arith.cmpi slt, %2, %386 : vector<32x1xi32>
    %388 = arith.andi %385, %387 : vector<32x1xi1>
    %389 = math.absf %381 : vector<32x1xf32>
    %cst_74 = arith.constant -1.000000e+00 : f32
    %390 = vector.broadcast %cst_74 : f32 to vector<32x1xf32>
    %391 = arith.select %388, %389, %390 : vector<32x1xi1>, vector<32x1xf32>
    %392 = vector.shape_cast %391 : vector<32x1xf32> to vector<1x32x1xf32>
    %cst_75 = arith.constant dense<0xFF800000> : vector<1xf32>
    %393 = vector.multi_reduction <maximumf>, %392, %cst_75 [1, 2] : vector<1x32x1xf32> to vector<1xf32>
    %394 = vector.shape_cast %393 : vector<1xf32> to vector<1x1x1xf32>
    %395 = vector.extract %394[0, 0, 0] : f32 from vector<1x1x1xf32>
    %396 = vector.broadcast %395 : f32 to vector<32x1xf32>
    %397 = arith.cmpf oeq, %391, %396 : vector<32x1xf32>
    %c32_i32_76 = arith.constant 32 : i32
    %398 = vector.broadcast %c32_i32_76 : i32 to vector<32x1xi32>
    %399 = arith.select %397, %2, %398 : vector<32x1xi1>, vector<32x1xi32>
    %400 = vector.shape_cast %399 : vector<32x1xi32> to vector<1x32x1xi32>
    %cst_77 = arith.constant dense<2147483647> : vector<1xi32>
    %401 = vector.multi_reduction <minsi>, %400, %cst_77 [1, 2] : vector<1x32x1xi32> to vector<1xi32>
    %402 = vector.shape_cast %401 : vector<1xi32> to vector<1x1x1xi32>
    %403 = vector.extract %402[0, 0, 0] : i32 from vector<1x1x1xi32>
    %404 = vector.broadcast %403 : i32 to vector<32x1xi32>
    %405 = arith.cmpi eq, %2, %404 : vector<32x1xi32>
    %cst_78 = arith.constant 0.000000e+00 : f32
    %406 = vector.shape_cast %405 : vector<32x1xi1> to vector<32x1xi1>
    %407 = vector.broadcast %406 : vector<32x1xi1> to vector<32x128xi1>
    %408 = vector.broadcast %cst_78 : f32 to vector<32x128xf32>
    %409 = arith.select %407, %380, %408 : vector<32x128xi1>, vector<32x128xf32>
    %cst_79 = arith.constant dense<0.000000e+00> : vector<128xf32>
    %410 = vector.multi_reduction <add>, %409, %cst_79 [0] : vector<32x128xf32> to vector<128xf32>
    %411 = vector.shape_cast %410 : vector<128xf32> to vector<1x128xf32>
    %412 = vector.extract_strided_slice %380 {offsets = [6, 0], sizes = [1, 128], strides = [1, 1]} : vector<32x128xf32> to vector<1x128xf32>
    %413 = vector.extract_strided_slice %411 {offsets = [0, 6], sizes = [1, 1], strides = [1, 1]} : vector<1x128xf32> to vector<1x1xf32>
    %414 = vector.shape_cast %413 : vector<1x1xf32> to vector<1x1x1xf32>
    %cst_80 = arith.constant dense<0.000000e+00> : vector<1xf32>
    %415 = vector.multi_reduction <add>, %414, %cst_80 [1, 2] : vector<1x1x1xf32> to vector<1xf32>
    %416 = vector.shape_cast %415 : vector<1xf32> to vector<1x1x1xf32>
    %417 = vector.extract %416[0, 0, 0] : f32 from vector<1x1x1xf32>
    %cst_81 = arith.constant 1.000000e+00 : f32
    %418 = arith.divf %cst_81, %417 : f32
    %419 = vector.broadcast %418 : f32 to vector<1x128xf32>
    %420 = arith.mulf %411, %419 : vector<1x128xf32>
    %421 = vector.extract_strided_slice %381 {offsets = [6, 0], sizes = [1, 1], strides = [1, 1]} : vector<32x1xf32> to vector<1x1xf32>
    %422 = vector.shape_cast %421 : vector<1x1xf32> to vector<1x1x1xf32>
    %cst_82 = arith.constant dense<0.000000e+00> : vector<1xf32>
    %423 = vector.multi_reduction <add>, %422, %cst_82 [1, 2] : vector<1x1x1xf32> to vector<1xf32>
    %424 = vector.shape_cast %423 : vector<1xf32> to vector<1x1x1xf32>
    %425 = vector.extract %424[0, 0, 0] : f32 from vector<1x1x1xf32>
    %426 = vector.broadcast %425 : f32 to vector<32x1xf32>
    %427 = arith.select %405, %426, %381 : vector<32x1xi1>, vector<32x1xf32>
    %cst_83 = arith.constant 0.000000e+00 : f32
    %428 = vector.broadcast %cst_83 : f32 to vector<32x1xf32>
    %429 = arith.select %383, %428, %427 : vector<32x1xi1>, vector<32x1xf32>
    %430 = vector.shape_cast %405 : vector<32x1xi1> to vector<32x1xi1>
    %431 = vector.broadcast %430 : vector<32x1xi1> to vector<32x128xi1>
    %432 = vector.shape_cast %412 : vector<1x128xf32> to vector<1x128xf32>
    %433 = vector.broadcast %432 : vector<1x128xf32> to vector<32x128xf32>
    %434 = arith.select %431, %433, %380 : vector<32x128xi1>, vector<32x128xf32>
    %435 = vector.broadcast %429 : vector<32x1xf32> to vector<32x128xf32>
    %436 = vector.broadcast %420 : vector<1x128xf32> to vector<32x128xf32>
    %437 = arith.mulf %435, %436 : vector<32x128xf32>
    %438 = arith.subf %434, %437 : vector<32x128xf32>
    %439 = vector.shape_cast %383 : vector<32x1xi1> to vector<32x1xi1>
    %440 = vector.broadcast %439 : vector<32x1xi1> to vector<32x128xi1>
    %441 = vector.shape_cast %420 : vector<1x128xf32> to vector<1x128xf32>
    %442 = vector.broadcast %441 : vector<1x128xf32> to vector<32x128xf32>
    %443 = arith.select %440, %442, %438 : vector<32x128xi1>, vector<32x128xf32>
    %444 = vector.extract_strided_slice %443 {offsets = [0, 7], sizes = [32, 1], strides = [1, 1]} : vector<32x128xf32> to vector<32x1xf32>
    %c7_i32 = arith.constant 7 : i32
    %445 = vector.broadcast %c7_i32 : i32 to vector<32x1xi32>
    %446 = arith.cmpi eq, %2, %445 : vector<32x1xi32>
    %c7_i32_84 = arith.constant 7 : i32
    %447 = vector.broadcast %c7_i32_84 : i32 to vector<32x1xi32>
    %448 = arith.cmpi sge, %2, %447 : vector<32x1xi32>
    %c32_i32_85 = arith.constant 32 : i32
    %449 = vector.broadcast %c32_i32_85 : i32 to vector<32x1xi32>
    %450 = arith.cmpi slt, %2, %449 : vector<32x1xi32>
    %451 = arith.andi %448, %450 : vector<32x1xi1>
    %452 = math.absf %444 : vector<32x1xf32>
    %cst_86 = arith.constant -1.000000e+00 : f32
    %453 = vector.broadcast %cst_86 : f32 to vector<32x1xf32>
    %454 = arith.select %451, %452, %453 : vector<32x1xi1>, vector<32x1xf32>
    %455 = vector.shape_cast %454 : vector<32x1xf32> to vector<1x32x1xf32>
    %cst_87 = arith.constant dense<0xFF800000> : vector<1xf32>
    %456 = vector.multi_reduction <maximumf>, %455, %cst_87 [1, 2] : vector<1x32x1xf32> to vector<1xf32>
    %457 = vector.shape_cast %456 : vector<1xf32> to vector<1x1x1xf32>
    %458 = vector.extract %457[0, 0, 0] : f32 from vector<1x1x1xf32>
    %459 = vector.broadcast %458 : f32 to vector<32x1xf32>
    %460 = arith.cmpf oeq, %454, %459 : vector<32x1xf32>
    %c32_i32_88 = arith.constant 32 : i32
    %461 = vector.broadcast %c32_i32_88 : i32 to vector<32x1xi32>
    %462 = arith.select %460, %2, %461 : vector<32x1xi1>, vector<32x1xi32>
    %463 = vector.shape_cast %462 : vector<32x1xi32> to vector<1x32x1xi32>
    %cst_89 = arith.constant dense<2147483647> : vector<1xi32>
    %464 = vector.multi_reduction <minsi>, %463, %cst_89 [1, 2] : vector<1x32x1xi32> to vector<1xi32>
    %465 = vector.shape_cast %464 : vector<1xi32> to vector<1x1x1xi32>
    %466 = vector.extract %465[0, 0, 0] : i32 from vector<1x1x1xi32>
    %467 = vector.broadcast %466 : i32 to vector<32x1xi32>
    %468 = arith.cmpi eq, %2, %467 : vector<32x1xi32>
    %cst_90 = arith.constant 0.000000e+00 : f32
    %469 = vector.shape_cast %468 : vector<32x1xi1> to vector<32x1xi1>
    %470 = vector.broadcast %469 : vector<32x1xi1> to vector<32x128xi1>
    %471 = vector.broadcast %cst_90 : f32 to vector<32x128xf32>
    %472 = arith.select %470, %443, %471 : vector<32x128xi1>, vector<32x128xf32>
    %cst_91 = arith.constant dense<0.000000e+00> : vector<128xf32>
    %473 = vector.multi_reduction <add>, %472, %cst_91 [0] : vector<32x128xf32> to vector<128xf32>
    %474 = vector.shape_cast %473 : vector<128xf32> to vector<1x128xf32>
    %475 = vector.extract_strided_slice %443 {offsets = [7, 0], sizes = [1, 128], strides = [1, 1]} : vector<32x128xf32> to vector<1x128xf32>
    %476 = vector.extract_strided_slice %474 {offsets = [0, 7], sizes = [1, 1], strides = [1, 1]} : vector<1x128xf32> to vector<1x1xf32>
    %477 = vector.shape_cast %476 : vector<1x1xf32> to vector<1x1x1xf32>
    %cst_92 = arith.constant dense<0.000000e+00> : vector<1xf32>
    %478 = vector.multi_reduction <add>, %477, %cst_92 [1, 2] : vector<1x1x1xf32> to vector<1xf32>
    %479 = vector.shape_cast %478 : vector<1xf32> to vector<1x1x1xf32>
    %480 = vector.extract %479[0, 0, 0] : f32 from vector<1x1x1xf32>
    %cst_93 = arith.constant 1.000000e+00 : f32
    %481 = arith.divf %cst_93, %480 : f32
    %482 = vector.broadcast %481 : f32 to vector<1x128xf32>
    %483 = arith.mulf %474, %482 : vector<1x128xf32>
    %484 = vector.extract_strided_slice %444 {offsets = [7, 0], sizes = [1, 1], strides = [1, 1]} : vector<32x1xf32> to vector<1x1xf32>
    %485 = vector.shape_cast %484 : vector<1x1xf32> to vector<1x1x1xf32>
    %cst_94 = arith.constant dense<0.000000e+00> : vector<1xf32>
    %486 = vector.multi_reduction <add>, %485, %cst_94 [1, 2] : vector<1x1x1xf32> to vector<1xf32>
    %487 = vector.shape_cast %486 : vector<1xf32> to vector<1x1x1xf32>
    %488 = vector.extract %487[0, 0, 0] : f32 from vector<1x1x1xf32>
    %489 = vector.broadcast %488 : f32 to vector<32x1xf32>
    %490 = arith.select %468, %489, %444 : vector<32x1xi1>, vector<32x1xf32>
    %cst_95 = arith.constant 0.000000e+00 : f32
    %491 = vector.broadcast %cst_95 : f32 to vector<32x1xf32>
    %492 = arith.select %446, %491, %490 : vector<32x1xi1>, vector<32x1xf32>
    %493 = vector.shape_cast %468 : vector<32x1xi1> to vector<32x1xi1>
    %494 = vector.broadcast %493 : vector<32x1xi1> to vector<32x128xi1>
    %495 = vector.shape_cast %475 : vector<1x128xf32> to vector<1x128xf32>
    %496 = vector.broadcast %495 : vector<1x128xf32> to vector<32x128xf32>
    %497 = arith.select %494, %496, %443 : vector<32x128xi1>, vector<32x128xf32>
    %498 = vector.broadcast %492 : vector<32x1xf32> to vector<32x128xf32>
    %499 = vector.broadcast %483 : vector<1x128xf32> to vector<32x128xf32>
    %500 = arith.mulf %498, %499 : vector<32x128xf32>
    %501 = arith.subf %497, %500 : vector<32x128xf32>
    %502 = vector.shape_cast %446 : vector<32x1xi1> to vector<32x1xi1>
    %503 = vector.broadcast %502 : vector<32x1xi1> to vector<32x128xi1>
    %504 = vector.shape_cast %483 : vector<1x128xf32> to vector<1x128xf32>
    %505 = vector.broadcast %504 : vector<1x128xf32> to vector<32x128xf32>
    %506 = arith.select %503, %505, %501 : vector<32x128xi1>, vector<32x128xf32>
    %507 = vector.extract_strided_slice %506 {offsets = [0, 8], sizes = [32, 1], strides = [1, 1]} : vector<32x128xf32> to vector<32x1xf32>
    %c8_i32 = arith.constant 8 : i32
    %508 = vector.broadcast %c8_i32 : i32 to vector<32x1xi32>
    %509 = arith.cmpi eq, %2, %508 : vector<32x1xi32>
    %c8_i32_96 = arith.constant 8 : i32
    %510 = vector.broadcast %c8_i32_96 : i32 to vector<32x1xi32>
    %511 = arith.cmpi sge, %2, %510 : vector<32x1xi32>
    %c32_i32_97 = arith.constant 32 : i32
    %512 = vector.broadcast %c32_i32_97 : i32 to vector<32x1xi32>
    %513 = arith.cmpi slt, %2, %512 : vector<32x1xi32>
    %514 = arith.andi %511, %513 : vector<32x1xi1>
    %515 = math.absf %507 : vector<32x1xf32>
    %cst_98 = arith.constant -1.000000e+00 : f32
    %516 = vector.broadcast %cst_98 : f32 to vector<32x1xf32>
    %517 = arith.select %514, %515, %516 : vector<32x1xi1>, vector<32x1xf32>
    %518 = vector.shape_cast %517 : vector<32x1xf32> to vector<1x32x1xf32>
    %cst_99 = arith.constant dense<0xFF800000> : vector<1xf32>
    %519 = vector.multi_reduction <maximumf>, %518, %cst_99 [1, 2] : vector<1x32x1xf32> to vector<1xf32>
    %520 = vector.shape_cast %519 : vector<1xf32> to vector<1x1x1xf32>
    %521 = vector.extract %520[0, 0, 0] : f32 from vector<1x1x1xf32>
    %522 = vector.broadcast %521 : f32 to vector<32x1xf32>
    %523 = arith.cmpf oeq, %517, %522 : vector<32x1xf32>
    %c32_i32_100 = arith.constant 32 : i32
    %524 = vector.broadcast %c32_i32_100 : i32 to vector<32x1xi32>
    %525 = arith.select %523, %2, %524 : vector<32x1xi1>, vector<32x1xi32>
    %526 = vector.shape_cast %525 : vector<32x1xi32> to vector<1x32x1xi32>
    %cst_101 = arith.constant dense<2147483647> : vector<1xi32>
    %527 = vector.multi_reduction <minsi>, %526, %cst_101 [1, 2] : vector<1x32x1xi32> to vector<1xi32>
    %528 = vector.shape_cast %527 : vector<1xi32> to vector<1x1x1xi32>
    %529 = vector.extract %528[0, 0, 0] : i32 from vector<1x1x1xi32>
    %530 = vector.broadcast %529 : i32 to vector<32x1xi32>
    %531 = arith.cmpi eq, %2, %530 : vector<32x1xi32>
    %cst_102 = arith.constant 0.000000e+00 : f32
    %532 = vector.shape_cast %531 : vector<32x1xi1> to vector<32x1xi1>
    %533 = vector.broadcast %532 : vector<32x1xi1> to vector<32x128xi1>
    %534 = vector.broadcast %cst_102 : f32 to vector<32x128xf32>
    %535 = arith.select %533, %506, %534 : vector<32x128xi1>, vector<32x128xf32>
    %cst_103 = arith.constant dense<0.000000e+00> : vector<128xf32>
    %536 = vector.multi_reduction <add>, %535, %cst_103 [0] : vector<32x128xf32> to vector<128xf32>
    %537 = vector.shape_cast %536 : vector<128xf32> to vector<1x128xf32>
    %538 = vector.extract_strided_slice %506 {offsets = [8, 0], sizes = [1, 128], strides = [1, 1]} : vector<32x128xf32> to vector<1x128xf32>
    %539 = vector.extract_strided_slice %537 {offsets = [0, 8], sizes = [1, 1], strides = [1, 1]} : vector<1x128xf32> to vector<1x1xf32>
    %540 = vector.shape_cast %539 : vector<1x1xf32> to vector<1x1x1xf32>
    %cst_104 = arith.constant dense<0.000000e+00> : vector<1xf32>
    %541 = vector.multi_reduction <add>, %540, %cst_104 [1, 2] : vector<1x1x1xf32> to vector<1xf32>
    %542 = vector.shape_cast %541 : vector<1xf32> to vector<1x1x1xf32>
    %543 = vector.extract %542[0, 0, 0] : f32 from vector<1x1x1xf32>
    %cst_105 = arith.constant 1.000000e+00 : f32
    %544 = arith.divf %cst_105, %543 : f32
    %545 = vector.broadcast %544 : f32 to vector<1x128xf32>
    %546 = arith.mulf %537, %545 : vector<1x128xf32>
    %547 = vector.extract_strided_slice %507 {offsets = [8, 0], sizes = [1, 1], strides = [1, 1]} : vector<32x1xf32> to vector<1x1xf32>
    %548 = vector.shape_cast %547 : vector<1x1xf32> to vector<1x1x1xf32>
    %cst_106 = arith.constant dense<0.000000e+00> : vector<1xf32>
    %549 = vector.multi_reduction <add>, %548, %cst_106 [1, 2] : vector<1x1x1xf32> to vector<1xf32>
    %550 = vector.shape_cast %549 : vector<1xf32> to vector<1x1x1xf32>
    %551 = vector.extract %550[0, 0, 0] : f32 from vector<1x1x1xf32>
    %552 = vector.broadcast %551 : f32 to vector<32x1xf32>
    %553 = arith.select %531, %552, %507 : vector<32x1xi1>, vector<32x1xf32>
    %cst_107 = arith.constant 0.000000e+00 : f32
    %554 = vector.broadcast %cst_107 : f32 to vector<32x1xf32>
    %555 = arith.select %509, %554, %553 : vector<32x1xi1>, vector<32x1xf32>
    %556 = vector.shape_cast %531 : vector<32x1xi1> to vector<32x1xi1>
    %557 = vector.broadcast %556 : vector<32x1xi1> to vector<32x128xi1>
    %558 = vector.shape_cast %538 : vector<1x128xf32> to vector<1x128xf32>
    %559 = vector.broadcast %558 : vector<1x128xf32> to vector<32x128xf32>
    %560 = arith.select %557, %559, %506 : vector<32x128xi1>, vector<32x128xf32>
    %561 = vector.broadcast %555 : vector<32x1xf32> to vector<32x128xf32>
    %562 = vector.broadcast %546 : vector<1x128xf32> to vector<32x128xf32>
    %563 = arith.mulf %561, %562 : vector<32x128xf32>
    %564 = arith.subf %560, %563 : vector<32x128xf32>
    %565 = vector.shape_cast %509 : vector<32x1xi1> to vector<32x1xi1>
    %566 = vector.broadcast %565 : vector<32x1xi1> to vector<32x128xi1>
    %567 = vector.shape_cast %546 : vector<1x128xf32> to vector<1x128xf32>
    %568 = vector.broadcast %567 : vector<1x128xf32> to vector<32x128xf32>
    %569 = arith.select %566, %568, %564 : vector<32x128xi1>, vector<32x128xf32>
    %570 = vector.extract_strided_slice %569 {offsets = [0, 9], sizes = [32, 1], strides = [1, 1]} : vector<32x128xf32> to vector<32x1xf32>
    %c9_i32 = arith.constant 9 : i32
    %571 = vector.broadcast %c9_i32 : i32 to vector<32x1xi32>
    %572 = arith.cmpi eq, %2, %571 : vector<32x1xi32>
    %c9_i32_108 = arith.constant 9 : i32
    %573 = vector.broadcast %c9_i32_108 : i32 to vector<32x1xi32>
    %574 = arith.cmpi sge, %2, %573 : vector<32x1xi32>
    %c32_i32_109 = arith.constant 32 : i32
    %575 = vector.broadcast %c32_i32_109 : i32 to vector<32x1xi32>
    %576 = arith.cmpi slt, %2, %575 : vector<32x1xi32>
    %577 = arith.andi %574, %576 : vector<32x1xi1>
    %578 = math.absf %570 : vector<32x1xf32>
    %cst_110 = arith.constant -1.000000e+00 : f32
    %579 = vector.broadcast %cst_110 : f32 to vector<32x1xf32>
    %580 = arith.select %577, %578, %579 : vector<32x1xi1>, vector<32x1xf32>
    %581 = vector.shape_cast %580 : vector<32x1xf32> to vector<1x32x1xf32>
    %cst_111 = arith.constant dense<0xFF800000> : vector<1xf32>
    %582 = vector.multi_reduction <maximumf>, %581, %cst_111 [1, 2] : vector<1x32x1xf32> to vector<1xf32>
    %583 = vector.shape_cast %582 : vector<1xf32> to vector<1x1x1xf32>
    %584 = vector.extract %583[0, 0, 0] : f32 from vector<1x1x1xf32>
    %585 = vector.broadcast %584 : f32 to vector<32x1xf32>
    %586 = arith.cmpf oeq, %580, %585 : vector<32x1xf32>
    %c32_i32_112 = arith.constant 32 : i32
    %587 = vector.broadcast %c32_i32_112 : i32 to vector<32x1xi32>
    %588 = arith.select %586, %2, %587 : vector<32x1xi1>, vector<32x1xi32>
    %589 = vector.shape_cast %588 : vector<32x1xi32> to vector<1x32x1xi32>
    %cst_113 = arith.constant dense<2147483647> : vector<1xi32>
    %590 = vector.multi_reduction <minsi>, %589, %cst_113 [1, 2] : vector<1x32x1xi32> to vector<1xi32>
    %591 = vector.shape_cast %590 : vector<1xi32> to vector<1x1x1xi32>
    %592 = vector.extract %591[0, 0, 0] : i32 from vector<1x1x1xi32>
    %593 = vector.broadcast %592 : i32 to vector<32x1xi32>
    %594 = arith.cmpi eq, %2, %593 : vector<32x1xi32>
    %cst_114 = arith.constant 0.000000e+00 : f32
    %595 = vector.shape_cast %594 : vector<32x1xi1> to vector<32x1xi1>
    %596 = vector.broadcast %595 : vector<32x1xi1> to vector<32x128xi1>
    %597 = vector.broadcast %cst_114 : f32 to vector<32x128xf32>
    %598 = arith.select %596, %569, %597 : vector<32x128xi1>, vector<32x128xf32>
    %cst_115 = arith.constant dense<0.000000e+00> : vector<128xf32>
    %599 = vector.multi_reduction <add>, %598, %cst_115 [0] : vector<32x128xf32> to vector<128xf32>
    %600 = vector.shape_cast %599 : vector<128xf32> to vector<1x128xf32>
    %601 = vector.extract_strided_slice %569 {offsets = [9, 0], sizes = [1, 128], strides = [1, 1]} : vector<32x128xf32> to vector<1x128xf32>
    %602 = vector.extract_strided_slice %600 {offsets = [0, 9], sizes = [1, 1], strides = [1, 1]} : vector<1x128xf32> to vector<1x1xf32>
    %603 = vector.shape_cast %602 : vector<1x1xf32> to vector<1x1x1xf32>
    %cst_116 = arith.constant dense<0.000000e+00> : vector<1xf32>
    %604 = vector.multi_reduction <add>, %603, %cst_116 [1, 2] : vector<1x1x1xf32> to vector<1xf32>
    %605 = vector.shape_cast %604 : vector<1xf32> to vector<1x1x1xf32>
    %606 = vector.extract %605[0, 0, 0] : f32 from vector<1x1x1xf32>
    %cst_117 = arith.constant 1.000000e+00 : f32
    %607 = arith.divf %cst_117, %606 : f32
    %608 = vector.broadcast %607 : f32 to vector<1x128xf32>
    %609 = arith.mulf %600, %608 : vector<1x128xf32>
    %610 = vector.extract_strided_slice %570 {offsets = [9, 0], sizes = [1, 1], strides = [1, 1]} : vector<32x1xf32> to vector<1x1xf32>
    %611 = vector.shape_cast %610 : vector<1x1xf32> to vector<1x1x1xf32>
    %cst_118 = arith.constant dense<0.000000e+00> : vector<1xf32>
    %612 = vector.multi_reduction <add>, %611, %cst_118 [1, 2] : vector<1x1x1xf32> to vector<1xf32>
    %613 = vector.shape_cast %612 : vector<1xf32> to vector<1x1x1xf32>
    %614 = vector.extract %613[0, 0, 0] : f32 from vector<1x1x1xf32>
    %615 = vector.broadcast %614 : f32 to vector<32x1xf32>
    %616 = arith.select %594, %615, %570 : vector<32x1xi1>, vector<32x1xf32>
    %cst_119 = arith.constant 0.000000e+00 : f32
    %617 = vector.broadcast %cst_119 : f32 to vector<32x1xf32>
    %618 = arith.select %572, %617, %616 : vector<32x1xi1>, vector<32x1xf32>
    %619 = vector.shape_cast %594 : vector<32x1xi1> to vector<32x1xi1>
    %620 = vector.broadcast %619 : vector<32x1xi1> to vector<32x128xi1>
    %621 = vector.shape_cast %601 : vector<1x128xf32> to vector<1x128xf32>
    %622 = vector.broadcast %621 : vector<1x128xf32> to vector<32x128xf32>
    %623 = arith.select %620, %622, %569 : vector<32x128xi1>, vector<32x128xf32>
    %624 = vector.broadcast %618 : vector<32x1xf32> to vector<32x128xf32>
    %625 = vector.broadcast %609 : vector<1x128xf32> to vector<32x128xf32>
    %626 = arith.mulf %624, %625 : vector<32x128xf32>
    %627 = arith.subf %623, %626 : vector<32x128xf32>
    %628 = vector.shape_cast %572 : vector<32x1xi1> to vector<32x1xi1>
    %629 = vector.broadcast %628 : vector<32x1xi1> to vector<32x128xi1>
    %630 = vector.shape_cast %609 : vector<1x128xf32> to vector<1x128xf32>
    %631 = vector.broadcast %630 : vector<1x128xf32> to vector<32x128xf32>
    %632 = arith.select %629, %631, %627 : vector<32x128xi1>, vector<32x128xf32>
    %633 = vector.extract_strided_slice %632 {offsets = [0, 10], sizes = [32, 1], strides = [1, 1]} : vector<32x128xf32> to vector<32x1xf32>
    %c10_i32 = arith.constant 10 : i32
    %634 = vector.broadcast %c10_i32 : i32 to vector<32x1xi32>
    %635 = arith.cmpi eq, %2, %634 : vector<32x1xi32>
    %c10_i32_120 = arith.constant 10 : i32
    %636 = vector.broadcast %c10_i32_120 : i32 to vector<32x1xi32>
    %637 = arith.cmpi sge, %2, %636 : vector<32x1xi32>
    %c32_i32_121 = arith.constant 32 : i32
    %638 = vector.broadcast %c32_i32_121 : i32 to vector<32x1xi32>
    %639 = arith.cmpi slt, %2, %638 : vector<32x1xi32>
    %640 = arith.andi %637, %639 : vector<32x1xi1>
    %641 = math.absf %633 : vector<32x1xf32>
    %cst_122 = arith.constant -1.000000e+00 : f32
    %642 = vector.broadcast %cst_122 : f32 to vector<32x1xf32>
    %643 = arith.select %640, %641, %642 : vector<32x1xi1>, vector<32x1xf32>
    %644 = vector.shape_cast %643 : vector<32x1xf32> to vector<1x32x1xf32>
    %cst_123 = arith.constant dense<0xFF800000> : vector<1xf32>
    %645 = vector.multi_reduction <maximumf>, %644, %cst_123 [1, 2] : vector<1x32x1xf32> to vector<1xf32>
    %646 = vector.shape_cast %645 : vector<1xf32> to vector<1x1x1xf32>
    %647 = vector.extract %646[0, 0, 0] : f32 from vector<1x1x1xf32>
    %648 = vector.broadcast %647 : f32 to vector<32x1xf32>
    %649 = arith.cmpf oeq, %643, %648 : vector<32x1xf32>
    %c32_i32_124 = arith.constant 32 : i32
    %650 = vector.broadcast %c32_i32_124 : i32 to vector<32x1xi32>
    %651 = arith.select %649, %2, %650 : vector<32x1xi1>, vector<32x1xi32>
    %652 = vector.shape_cast %651 : vector<32x1xi32> to vector<1x32x1xi32>
    %cst_125 = arith.constant dense<2147483647> : vector<1xi32>
    %653 = vector.multi_reduction <minsi>, %652, %cst_125 [1, 2] : vector<1x32x1xi32> to vector<1xi32>
    %654 = vector.shape_cast %653 : vector<1xi32> to vector<1x1x1xi32>
    %655 = vector.extract %654[0, 0, 0] : i32 from vector<1x1x1xi32>
    %656 = vector.broadcast %655 : i32 to vector<32x1xi32>
    %657 = arith.cmpi eq, %2, %656 : vector<32x1xi32>
    %cst_126 = arith.constant 0.000000e+00 : f32
    %658 = vector.shape_cast %657 : vector<32x1xi1> to vector<32x1xi1>
    %659 = vector.broadcast %658 : vector<32x1xi1> to vector<32x128xi1>
    %660 = vector.broadcast %cst_126 : f32 to vector<32x128xf32>
    %661 = arith.select %659, %632, %660 : vector<32x128xi1>, vector<32x128xf32>
    %cst_127 = arith.constant dense<0.000000e+00> : vector<128xf32>
    %662 = vector.multi_reduction <add>, %661, %cst_127 [0] : vector<32x128xf32> to vector<128xf32>
    %663 = vector.shape_cast %662 : vector<128xf32> to vector<1x128xf32>
    %664 = vector.extract_strided_slice %632 {offsets = [10, 0], sizes = [1, 128], strides = [1, 1]} : vector<32x128xf32> to vector<1x128xf32>
    %665 = vector.extract_strided_slice %663 {offsets = [0, 10], sizes = [1, 1], strides = [1, 1]} : vector<1x128xf32> to vector<1x1xf32>
    %666 = vector.shape_cast %665 : vector<1x1xf32> to vector<1x1x1xf32>
    %cst_128 = arith.constant dense<0.000000e+00> : vector<1xf32>
    %667 = vector.multi_reduction <add>, %666, %cst_128 [1, 2] : vector<1x1x1xf32> to vector<1xf32>
    %668 = vector.shape_cast %667 : vector<1xf32> to vector<1x1x1xf32>
    %669 = vector.extract %668[0, 0, 0] : f32 from vector<1x1x1xf32>
    %cst_129 = arith.constant 1.000000e+00 : f32
    %670 = arith.divf %cst_129, %669 : f32
    %671 = vector.broadcast %670 : f32 to vector<1x128xf32>
    %672 = arith.mulf %663, %671 : vector<1x128xf32>
    %673 = vector.extract_strided_slice %633 {offsets = [10, 0], sizes = [1, 1], strides = [1, 1]} : vector<32x1xf32> to vector<1x1xf32>
    %674 = vector.shape_cast %673 : vector<1x1xf32> to vector<1x1x1xf32>
    %cst_130 = arith.constant dense<0.000000e+00> : vector<1xf32>
    %675 = vector.multi_reduction <add>, %674, %cst_130 [1, 2] : vector<1x1x1xf32> to vector<1xf32>
    %676 = vector.shape_cast %675 : vector<1xf32> to vector<1x1x1xf32>
    %677 = vector.extract %676[0, 0, 0] : f32 from vector<1x1x1xf32>
    %678 = vector.broadcast %677 : f32 to vector<32x1xf32>
    %679 = arith.select %657, %678, %633 : vector<32x1xi1>, vector<32x1xf32>
    %cst_131 = arith.constant 0.000000e+00 : f32
    %680 = vector.broadcast %cst_131 : f32 to vector<32x1xf32>
    %681 = arith.select %635, %680, %679 : vector<32x1xi1>, vector<32x1xf32>
    %682 = vector.shape_cast %657 : vector<32x1xi1> to vector<32x1xi1>
    %683 = vector.broadcast %682 : vector<32x1xi1> to vector<32x128xi1>
    %684 = vector.shape_cast %664 : vector<1x128xf32> to vector<1x128xf32>
    %685 = vector.broadcast %684 : vector<1x128xf32> to vector<32x128xf32>
    %686 = arith.select %683, %685, %632 : vector<32x128xi1>, vector<32x128xf32>
    %687 = vector.broadcast %681 : vector<32x1xf32> to vector<32x128xf32>
    %688 = vector.broadcast %672 : vector<1x128xf32> to vector<32x128xf32>
    %689 = arith.mulf %687, %688 : vector<32x128xf32>
    %690 = arith.subf %686, %689 : vector<32x128xf32>
    %691 = vector.shape_cast %635 : vector<32x1xi1> to vector<32x1xi1>
    %692 = vector.broadcast %691 : vector<32x1xi1> to vector<32x128xi1>
    %693 = vector.shape_cast %672 : vector<1x128xf32> to vector<1x128xf32>
    %694 = vector.broadcast %693 : vector<1x128xf32> to vector<32x128xf32>
    %695 = arith.select %692, %694, %690 : vector<32x128xi1>, vector<32x128xf32>
    %696 = vector.extract_strided_slice %695 {offsets = [0, 11], sizes = [32, 1], strides = [1, 1]} : vector<32x128xf32> to vector<32x1xf32>
    %c11_i32 = arith.constant 11 : i32
    %697 = vector.broadcast %c11_i32 : i32 to vector<32x1xi32>
    %698 = arith.cmpi eq, %2, %697 : vector<32x1xi32>
    %c11_i32_132 = arith.constant 11 : i32
    %699 = vector.broadcast %c11_i32_132 : i32 to vector<32x1xi32>
    %700 = arith.cmpi sge, %2, %699 : vector<32x1xi32>
    %c32_i32_133 = arith.constant 32 : i32
    %701 = vector.broadcast %c32_i32_133 : i32 to vector<32x1xi32>
    %702 = arith.cmpi slt, %2, %701 : vector<32x1xi32>
    %703 = arith.andi %700, %702 : vector<32x1xi1>
    %704 = math.absf %696 : vector<32x1xf32>
    %cst_134 = arith.constant -1.000000e+00 : f32
    %705 = vector.broadcast %cst_134 : f32 to vector<32x1xf32>
    %706 = arith.select %703, %704, %705 : vector<32x1xi1>, vector<32x1xf32>
    %707 = vector.shape_cast %706 : vector<32x1xf32> to vector<1x32x1xf32>
    %cst_135 = arith.constant dense<0xFF800000> : vector<1xf32>
    %708 = vector.multi_reduction <maximumf>, %707, %cst_135 [1, 2] : vector<1x32x1xf32> to vector<1xf32>
    %709 = vector.shape_cast %708 : vector<1xf32> to vector<1x1x1xf32>
    %710 = vector.extract %709[0, 0, 0] : f32 from vector<1x1x1xf32>
    %711 = vector.broadcast %710 : f32 to vector<32x1xf32>
    %712 = arith.cmpf oeq, %706, %711 : vector<32x1xf32>
    %c32_i32_136 = arith.constant 32 : i32
    %713 = vector.broadcast %c32_i32_136 : i32 to vector<32x1xi32>
    %714 = arith.select %712, %2, %713 : vector<32x1xi1>, vector<32x1xi32>
    %715 = vector.shape_cast %714 : vector<32x1xi32> to vector<1x32x1xi32>
    %cst_137 = arith.constant dense<2147483647> : vector<1xi32>
    %716 = vector.multi_reduction <minsi>, %715, %cst_137 [1, 2] : vector<1x32x1xi32> to vector<1xi32>
    %717 = vector.shape_cast %716 : vector<1xi32> to vector<1x1x1xi32>
    %718 = vector.extract %717[0, 0, 0] : i32 from vector<1x1x1xi32>
    %719 = vector.broadcast %718 : i32 to vector<32x1xi32>
    %720 = arith.cmpi eq, %2, %719 : vector<32x1xi32>
    %cst_138 = arith.constant 0.000000e+00 : f32
    %721 = vector.shape_cast %720 : vector<32x1xi1> to vector<32x1xi1>
    %722 = vector.broadcast %721 : vector<32x1xi1> to vector<32x128xi1>
    %723 = vector.broadcast %cst_138 : f32 to vector<32x128xf32>
    %724 = arith.select %722, %695, %723 : vector<32x128xi1>, vector<32x128xf32>
    %cst_139 = arith.constant dense<0.000000e+00> : vector<128xf32>
    %725 = vector.multi_reduction <add>, %724, %cst_139 [0] : vector<32x128xf32> to vector<128xf32>
    %726 = vector.shape_cast %725 : vector<128xf32> to vector<1x128xf32>
    %727 = vector.extract_strided_slice %695 {offsets = [11, 0], sizes = [1, 128], strides = [1, 1]} : vector<32x128xf32> to vector<1x128xf32>
    %728 = vector.extract_strided_slice %726 {offsets = [0, 11], sizes = [1, 1], strides = [1, 1]} : vector<1x128xf32> to vector<1x1xf32>
    %729 = vector.shape_cast %728 : vector<1x1xf32> to vector<1x1x1xf32>
    %cst_140 = arith.constant dense<0.000000e+00> : vector<1xf32>
    %730 = vector.multi_reduction <add>, %729, %cst_140 [1, 2] : vector<1x1x1xf32> to vector<1xf32>
    %731 = vector.shape_cast %730 : vector<1xf32> to vector<1x1x1xf32>
    %732 = vector.extract %731[0, 0, 0] : f32 from vector<1x1x1xf32>
    %cst_141 = arith.constant 1.000000e+00 : f32
    %733 = arith.divf %cst_141, %732 : f32
    %734 = vector.broadcast %733 : f32 to vector<1x128xf32>
    %735 = arith.mulf %726, %734 : vector<1x128xf32>
    %736 = vector.extract_strided_slice %696 {offsets = [11, 0], sizes = [1, 1], strides = [1, 1]} : vector<32x1xf32> to vector<1x1xf32>
    %737 = vector.shape_cast %736 : vector<1x1xf32> to vector<1x1x1xf32>
    %cst_142 = arith.constant dense<0.000000e+00> : vector<1xf32>
    %738 = vector.multi_reduction <add>, %737, %cst_142 [1, 2] : vector<1x1x1xf32> to vector<1xf32>
    %739 = vector.shape_cast %738 : vector<1xf32> to vector<1x1x1xf32>
    %740 = vector.extract %739[0, 0, 0] : f32 from vector<1x1x1xf32>
    %741 = vector.broadcast %740 : f32 to vector<32x1xf32>
    %742 = arith.select %720, %741, %696 : vector<32x1xi1>, vector<32x1xf32>
    %cst_143 = arith.constant 0.000000e+00 : f32
    %743 = vector.broadcast %cst_143 : f32 to vector<32x1xf32>
    %744 = arith.select %698, %743, %742 : vector<32x1xi1>, vector<32x1xf32>
    %745 = vector.shape_cast %720 : vector<32x1xi1> to vector<32x1xi1>
    %746 = vector.broadcast %745 : vector<32x1xi1> to vector<32x128xi1>
    %747 = vector.shape_cast %727 : vector<1x128xf32> to vector<1x128xf32>
    %748 = vector.broadcast %747 : vector<1x128xf32> to vector<32x128xf32>
    %749 = arith.select %746, %748, %695 : vector<32x128xi1>, vector<32x128xf32>
    %750 = vector.broadcast %744 : vector<32x1xf32> to vector<32x128xf32>
    %751 = vector.broadcast %735 : vector<1x128xf32> to vector<32x128xf32>
    %752 = arith.mulf %750, %751 : vector<32x128xf32>
    %753 = arith.subf %749, %752 : vector<32x128xf32>
    %754 = vector.shape_cast %698 : vector<32x1xi1> to vector<32x1xi1>
    %755 = vector.broadcast %754 : vector<32x1xi1> to vector<32x128xi1>
    %756 = vector.shape_cast %735 : vector<1x128xf32> to vector<1x128xf32>
    %757 = vector.broadcast %756 : vector<1x128xf32> to vector<32x128xf32>
    %758 = arith.select %755, %757, %753 : vector<32x128xi1>, vector<32x128xf32>
    %759 = vector.extract_strided_slice %758 {offsets = [0, 12], sizes = [32, 1], strides = [1, 1]} : vector<32x128xf32> to vector<32x1xf32>
    %c12_i32 = arith.constant 12 : i32
    %760 = vector.broadcast %c12_i32 : i32 to vector<32x1xi32>
    %761 = arith.cmpi eq, %2, %760 : vector<32x1xi32>
    %c12_i32_144 = arith.constant 12 : i32
    %762 = vector.broadcast %c12_i32_144 : i32 to vector<32x1xi32>
    %763 = arith.cmpi sge, %2, %762 : vector<32x1xi32>
    %c32_i32_145 = arith.constant 32 : i32
    %764 = vector.broadcast %c32_i32_145 : i32 to vector<32x1xi32>
    %765 = arith.cmpi slt, %2, %764 : vector<32x1xi32>
    %766 = arith.andi %763, %765 : vector<32x1xi1>
    %767 = math.absf %759 : vector<32x1xf32>
    %cst_146 = arith.constant -1.000000e+00 : f32
    %768 = vector.broadcast %cst_146 : f32 to vector<32x1xf32>
    %769 = arith.select %766, %767, %768 : vector<32x1xi1>, vector<32x1xf32>
    %770 = vector.shape_cast %769 : vector<32x1xf32> to vector<1x32x1xf32>
    %cst_147 = arith.constant dense<0xFF800000> : vector<1xf32>
    %771 = vector.multi_reduction <maximumf>, %770, %cst_147 [1, 2] : vector<1x32x1xf32> to vector<1xf32>
    %772 = vector.shape_cast %771 : vector<1xf32> to vector<1x1x1xf32>
    %773 = vector.extract %772[0, 0, 0] : f32 from vector<1x1x1xf32>
    %774 = vector.broadcast %773 : f32 to vector<32x1xf32>
    %775 = arith.cmpf oeq, %769, %774 : vector<32x1xf32>
    %c32_i32_148 = arith.constant 32 : i32
    %776 = vector.broadcast %c32_i32_148 : i32 to vector<32x1xi32>
    %777 = arith.select %775, %2, %776 : vector<32x1xi1>, vector<32x1xi32>
    %778 = vector.shape_cast %777 : vector<32x1xi32> to vector<1x32x1xi32>
    %cst_149 = arith.constant dense<2147483647> : vector<1xi32>
    %779 = vector.multi_reduction <minsi>, %778, %cst_149 [1, 2] : vector<1x32x1xi32> to vector<1xi32>
    %780 = vector.shape_cast %779 : vector<1xi32> to vector<1x1x1xi32>
    %781 = vector.extract %780[0, 0, 0] : i32 from vector<1x1x1xi32>
    %782 = vector.broadcast %781 : i32 to vector<32x1xi32>
    %783 = arith.cmpi eq, %2, %782 : vector<32x1xi32>
    %cst_150 = arith.constant 0.000000e+00 : f32
    %784 = vector.shape_cast %783 : vector<32x1xi1> to vector<32x1xi1>
    %785 = vector.broadcast %784 : vector<32x1xi1> to vector<32x128xi1>
    %786 = vector.broadcast %cst_150 : f32 to vector<32x128xf32>
    %787 = arith.select %785, %758, %786 : vector<32x128xi1>, vector<32x128xf32>
    %cst_151 = arith.constant dense<0.000000e+00> : vector<128xf32>
    %788 = vector.multi_reduction <add>, %787, %cst_151 [0] : vector<32x128xf32> to vector<128xf32>
    %789 = vector.shape_cast %788 : vector<128xf32> to vector<1x128xf32>
    %790 = vector.extract_strided_slice %758 {offsets = [12, 0], sizes = [1, 128], strides = [1, 1]} : vector<32x128xf32> to vector<1x128xf32>
    %791 = vector.extract_strided_slice %789 {offsets = [0, 12], sizes = [1, 1], strides = [1, 1]} : vector<1x128xf32> to vector<1x1xf32>
    %792 = vector.shape_cast %791 : vector<1x1xf32> to vector<1x1x1xf32>
    %cst_152 = arith.constant dense<0.000000e+00> : vector<1xf32>
    %793 = vector.multi_reduction <add>, %792, %cst_152 [1, 2] : vector<1x1x1xf32> to vector<1xf32>
    %794 = vector.shape_cast %793 : vector<1xf32> to vector<1x1x1xf32>
    %795 = vector.extract %794[0, 0, 0] : f32 from vector<1x1x1xf32>
    %cst_153 = arith.constant 1.000000e+00 : f32
    %796 = arith.divf %cst_153, %795 : f32
    %797 = vector.broadcast %796 : f32 to vector<1x128xf32>
    %798 = arith.mulf %789, %797 : vector<1x128xf32>
    %799 = vector.extract_strided_slice %759 {offsets = [12, 0], sizes = [1, 1], strides = [1, 1]} : vector<32x1xf32> to vector<1x1xf32>
    %800 = vector.shape_cast %799 : vector<1x1xf32> to vector<1x1x1xf32>
    %cst_154 = arith.constant dense<0.000000e+00> : vector<1xf32>
    %801 = vector.multi_reduction <add>, %800, %cst_154 [1, 2] : vector<1x1x1xf32> to vector<1xf32>
    %802 = vector.shape_cast %801 : vector<1xf32> to vector<1x1x1xf32>
    %803 = vector.extract %802[0, 0, 0] : f32 from vector<1x1x1xf32>
    %804 = vector.broadcast %803 : f32 to vector<32x1xf32>
    %805 = arith.select %783, %804, %759 : vector<32x1xi1>, vector<32x1xf32>
    %cst_155 = arith.constant 0.000000e+00 : f32
    %806 = vector.broadcast %cst_155 : f32 to vector<32x1xf32>
    %807 = arith.select %761, %806, %805 : vector<32x1xi1>, vector<32x1xf32>
    %808 = vector.shape_cast %783 : vector<32x1xi1> to vector<32x1xi1>
    %809 = vector.broadcast %808 : vector<32x1xi1> to vector<32x128xi1>
    %810 = vector.shape_cast %790 : vector<1x128xf32> to vector<1x128xf32>
    %811 = vector.broadcast %810 : vector<1x128xf32> to vector<32x128xf32>
    %812 = arith.select %809, %811, %758 : vector<32x128xi1>, vector<32x128xf32>
    %813 = vector.broadcast %807 : vector<32x1xf32> to vector<32x128xf32>
    %814 = vector.broadcast %798 : vector<1x128xf32> to vector<32x128xf32>
    %815 = arith.mulf %813, %814 : vector<32x128xf32>
    %816 = arith.subf %812, %815 : vector<32x128xf32>
    %817 = vector.shape_cast %761 : vector<32x1xi1> to vector<32x1xi1>
    %818 = vector.broadcast %817 : vector<32x1xi1> to vector<32x128xi1>
    %819 = vector.shape_cast %798 : vector<1x128xf32> to vector<1x128xf32>
    %820 = vector.broadcast %819 : vector<1x128xf32> to vector<32x128xf32>
    %821 = arith.select %818, %820, %816 : vector<32x128xi1>, vector<32x128xf32>
    %822 = vector.extract_strided_slice %821 {offsets = [0, 13], sizes = [32, 1], strides = [1, 1]} : vector<32x128xf32> to vector<32x1xf32>
    %c13_i32 = arith.constant 13 : i32
    %823 = vector.broadcast %c13_i32 : i32 to vector<32x1xi32>
    %824 = arith.cmpi eq, %2, %823 : vector<32x1xi32>
    %c13_i32_156 = arith.constant 13 : i32
    %825 = vector.broadcast %c13_i32_156 : i32 to vector<32x1xi32>
    %826 = arith.cmpi sge, %2, %825 : vector<32x1xi32>
    %c32_i32_157 = arith.constant 32 : i32
    %827 = vector.broadcast %c32_i32_157 : i32 to vector<32x1xi32>
    %828 = arith.cmpi slt, %2, %827 : vector<32x1xi32>
    %829 = arith.andi %826, %828 : vector<32x1xi1>
    %830 = math.absf %822 : vector<32x1xf32>
    %cst_158 = arith.constant -1.000000e+00 : f32
    %831 = vector.broadcast %cst_158 : f32 to vector<32x1xf32>
    %832 = arith.select %829, %830, %831 : vector<32x1xi1>, vector<32x1xf32>
    %833 = vector.shape_cast %832 : vector<32x1xf32> to vector<1x32x1xf32>
    %cst_159 = arith.constant dense<0xFF800000> : vector<1xf32>
    %834 = vector.multi_reduction <maximumf>, %833, %cst_159 [1, 2] : vector<1x32x1xf32> to vector<1xf32>
    %835 = vector.shape_cast %834 : vector<1xf32> to vector<1x1x1xf32>
    %836 = vector.extract %835[0, 0, 0] : f32 from vector<1x1x1xf32>
    %837 = vector.broadcast %836 : f32 to vector<32x1xf32>
    %838 = arith.cmpf oeq, %832, %837 : vector<32x1xf32>
    %c32_i32_160 = arith.constant 32 : i32
    %839 = vector.broadcast %c32_i32_160 : i32 to vector<32x1xi32>
    %840 = arith.select %838, %2, %839 : vector<32x1xi1>, vector<32x1xi32>
    %841 = vector.shape_cast %840 : vector<32x1xi32> to vector<1x32x1xi32>
    %cst_161 = arith.constant dense<2147483647> : vector<1xi32>
    %842 = vector.multi_reduction <minsi>, %841, %cst_161 [1, 2] : vector<1x32x1xi32> to vector<1xi32>
    %843 = vector.shape_cast %842 : vector<1xi32> to vector<1x1x1xi32>
    %844 = vector.extract %843[0, 0, 0] : i32 from vector<1x1x1xi32>
    %845 = vector.broadcast %844 : i32 to vector<32x1xi32>
    %846 = arith.cmpi eq, %2, %845 : vector<32x1xi32>
    %cst_162 = arith.constant 0.000000e+00 : f32
    %847 = vector.shape_cast %846 : vector<32x1xi1> to vector<32x1xi1>
    %848 = vector.broadcast %847 : vector<32x1xi1> to vector<32x128xi1>
    %849 = vector.broadcast %cst_162 : f32 to vector<32x128xf32>
    %850 = arith.select %848, %821, %849 : vector<32x128xi1>, vector<32x128xf32>
    %cst_163 = arith.constant dense<0.000000e+00> : vector<128xf32>
    %851 = vector.multi_reduction <add>, %850, %cst_163 [0] : vector<32x128xf32> to vector<128xf32>
    %852 = vector.shape_cast %851 : vector<128xf32> to vector<1x128xf32>
    %853 = vector.extract_strided_slice %821 {offsets = [13, 0], sizes = [1, 128], strides = [1, 1]} : vector<32x128xf32> to vector<1x128xf32>
    %854 = vector.extract_strided_slice %852 {offsets = [0, 13], sizes = [1, 1], strides = [1, 1]} : vector<1x128xf32> to vector<1x1xf32>
    %855 = vector.shape_cast %854 : vector<1x1xf32> to vector<1x1x1xf32>
    %cst_164 = arith.constant dense<0.000000e+00> : vector<1xf32>
    %856 = vector.multi_reduction <add>, %855, %cst_164 [1, 2] : vector<1x1x1xf32> to vector<1xf32>
    %857 = vector.shape_cast %856 : vector<1xf32> to vector<1x1x1xf32>
    %858 = vector.extract %857[0, 0, 0] : f32 from vector<1x1x1xf32>
    %cst_165 = arith.constant 1.000000e+00 : f32
    %859 = arith.divf %cst_165, %858 : f32
    %860 = vector.broadcast %859 : f32 to vector<1x128xf32>
    %861 = arith.mulf %852, %860 : vector<1x128xf32>
    %862 = vector.extract_strided_slice %822 {offsets = [13, 0], sizes = [1, 1], strides = [1, 1]} : vector<32x1xf32> to vector<1x1xf32>
    %863 = vector.shape_cast %862 : vector<1x1xf32> to vector<1x1x1xf32>
    %cst_166 = arith.constant dense<0.000000e+00> : vector<1xf32>
    %864 = vector.multi_reduction <add>, %863, %cst_166 [1, 2] : vector<1x1x1xf32> to vector<1xf32>
    %865 = vector.shape_cast %864 : vector<1xf32> to vector<1x1x1xf32>
    %866 = vector.extract %865[0, 0, 0] : f32 from vector<1x1x1xf32>
    %867 = vector.broadcast %866 : f32 to vector<32x1xf32>
    %868 = arith.select %846, %867, %822 : vector<32x1xi1>, vector<32x1xf32>
    %cst_167 = arith.constant 0.000000e+00 : f32
    %869 = vector.broadcast %cst_167 : f32 to vector<32x1xf32>
    %870 = arith.select %824, %869, %868 : vector<32x1xi1>, vector<32x1xf32>
    %871 = vector.shape_cast %846 : vector<32x1xi1> to vector<32x1xi1>
    %872 = vector.broadcast %871 : vector<32x1xi1> to vector<32x128xi1>
    %873 = vector.shape_cast %853 : vector<1x128xf32> to vector<1x128xf32>
    %874 = vector.broadcast %873 : vector<1x128xf32> to vector<32x128xf32>
    %875 = arith.select %872, %874, %821 : vector<32x128xi1>, vector<32x128xf32>
    %876 = vector.broadcast %870 : vector<32x1xf32> to vector<32x128xf32>
    %877 = vector.broadcast %861 : vector<1x128xf32> to vector<32x128xf32>
    %878 = arith.mulf %876, %877 : vector<32x128xf32>
    %879 = arith.subf %875, %878 : vector<32x128xf32>
    %880 = vector.shape_cast %824 : vector<32x1xi1> to vector<32x1xi1>
    %881 = vector.broadcast %880 : vector<32x1xi1> to vector<32x128xi1>
    %882 = vector.shape_cast %861 : vector<1x128xf32> to vector<1x128xf32>
    %883 = vector.broadcast %882 : vector<1x128xf32> to vector<32x128xf32>
    %884 = arith.select %881, %883, %879 : vector<32x128xi1>, vector<32x128xf32>
    %885 = vector.extract_strided_slice %884 {offsets = [0, 14], sizes = [32, 1], strides = [1, 1]} : vector<32x128xf32> to vector<32x1xf32>
    %c14_i32 = arith.constant 14 : i32
    %886 = vector.broadcast %c14_i32 : i32 to vector<32x1xi32>
    %887 = arith.cmpi eq, %2, %886 : vector<32x1xi32>
    %c14_i32_168 = arith.constant 14 : i32
    %888 = vector.broadcast %c14_i32_168 : i32 to vector<32x1xi32>
    %889 = arith.cmpi sge, %2, %888 : vector<32x1xi32>
    %c32_i32_169 = arith.constant 32 : i32
    %890 = vector.broadcast %c32_i32_169 : i32 to vector<32x1xi32>
    %891 = arith.cmpi slt, %2, %890 : vector<32x1xi32>
    %892 = arith.andi %889, %891 : vector<32x1xi1>
    %893 = math.absf %885 : vector<32x1xf32>
    %cst_170 = arith.constant -1.000000e+00 : f32
    %894 = vector.broadcast %cst_170 : f32 to vector<32x1xf32>
    %895 = arith.select %892, %893, %894 : vector<32x1xi1>, vector<32x1xf32>
    %896 = vector.shape_cast %895 : vector<32x1xf32> to vector<1x32x1xf32>
    %cst_171 = arith.constant dense<0xFF800000> : vector<1xf32>
    %897 = vector.multi_reduction <maximumf>, %896, %cst_171 [1, 2] : vector<1x32x1xf32> to vector<1xf32>
    %898 = vector.shape_cast %897 : vector<1xf32> to vector<1x1x1xf32>
    %899 = vector.extract %898[0, 0, 0] : f32 from vector<1x1x1xf32>
    %900 = vector.broadcast %899 : f32 to vector<32x1xf32>
    %901 = arith.cmpf oeq, %895, %900 : vector<32x1xf32>
    %c32_i32_172 = arith.constant 32 : i32
    %902 = vector.broadcast %c32_i32_172 : i32 to vector<32x1xi32>
    %903 = arith.select %901, %2, %902 : vector<32x1xi1>, vector<32x1xi32>
    %904 = vector.shape_cast %903 : vector<32x1xi32> to vector<1x32x1xi32>
    %cst_173 = arith.constant dense<2147483647> : vector<1xi32>
    %905 = vector.multi_reduction <minsi>, %904, %cst_173 [1, 2] : vector<1x32x1xi32> to vector<1xi32>
    %906 = vector.shape_cast %905 : vector<1xi32> to vector<1x1x1xi32>
    %907 = vector.extract %906[0, 0, 0] : i32 from vector<1x1x1xi32>
    %908 = vector.broadcast %907 : i32 to vector<32x1xi32>
    %909 = arith.cmpi eq, %2, %908 : vector<32x1xi32>
    %cst_174 = arith.constant 0.000000e+00 : f32
    %910 = vector.shape_cast %909 : vector<32x1xi1> to vector<32x1xi1>
    %911 = vector.broadcast %910 : vector<32x1xi1> to vector<32x128xi1>
    %912 = vector.broadcast %cst_174 : f32 to vector<32x128xf32>
    %913 = arith.select %911, %884, %912 : vector<32x128xi1>, vector<32x128xf32>
    %cst_175 = arith.constant dense<0.000000e+00> : vector<128xf32>
    %914 = vector.multi_reduction <add>, %913, %cst_175 [0] : vector<32x128xf32> to vector<128xf32>
    %915 = vector.shape_cast %914 : vector<128xf32> to vector<1x128xf32>
    %916 = vector.extract_strided_slice %884 {offsets = [14, 0], sizes = [1, 128], strides = [1, 1]} : vector<32x128xf32> to vector<1x128xf32>
    %917 = vector.extract_strided_slice %915 {offsets = [0, 14], sizes = [1, 1], strides = [1, 1]} : vector<1x128xf32> to vector<1x1xf32>
    %918 = vector.shape_cast %917 : vector<1x1xf32> to vector<1x1x1xf32>
    %cst_176 = arith.constant dense<0.000000e+00> : vector<1xf32>
    %919 = vector.multi_reduction <add>, %918, %cst_176 [1, 2] : vector<1x1x1xf32> to vector<1xf32>
    %920 = vector.shape_cast %919 : vector<1xf32> to vector<1x1x1xf32>
    %921 = vector.extract %920[0, 0, 0] : f32 from vector<1x1x1xf32>
    %cst_177 = arith.constant 1.000000e+00 : f32
    %922 = arith.divf %cst_177, %921 : f32
    %923 = vector.broadcast %922 : f32 to vector<1x128xf32>
    %924 = arith.mulf %915, %923 : vector<1x128xf32>
    %925 = vector.extract_strided_slice %885 {offsets = [14, 0], sizes = [1, 1], strides = [1, 1]} : vector<32x1xf32> to vector<1x1xf32>
    %926 = vector.shape_cast %925 : vector<1x1xf32> to vector<1x1x1xf32>
    %cst_178 = arith.constant dense<0.000000e+00> : vector<1xf32>
    %927 = vector.multi_reduction <add>, %926, %cst_178 [1, 2] : vector<1x1x1xf32> to vector<1xf32>
    %928 = vector.shape_cast %927 : vector<1xf32> to vector<1x1x1xf32>
    %929 = vector.extract %928[0, 0, 0] : f32 from vector<1x1x1xf32>
    %930 = vector.broadcast %929 : f32 to vector<32x1xf32>
    %931 = arith.select %909, %930, %885 : vector<32x1xi1>, vector<32x1xf32>
    %cst_179 = arith.constant 0.000000e+00 : f32
    %932 = vector.broadcast %cst_179 : f32 to vector<32x1xf32>
    %933 = arith.select %887, %932, %931 : vector<32x1xi1>, vector<32x1xf32>
    %934 = vector.shape_cast %909 : vector<32x1xi1> to vector<32x1xi1>
    %935 = vector.broadcast %934 : vector<32x1xi1> to vector<32x128xi1>
    %936 = vector.shape_cast %916 : vector<1x128xf32> to vector<1x128xf32>
    %937 = vector.broadcast %936 : vector<1x128xf32> to vector<32x128xf32>
    %938 = arith.select %935, %937, %884 : vector<32x128xi1>, vector<32x128xf32>
    %939 = vector.broadcast %933 : vector<32x1xf32> to vector<32x128xf32>
    %940 = vector.broadcast %924 : vector<1x128xf32> to vector<32x128xf32>
    %941 = arith.mulf %939, %940 : vector<32x128xf32>
    %942 = arith.subf %938, %941 : vector<32x128xf32>
    %943 = vector.shape_cast %887 : vector<32x1xi1> to vector<32x1xi1>
    %944 = vector.broadcast %943 : vector<32x1xi1> to vector<32x128xi1>
    %945 = vector.shape_cast %924 : vector<1x128xf32> to vector<1x128xf32>
    %946 = vector.broadcast %945 : vector<1x128xf32> to vector<32x128xf32>
    %947 = arith.select %944, %946, %942 : vector<32x128xi1>, vector<32x128xf32>
    %948 = vector.extract_strided_slice %947 {offsets = [0, 15], sizes = [32, 1], strides = [1, 1]} : vector<32x128xf32> to vector<32x1xf32>
    %c15_i32 = arith.constant 15 : i32
    %949 = vector.broadcast %c15_i32 : i32 to vector<32x1xi32>
    %950 = arith.cmpi eq, %2, %949 : vector<32x1xi32>
    %c15_i32_180 = arith.constant 15 : i32
    %951 = vector.broadcast %c15_i32_180 : i32 to vector<32x1xi32>
    %952 = arith.cmpi sge, %2, %951 : vector<32x1xi32>
    %c32_i32_181 = arith.constant 32 : i32
    %953 = vector.broadcast %c32_i32_181 : i32 to vector<32x1xi32>
    %954 = arith.cmpi slt, %2, %953 : vector<32x1xi32>
    %955 = arith.andi %952, %954 : vector<32x1xi1>
    %956 = math.absf %948 : vector<32x1xf32>
    %cst_182 = arith.constant -1.000000e+00 : f32
    %957 = vector.broadcast %cst_182 : f32 to vector<32x1xf32>
    %958 = arith.select %955, %956, %957 : vector<32x1xi1>, vector<32x1xf32>
    %959 = vector.shape_cast %958 : vector<32x1xf32> to vector<1x32x1xf32>
    %cst_183 = arith.constant dense<0xFF800000> : vector<1xf32>
    %960 = vector.multi_reduction <maximumf>, %959, %cst_183 [1, 2] : vector<1x32x1xf32> to vector<1xf32>
    %961 = vector.shape_cast %960 : vector<1xf32> to vector<1x1x1xf32>
    %962 = vector.extract %961[0, 0, 0] : f32 from vector<1x1x1xf32>
    %963 = vector.broadcast %962 : f32 to vector<32x1xf32>
    %964 = arith.cmpf oeq, %958, %963 : vector<32x1xf32>
    %c32_i32_184 = arith.constant 32 : i32
    %965 = vector.broadcast %c32_i32_184 : i32 to vector<32x1xi32>
    %966 = arith.select %964, %2, %965 : vector<32x1xi1>, vector<32x1xi32>
    %967 = vector.shape_cast %966 : vector<32x1xi32> to vector<1x32x1xi32>
    %cst_185 = arith.constant dense<2147483647> : vector<1xi32>
    %968 = vector.multi_reduction <minsi>, %967, %cst_185 [1, 2] : vector<1x32x1xi32> to vector<1xi32>
    %969 = vector.shape_cast %968 : vector<1xi32> to vector<1x1x1xi32>
    %970 = vector.extract %969[0, 0, 0] : i32 from vector<1x1x1xi32>
    %971 = vector.broadcast %970 : i32 to vector<32x1xi32>
    %972 = arith.cmpi eq, %2, %971 : vector<32x1xi32>
    %cst_186 = arith.constant 0.000000e+00 : f32
    %973 = vector.shape_cast %972 : vector<32x1xi1> to vector<32x1xi1>
    %974 = vector.broadcast %973 : vector<32x1xi1> to vector<32x128xi1>
    %975 = vector.broadcast %cst_186 : f32 to vector<32x128xf32>
    %976 = arith.select %974, %947, %975 : vector<32x128xi1>, vector<32x128xf32>
    %cst_187 = arith.constant dense<0.000000e+00> : vector<128xf32>
    %977 = vector.multi_reduction <add>, %976, %cst_187 [0] : vector<32x128xf32> to vector<128xf32>
    %978 = vector.shape_cast %977 : vector<128xf32> to vector<1x128xf32>
    %979 = vector.extract_strided_slice %947 {offsets = [15, 0], sizes = [1, 128], strides = [1, 1]} : vector<32x128xf32> to vector<1x128xf32>
    %980 = vector.extract_strided_slice %978 {offsets = [0, 15], sizes = [1, 1], strides = [1, 1]} : vector<1x128xf32> to vector<1x1xf32>
    %981 = vector.shape_cast %980 : vector<1x1xf32> to vector<1x1x1xf32>
    %cst_188 = arith.constant dense<0.000000e+00> : vector<1xf32>
    %982 = vector.multi_reduction <add>, %981, %cst_188 [1, 2] : vector<1x1x1xf32> to vector<1xf32>
    %983 = vector.shape_cast %982 : vector<1xf32> to vector<1x1x1xf32>
    %984 = vector.extract %983[0, 0, 0] : f32 from vector<1x1x1xf32>
    %cst_189 = arith.constant 1.000000e+00 : f32
    %985 = arith.divf %cst_189, %984 : f32
    %986 = vector.broadcast %985 : f32 to vector<1x128xf32>
    %987 = arith.mulf %978, %986 : vector<1x128xf32>
    %988 = vector.extract_strided_slice %948 {offsets = [15, 0], sizes = [1, 1], strides = [1, 1]} : vector<32x1xf32> to vector<1x1xf32>
    %989 = vector.shape_cast %988 : vector<1x1xf32> to vector<1x1x1xf32>
    %cst_190 = arith.constant dense<0.000000e+00> : vector<1xf32>
    %990 = vector.multi_reduction <add>, %989, %cst_190 [1, 2] : vector<1x1x1xf32> to vector<1xf32>
    %991 = vector.shape_cast %990 : vector<1xf32> to vector<1x1x1xf32>
    %992 = vector.extract %991[0, 0, 0] : f32 from vector<1x1x1xf32>
    %993 = vector.broadcast %992 : f32 to vector<32x1xf32>
    %994 = arith.select %972, %993, %948 : vector<32x1xi1>, vector<32x1xf32>
    %cst_191 = arith.constant 0.000000e+00 : f32
    %995 = vector.broadcast %cst_191 : f32 to vector<32x1xf32>
    %996 = arith.select %950, %995, %994 : vector<32x1xi1>, vector<32x1xf32>
    %997 = vector.shape_cast %972 : vector<32x1xi1> to vector<32x1xi1>
    %998 = vector.broadcast %997 : vector<32x1xi1> to vector<32x128xi1>
    %999 = vector.shape_cast %979 : vector<1x128xf32> to vector<1x128xf32>
    %1000 = vector.broadcast %999 : vector<1x128xf32> to vector<32x128xf32>
    %1001 = arith.select %998, %1000, %947 : vector<32x128xi1>, vector<32x128xf32>
    %1002 = vector.broadcast %996 : vector<32x1xf32> to vector<32x128xf32>
    %1003 = vector.broadcast %987 : vector<1x128xf32> to vector<32x128xf32>
    %1004 = arith.mulf %1002, %1003 : vector<32x128xf32>
    %1005 = arith.subf %1001, %1004 : vector<32x128xf32>
    %1006 = vector.shape_cast %950 : vector<32x1xi1> to vector<32x1xi1>
    %1007 = vector.broadcast %1006 : vector<32x1xi1> to vector<32x128xi1>
    %1008 = vector.shape_cast %987 : vector<1x128xf32> to vector<1x128xf32>
    %1009 = vector.broadcast %1008 : vector<1x128xf32> to vector<32x128xf32>
    %1010 = arith.select %1007, %1009, %1005 : vector<32x128xi1>, vector<32x128xf32>
    %1011 = vector.extract_strided_slice %1010 {offsets = [0, 16], sizes = [32, 1], strides = [1, 1]} : vector<32x128xf32> to vector<32x1xf32>
    %c16_i32 = arith.constant 16 : i32
    %1012 = vector.broadcast %c16_i32 : i32 to vector<32x1xi32>
    %1013 = arith.cmpi eq, %2, %1012 : vector<32x1xi32>
    %c16_i32_192 = arith.constant 16 : i32
    %1014 = vector.broadcast %c16_i32_192 : i32 to vector<32x1xi32>
    %1015 = arith.cmpi sge, %2, %1014 : vector<32x1xi32>
    %c32_i32_193 = arith.constant 32 : i32
    %1016 = vector.broadcast %c32_i32_193 : i32 to vector<32x1xi32>
    %1017 = arith.cmpi slt, %2, %1016 : vector<32x1xi32>
    %1018 = arith.andi %1015, %1017 : vector<32x1xi1>
    %1019 = math.absf %1011 : vector<32x1xf32>
    %cst_194 = arith.constant -1.000000e+00 : f32
    %1020 = vector.broadcast %cst_194 : f32 to vector<32x1xf32>
    %1021 = arith.select %1018, %1019, %1020 : vector<32x1xi1>, vector<32x1xf32>
    %1022 = vector.shape_cast %1021 : vector<32x1xf32> to vector<1x32x1xf32>
    %cst_195 = arith.constant dense<0xFF800000> : vector<1xf32>
    %1023 = vector.multi_reduction <maximumf>, %1022, %cst_195 [1, 2] : vector<1x32x1xf32> to vector<1xf32>
    %1024 = vector.shape_cast %1023 : vector<1xf32> to vector<1x1x1xf32>
    %1025 = vector.extract %1024[0, 0, 0] : f32 from vector<1x1x1xf32>
    %1026 = vector.broadcast %1025 : f32 to vector<32x1xf32>
    %1027 = arith.cmpf oeq, %1021, %1026 : vector<32x1xf32>
    %c32_i32_196 = arith.constant 32 : i32
    %1028 = vector.broadcast %c32_i32_196 : i32 to vector<32x1xi32>
    %1029 = arith.select %1027, %2, %1028 : vector<32x1xi1>, vector<32x1xi32>
    %1030 = vector.shape_cast %1029 : vector<32x1xi32> to vector<1x32x1xi32>
    %cst_197 = arith.constant dense<2147483647> : vector<1xi32>
    %1031 = vector.multi_reduction <minsi>, %1030, %cst_197 [1, 2] : vector<1x32x1xi32> to vector<1xi32>
    %1032 = vector.shape_cast %1031 : vector<1xi32> to vector<1x1x1xi32>
    %1033 = vector.extract %1032[0, 0, 0] : i32 from vector<1x1x1xi32>
    %1034 = vector.broadcast %1033 : i32 to vector<32x1xi32>
    %1035 = arith.cmpi eq, %2, %1034 : vector<32x1xi32>
    %cst_198 = arith.constant 0.000000e+00 : f32
    %1036 = vector.shape_cast %1035 : vector<32x1xi1> to vector<32x1xi1>
    %1037 = vector.broadcast %1036 : vector<32x1xi1> to vector<32x128xi1>
    %1038 = vector.broadcast %cst_198 : f32 to vector<32x128xf32>
    %1039 = arith.select %1037, %1010, %1038 : vector<32x128xi1>, vector<32x128xf32>
    %cst_199 = arith.constant dense<0.000000e+00> : vector<128xf32>
    %1040 = vector.multi_reduction <add>, %1039, %cst_199 [0] : vector<32x128xf32> to vector<128xf32>
    %1041 = vector.shape_cast %1040 : vector<128xf32> to vector<1x128xf32>
    %1042 = vector.extract_strided_slice %1010 {offsets = [16, 0], sizes = [1, 128], strides = [1, 1]} : vector<32x128xf32> to vector<1x128xf32>
    %1043 = vector.extract_strided_slice %1041 {offsets = [0, 16], sizes = [1, 1], strides = [1, 1]} : vector<1x128xf32> to vector<1x1xf32>
    %1044 = vector.shape_cast %1043 : vector<1x1xf32> to vector<1x1x1xf32>
    %cst_200 = arith.constant dense<0.000000e+00> : vector<1xf32>
    %1045 = vector.multi_reduction <add>, %1044, %cst_200 [1, 2] : vector<1x1x1xf32> to vector<1xf32>
    %1046 = vector.shape_cast %1045 : vector<1xf32> to vector<1x1x1xf32>
    %1047 = vector.extract %1046[0, 0, 0] : f32 from vector<1x1x1xf32>
    %cst_201 = arith.constant 1.000000e+00 : f32
    %1048 = arith.divf %cst_201, %1047 : f32
    %1049 = vector.broadcast %1048 : f32 to vector<1x128xf32>
    %1050 = arith.mulf %1041, %1049 : vector<1x128xf32>
    %1051 = vector.extract_strided_slice %1011 {offsets = [16, 0], sizes = [1, 1], strides = [1, 1]} : vector<32x1xf32> to vector<1x1xf32>
    %1052 = vector.shape_cast %1051 : vector<1x1xf32> to vector<1x1x1xf32>
    %cst_202 = arith.constant dense<0.000000e+00> : vector<1xf32>
    %1053 = vector.multi_reduction <add>, %1052, %cst_202 [1, 2] : vector<1x1x1xf32> to vector<1xf32>
    %1054 = vector.shape_cast %1053 : vector<1xf32> to vector<1x1x1xf32>
    %1055 = vector.extract %1054[0, 0, 0] : f32 from vector<1x1x1xf32>
    %1056 = vector.broadcast %1055 : f32 to vector<32x1xf32>
    %1057 = arith.select %1035, %1056, %1011 : vector<32x1xi1>, vector<32x1xf32>
    %cst_203 = arith.constant 0.000000e+00 : f32
    %1058 = vector.broadcast %cst_203 : f32 to vector<32x1xf32>
    %1059 = arith.select %1013, %1058, %1057 : vector<32x1xi1>, vector<32x1xf32>
    %1060 = vector.shape_cast %1035 : vector<32x1xi1> to vector<32x1xi1>
    %1061 = vector.broadcast %1060 : vector<32x1xi1> to vector<32x128xi1>
    %1062 = vector.shape_cast %1042 : vector<1x128xf32> to vector<1x128xf32>
    %1063 = vector.broadcast %1062 : vector<1x128xf32> to vector<32x128xf32>
    %1064 = arith.select %1061, %1063, %1010 : vector<32x128xi1>, vector<32x128xf32>
    %1065 = vector.broadcast %1059 : vector<32x1xf32> to vector<32x128xf32>
    %1066 = vector.broadcast %1050 : vector<1x128xf32> to vector<32x128xf32>
    %1067 = arith.mulf %1065, %1066 : vector<32x128xf32>
    %1068 = arith.subf %1064, %1067 : vector<32x128xf32>
    %1069 = vector.shape_cast %1013 : vector<32x1xi1> to vector<32x1xi1>
    %1070 = vector.broadcast %1069 : vector<32x1xi1> to vector<32x128xi1>
    %1071 = vector.shape_cast %1050 : vector<1x128xf32> to vector<1x128xf32>
    %1072 = vector.broadcast %1071 : vector<1x128xf32> to vector<32x128xf32>
    %1073 = arith.select %1070, %1072, %1068 : vector<32x128xi1>, vector<32x128xf32>
    %1074 = vector.extract_strided_slice %1073 {offsets = [0, 17], sizes = [32, 1], strides = [1, 1]} : vector<32x128xf32> to vector<32x1xf32>
    %c17_i32 = arith.constant 17 : i32
    %1075 = vector.broadcast %c17_i32 : i32 to vector<32x1xi32>
    %1076 = arith.cmpi eq, %2, %1075 : vector<32x1xi32>
    %c17_i32_204 = arith.constant 17 : i32
    %1077 = vector.broadcast %c17_i32_204 : i32 to vector<32x1xi32>
    %1078 = arith.cmpi sge, %2, %1077 : vector<32x1xi32>
    %c32_i32_205 = arith.constant 32 : i32
    %1079 = vector.broadcast %c32_i32_205 : i32 to vector<32x1xi32>
    %1080 = arith.cmpi slt, %2, %1079 : vector<32x1xi32>
    %1081 = arith.andi %1078, %1080 : vector<32x1xi1>
    %1082 = math.absf %1074 : vector<32x1xf32>
    %cst_206 = arith.constant -1.000000e+00 : f32
    %1083 = vector.broadcast %cst_206 : f32 to vector<32x1xf32>
    %1084 = arith.select %1081, %1082, %1083 : vector<32x1xi1>, vector<32x1xf32>
    %1085 = vector.shape_cast %1084 : vector<32x1xf32> to vector<1x32x1xf32>
    %cst_207 = arith.constant dense<0xFF800000> : vector<1xf32>
    %1086 = vector.multi_reduction <maximumf>, %1085, %cst_207 [1, 2] : vector<1x32x1xf32> to vector<1xf32>
    %1087 = vector.shape_cast %1086 : vector<1xf32> to vector<1x1x1xf32>
    %1088 = vector.extract %1087[0, 0, 0] : f32 from vector<1x1x1xf32>
    %1089 = vector.broadcast %1088 : f32 to vector<32x1xf32>
    %1090 = arith.cmpf oeq, %1084, %1089 : vector<32x1xf32>
    %c32_i32_208 = arith.constant 32 : i32
    %1091 = vector.broadcast %c32_i32_208 : i32 to vector<32x1xi32>
    %1092 = arith.select %1090, %2, %1091 : vector<32x1xi1>, vector<32x1xi32>
    %1093 = vector.shape_cast %1092 : vector<32x1xi32> to vector<1x32x1xi32>
    %cst_209 = arith.constant dense<2147483647> : vector<1xi32>
    %1094 = vector.multi_reduction <minsi>, %1093, %cst_209 [1, 2] : vector<1x32x1xi32> to vector<1xi32>
    %1095 = vector.shape_cast %1094 : vector<1xi32> to vector<1x1x1xi32>
    %1096 = vector.extract %1095[0, 0, 0] : i32 from vector<1x1x1xi32>
    %1097 = vector.broadcast %1096 : i32 to vector<32x1xi32>
    %1098 = arith.cmpi eq, %2, %1097 : vector<32x1xi32>
    %cst_210 = arith.constant 0.000000e+00 : f32
    %1099 = vector.shape_cast %1098 : vector<32x1xi1> to vector<32x1xi1>
    %1100 = vector.broadcast %1099 : vector<32x1xi1> to vector<32x128xi1>
    %1101 = vector.broadcast %cst_210 : f32 to vector<32x128xf32>
    %1102 = arith.select %1100, %1073, %1101 : vector<32x128xi1>, vector<32x128xf32>
    %cst_211 = arith.constant dense<0.000000e+00> : vector<128xf32>
    %1103 = vector.multi_reduction <add>, %1102, %cst_211 [0] : vector<32x128xf32> to vector<128xf32>
    %1104 = vector.shape_cast %1103 : vector<128xf32> to vector<1x128xf32>
    %1105 = vector.extract_strided_slice %1073 {offsets = [17, 0], sizes = [1, 128], strides = [1, 1]} : vector<32x128xf32> to vector<1x128xf32>
    %1106 = vector.extract_strided_slice %1104 {offsets = [0, 17], sizes = [1, 1], strides = [1, 1]} : vector<1x128xf32> to vector<1x1xf32>
    %1107 = vector.shape_cast %1106 : vector<1x1xf32> to vector<1x1x1xf32>
    %cst_212 = arith.constant dense<0.000000e+00> : vector<1xf32>
    %1108 = vector.multi_reduction <add>, %1107, %cst_212 [1, 2] : vector<1x1x1xf32> to vector<1xf32>
    %1109 = vector.shape_cast %1108 : vector<1xf32> to vector<1x1x1xf32>
    %1110 = vector.extract %1109[0, 0, 0] : f32 from vector<1x1x1xf32>
    %cst_213 = arith.constant 1.000000e+00 : f32
    %1111 = arith.divf %cst_213, %1110 : f32
    %1112 = vector.broadcast %1111 : f32 to vector<1x128xf32>
    %1113 = arith.mulf %1104, %1112 : vector<1x128xf32>
    %1114 = vector.extract_strided_slice %1074 {offsets = [17, 0], sizes = [1, 1], strides = [1, 1]} : vector<32x1xf32> to vector<1x1xf32>
    %1115 = vector.shape_cast %1114 : vector<1x1xf32> to vector<1x1x1xf32>
    %cst_214 = arith.constant dense<0.000000e+00> : vector<1xf32>
    %1116 = vector.multi_reduction <add>, %1115, %cst_214 [1, 2] : vector<1x1x1xf32> to vector<1xf32>
    %1117 = vector.shape_cast %1116 : vector<1xf32> to vector<1x1x1xf32>
    %1118 = vector.extract %1117[0, 0, 0] : f32 from vector<1x1x1xf32>
    %1119 = vector.broadcast %1118 : f32 to vector<32x1xf32>
    %1120 = arith.select %1098, %1119, %1074 : vector<32x1xi1>, vector<32x1xf32>
    %cst_215 = arith.constant 0.000000e+00 : f32
    %1121 = vector.broadcast %cst_215 : f32 to vector<32x1xf32>
    %1122 = arith.select %1076, %1121, %1120 : vector<32x1xi1>, vector<32x1xf32>
    %1123 = vector.shape_cast %1098 : vector<32x1xi1> to vector<32x1xi1>
    %1124 = vector.broadcast %1123 : vector<32x1xi1> to vector<32x128xi1>
    %1125 = vector.shape_cast %1105 : vector<1x128xf32> to vector<1x128xf32>
    %1126 = vector.broadcast %1125 : vector<1x128xf32> to vector<32x128xf32>
    %1127 = arith.select %1124, %1126, %1073 : vector<32x128xi1>, vector<32x128xf32>
    %1128 = vector.broadcast %1122 : vector<32x1xf32> to vector<32x128xf32>
    %1129 = vector.broadcast %1113 : vector<1x128xf32> to vector<32x128xf32>
    %1130 = arith.mulf %1128, %1129 : vector<32x128xf32>
    %1131 = arith.subf %1127, %1130 : vector<32x128xf32>
    %1132 = vector.shape_cast %1076 : vector<32x1xi1> to vector<32x1xi1>
    %1133 = vector.broadcast %1132 : vector<32x1xi1> to vector<32x128xi1>
    %1134 = vector.shape_cast %1113 : vector<1x128xf32> to vector<1x128xf32>
    %1135 = vector.broadcast %1134 : vector<1x128xf32> to vector<32x128xf32>
    %1136 = arith.select %1133, %1135, %1131 : vector<32x128xi1>, vector<32x128xf32>
    %1137 = vector.extract_strided_slice %1136 {offsets = [0, 18], sizes = [32, 1], strides = [1, 1]} : vector<32x128xf32> to vector<32x1xf32>
    %c18_i32 = arith.constant 18 : i32
    %1138 = vector.broadcast %c18_i32 : i32 to vector<32x1xi32>
    %1139 = arith.cmpi eq, %2, %1138 : vector<32x1xi32>
    %c18_i32_216 = arith.constant 18 : i32
    %1140 = vector.broadcast %c18_i32_216 : i32 to vector<32x1xi32>
    %1141 = arith.cmpi sge, %2, %1140 : vector<32x1xi32>
    %c32_i32_217 = arith.constant 32 : i32
    %1142 = vector.broadcast %c32_i32_217 : i32 to vector<32x1xi32>
    %1143 = arith.cmpi slt, %2, %1142 : vector<32x1xi32>
    %1144 = arith.andi %1141, %1143 : vector<32x1xi1>
    %1145 = math.absf %1137 : vector<32x1xf32>
    %cst_218 = arith.constant -1.000000e+00 : f32
    %1146 = vector.broadcast %cst_218 : f32 to vector<32x1xf32>
    %1147 = arith.select %1144, %1145, %1146 : vector<32x1xi1>, vector<32x1xf32>
    %1148 = vector.shape_cast %1147 : vector<32x1xf32> to vector<1x32x1xf32>
    %cst_219 = arith.constant dense<0xFF800000> : vector<1xf32>
    %1149 = vector.multi_reduction <maximumf>, %1148, %cst_219 [1, 2] : vector<1x32x1xf32> to vector<1xf32>
    %1150 = vector.shape_cast %1149 : vector<1xf32> to vector<1x1x1xf32>
    %1151 = vector.extract %1150[0, 0, 0] : f32 from vector<1x1x1xf32>
    %1152 = vector.broadcast %1151 : f32 to vector<32x1xf32>
    %1153 = arith.cmpf oeq, %1147, %1152 : vector<32x1xf32>
    %c32_i32_220 = arith.constant 32 : i32
    %1154 = vector.broadcast %c32_i32_220 : i32 to vector<32x1xi32>
    %1155 = arith.select %1153, %2, %1154 : vector<32x1xi1>, vector<32x1xi32>
    %1156 = vector.shape_cast %1155 : vector<32x1xi32> to vector<1x32x1xi32>
    %cst_221 = arith.constant dense<2147483647> : vector<1xi32>
    %1157 = vector.multi_reduction <minsi>, %1156, %cst_221 [1, 2] : vector<1x32x1xi32> to vector<1xi32>
    %1158 = vector.shape_cast %1157 : vector<1xi32> to vector<1x1x1xi32>
    %1159 = vector.extract %1158[0, 0, 0] : i32 from vector<1x1x1xi32>
    %1160 = vector.broadcast %1159 : i32 to vector<32x1xi32>
    %1161 = arith.cmpi eq, %2, %1160 : vector<32x1xi32>
    %cst_222 = arith.constant 0.000000e+00 : f32
    %1162 = vector.shape_cast %1161 : vector<32x1xi1> to vector<32x1xi1>
    %1163 = vector.broadcast %1162 : vector<32x1xi1> to vector<32x128xi1>
    %1164 = vector.broadcast %cst_222 : f32 to vector<32x128xf32>
    %1165 = arith.select %1163, %1136, %1164 : vector<32x128xi1>, vector<32x128xf32>
    %cst_223 = arith.constant dense<0.000000e+00> : vector<128xf32>
    %1166 = vector.multi_reduction <add>, %1165, %cst_223 [0] : vector<32x128xf32> to vector<128xf32>
    %1167 = vector.shape_cast %1166 : vector<128xf32> to vector<1x128xf32>
    %1168 = vector.extract_strided_slice %1136 {offsets = [18, 0], sizes = [1, 128], strides = [1, 1]} : vector<32x128xf32> to vector<1x128xf32>
    %1169 = vector.extract_strided_slice %1167 {offsets = [0, 18], sizes = [1, 1], strides = [1, 1]} : vector<1x128xf32> to vector<1x1xf32>
    %1170 = vector.shape_cast %1169 : vector<1x1xf32> to vector<1x1x1xf32>
    %cst_224 = arith.constant dense<0.000000e+00> : vector<1xf32>
    %1171 = vector.multi_reduction <add>, %1170, %cst_224 [1, 2] : vector<1x1x1xf32> to vector<1xf32>
    %1172 = vector.shape_cast %1171 : vector<1xf32> to vector<1x1x1xf32>
    %1173 = vector.extract %1172[0, 0, 0] : f32 from vector<1x1x1xf32>
    %cst_225 = arith.constant 1.000000e+00 : f32
    %1174 = arith.divf %cst_225, %1173 : f32
    %1175 = vector.broadcast %1174 : f32 to vector<1x128xf32>
    %1176 = arith.mulf %1167, %1175 : vector<1x128xf32>
    %1177 = vector.extract_strided_slice %1137 {offsets = [18, 0], sizes = [1, 1], strides = [1, 1]} : vector<32x1xf32> to vector<1x1xf32>
    %1178 = vector.shape_cast %1177 : vector<1x1xf32> to vector<1x1x1xf32>
    %cst_226 = arith.constant dense<0.000000e+00> : vector<1xf32>
    %1179 = vector.multi_reduction <add>, %1178, %cst_226 [1, 2] : vector<1x1x1xf32> to vector<1xf32>
    %1180 = vector.shape_cast %1179 : vector<1xf32> to vector<1x1x1xf32>
    %1181 = vector.extract %1180[0, 0, 0] : f32 from vector<1x1x1xf32>
    %1182 = vector.broadcast %1181 : f32 to vector<32x1xf32>
    %1183 = arith.select %1161, %1182, %1137 : vector<32x1xi1>, vector<32x1xf32>
    %cst_227 = arith.constant 0.000000e+00 : f32
    %1184 = vector.broadcast %cst_227 : f32 to vector<32x1xf32>
    %1185 = arith.select %1139, %1184, %1183 : vector<32x1xi1>, vector<32x1xf32>
    %1186 = vector.shape_cast %1161 : vector<32x1xi1> to vector<32x1xi1>
    %1187 = vector.broadcast %1186 : vector<32x1xi1> to vector<32x128xi1>
    %1188 = vector.shape_cast %1168 : vector<1x128xf32> to vector<1x128xf32>
    %1189 = vector.broadcast %1188 : vector<1x128xf32> to vector<32x128xf32>
    %1190 = arith.select %1187, %1189, %1136 : vector<32x128xi1>, vector<32x128xf32>
    %1191 = vector.broadcast %1185 : vector<32x1xf32> to vector<32x128xf32>
    %1192 = vector.broadcast %1176 : vector<1x128xf32> to vector<32x128xf32>
    %1193 = arith.mulf %1191, %1192 : vector<32x128xf32>
    %1194 = arith.subf %1190, %1193 : vector<32x128xf32>
    %1195 = vector.shape_cast %1139 : vector<32x1xi1> to vector<32x1xi1>
    %1196 = vector.broadcast %1195 : vector<32x1xi1> to vector<32x128xi1>
    %1197 = vector.shape_cast %1176 : vector<1x128xf32> to vector<1x128xf32>
    %1198 = vector.broadcast %1197 : vector<1x128xf32> to vector<32x128xf32>
    %1199 = arith.select %1196, %1198, %1194 : vector<32x128xi1>, vector<32x128xf32>
    %1200 = vector.extract_strided_slice %1199 {offsets = [0, 19], sizes = [32, 1], strides = [1, 1]} : vector<32x128xf32> to vector<32x1xf32>
    %c19_i32 = arith.constant 19 : i32
    %1201 = vector.broadcast %c19_i32 : i32 to vector<32x1xi32>
    %1202 = arith.cmpi eq, %2, %1201 : vector<32x1xi32>
    %c19_i32_228 = arith.constant 19 : i32
    %1203 = vector.broadcast %c19_i32_228 : i32 to vector<32x1xi32>
    %1204 = arith.cmpi sge, %2, %1203 : vector<32x1xi32>
    %c32_i32_229 = arith.constant 32 : i32
    %1205 = vector.broadcast %c32_i32_229 : i32 to vector<32x1xi32>
    %1206 = arith.cmpi slt, %2, %1205 : vector<32x1xi32>
    %1207 = arith.andi %1204, %1206 : vector<32x1xi1>
    %1208 = math.absf %1200 : vector<32x1xf32>
    %cst_230 = arith.constant -1.000000e+00 : f32
    %1209 = vector.broadcast %cst_230 : f32 to vector<32x1xf32>
    %1210 = arith.select %1207, %1208, %1209 : vector<32x1xi1>, vector<32x1xf32>
    %1211 = vector.shape_cast %1210 : vector<32x1xf32> to vector<1x32x1xf32>
    %cst_231 = arith.constant dense<0xFF800000> : vector<1xf32>
    %1212 = vector.multi_reduction <maximumf>, %1211, %cst_231 [1, 2] : vector<1x32x1xf32> to vector<1xf32>
    %1213 = vector.shape_cast %1212 : vector<1xf32> to vector<1x1x1xf32>
    %1214 = vector.extract %1213[0, 0, 0] : f32 from vector<1x1x1xf32>
    %1215 = vector.broadcast %1214 : f32 to vector<32x1xf32>
    %1216 = arith.cmpf oeq, %1210, %1215 : vector<32x1xf32>
    %c32_i32_232 = arith.constant 32 : i32
    %1217 = vector.broadcast %c32_i32_232 : i32 to vector<32x1xi32>
    %1218 = arith.select %1216, %2, %1217 : vector<32x1xi1>, vector<32x1xi32>
    %1219 = vector.shape_cast %1218 : vector<32x1xi32> to vector<1x32x1xi32>
    %cst_233 = arith.constant dense<2147483647> : vector<1xi32>
    %1220 = vector.multi_reduction <minsi>, %1219, %cst_233 [1, 2] : vector<1x32x1xi32> to vector<1xi32>
    %1221 = vector.shape_cast %1220 : vector<1xi32> to vector<1x1x1xi32>
    %1222 = vector.extract %1221[0, 0, 0] : i32 from vector<1x1x1xi32>
    %1223 = vector.broadcast %1222 : i32 to vector<32x1xi32>
    %1224 = arith.cmpi eq, %2, %1223 : vector<32x1xi32>
    %cst_234 = arith.constant 0.000000e+00 : f32
    %1225 = vector.shape_cast %1224 : vector<32x1xi1> to vector<32x1xi1>
    %1226 = vector.broadcast %1225 : vector<32x1xi1> to vector<32x128xi1>
    %1227 = vector.broadcast %cst_234 : f32 to vector<32x128xf32>
    %1228 = arith.select %1226, %1199, %1227 : vector<32x128xi1>, vector<32x128xf32>
    %cst_235 = arith.constant dense<0.000000e+00> : vector<128xf32>
    %1229 = vector.multi_reduction <add>, %1228, %cst_235 [0] : vector<32x128xf32> to vector<128xf32>
    %1230 = vector.shape_cast %1229 : vector<128xf32> to vector<1x128xf32>
    %1231 = vector.extract_strided_slice %1199 {offsets = [19, 0], sizes = [1, 128], strides = [1, 1]} : vector<32x128xf32> to vector<1x128xf32>
    %1232 = vector.extract_strided_slice %1230 {offsets = [0, 19], sizes = [1, 1], strides = [1, 1]} : vector<1x128xf32> to vector<1x1xf32>
    %1233 = vector.shape_cast %1232 : vector<1x1xf32> to vector<1x1x1xf32>
    %cst_236 = arith.constant dense<0.000000e+00> : vector<1xf32>
    %1234 = vector.multi_reduction <add>, %1233, %cst_236 [1, 2] : vector<1x1x1xf32> to vector<1xf32>
    %1235 = vector.shape_cast %1234 : vector<1xf32> to vector<1x1x1xf32>
    %1236 = vector.extract %1235[0, 0, 0] : f32 from vector<1x1x1xf32>
    %cst_237 = arith.constant 1.000000e+00 : f32
    %1237 = arith.divf %cst_237, %1236 : f32
    %1238 = vector.broadcast %1237 : f32 to vector<1x128xf32>
    %1239 = arith.mulf %1230, %1238 : vector<1x128xf32>
    %1240 = vector.extract_strided_slice %1200 {offsets = [19, 0], sizes = [1, 1], strides = [1, 1]} : vector<32x1xf32> to vector<1x1xf32>
    %1241 = vector.shape_cast %1240 : vector<1x1xf32> to vector<1x1x1xf32>
    %cst_238 = arith.constant dense<0.000000e+00> : vector<1xf32>
    %1242 = vector.multi_reduction <add>, %1241, %cst_238 [1, 2] : vector<1x1x1xf32> to vector<1xf32>
    %1243 = vector.shape_cast %1242 : vector<1xf32> to vector<1x1x1xf32>
    %1244 = vector.extract %1243[0, 0, 0] : f32 from vector<1x1x1xf32>
    %1245 = vector.broadcast %1244 : f32 to vector<32x1xf32>
    %1246 = arith.select %1224, %1245, %1200 : vector<32x1xi1>, vector<32x1xf32>
    %cst_239 = arith.constant 0.000000e+00 : f32
    %1247 = vector.broadcast %cst_239 : f32 to vector<32x1xf32>
    %1248 = arith.select %1202, %1247, %1246 : vector<32x1xi1>, vector<32x1xf32>
    %1249 = vector.shape_cast %1224 : vector<32x1xi1> to vector<32x1xi1>
    %1250 = vector.broadcast %1249 : vector<32x1xi1> to vector<32x128xi1>
    %1251 = vector.shape_cast %1231 : vector<1x128xf32> to vector<1x128xf32>
    %1252 = vector.broadcast %1251 : vector<1x128xf32> to vector<32x128xf32>
    %1253 = arith.select %1250, %1252, %1199 : vector<32x128xi1>, vector<32x128xf32>
    %1254 = vector.broadcast %1248 : vector<32x1xf32> to vector<32x128xf32>
    %1255 = vector.broadcast %1239 : vector<1x128xf32> to vector<32x128xf32>
    %1256 = arith.mulf %1254, %1255 : vector<32x128xf32>
    %1257 = arith.subf %1253, %1256 : vector<32x128xf32>
    %1258 = vector.shape_cast %1202 : vector<32x1xi1> to vector<32x1xi1>
    %1259 = vector.broadcast %1258 : vector<32x1xi1> to vector<32x128xi1>
    %1260 = vector.shape_cast %1239 : vector<1x128xf32> to vector<1x128xf32>
    %1261 = vector.broadcast %1260 : vector<1x128xf32> to vector<32x128xf32>
    %1262 = arith.select %1259, %1261, %1257 : vector<32x128xi1>, vector<32x128xf32>
    %1263 = vector.extract_strided_slice %1262 {offsets = [0, 20], sizes = [32, 1], strides = [1, 1]} : vector<32x128xf32> to vector<32x1xf32>
    %c20_i32 = arith.constant 20 : i32
    %1264 = vector.broadcast %c20_i32 : i32 to vector<32x1xi32>
    %1265 = arith.cmpi eq, %2, %1264 : vector<32x1xi32>
    %c20_i32_240 = arith.constant 20 : i32
    %1266 = vector.broadcast %c20_i32_240 : i32 to vector<32x1xi32>
    %1267 = arith.cmpi sge, %2, %1266 : vector<32x1xi32>
    %c32_i32_241 = arith.constant 32 : i32
    %1268 = vector.broadcast %c32_i32_241 : i32 to vector<32x1xi32>
    %1269 = arith.cmpi slt, %2, %1268 : vector<32x1xi32>
    %1270 = arith.andi %1267, %1269 : vector<32x1xi1>
    %1271 = math.absf %1263 : vector<32x1xf32>
    %cst_242 = arith.constant -1.000000e+00 : f32
    %1272 = vector.broadcast %cst_242 : f32 to vector<32x1xf32>
    %1273 = arith.select %1270, %1271, %1272 : vector<32x1xi1>, vector<32x1xf32>
    %1274 = vector.shape_cast %1273 : vector<32x1xf32> to vector<1x32x1xf32>
    %cst_243 = arith.constant dense<0xFF800000> : vector<1xf32>
    %1275 = vector.multi_reduction <maximumf>, %1274, %cst_243 [1, 2] : vector<1x32x1xf32> to vector<1xf32>
    %1276 = vector.shape_cast %1275 : vector<1xf32> to vector<1x1x1xf32>
    %1277 = vector.extract %1276[0, 0, 0] : f32 from vector<1x1x1xf32>
    %1278 = vector.broadcast %1277 : f32 to vector<32x1xf32>
    %1279 = arith.cmpf oeq, %1273, %1278 : vector<32x1xf32>
    %c32_i32_244 = arith.constant 32 : i32
    %1280 = vector.broadcast %c32_i32_244 : i32 to vector<32x1xi32>
    %1281 = arith.select %1279, %2, %1280 : vector<32x1xi1>, vector<32x1xi32>
    %1282 = vector.shape_cast %1281 : vector<32x1xi32> to vector<1x32x1xi32>
    %cst_245 = arith.constant dense<2147483647> : vector<1xi32>
    %1283 = vector.multi_reduction <minsi>, %1282, %cst_245 [1, 2] : vector<1x32x1xi32> to vector<1xi32>
    %1284 = vector.shape_cast %1283 : vector<1xi32> to vector<1x1x1xi32>
    %1285 = vector.extract %1284[0, 0, 0] : i32 from vector<1x1x1xi32>
    %1286 = vector.broadcast %1285 : i32 to vector<32x1xi32>
    %1287 = arith.cmpi eq, %2, %1286 : vector<32x1xi32>
    %cst_246 = arith.constant 0.000000e+00 : f32
    %1288 = vector.shape_cast %1287 : vector<32x1xi1> to vector<32x1xi1>
    %1289 = vector.broadcast %1288 : vector<32x1xi1> to vector<32x128xi1>
    %1290 = vector.broadcast %cst_246 : f32 to vector<32x128xf32>
    %1291 = arith.select %1289, %1262, %1290 : vector<32x128xi1>, vector<32x128xf32>
    %cst_247 = arith.constant dense<0.000000e+00> : vector<128xf32>
    %1292 = vector.multi_reduction <add>, %1291, %cst_247 [0] : vector<32x128xf32> to vector<128xf32>
    %1293 = vector.shape_cast %1292 : vector<128xf32> to vector<1x128xf32>
    %1294 = vector.extract_strided_slice %1262 {offsets = [20, 0], sizes = [1, 128], strides = [1, 1]} : vector<32x128xf32> to vector<1x128xf32>
    %1295 = vector.extract_strided_slice %1293 {offsets = [0, 20], sizes = [1, 1], strides = [1, 1]} : vector<1x128xf32> to vector<1x1xf32>
    %1296 = vector.shape_cast %1295 : vector<1x1xf32> to vector<1x1x1xf32>
    %cst_248 = arith.constant dense<0.000000e+00> : vector<1xf32>
    %1297 = vector.multi_reduction <add>, %1296, %cst_248 [1, 2] : vector<1x1x1xf32> to vector<1xf32>
    %1298 = vector.shape_cast %1297 : vector<1xf32> to vector<1x1x1xf32>
    %1299 = vector.extract %1298[0, 0, 0] : f32 from vector<1x1x1xf32>
    %cst_249 = arith.constant 1.000000e+00 : f32
    %1300 = arith.divf %cst_249, %1299 : f32
    %1301 = vector.broadcast %1300 : f32 to vector<1x128xf32>
    %1302 = arith.mulf %1293, %1301 : vector<1x128xf32>
    %1303 = vector.extract_strided_slice %1263 {offsets = [20, 0], sizes = [1, 1], strides = [1, 1]} : vector<32x1xf32> to vector<1x1xf32>
    %1304 = vector.shape_cast %1303 : vector<1x1xf32> to vector<1x1x1xf32>
    %cst_250 = arith.constant dense<0.000000e+00> : vector<1xf32>
    %1305 = vector.multi_reduction <add>, %1304, %cst_250 [1, 2] : vector<1x1x1xf32> to vector<1xf32>
    %1306 = vector.shape_cast %1305 : vector<1xf32> to vector<1x1x1xf32>
    %1307 = vector.extract %1306[0, 0, 0] : f32 from vector<1x1x1xf32>
    %1308 = vector.broadcast %1307 : f32 to vector<32x1xf32>
    %1309 = arith.select %1287, %1308, %1263 : vector<32x1xi1>, vector<32x1xf32>
    %cst_251 = arith.constant 0.000000e+00 : f32
    %1310 = vector.broadcast %cst_251 : f32 to vector<32x1xf32>
    %1311 = arith.select %1265, %1310, %1309 : vector<32x1xi1>, vector<32x1xf32>
    %1312 = vector.shape_cast %1287 : vector<32x1xi1> to vector<32x1xi1>
    %1313 = vector.broadcast %1312 : vector<32x1xi1> to vector<32x128xi1>
    %1314 = vector.shape_cast %1294 : vector<1x128xf32> to vector<1x128xf32>
    %1315 = vector.broadcast %1314 : vector<1x128xf32> to vector<32x128xf32>
    %1316 = arith.select %1313, %1315, %1262 : vector<32x128xi1>, vector<32x128xf32>
    %1317 = vector.broadcast %1311 : vector<32x1xf32> to vector<32x128xf32>
    %1318 = vector.broadcast %1302 : vector<1x128xf32> to vector<32x128xf32>
    %1319 = arith.mulf %1317, %1318 : vector<32x128xf32>
    %1320 = arith.subf %1316, %1319 : vector<32x128xf32>
    %1321 = vector.shape_cast %1265 : vector<32x1xi1> to vector<32x1xi1>
    %1322 = vector.broadcast %1321 : vector<32x1xi1> to vector<32x128xi1>
    %1323 = vector.shape_cast %1302 : vector<1x128xf32> to vector<1x128xf32>
    %1324 = vector.broadcast %1323 : vector<1x128xf32> to vector<32x128xf32>
    %1325 = arith.select %1322, %1324, %1320 : vector<32x128xi1>, vector<32x128xf32>
    %1326 = vector.extract_strided_slice %1325 {offsets = [0, 21], sizes = [32, 1], strides = [1, 1]} : vector<32x128xf32> to vector<32x1xf32>
    %c21_i32 = arith.constant 21 : i32
    %1327 = vector.broadcast %c21_i32 : i32 to vector<32x1xi32>
    %1328 = arith.cmpi eq, %2, %1327 : vector<32x1xi32>
    %c21_i32_252 = arith.constant 21 : i32
    %1329 = vector.broadcast %c21_i32_252 : i32 to vector<32x1xi32>
    %1330 = arith.cmpi sge, %2, %1329 : vector<32x1xi32>
    %c32_i32_253 = arith.constant 32 : i32
    %1331 = vector.broadcast %c32_i32_253 : i32 to vector<32x1xi32>
    %1332 = arith.cmpi slt, %2, %1331 : vector<32x1xi32>
    %1333 = arith.andi %1330, %1332 : vector<32x1xi1>
    %1334 = math.absf %1326 : vector<32x1xf32>
    %cst_254 = arith.constant -1.000000e+00 : f32
    %1335 = vector.broadcast %cst_254 : f32 to vector<32x1xf32>
    %1336 = arith.select %1333, %1334, %1335 : vector<32x1xi1>, vector<32x1xf32>
    %1337 = vector.shape_cast %1336 : vector<32x1xf32> to vector<1x32x1xf32>
    %cst_255 = arith.constant dense<0xFF800000> : vector<1xf32>
    %1338 = vector.multi_reduction <maximumf>, %1337, %cst_255 [1, 2] : vector<1x32x1xf32> to vector<1xf32>
    %1339 = vector.shape_cast %1338 : vector<1xf32> to vector<1x1x1xf32>
    %1340 = vector.extract %1339[0, 0, 0] : f32 from vector<1x1x1xf32>
    %1341 = vector.broadcast %1340 : f32 to vector<32x1xf32>
    %1342 = arith.cmpf oeq, %1336, %1341 : vector<32x1xf32>
    %c32_i32_256 = arith.constant 32 : i32
    %1343 = vector.broadcast %c32_i32_256 : i32 to vector<32x1xi32>
    %1344 = arith.select %1342, %2, %1343 : vector<32x1xi1>, vector<32x1xi32>
    %1345 = vector.shape_cast %1344 : vector<32x1xi32> to vector<1x32x1xi32>
    %cst_257 = arith.constant dense<2147483647> : vector<1xi32>
    %1346 = vector.multi_reduction <minsi>, %1345, %cst_257 [1, 2] : vector<1x32x1xi32> to vector<1xi32>
    %1347 = vector.shape_cast %1346 : vector<1xi32> to vector<1x1x1xi32>
    %1348 = vector.extract %1347[0, 0, 0] : i32 from vector<1x1x1xi32>
    %1349 = vector.broadcast %1348 : i32 to vector<32x1xi32>
    %1350 = arith.cmpi eq, %2, %1349 : vector<32x1xi32>
    %cst_258 = arith.constant 0.000000e+00 : f32
    %1351 = vector.shape_cast %1350 : vector<32x1xi1> to vector<32x1xi1>
    %1352 = vector.broadcast %1351 : vector<32x1xi1> to vector<32x128xi1>
    %1353 = vector.broadcast %cst_258 : f32 to vector<32x128xf32>
    %1354 = arith.select %1352, %1325, %1353 : vector<32x128xi1>, vector<32x128xf32>
    %cst_259 = arith.constant dense<0.000000e+00> : vector<128xf32>
    %1355 = vector.multi_reduction <add>, %1354, %cst_259 [0] : vector<32x128xf32> to vector<128xf32>
    %1356 = vector.shape_cast %1355 : vector<128xf32> to vector<1x128xf32>
    %1357 = vector.extract_strided_slice %1325 {offsets = [21, 0], sizes = [1, 128], strides = [1, 1]} : vector<32x128xf32> to vector<1x128xf32>
    %1358 = vector.extract_strided_slice %1356 {offsets = [0, 21], sizes = [1, 1], strides = [1, 1]} : vector<1x128xf32> to vector<1x1xf32>
    %1359 = vector.shape_cast %1358 : vector<1x1xf32> to vector<1x1x1xf32>
    %cst_260 = arith.constant dense<0.000000e+00> : vector<1xf32>
    %1360 = vector.multi_reduction <add>, %1359, %cst_260 [1, 2] : vector<1x1x1xf32> to vector<1xf32>
    %1361 = vector.shape_cast %1360 : vector<1xf32> to vector<1x1x1xf32>
    %1362 = vector.extract %1361[0, 0, 0] : f32 from vector<1x1x1xf32>
    %cst_261 = arith.constant 1.000000e+00 : f32
    %1363 = arith.divf %cst_261, %1362 : f32
    %1364 = vector.broadcast %1363 : f32 to vector<1x128xf32>
    %1365 = arith.mulf %1356, %1364 : vector<1x128xf32>
    %1366 = vector.extract_strided_slice %1326 {offsets = [21, 0], sizes = [1, 1], strides = [1, 1]} : vector<32x1xf32> to vector<1x1xf32>
    %1367 = vector.shape_cast %1366 : vector<1x1xf32> to vector<1x1x1xf32>
    %cst_262 = arith.constant dense<0.000000e+00> : vector<1xf32>
    %1368 = vector.multi_reduction <add>, %1367, %cst_262 [1, 2] : vector<1x1x1xf32> to vector<1xf32>
    %1369 = vector.shape_cast %1368 : vector<1xf32> to vector<1x1x1xf32>
    %1370 = vector.extract %1369[0, 0, 0] : f32 from vector<1x1x1xf32>
    %1371 = vector.broadcast %1370 : f32 to vector<32x1xf32>
    %1372 = arith.select %1350, %1371, %1326 : vector<32x1xi1>, vector<32x1xf32>
    %cst_263 = arith.constant 0.000000e+00 : f32
    %1373 = vector.broadcast %cst_263 : f32 to vector<32x1xf32>
    %1374 = arith.select %1328, %1373, %1372 : vector<32x1xi1>, vector<32x1xf32>
    %1375 = vector.shape_cast %1350 : vector<32x1xi1> to vector<32x1xi1>
    %1376 = vector.broadcast %1375 : vector<32x1xi1> to vector<32x128xi1>
    %1377 = vector.shape_cast %1357 : vector<1x128xf32> to vector<1x128xf32>
    %1378 = vector.broadcast %1377 : vector<1x128xf32> to vector<32x128xf32>
    %1379 = arith.select %1376, %1378, %1325 : vector<32x128xi1>, vector<32x128xf32>
    %1380 = vector.broadcast %1374 : vector<32x1xf32> to vector<32x128xf32>
    %1381 = vector.broadcast %1365 : vector<1x128xf32> to vector<32x128xf32>
    %1382 = arith.mulf %1380, %1381 : vector<32x128xf32>
    %1383 = arith.subf %1379, %1382 : vector<32x128xf32>
    %1384 = vector.shape_cast %1328 : vector<32x1xi1> to vector<32x1xi1>
    %1385 = vector.broadcast %1384 : vector<32x1xi1> to vector<32x128xi1>
    %1386 = vector.shape_cast %1365 : vector<1x128xf32> to vector<1x128xf32>
    %1387 = vector.broadcast %1386 : vector<1x128xf32> to vector<32x128xf32>
    %1388 = arith.select %1385, %1387, %1383 : vector<32x128xi1>, vector<32x128xf32>
    %1389 = vector.extract_strided_slice %1388 {offsets = [0, 22], sizes = [32, 1], strides = [1, 1]} : vector<32x128xf32> to vector<32x1xf32>
    %c22_i32 = arith.constant 22 : i32
    %1390 = vector.broadcast %c22_i32 : i32 to vector<32x1xi32>
    %1391 = arith.cmpi eq, %2, %1390 : vector<32x1xi32>
    %c22_i32_264 = arith.constant 22 : i32
    %1392 = vector.broadcast %c22_i32_264 : i32 to vector<32x1xi32>
    %1393 = arith.cmpi sge, %2, %1392 : vector<32x1xi32>
    %c32_i32_265 = arith.constant 32 : i32
    %1394 = vector.broadcast %c32_i32_265 : i32 to vector<32x1xi32>
    %1395 = arith.cmpi slt, %2, %1394 : vector<32x1xi32>
    %1396 = arith.andi %1393, %1395 : vector<32x1xi1>
    %1397 = math.absf %1389 : vector<32x1xf32>
    %cst_266 = arith.constant -1.000000e+00 : f32
    %1398 = vector.broadcast %cst_266 : f32 to vector<32x1xf32>
    %1399 = arith.select %1396, %1397, %1398 : vector<32x1xi1>, vector<32x1xf32>
    %1400 = vector.shape_cast %1399 : vector<32x1xf32> to vector<1x32x1xf32>
    %cst_267 = arith.constant dense<0xFF800000> : vector<1xf32>
    %1401 = vector.multi_reduction <maximumf>, %1400, %cst_267 [1, 2] : vector<1x32x1xf32> to vector<1xf32>
    %1402 = vector.shape_cast %1401 : vector<1xf32> to vector<1x1x1xf32>
    %1403 = vector.extract %1402[0, 0, 0] : f32 from vector<1x1x1xf32>
    %1404 = vector.broadcast %1403 : f32 to vector<32x1xf32>
    %1405 = arith.cmpf oeq, %1399, %1404 : vector<32x1xf32>
    %c32_i32_268 = arith.constant 32 : i32
    %1406 = vector.broadcast %c32_i32_268 : i32 to vector<32x1xi32>
    %1407 = arith.select %1405, %2, %1406 : vector<32x1xi1>, vector<32x1xi32>
    %1408 = vector.shape_cast %1407 : vector<32x1xi32> to vector<1x32x1xi32>
    %cst_269 = arith.constant dense<2147483647> : vector<1xi32>
    %1409 = vector.multi_reduction <minsi>, %1408, %cst_269 [1, 2] : vector<1x32x1xi32> to vector<1xi32>
    %1410 = vector.shape_cast %1409 : vector<1xi32> to vector<1x1x1xi32>
    %1411 = vector.extract %1410[0, 0, 0] : i32 from vector<1x1x1xi32>
    %1412 = vector.broadcast %1411 : i32 to vector<32x1xi32>
    %1413 = arith.cmpi eq, %2, %1412 : vector<32x1xi32>
    %cst_270 = arith.constant 0.000000e+00 : f32
    %1414 = vector.shape_cast %1413 : vector<32x1xi1> to vector<32x1xi1>
    %1415 = vector.broadcast %1414 : vector<32x1xi1> to vector<32x128xi1>
    %1416 = vector.broadcast %cst_270 : f32 to vector<32x128xf32>
    %1417 = arith.select %1415, %1388, %1416 : vector<32x128xi1>, vector<32x128xf32>
    %cst_271 = arith.constant dense<0.000000e+00> : vector<128xf32>
    %1418 = vector.multi_reduction <add>, %1417, %cst_271 [0] : vector<32x128xf32> to vector<128xf32>
    %1419 = vector.shape_cast %1418 : vector<128xf32> to vector<1x128xf32>
    %1420 = vector.extract_strided_slice %1388 {offsets = [22, 0], sizes = [1, 128], strides = [1, 1]} : vector<32x128xf32> to vector<1x128xf32>
    %1421 = vector.extract_strided_slice %1419 {offsets = [0, 22], sizes = [1, 1], strides = [1, 1]} : vector<1x128xf32> to vector<1x1xf32>
    %1422 = vector.shape_cast %1421 : vector<1x1xf32> to vector<1x1x1xf32>
    %cst_272 = arith.constant dense<0.000000e+00> : vector<1xf32>
    %1423 = vector.multi_reduction <add>, %1422, %cst_272 [1, 2] : vector<1x1x1xf32> to vector<1xf32>
    %1424 = vector.shape_cast %1423 : vector<1xf32> to vector<1x1x1xf32>
    %1425 = vector.extract %1424[0, 0, 0] : f32 from vector<1x1x1xf32>
    %cst_273 = arith.constant 1.000000e+00 : f32
    %1426 = arith.divf %cst_273, %1425 : f32
    %1427 = vector.broadcast %1426 : f32 to vector<1x128xf32>
    %1428 = arith.mulf %1419, %1427 : vector<1x128xf32>
    %1429 = vector.extract_strided_slice %1389 {offsets = [22, 0], sizes = [1, 1], strides = [1, 1]} : vector<32x1xf32> to vector<1x1xf32>
    %1430 = vector.shape_cast %1429 : vector<1x1xf32> to vector<1x1x1xf32>
    %cst_274 = arith.constant dense<0.000000e+00> : vector<1xf32>
    %1431 = vector.multi_reduction <add>, %1430, %cst_274 [1, 2] : vector<1x1x1xf32> to vector<1xf32>
    %1432 = vector.shape_cast %1431 : vector<1xf32> to vector<1x1x1xf32>
    %1433 = vector.extract %1432[0, 0, 0] : f32 from vector<1x1x1xf32>
    %1434 = vector.broadcast %1433 : f32 to vector<32x1xf32>
    %1435 = arith.select %1413, %1434, %1389 : vector<32x1xi1>, vector<32x1xf32>
    %cst_275 = arith.constant 0.000000e+00 : f32
    %1436 = vector.broadcast %cst_275 : f32 to vector<32x1xf32>
    %1437 = arith.select %1391, %1436, %1435 : vector<32x1xi1>, vector<32x1xf32>
    %1438 = vector.shape_cast %1413 : vector<32x1xi1> to vector<32x1xi1>
    %1439 = vector.broadcast %1438 : vector<32x1xi1> to vector<32x128xi1>
    %1440 = vector.shape_cast %1420 : vector<1x128xf32> to vector<1x128xf32>
    %1441 = vector.broadcast %1440 : vector<1x128xf32> to vector<32x128xf32>
    %1442 = arith.select %1439, %1441, %1388 : vector<32x128xi1>, vector<32x128xf32>
    %1443 = vector.broadcast %1437 : vector<32x1xf32> to vector<32x128xf32>
    %1444 = vector.broadcast %1428 : vector<1x128xf32> to vector<32x128xf32>
    %1445 = arith.mulf %1443, %1444 : vector<32x128xf32>
    %1446 = arith.subf %1442, %1445 : vector<32x128xf32>
    %1447 = vector.shape_cast %1391 : vector<32x1xi1> to vector<32x1xi1>
    %1448 = vector.broadcast %1447 : vector<32x1xi1> to vector<32x128xi1>
    %1449 = vector.shape_cast %1428 : vector<1x128xf32> to vector<1x128xf32>
    %1450 = vector.broadcast %1449 : vector<1x128xf32> to vector<32x128xf32>
    %1451 = arith.select %1448, %1450, %1446 : vector<32x128xi1>, vector<32x128xf32>
    %1452 = vector.extract_strided_slice %1451 {offsets = [0, 23], sizes = [32, 1], strides = [1, 1]} : vector<32x128xf32> to vector<32x1xf32>
    %c23_i32 = arith.constant 23 : i32
    %1453 = vector.broadcast %c23_i32 : i32 to vector<32x1xi32>
    %1454 = arith.cmpi eq, %2, %1453 : vector<32x1xi32>
    %c23_i32_276 = arith.constant 23 : i32
    %1455 = vector.broadcast %c23_i32_276 : i32 to vector<32x1xi32>
    %1456 = arith.cmpi sge, %2, %1455 : vector<32x1xi32>
    %c32_i32_277 = arith.constant 32 : i32
    %1457 = vector.broadcast %c32_i32_277 : i32 to vector<32x1xi32>
    %1458 = arith.cmpi slt, %2, %1457 : vector<32x1xi32>
    %1459 = arith.andi %1456, %1458 : vector<32x1xi1>
    %1460 = math.absf %1452 : vector<32x1xf32>
    %cst_278 = arith.constant -1.000000e+00 : f32
    %1461 = vector.broadcast %cst_278 : f32 to vector<32x1xf32>
    %1462 = arith.select %1459, %1460, %1461 : vector<32x1xi1>, vector<32x1xf32>
    %1463 = vector.shape_cast %1462 : vector<32x1xf32> to vector<1x32x1xf32>
    %cst_279 = arith.constant dense<0xFF800000> : vector<1xf32>
    %1464 = vector.multi_reduction <maximumf>, %1463, %cst_279 [1, 2] : vector<1x32x1xf32> to vector<1xf32>
    %1465 = vector.shape_cast %1464 : vector<1xf32> to vector<1x1x1xf32>
    %1466 = vector.extract %1465[0, 0, 0] : f32 from vector<1x1x1xf32>
    %1467 = vector.broadcast %1466 : f32 to vector<32x1xf32>
    %1468 = arith.cmpf oeq, %1462, %1467 : vector<32x1xf32>
    %c32_i32_280 = arith.constant 32 : i32
    %1469 = vector.broadcast %c32_i32_280 : i32 to vector<32x1xi32>
    %1470 = arith.select %1468, %2, %1469 : vector<32x1xi1>, vector<32x1xi32>
    %1471 = vector.shape_cast %1470 : vector<32x1xi32> to vector<1x32x1xi32>
    %cst_281 = arith.constant dense<2147483647> : vector<1xi32>
    %1472 = vector.multi_reduction <minsi>, %1471, %cst_281 [1, 2] : vector<1x32x1xi32> to vector<1xi32>
    %1473 = vector.shape_cast %1472 : vector<1xi32> to vector<1x1x1xi32>
    %1474 = vector.extract %1473[0, 0, 0] : i32 from vector<1x1x1xi32>
    %1475 = vector.broadcast %1474 : i32 to vector<32x1xi32>
    %1476 = arith.cmpi eq, %2, %1475 : vector<32x1xi32>
    %cst_282 = arith.constant 0.000000e+00 : f32
    %1477 = vector.shape_cast %1476 : vector<32x1xi1> to vector<32x1xi1>
    %1478 = vector.broadcast %1477 : vector<32x1xi1> to vector<32x128xi1>
    %1479 = vector.broadcast %cst_282 : f32 to vector<32x128xf32>
    %1480 = arith.select %1478, %1451, %1479 : vector<32x128xi1>, vector<32x128xf32>
    %cst_283 = arith.constant dense<0.000000e+00> : vector<128xf32>
    %1481 = vector.multi_reduction <add>, %1480, %cst_283 [0] : vector<32x128xf32> to vector<128xf32>
    %1482 = vector.shape_cast %1481 : vector<128xf32> to vector<1x128xf32>
    %1483 = vector.extract_strided_slice %1451 {offsets = [23, 0], sizes = [1, 128], strides = [1, 1]} : vector<32x128xf32> to vector<1x128xf32>
    %1484 = vector.extract_strided_slice %1482 {offsets = [0, 23], sizes = [1, 1], strides = [1, 1]} : vector<1x128xf32> to vector<1x1xf32>
    %1485 = vector.shape_cast %1484 : vector<1x1xf32> to vector<1x1x1xf32>
    %cst_284 = arith.constant dense<0.000000e+00> : vector<1xf32>
    %1486 = vector.multi_reduction <add>, %1485, %cst_284 [1, 2] : vector<1x1x1xf32> to vector<1xf32>
    %1487 = vector.shape_cast %1486 : vector<1xf32> to vector<1x1x1xf32>
    %1488 = vector.extract %1487[0, 0, 0] : f32 from vector<1x1x1xf32>
    %cst_285 = arith.constant 1.000000e+00 : f32
    %1489 = arith.divf %cst_285, %1488 : f32
    %1490 = vector.broadcast %1489 : f32 to vector<1x128xf32>
    %1491 = arith.mulf %1482, %1490 : vector<1x128xf32>
    %1492 = vector.extract_strided_slice %1452 {offsets = [23, 0], sizes = [1, 1], strides = [1, 1]} : vector<32x1xf32> to vector<1x1xf32>
    %1493 = vector.shape_cast %1492 : vector<1x1xf32> to vector<1x1x1xf32>
    %cst_286 = arith.constant dense<0.000000e+00> : vector<1xf32>
    %1494 = vector.multi_reduction <add>, %1493, %cst_286 [1, 2] : vector<1x1x1xf32> to vector<1xf32>
    %1495 = vector.shape_cast %1494 : vector<1xf32> to vector<1x1x1xf32>
    %1496 = vector.extract %1495[0, 0, 0] : f32 from vector<1x1x1xf32>
    %1497 = vector.broadcast %1496 : f32 to vector<32x1xf32>
    %1498 = arith.select %1476, %1497, %1452 : vector<32x1xi1>, vector<32x1xf32>
    %cst_287 = arith.constant 0.000000e+00 : f32
    %1499 = vector.broadcast %cst_287 : f32 to vector<32x1xf32>
    %1500 = arith.select %1454, %1499, %1498 : vector<32x1xi1>, vector<32x1xf32>
    %1501 = vector.shape_cast %1476 : vector<32x1xi1> to vector<32x1xi1>
    %1502 = vector.broadcast %1501 : vector<32x1xi1> to vector<32x128xi1>
    %1503 = vector.shape_cast %1483 : vector<1x128xf32> to vector<1x128xf32>
    %1504 = vector.broadcast %1503 : vector<1x128xf32> to vector<32x128xf32>
    %1505 = arith.select %1502, %1504, %1451 : vector<32x128xi1>, vector<32x128xf32>
    %1506 = vector.broadcast %1500 : vector<32x1xf32> to vector<32x128xf32>
    %1507 = vector.broadcast %1491 : vector<1x128xf32> to vector<32x128xf32>
    %1508 = arith.mulf %1506, %1507 : vector<32x128xf32>
    %1509 = arith.subf %1505, %1508 : vector<32x128xf32>
    %1510 = vector.shape_cast %1454 : vector<32x1xi1> to vector<32x1xi1>
    %1511 = vector.broadcast %1510 : vector<32x1xi1> to vector<32x128xi1>
    %1512 = vector.shape_cast %1491 : vector<1x128xf32> to vector<1x128xf32>
    %1513 = vector.broadcast %1512 : vector<1x128xf32> to vector<32x128xf32>
    %1514 = arith.select %1511, %1513, %1509 : vector<32x128xi1>, vector<32x128xf32>
    %1515 = vector.extract_strided_slice %1514 {offsets = [0, 24], sizes = [32, 1], strides = [1, 1]} : vector<32x128xf32> to vector<32x1xf32>
    %c24_i32 = arith.constant 24 : i32
    %1516 = vector.broadcast %c24_i32 : i32 to vector<32x1xi32>
    %1517 = arith.cmpi eq, %2, %1516 : vector<32x1xi32>
    %c24_i32_288 = arith.constant 24 : i32
    %1518 = vector.broadcast %c24_i32_288 : i32 to vector<32x1xi32>
    %1519 = arith.cmpi sge, %2, %1518 : vector<32x1xi32>
    %c32_i32_289 = arith.constant 32 : i32
    %1520 = vector.broadcast %c32_i32_289 : i32 to vector<32x1xi32>
    %1521 = arith.cmpi slt, %2, %1520 : vector<32x1xi32>
    %1522 = arith.andi %1519, %1521 : vector<32x1xi1>
    %1523 = math.absf %1515 : vector<32x1xf32>
    %cst_290 = arith.constant -1.000000e+00 : f32
    %1524 = vector.broadcast %cst_290 : f32 to vector<32x1xf32>
    %1525 = arith.select %1522, %1523, %1524 : vector<32x1xi1>, vector<32x1xf32>
    %1526 = vector.shape_cast %1525 : vector<32x1xf32> to vector<1x32x1xf32>
    %cst_291 = arith.constant dense<0xFF800000> : vector<1xf32>
    %1527 = vector.multi_reduction <maximumf>, %1526, %cst_291 [1, 2] : vector<1x32x1xf32> to vector<1xf32>
    %1528 = vector.shape_cast %1527 : vector<1xf32> to vector<1x1x1xf32>
    %1529 = vector.extract %1528[0, 0, 0] : f32 from vector<1x1x1xf32>
    %1530 = vector.broadcast %1529 : f32 to vector<32x1xf32>
    %1531 = arith.cmpf oeq, %1525, %1530 : vector<32x1xf32>
    %c32_i32_292 = arith.constant 32 : i32
    %1532 = vector.broadcast %c32_i32_292 : i32 to vector<32x1xi32>
    %1533 = arith.select %1531, %2, %1532 : vector<32x1xi1>, vector<32x1xi32>
    %1534 = vector.shape_cast %1533 : vector<32x1xi32> to vector<1x32x1xi32>
    %cst_293 = arith.constant dense<2147483647> : vector<1xi32>
    %1535 = vector.multi_reduction <minsi>, %1534, %cst_293 [1, 2] : vector<1x32x1xi32> to vector<1xi32>
    %1536 = vector.shape_cast %1535 : vector<1xi32> to vector<1x1x1xi32>
    %1537 = vector.extract %1536[0, 0, 0] : i32 from vector<1x1x1xi32>
    %1538 = vector.broadcast %1537 : i32 to vector<32x1xi32>
    %1539 = arith.cmpi eq, %2, %1538 : vector<32x1xi32>
    %cst_294 = arith.constant 0.000000e+00 : f32
    %1540 = vector.shape_cast %1539 : vector<32x1xi1> to vector<32x1xi1>
    %1541 = vector.broadcast %1540 : vector<32x1xi1> to vector<32x128xi1>
    %1542 = vector.broadcast %cst_294 : f32 to vector<32x128xf32>
    %1543 = arith.select %1541, %1514, %1542 : vector<32x128xi1>, vector<32x128xf32>
    %cst_295 = arith.constant dense<0.000000e+00> : vector<128xf32>
    %1544 = vector.multi_reduction <add>, %1543, %cst_295 [0] : vector<32x128xf32> to vector<128xf32>
    %1545 = vector.shape_cast %1544 : vector<128xf32> to vector<1x128xf32>
    %1546 = vector.extract_strided_slice %1514 {offsets = [24, 0], sizes = [1, 128], strides = [1, 1]} : vector<32x128xf32> to vector<1x128xf32>
    %1547 = vector.extract_strided_slice %1545 {offsets = [0, 24], sizes = [1, 1], strides = [1, 1]} : vector<1x128xf32> to vector<1x1xf32>
    %1548 = vector.shape_cast %1547 : vector<1x1xf32> to vector<1x1x1xf32>
    %cst_296 = arith.constant dense<0.000000e+00> : vector<1xf32>
    %1549 = vector.multi_reduction <add>, %1548, %cst_296 [1, 2] : vector<1x1x1xf32> to vector<1xf32>
    %1550 = vector.shape_cast %1549 : vector<1xf32> to vector<1x1x1xf32>
    %1551 = vector.extract %1550[0, 0, 0] : f32 from vector<1x1x1xf32>
    %cst_297 = arith.constant 1.000000e+00 : f32
    %1552 = arith.divf %cst_297, %1551 : f32
    %1553 = vector.broadcast %1552 : f32 to vector<1x128xf32>
    %1554 = arith.mulf %1545, %1553 : vector<1x128xf32>
    %1555 = vector.extract_strided_slice %1515 {offsets = [24, 0], sizes = [1, 1], strides = [1, 1]} : vector<32x1xf32> to vector<1x1xf32>
    %1556 = vector.shape_cast %1555 : vector<1x1xf32> to vector<1x1x1xf32>
    %cst_298 = arith.constant dense<0.000000e+00> : vector<1xf32>
    %1557 = vector.multi_reduction <add>, %1556, %cst_298 [1, 2] : vector<1x1x1xf32> to vector<1xf32>
    %1558 = vector.shape_cast %1557 : vector<1xf32> to vector<1x1x1xf32>
    %1559 = vector.extract %1558[0, 0, 0] : f32 from vector<1x1x1xf32>
    %1560 = vector.broadcast %1559 : f32 to vector<32x1xf32>
    %1561 = arith.select %1539, %1560, %1515 : vector<32x1xi1>, vector<32x1xf32>
    %cst_299 = arith.constant 0.000000e+00 : f32
    %1562 = vector.broadcast %cst_299 : f32 to vector<32x1xf32>
    %1563 = arith.select %1517, %1562, %1561 : vector<32x1xi1>, vector<32x1xf32>
    %1564 = vector.shape_cast %1539 : vector<32x1xi1> to vector<32x1xi1>
    %1565 = vector.broadcast %1564 : vector<32x1xi1> to vector<32x128xi1>
    %1566 = vector.shape_cast %1546 : vector<1x128xf32> to vector<1x128xf32>
    %1567 = vector.broadcast %1566 : vector<1x128xf32> to vector<32x128xf32>
    %1568 = arith.select %1565, %1567, %1514 : vector<32x128xi1>, vector<32x128xf32>
    %1569 = vector.broadcast %1563 : vector<32x1xf32> to vector<32x128xf32>
    %1570 = vector.broadcast %1554 : vector<1x128xf32> to vector<32x128xf32>
    %1571 = arith.mulf %1569, %1570 : vector<32x128xf32>
    %1572 = arith.subf %1568, %1571 : vector<32x128xf32>
    %1573 = vector.shape_cast %1517 : vector<32x1xi1> to vector<32x1xi1>
    %1574 = vector.broadcast %1573 : vector<32x1xi1> to vector<32x128xi1>
    %1575 = vector.shape_cast %1554 : vector<1x128xf32> to vector<1x128xf32>
    %1576 = vector.broadcast %1575 : vector<1x128xf32> to vector<32x128xf32>
    %1577 = arith.select %1574, %1576, %1572 : vector<32x128xi1>, vector<32x128xf32>
    %1578 = vector.extract_strided_slice %1577 {offsets = [0, 25], sizes = [32, 1], strides = [1, 1]} : vector<32x128xf32> to vector<32x1xf32>
    %c25_i32 = arith.constant 25 : i32
    %1579 = vector.broadcast %c25_i32 : i32 to vector<32x1xi32>
    %1580 = arith.cmpi eq, %2, %1579 : vector<32x1xi32>
    %c25_i32_300 = arith.constant 25 : i32
    %1581 = vector.broadcast %c25_i32_300 : i32 to vector<32x1xi32>
    %1582 = arith.cmpi sge, %2, %1581 : vector<32x1xi32>
    %c32_i32_301 = arith.constant 32 : i32
    %1583 = vector.broadcast %c32_i32_301 : i32 to vector<32x1xi32>
    %1584 = arith.cmpi slt, %2, %1583 : vector<32x1xi32>
    %1585 = arith.andi %1582, %1584 : vector<32x1xi1>
    %1586 = math.absf %1578 : vector<32x1xf32>
    %cst_302 = arith.constant -1.000000e+00 : f32
    %1587 = vector.broadcast %cst_302 : f32 to vector<32x1xf32>
    %1588 = arith.select %1585, %1586, %1587 : vector<32x1xi1>, vector<32x1xf32>
    %1589 = vector.shape_cast %1588 : vector<32x1xf32> to vector<1x32x1xf32>
    %cst_303 = arith.constant dense<0xFF800000> : vector<1xf32>
    %1590 = vector.multi_reduction <maximumf>, %1589, %cst_303 [1, 2] : vector<1x32x1xf32> to vector<1xf32>
    %1591 = vector.shape_cast %1590 : vector<1xf32> to vector<1x1x1xf32>
    %1592 = vector.extract %1591[0, 0, 0] : f32 from vector<1x1x1xf32>
    %1593 = vector.broadcast %1592 : f32 to vector<32x1xf32>
    %1594 = arith.cmpf oeq, %1588, %1593 : vector<32x1xf32>
    %c32_i32_304 = arith.constant 32 : i32
    %1595 = vector.broadcast %c32_i32_304 : i32 to vector<32x1xi32>
    %1596 = arith.select %1594, %2, %1595 : vector<32x1xi1>, vector<32x1xi32>
    %1597 = vector.shape_cast %1596 : vector<32x1xi32> to vector<1x32x1xi32>
    %cst_305 = arith.constant dense<2147483647> : vector<1xi32>
    %1598 = vector.multi_reduction <minsi>, %1597, %cst_305 [1, 2] : vector<1x32x1xi32> to vector<1xi32>
    %1599 = vector.shape_cast %1598 : vector<1xi32> to vector<1x1x1xi32>
    %1600 = vector.extract %1599[0, 0, 0] : i32 from vector<1x1x1xi32>
    %1601 = vector.broadcast %1600 : i32 to vector<32x1xi32>
    %1602 = arith.cmpi eq, %2, %1601 : vector<32x1xi32>
    %cst_306 = arith.constant 0.000000e+00 : f32
    %1603 = vector.shape_cast %1602 : vector<32x1xi1> to vector<32x1xi1>
    %1604 = vector.broadcast %1603 : vector<32x1xi1> to vector<32x128xi1>
    %1605 = vector.broadcast %cst_306 : f32 to vector<32x128xf32>
    %1606 = arith.select %1604, %1577, %1605 : vector<32x128xi1>, vector<32x128xf32>
    %cst_307 = arith.constant dense<0.000000e+00> : vector<128xf32>
    %1607 = vector.multi_reduction <add>, %1606, %cst_307 [0] : vector<32x128xf32> to vector<128xf32>
    %1608 = vector.shape_cast %1607 : vector<128xf32> to vector<1x128xf32>
    %1609 = vector.extract_strided_slice %1577 {offsets = [25, 0], sizes = [1, 128], strides = [1, 1]} : vector<32x128xf32> to vector<1x128xf32>
    %1610 = vector.extract_strided_slice %1608 {offsets = [0, 25], sizes = [1, 1], strides = [1, 1]} : vector<1x128xf32> to vector<1x1xf32>
    %1611 = vector.shape_cast %1610 : vector<1x1xf32> to vector<1x1x1xf32>
    %cst_308 = arith.constant dense<0.000000e+00> : vector<1xf32>
    %1612 = vector.multi_reduction <add>, %1611, %cst_308 [1, 2] : vector<1x1x1xf32> to vector<1xf32>
    %1613 = vector.shape_cast %1612 : vector<1xf32> to vector<1x1x1xf32>
    %1614 = vector.extract %1613[0, 0, 0] : f32 from vector<1x1x1xf32>
    %cst_309 = arith.constant 1.000000e+00 : f32
    %1615 = arith.divf %cst_309, %1614 : f32
    %1616 = vector.broadcast %1615 : f32 to vector<1x128xf32>
    %1617 = arith.mulf %1608, %1616 : vector<1x128xf32>
    %1618 = vector.extract_strided_slice %1578 {offsets = [25, 0], sizes = [1, 1], strides = [1, 1]} : vector<32x1xf32> to vector<1x1xf32>
    %1619 = vector.shape_cast %1618 : vector<1x1xf32> to vector<1x1x1xf32>
    %cst_310 = arith.constant dense<0.000000e+00> : vector<1xf32>
    %1620 = vector.multi_reduction <add>, %1619, %cst_310 [1, 2] : vector<1x1x1xf32> to vector<1xf32>
    %1621 = vector.shape_cast %1620 : vector<1xf32> to vector<1x1x1xf32>
    %1622 = vector.extract %1621[0, 0, 0] : f32 from vector<1x1x1xf32>
    %1623 = vector.broadcast %1622 : f32 to vector<32x1xf32>
    %1624 = arith.select %1602, %1623, %1578 : vector<32x1xi1>, vector<32x1xf32>
    %cst_311 = arith.constant 0.000000e+00 : f32
    %1625 = vector.broadcast %cst_311 : f32 to vector<32x1xf32>
    %1626 = arith.select %1580, %1625, %1624 : vector<32x1xi1>, vector<32x1xf32>
    %1627 = vector.shape_cast %1602 : vector<32x1xi1> to vector<32x1xi1>
    %1628 = vector.broadcast %1627 : vector<32x1xi1> to vector<32x128xi1>
    %1629 = vector.shape_cast %1609 : vector<1x128xf32> to vector<1x128xf32>
    %1630 = vector.broadcast %1629 : vector<1x128xf32> to vector<32x128xf32>
    %1631 = arith.select %1628, %1630, %1577 : vector<32x128xi1>, vector<32x128xf32>
    %1632 = vector.broadcast %1626 : vector<32x1xf32> to vector<32x128xf32>
    %1633 = vector.broadcast %1617 : vector<1x128xf32> to vector<32x128xf32>
    %1634 = arith.mulf %1632, %1633 : vector<32x128xf32>
    %1635 = arith.subf %1631, %1634 : vector<32x128xf32>
    %1636 = vector.shape_cast %1580 : vector<32x1xi1> to vector<32x1xi1>
    %1637 = vector.broadcast %1636 : vector<32x1xi1> to vector<32x128xi1>
    %1638 = vector.shape_cast %1617 : vector<1x128xf32> to vector<1x128xf32>
    %1639 = vector.broadcast %1638 : vector<1x128xf32> to vector<32x128xf32>
    %1640 = arith.select %1637, %1639, %1635 : vector<32x128xi1>, vector<32x128xf32>
    %1641 = vector.extract_strided_slice %1640 {offsets = [0, 26], sizes = [32, 1], strides = [1, 1]} : vector<32x128xf32> to vector<32x1xf32>
    %c26_i32 = arith.constant 26 : i32
    %1642 = vector.broadcast %c26_i32 : i32 to vector<32x1xi32>
    %1643 = arith.cmpi eq, %2, %1642 : vector<32x1xi32>
    %c26_i32_312 = arith.constant 26 : i32
    %1644 = vector.broadcast %c26_i32_312 : i32 to vector<32x1xi32>
    %1645 = arith.cmpi sge, %2, %1644 : vector<32x1xi32>
    %c32_i32_313 = arith.constant 32 : i32
    %1646 = vector.broadcast %c32_i32_313 : i32 to vector<32x1xi32>
    %1647 = arith.cmpi slt, %2, %1646 : vector<32x1xi32>
    %1648 = arith.andi %1645, %1647 : vector<32x1xi1>
    %1649 = math.absf %1641 : vector<32x1xf32>
    %cst_314 = arith.constant -1.000000e+00 : f32
    %1650 = vector.broadcast %cst_314 : f32 to vector<32x1xf32>
    %1651 = arith.select %1648, %1649, %1650 : vector<32x1xi1>, vector<32x1xf32>
    %1652 = vector.shape_cast %1651 : vector<32x1xf32> to vector<1x32x1xf32>
    %cst_315 = arith.constant dense<0xFF800000> : vector<1xf32>
    %1653 = vector.multi_reduction <maximumf>, %1652, %cst_315 [1, 2] : vector<1x32x1xf32> to vector<1xf32>
    %1654 = vector.shape_cast %1653 : vector<1xf32> to vector<1x1x1xf32>
    %1655 = vector.extract %1654[0, 0, 0] : f32 from vector<1x1x1xf32>
    %1656 = vector.broadcast %1655 : f32 to vector<32x1xf32>
    %1657 = arith.cmpf oeq, %1651, %1656 : vector<32x1xf32>
    %c32_i32_316 = arith.constant 32 : i32
    %1658 = vector.broadcast %c32_i32_316 : i32 to vector<32x1xi32>
    %1659 = arith.select %1657, %2, %1658 : vector<32x1xi1>, vector<32x1xi32>
    %1660 = vector.shape_cast %1659 : vector<32x1xi32> to vector<1x32x1xi32>
    %cst_317 = arith.constant dense<2147483647> : vector<1xi32>
    %1661 = vector.multi_reduction <minsi>, %1660, %cst_317 [1, 2] : vector<1x32x1xi32> to vector<1xi32>
    %1662 = vector.shape_cast %1661 : vector<1xi32> to vector<1x1x1xi32>
    %1663 = vector.extract %1662[0, 0, 0] : i32 from vector<1x1x1xi32>
    %1664 = vector.broadcast %1663 : i32 to vector<32x1xi32>
    %1665 = arith.cmpi eq, %2, %1664 : vector<32x1xi32>
    %cst_318 = arith.constant 0.000000e+00 : f32
    %1666 = vector.shape_cast %1665 : vector<32x1xi1> to vector<32x1xi1>
    %1667 = vector.broadcast %1666 : vector<32x1xi1> to vector<32x128xi1>
    %1668 = vector.broadcast %cst_318 : f32 to vector<32x128xf32>
    %1669 = arith.select %1667, %1640, %1668 : vector<32x128xi1>, vector<32x128xf32>
    %cst_319 = arith.constant dense<0.000000e+00> : vector<128xf32>
    %1670 = vector.multi_reduction <add>, %1669, %cst_319 [0] : vector<32x128xf32> to vector<128xf32>
    %1671 = vector.shape_cast %1670 : vector<128xf32> to vector<1x128xf32>
    %1672 = vector.extract_strided_slice %1640 {offsets = [26, 0], sizes = [1, 128], strides = [1, 1]} : vector<32x128xf32> to vector<1x128xf32>
    %1673 = vector.extract_strided_slice %1671 {offsets = [0, 26], sizes = [1, 1], strides = [1, 1]} : vector<1x128xf32> to vector<1x1xf32>
    %1674 = vector.shape_cast %1673 : vector<1x1xf32> to vector<1x1x1xf32>
    %cst_320 = arith.constant dense<0.000000e+00> : vector<1xf32>
    %1675 = vector.multi_reduction <add>, %1674, %cst_320 [1, 2] : vector<1x1x1xf32> to vector<1xf32>
    %1676 = vector.shape_cast %1675 : vector<1xf32> to vector<1x1x1xf32>
    %1677 = vector.extract %1676[0, 0, 0] : f32 from vector<1x1x1xf32>
    %cst_321 = arith.constant 1.000000e+00 : f32
    %1678 = arith.divf %cst_321, %1677 : f32
    %1679 = vector.broadcast %1678 : f32 to vector<1x128xf32>
    %1680 = arith.mulf %1671, %1679 : vector<1x128xf32>
    %1681 = vector.extract_strided_slice %1641 {offsets = [26, 0], sizes = [1, 1], strides = [1, 1]} : vector<32x1xf32> to vector<1x1xf32>
    %1682 = vector.shape_cast %1681 : vector<1x1xf32> to vector<1x1x1xf32>
    %cst_322 = arith.constant dense<0.000000e+00> : vector<1xf32>
    %1683 = vector.multi_reduction <add>, %1682, %cst_322 [1, 2] : vector<1x1x1xf32> to vector<1xf32>
    %1684 = vector.shape_cast %1683 : vector<1xf32> to vector<1x1x1xf32>
    %1685 = vector.extract %1684[0, 0, 0] : f32 from vector<1x1x1xf32>
    %1686 = vector.broadcast %1685 : f32 to vector<32x1xf32>
    %1687 = arith.select %1665, %1686, %1641 : vector<32x1xi1>, vector<32x1xf32>
    %cst_323 = arith.constant 0.000000e+00 : f32
    %1688 = vector.broadcast %cst_323 : f32 to vector<32x1xf32>
    %1689 = arith.select %1643, %1688, %1687 : vector<32x1xi1>, vector<32x1xf32>
    %1690 = vector.shape_cast %1665 : vector<32x1xi1> to vector<32x1xi1>
    %1691 = vector.broadcast %1690 : vector<32x1xi1> to vector<32x128xi1>
    %1692 = vector.shape_cast %1672 : vector<1x128xf32> to vector<1x128xf32>
    %1693 = vector.broadcast %1692 : vector<1x128xf32> to vector<32x128xf32>
    %1694 = arith.select %1691, %1693, %1640 : vector<32x128xi1>, vector<32x128xf32>
    %1695 = vector.broadcast %1689 : vector<32x1xf32> to vector<32x128xf32>
    %1696 = vector.broadcast %1680 : vector<1x128xf32> to vector<32x128xf32>
    %1697 = arith.mulf %1695, %1696 : vector<32x128xf32>
    %1698 = arith.subf %1694, %1697 : vector<32x128xf32>
    %1699 = vector.shape_cast %1643 : vector<32x1xi1> to vector<32x1xi1>
    %1700 = vector.broadcast %1699 : vector<32x1xi1> to vector<32x128xi1>
    %1701 = vector.shape_cast %1680 : vector<1x128xf32> to vector<1x128xf32>
    %1702 = vector.broadcast %1701 : vector<1x128xf32> to vector<32x128xf32>
    %1703 = arith.select %1700, %1702, %1698 : vector<32x128xi1>, vector<32x128xf32>
    %1704 = vector.extract_strided_slice %1703 {offsets = [0, 27], sizes = [32, 1], strides = [1, 1]} : vector<32x128xf32> to vector<32x1xf32>
    %c27_i32 = arith.constant 27 : i32
    %1705 = vector.broadcast %c27_i32 : i32 to vector<32x1xi32>
    %1706 = arith.cmpi eq, %2, %1705 : vector<32x1xi32>
    %c27_i32_324 = arith.constant 27 : i32
    %1707 = vector.broadcast %c27_i32_324 : i32 to vector<32x1xi32>
    %1708 = arith.cmpi sge, %2, %1707 : vector<32x1xi32>
    %c32_i32_325 = arith.constant 32 : i32
    %1709 = vector.broadcast %c32_i32_325 : i32 to vector<32x1xi32>
    %1710 = arith.cmpi slt, %2, %1709 : vector<32x1xi32>
    %1711 = arith.andi %1708, %1710 : vector<32x1xi1>
    %1712 = math.absf %1704 : vector<32x1xf32>
    %cst_326 = arith.constant -1.000000e+00 : f32
    %1713 = vector.broadcast %cst_326 : f32 to vector<32x1xf32>
    %1714 = arith.select %1711, %1712, %1713 : vector<32x1xi1>, vector<32x1xf32>
    %1715 = vector.shape_cast %1714 : vector<32x1xf32> to vector<1x32x1xf32>
    %cst_327 = arith.constant dense<0xFF800000> : vector<1xf32>
    %1716 = vector.multi_reduction <maximumf>, %1715, %cst_327 [1, 2] : vector<1x32x1xf32> to vector<1xf32>
    %1717 = vector.shape_cast %1716 : vector<1xf32> to vector<1x1x1xf32>
    %1718 = vector.extract %1717[0, 0, 0] : f32 from vector<1x1x1xf32>
    %1719 = vector.broadcast %1718 : f32 to vector<32x1xf32>
    %1720 = arith.cmpf oeq, %1714, %1719 : vector<32x1xf32>
    %c32_i32_328 = arith.constant 32 : i32
    %1721 = vector.broadcast %c32_i32_328 : i32 to vector<32x1xi32>
    %1722 = arith.select %1720, %2, %1721 : vector<32x1xi1>, vector<32x1xi32>
    %1723 = vector.shape_cast %1722 : vector<32x1xi32> to vector<1x32x1xi32>
    %cst_329 = arith.constant dense<2147483647> : vector<1xi32>
    %1724 = vector.multi_reduction <minsi>, %1723, %cst_329 [1, 2] : vector<1x32x1xi32> to vector<1xi32>
    %1725 = vector.shape_cast %1724 : vector<1xi32> to vector<1x1x1xi32>
    %1726 = vector.extract %1725[0, 0, 0] : i32 from vector<1x1x1xi32>
    %1727 = vector.broadcast %1726 : i32 to vector<32x1xi32>
    %1728 = arith.cmpi eq, %2, %1727 : vector<32x1xi32>
    %cst_330 = arith.constant 0.000000e+00 : f32
    %1729 = vector.shape_cast %1728 : vector<32x1xi1> to vector<32x1xi1>
    %1730 = vector.broadcast %1729 : vector<32x1xi1> to vector<32x128xi1>
    %1731 = vector.broadcast %cst_330 : f32 to vector<32x128xf32>
    %1732 = arith.select %1730, %1703, %1731 : vector<32x128xi1>, vector<32x128xf32>
    %cst_331 = arith.constant dense<0.000000e+00> : vector<128xf32>
    %1733 = vector.multi_reduction <add>, %1732, %cst_331 [0] : vector<32x128xf32> to vector<128xf32>
    %1734 = vector.shape_cast %1733 : vector<128xf32> to vector<1x128xf32>
    %1735 = vector.extract_strided_slice %1703 {offsets = [27, 0], sizes = [1, 128], strides = [1, 1]} : vector<32x128xf32> to vector<1x128xf32>
    %1736 = vector.extract_strided_slice %1734 {offsets = [0, 27], sizes = [1, 1], strides = [1, 1]} : vector<1x128xf32> to vector<1x1xf32>
    %1737 = vector.shape_cast %1736 : vector<1x1xf32> to vector<1x1x1xf32>
    %cst_332 = arith.constant dense<0.000000e+00> : vector<1xf32>
    %1738 = vector.multi_reduction <add>, %1737, %cst_332 [1, 2] : vector<1x1x1xf32> to vector<1xf32>
    %1739 = vector.shape_cast %1738 : vector<1xf32> to vector<1x1x1xf32>
    %1740 = vector.extract %1739[0, 0, 0] : f32 from vector<1x1x1xf32>
    %cst_333 = arith.constant 1.000000e+00 : f32
    %1741 = arith.divf %cst_333, %1740 : f32
    %1742 = vector.broadcast %1741 : f32 to vector<1x128xf32>
    %1743 = arith.mulf %1734, %1742 : vector<1x128xf32>
    %1744 = vector.extract_strided_slice %1704 {offsets = [27, 0], sizes = [1, 1], strides = [1, 1]} : vector<32x1xf32> to vector<1x1xf32>
    %1745 = vector.shape_cast %1744 : vector<1x1xf32> to vector<1x1x1xf32>
    %cst_334 = arith.constant dense<0.000000e+00> : vector<1xf32>
    %1746 = vector.multi_reduction <add>, %1745, %cst_334 [1, 2] : vector<1x1x1xf32> to vector<1xf32>
    %1747 = vector.shape_cast %1746 : vector<1xf32> to vector<1x1x1xf32>
    %1748 = vector.extract %1747[0, 0, 0] : f32 from vector<1x1x1xf32>
    %1749 = vector.broadcast %1748 : f32 to vector<32x1xf32>
    %1750 = arith.select %1728, %1749, %1704 : vector<32x1xi1>, vector<32x1xf32>
    %cst_335 = arith.constant 0.000000e+00 : f32
    %1751 = vector.broadcast %cst_335 : f32 to vector<32x1xf32>
    %1752 = arith.select %1706, %1751, %1750 : vector<32x1xi1>, vector<32x1xf32>
    %1753 = vector.shape_cast %1728 : vector<32x1xi1> to vector<32x1xi1>
    %1754 = vector.broadcast %1753 : vector<32x1xi1> to vector<32x128xi1>
    %1755 = vector.shape_cast %1735 : vector<1x128xf32> to vector<1x128xf32>
    %1756 = vector.broadcast %1755 : vector<1x128xf32> to vector<32x128xf32>
    %1757 = arith.select %1754, %1756, %1703 : vector<32x128xi1>, vector<32x128xf32>
    %1758 = vector.broadcast %1752 : vector<32x1xf32> to vector<32x128xf32>
    %1759 = vector.broadcast %1743 : vector<1x128xf32> to vector<32x128xf32>
    %1760 = arith.mulf %1758, %1759 : vector<32x128xf32>
    %1761 = arith.subf %1757, %1760 : vector<32x128xf32>
    %1762 = vector.shape_cast %1706 : vector<32x1xi1> to vector<32x1xi1>
    %1763 = vector.broadcast %1762 : vector<32x1xi1> to vector<32x128xi1>
    %1764 = vector.shape_cast %1743 : vector<1x128xf32> to vector<1x128xf32>
    %1765 = vector.broadcast %1764 : vector<1x128xf32> to vector<32x128xf32>
    %1766 = arith.select %1763, %1765, %1761 : vector<32x128xi1>, vector<32x128xf32>
    %1767 = vector.extract_strided_slice %1766 {offsets = [0, 28], sizes = [32, 1], strides = [1, 1]} : vector<32x128xf32> to vector<32x1xf32>
    %c28_i32 = arith.constant 28 : i32
    %1768 = vector.broadcast %c28_i32 : i32 to vector<32x1xi32>
    %1769 = arith.cmpi eq, %2, %1768 : vector<32x1xi32>
    %c28_i32_336 = arith.constant 28 : i32
    %1770 = vector.broadcast %c28_i32_336 : i32 to vector<32x1xi32>
    %1771 = arith.cmpi sge, %2, %1770 : vector<32x1xi32>
    %c32_i32_337 = arith.constant 32 : i32
    %1772 = vector.broadcast %c32_i32_337 : i32 to vector<32x1xi32>
    %1773 = arith.cmpi slt, %2, %1772 : vector<32x1xi32>
    %1774 = arith.andi %1771, %1773 : vector<32x1xi1>
    %1775 = math.absf %1767 : vector<32x1xf32>
    %cst_338 = arith.constant -1.000000e+00 : f32
    %1776 = vector.broadcast %cst_338 : f32 to vector<32x1xf32>
    %1777 = arith.select %1774, %1775, %1776 : vector<32x1xi1>, vector<32x1xf32>
    %1778 = vector.shape_cast %1777 : vector<32x1xf32> to vector<1x32x1xf32>
    %cst_339 = arith.constant dense<0xFF800000> : vector<1xf32>
    %1779 = vector.multi_reduction <maximumf>, %1778, %cst_339 [1, 2] : vector<1x32x1xf32> to vector<1xf32>
    %1780 = vector.shape_cast %1779 : vector<1xf32> to vector<1x1x1xf32>
    %1781 = vector.extract %1780[0, 0, 0] : f32 from vector<1x1x1xf32>
    %1782 = vector.broadcast %1781 : f32 to vector<32x1xf32>
    %1783 = arith.cmpf oeq, %1777, %1782 : vector<32x1xf32>
    %c32_i32_340 = arith.constant 32 : i32
    %1784 = vector.broadcast %c32_i32_340 : i32 to vector<32x1xi32>
    %1785 = arith.select %1783, %2, %1784 : vector<32x1xi1>, vector<32x1xi32>
    %1786 = vector.shape_cast %1785 : vector<32x1xi32> to vector<1x32x1xi32>
    %cst_341 = arith.constant dense<2147483647> : vector<1xi32>
    %1787 = vector.multi_reduction <minsi>, %1786, %cst_341 [1, 2] : vector<1x32x1xi32> to vector<1xi32>
    %1788 = vector.shape_cast %1787 : vector<1xi32> to vector<1x1x1xi32>
    %1789 = vector.extract %1788[0, 0, 0] : i32 from vector<1x1x1xi32>
    %1790 = vector.broadcast %1789 : i32 to vector<32x1xi32>
    %1791 = arith.cmpi eq, %2, %1790 : vector<32x1xi32>
    %cst_342 = arith.constant 0.000000e+00 : f32
    %1792 = vector.shape_cast %1791 : vector<32x1xi1> to vector<32x1xi1>
    %1793 = vector.broadcast %1792 : vector<32x1xi1> to vector<32x128xi1>
    %1794 = vector.broadcast %cst_342 : f32 to vector<32x128xf32>
    %1795 = arith.select %1793, %1766, %1794 : vector<32x128xi1>, vector<32x128xf32>
    %cst_343 = arith.constant dense<0.000000e+00> : vector<128xf32>
    %1796 = vector.multi_reduction <add>, %1795, %cst_343 [0] : vector<32x128xf32> to vector<128xf32>
    %1797 = vector.shape_cast %1796 : vector<128xf32> to vector<1x128xf32>
    %1798 = vector.extract_strided_slice %1766 {offsets = [28, 0], sizes = [1, 128], strides = [1, 1]} : vector<32x128xf32> to vector<1x128xf32>
    %1799 = vector.extract_strided_slice %1797 {offsets = [0, 28], sizes = [1, 1], strides = [1, 1]} : vector<1x128xf32> to vector<1x1xf32>
    %1800 = vector.shape_cast %1799 : vector<1x1xf32> to vector<1x1x1xf32>
    %cst_344 = arith.constant dense<0.000000e+00> : vector<1xf32>
    %1801 = vector.multi_reduction <add>, %1800, %cst_344 [1, 2] : vector<1x1x1xf32> to vector<1xf32>
    %1802 = vector.shape_cast %1801 : vector<1xf32> to vector<1x1x1xf32>
    %1803 = vector.extract %1802[0, 0, 0] : f32 from vector<1x1x1xf32>
    %cst_345 = arith.constant 1.000000e+00 : f32
    %1804 = arith.divf %cst_345, %1803 : f32
    %1805 = vector.broadcast %1804 : f32 to vector<1x128xf32>
    %1806 = arith.mulf %1797, %1805 : vector<1x128xf32>
    %1807 = vector.extract_strided_slice %1767 {offsets = [28, 0], sizes = [1, 1], strides = [1, 1]} : vector<32x1xf32> to vector<1x1xf32>
    %1808 = vector.shape_cast %1807 : vector<1x1xf32> to vector<1x1x1xf32>
    %cst_346 = arith.constant dense<0.000000e+00> : vector<1xf32>
    %1809 = vector.multi_reduction <add>, %1808, %cst_346 [1, 2] : vector<1x1x1xf32> to vector<1xf32>
    %1810 = vector.shape_cast %1809 : vector<1xf32> to vector<1x1x1xf32>
    %1811 = vector.extract %1810[0, 0, 0] : f32 from vector<1x1x1xf32>
    %1812 = vector.broadcast %1811 : f32 to vector<32x1xf32>
    %1813 = arith.select %1791, %1812, %1767 : vector<32x1xi1>, vector<32x1xf32>
    %cst_347 = arith.constant 0.000000e+00 : f32
    %1814 = vector.broadcast %cst_347 : f32 to vector<32x1xf32>
    %1815 = arith.select %1769, %1814, %1813 : vector<32x1xi1>, vector<32x1xf32>
    %1816 = vector.shape_cast %1791 : vector<32x1xi1> to vector<32x1xi1>
    %1817 = vector.broadcast %1816 : vector<32x1xi1> to vector<32x128xi1>
    %1818 = vector.shape_cast %1798 : vector<1x128xf32> to vector<1x128xf32>
    %1819 = vector.broadcast %1818 : vector<1x128xf32> to vector<32x128xf32>
    %1820 = arith.select %1817, %1819, %1766 : vector<32x128xi1>, vector<32x128xf32>
    %1821 = vector.broadcast %1815 : vector<32x1xf32> to vector<32x128xf32>
    %1822 = vector.broadcast %1806 : vector<1x128xf32> to vector<32x128xf32>
    %1823 = arith.mulf %1821, %1822 : vector<32x128xf32>
    %1824 = arith.subf %1820, %1823 : vector<32x128xf32>
    %1825 = vector.shape_cast %1769 : vector<32x1xi1> to vector<32x1xi1>
    %1826 = vector.broadcast %1825 : vector<32x1xi1> to vector<32x128xi1>
    %1827 = vector.shape_cast %1806 : vector<1x128xf32> to vector<1x128xf32>
    %1828 = vector.broadcast %1827 : vector<1x128xf32> to vector<32x128xf32>
    %1829 = arith.select %1826, %1828, %1824 : vector<32x128xi1>, vector<32x128xf32>
    %1830 = vector.extract_strided_slice %1829 {offsets = [0, 29], sizes = [32, 1], strides = [1, 1]} : vector<32x128xf32> to vector<32x1xf32>
    %c29_i32 = arith.constant 29 : i32
    %1831 = vector.broadcast %c29_i32 : i32 to vector<32x1xi32>
    %1832 = arith.cmpi eq, %2, %1831 : vector<32x1xi32>
    %c29_i32_348 = arith.constant 29 : i32
    %1833 = vector.broadcast %c29_i32_348 : i32 to vector<32x1xi32>
    %1834 = arith.cmpi sge, %2, %1833 : vector<32x1xi32>
    %c32_i32_349 = arith.constant 32 : i32
    %1835 = vector.broadcast %c32_i32_349 : i32 to vector<32x1xi32>
    %1836 = arith.cmpi slt, %2, %1835 : vector<32x1xi32>
    %1837 = arith.andi %1834, %1836 : vector<32x1xi1>
    %1838 = math.absf %1830 : vector<32x1xf32>
    %cst_350 = arith.constant -1.000000e+00 : f32
    %1839 = vector.broadcast %cst_350 : f32 to vector<32x1xf32>
    %1840 = arith.select %1837, %1838, %1839 : vector<32x1xi1>, vector<32x1xf32>
    %1841 = vector.shape_cast %1840 : vector<32x1xf32> to vector<1x32x1xf32>
    %cst_351 = arith.constant dense<0xFF800000> : vector<1xf32>
    %1842 = vector.multi_reduction <maximumf>, %1841, %cst_351 [1, 2] : vector<1x32x1xf32> to vector<1xf32>
    %1843 = vector.shape_cast %1842 : vector<1xf32> to vector<1x1x1xf32>
    %1844 = vector.extract %1843[0, 0, 0] : f32 from vector<1x1x1xf32>
    %1845 = vector.broadcast %1844 : f32 to vector<32x1xf32>
    %1846 = arith.cmpf oeq, %1840, %1845 : vector<32x1xf32>
    %c32_i32_352 = arith.constant 32 : i32
    %1847 = vector.broadcast %c32_i32_352 : i32 to vector<32x1xi32>
    %1848 = arith.select %1846, %2, %1847 : vector<32x1xi1>, vector<32x1xi32>
    %1849 = vector.shape_cast %1848 : vector<32x1xi32> to vector<1x32x1xi32>
    %cst_353 = arith.constant dense<2147483647> : vector<1xi32>
    %1850 = vector.multi_reduction <minsi>, %1849, %cst_353 [1, 2] : vector<1x32x1xi32> to vector<1xi32>
    %1851 = vector.shape_cast %1850 : vector<1xi32> to vector<1x1x1xi32>
    %1852 = vector.extract %1851[0, 0, 0] : i32 from vector<1x1x1xi32>
    %1853 = vector.broadcast %1852 : i32 to vector<32x1xi32>
    %1854 = arith.cmpi eq, %2, %1853 : vector<32x1xi32>
    %cst_354 = arith.constant 0.000000e+00 : f32
    %1855 = vector.shape_cast %1854 : vector<32x1xi1> to vector<32x1xi1>
    %1856 = vector.broadcast %1855 : vector<32x1xi1> to vector<32x128xi1>
    %1857 = vector.broadcast %cst_354 : f32 to vector<32x128xf32>
    %1858 = arith.select %1856, %1829, %1857 : vector<32x128xi1>, vector<32x128xf32>
    %cst_355 = arith.constant dense<0.000000e+00> : vector<128xf32>
    %1859 = vector.multi_reduction <add>, %1858, %cst_355 [0] : vector<32x128xf32> to vector<128xf32>
    %1860 = vector.shape_cast %1859 : vector<128xf32> to vector<1x128xf32>
    %1861 = vector.extract_strided_slice %1829 {offsets = [29, 0], sizes = [1, 128], strides = [1, 1]} : vector<32x128xf32> to vector<1x128xf32>
    %1862 = vector.extract_strided_slice %1860 {offsets = [0, 29], sizes = [1, 1], strides = [1, 1]} : vector<1x128xf32> to vector<1x1xf32>
    %1863 = vector.shape_cast %1862 : vector<1x1xf32> to vector<1x1x1xf32>
    %cst_356 = arith.constant dense<0.000000e+00> : vector<1xf32>
    %1864 = vector.multi_reduction <add>, %1863, %cst_356 [1, 2] : vector<1x1x1xf32> to vector<1xf32>
    %1865 = vector.shape_cast %1864 : vector<1xf32> to vector<1x1x1xf32>
    %1866 = vector.extract %1865[0, 0, 0] : f32 from vector<1x1x1xf32>
    %cst_357 = arith.constant 1.000000e+00 : f32
    %1867 = arith.divf %cst_357, %1866 : f32
    %1868 = vector.broadcast %1867 : f32 to vector<1x128xf32>
    %1869 = arith.mulf %1860, %1868 : vector<1x128xf32>
    %1870 = vector.extract_strided_slice %1830 {offsets = [29, 0], sizes = [1, 1], strides = [1, 1]} : vector<32x1xf32> to vector<1x1xf32>
    %1871 = vector.shape_cast %1870 : vector<1x1xf32> to vector<1x1x1xf32>
    %cst_358 = arith.constant dense<0.000000e+00> : vector<1xf32>
    %1872 = vector.multi_reduction <add>, %1871, %cst_358 [1, 2] : vector<1x1x1xf32> to vector<1xf32>
    %1873 = vector.shape_cast %1872 : vector<1xf32> to vector<1x1x1xf32>
    %1874 = vector.extract %1873[0, 0, 0] : f32 from vector<1x1x1xf32>
    %1875 = vector.broadcast %1874 : f32 to vector<32x1xf32>
    %1876 = arith.select %1854, %1875, %1830 : vector<32x1xi1>, vector<32x1xf32>
    %cst_359 = arith.constant 0.000000e+00 : f32
    %1877 = vector.broadcast %cst_359 : f32 to vector<32x1xf32>
    %1878 = arith.select %1832, %1877, %1876 : vector<32x1xi1>, vector<32x1xf32>
    %1879 = vector.shape_cast %1854 : vector<32x1xi1> to vector<32x1xi1>
    %1880 = vector.broadcast %1879 : vector<32x1xi1> to vector<32x128xi1>
    %1881 = vector.shape_cast %1861 : vector<1x128xf32> to vector<1x128xf32>
    %1882 = vector.broadcast %1881 : vector<1x128xf32> to vector<32x128xf32>
    %1883 = arith.select %1880, %1882, %1829 : vector<32x128xi1>, vector<32x128xf32>
    %1884 = vector.broadcast %1878 : vector<32x1xf32> to vector<32x128xf32>
    %1885 = vector.broadcast %1869 : vector<1x128xf32> to vector<32x128xf32>
    %1886 = arith.mulf %1884, %1885 : vector<32x128xf32>
    %1887 = arith.subf %1883, %1886 : vector<32x128xf32>
    %1888 = vector.shape_cast %1832 : vector<32x1xi1> to vector<32x1xi1>
    %1889 = vector.broadcast %1888 : vector<32x1xi1> to vector<32x128xi1>
    %1890 = vector.shape_cast %1869 : vector<1x128xf32> to vector<1x128xf32>
    %1891 = vector.broadcast %1890 : vector<1x128xf32> to vector<32x128xf32>
    %1892 = arith.select %1889, %1891, %1887 : vector<32x128xi1>, vector<32x128xf32>
    %1893 = vector.extract_strided_slice %1892 {offsets = [0, 30], sizes = [32, 1], strides = [1, 1]} : vector<32x128xf32> to vector<32x1xf32>
    %c30_i32 = arith.constant 30 : i32
    %1894 = vector.broadcast %c30_i32 : i32 to vector<32x1xi32>
    %1895 = arith.cmpi eq, %2, %1894 : vector<32x1xi32>
    %c30_i32_360 = arith.constant 30 : i32
    %1896 = vector.broadcast %c30_i32_360 : i32 to vector<32x1xi32>
    %1897 = arith.cmpi sge, %2, %1896 : vector<32x1xi32>
    %c32_i32_361 = arith.constant 32 : i32
    %1898 = vector.broadcast %c32_i32_361 : i32 to vector<32x1xi32>
    %1899 = arith.cmpi slt, %2, %1898 : vector<32x1xi32>
    %1900 = arith.andi %1897, %1899 : vector<32x1xi1>
    %1901 = math.absf %1893 : vector<32x1xf32>
    %cst_362 = arith.constant -1.000000e+00 : f32
    %1902 = vector.broadcast %cst_362 : f32 to vector<32x1xf32>
    %1903 = arith.select %1900, %1901, %1902 : vector<32x1xi1>, vector<32x1xf32>
    %1904 = vector.shape_cast %1903 : vector<32x1xf32> to vector<1x32x1xf32>
    %cst_363 = arith.constant dense<0xFF800000> : vector<1xf32>
    %1905 = vector.multi_reduction <maximumf>, %1904, %cst_363 [1, 2] : vector<1x32x1xf32> to vector<1xf32>
    %1906 = vector.shape_cast %1905 : vector<1xf32> to vector<1x1x1xf32>
    %1907 = vector.extract %1906[0, 0, 0] : f32 from vector<1x1x1xf32>
    %1908 = vector.broadcast %1907 : f32 to vector<32x1xf32>
    %1909 = arith.cmpf oeq, %1903, %1908 : vector<32x1xf32>
    %c32_i32_364 = arith.constant 32 : i32
    %1910 = vector.broadcast %c32_i32_364 : i32 to vector<32x1xi32>
    %1911 = arith.select %1909, %2, %1910 : vector<32x1xi1>, vector<32x1xi32>
    %1912 = vector.shape_cast %1911 : vector<32x1xi32> to vector<1x32x1xi32>
    %cst_365 = arith.constant dense<2147483647> : vector<1xi32>
    %1913 = vector.multi_reduction <minsi>, %1912, %cst_365 [1, 2] : vector<1x32x1xi32> to vector<1xi32>
    %1914 = vector.shape_cast %1913 : vector<1xi32> to vector<1x1x1xi32>
    %1915 = vector.extract %1914[0, 0, 0] : i32 from vector<1x1x1xi32>
    %1916 = vector.broadcast %1915 : i32 to vector<32x1xi32>
    %1917 = arith.cmpi eq, %2, %1916 : vector<32x1xi32>
    %cst_366 = arith.constant 0.000000e+00 : f32
    %1918 = vector.shape_cast %1917 : vector<32x1xi1> to vector<32x1xi1>
    %1919 = vector.broadcast %1918 : vector<32x1xi1> to vector<32x128xi1>
    %1920 = vector.broadcast %cst_366 : f32 to vector<32x128xf32>
    %1921 = arith.select %1919, %1892, %1920 : vector<32x128xi1>, vector<32x128xf32>
    %cst_367 = arith.constant dense<0.000000e+00> : vector<128xf32>
    %1922 = vector.multi_reduction <add>, %1921, %cst_367 [0] : vector<32x128xf32> to vector<128xf32>
    %1923 = vector.shape_cast %1922 : vector<128xf32> to vector<1x128xf32>
    %1924 = vector.extract_strided_slice %1892 {offsets = [30, 0], sizes = [1, 128], strides = [1, 1]} : vector<32x128xf32> to vector<1x128xf32>
    %1925 = vector.extract_strided_slice %1923 {offsets = [0, 30], sizes = [1, 1], strides = [1, 1]} : vector<1x128xf32> to vector<1x1xf32>
    %1926 = vector.shape_cast %1925 : vector<1x1xf32> to vector<1x1x1xf32>
    %cst_368 = arith.constant dense<0.000000e+00> : vector<1xf32>
    %1927 = vector.multi_reduction <add>, %1926, %cst_368 [1, 2] : vector<1x1x1xf32> to vector<1xf32>
    %1928 = vector.shape_cast %1927 : vector<1xf32> to vector<1x1x1xf32>
    %1929 = vector.extract %1928[0, 0, 0] : f32 from vector<1x1x1xf32>
    %cst_369 = arith.constant 1.000000e+00 : f32
    %1930 = arith.divf %cst_369, %1929 : f32
    %1931 = vector.broadcast %1930 : f32 to vector<1x128xf32>
    %1932 = arith.mulf %1923, %1931 : vector<1x128xf32>
    %1933 = vector.extract_strided_slice %1893 {offsets = [30, 0], sizes = [1, 1], strides = [1, 1]} : vector<32x1xf32> to vector<1x1xf32>
    %1934 = vector.shape_cast %1933 : vector<1x1xf32> to vector<1x1x1xf32>
    %cst_370 = arith.constant dense<0.000000e+00> : vector<1xf32>
    %1935 = vector.multi_reduction <add>, %1934, %cst_370 [1, 2] : vector<1x1x1xf32> to vector<1xf32>
    %1936 = vector.shape_cast %1935 : vector<1xf32> to vector<1x1x1xf32>
    %1937 = vector.extract %1936[0, 0, 0] : f32 from vector<1x1x1xf32>
    %1938 = vector.broadcast %1937 : f32 to vector<32x1xf32>
    %1939 = arith.select %1917, %1938, %1893 : vector<32x1xi1>, vector<32x1xf32>
    %cst_371 = arith.constant 0.000000e+00 : f32
    %1940 = vector.broadcast %cst_371 : f32 to vector<32x1xf32>
    %1941 = arith.select %1895, %1940, %1939 : vector<32x1xi1>, vector<32x1xf32>
    %1942 = vector.shape_cast %1917 : vector<32x1xi1> to vector<32x1xi1>
    %1943 = vector.broadcast %1942 : vector<32x1xi1> to vector<32x128xi1>
    %1944 = vector.shape_cast %1924 : vector<1x128xf32> to vector<1x128xf32>
    %1945 = vector.broadcast %1944 : vector<1x128xf32> to vector<32x128xf32>
    %1946 = arith.select %1943, %1945, %1892 : vector<32x128xi1>, vector<32x128xf32>
    %1947 = vector.broadcast %1941 : vector<32x1xf32> to vector<32x128xf32>
    %1948 = vector.broadcast %1932 : vector<1x128xf32> to vector<32x128xf32>
    %1949 = arith.mulf %1947, %1948 : vector<32x128xf32>
    %1950 = arith.subf %1946, %1949 : vector<32x128xf32>
    %1951 = vector.shape_cast %1895 : vector<32x1xi1> to vector<32x1xi1>
    %1952 = vector.broadcast %1951 : vector<32x1xi1> to vector<32x128xi1>
    %1953 = vector.shape_cast %1932 : vector<1x128xf32> to vector<1x128xf32>
    %1954 = vector.broadcast %1953 : vector<1x128xf32> to vector<32x128xf32>
    %1955 = arith.select %1952, %1954, %1950 : vector<32x128xi1>, vector<32x128xf32>
    %1956 = vector.extract_strided_slice %1955 {offsets = [0, 31], sizes = [32, 1], strides = [1, 1]} : vector<32x128xf32> to vector<32x1xf32>
    %c31_i32 = arith.constant 31 : i32
    %1957 = vector.broadcast %c31_i32 : i32 to vector<32x1xi32>
    %1958 = arith.cmpi eq, %2, %1957 : vector<32x1xi32>
    %c31_i32_372 = arith.constant 31 : i32
    %1959 = vector.broadcast %c31_i32_372 : i32 to vector<32x1xi32>
    %1960 = arith.cmpi sge, %2, %1959 : vector<32x1xi32>
    %c32_i32_373 = arith.constant 32 : i32
    %1961 = vector.broadcast %c32_i32_373 : i32 to vector<32x1xi32>
    %1962 = arith.cmpi slt, %2, %1961 : vector<32x1xi32>
    %1963 = arith.andi %1960, %1962 : vector<32x1xi1>
    %1964 = math.absf %1956 : vector<32x1xf32>
    %cst_374 = arith.constant -1.000000e+00 : f32
    %1965 = vector.broadcast %cst_374 : f32 to vector<32x1xf32>
    %1966 = arith.select %1963, %1964, %1965 : vector<32x1xi1>, vector<32x1xf32>
    %1967 = vector.shape_cast %1966 : vector<32x1xf32> to vector<1x32x1xf32>
    %cst_375 = arith.constant dense<0xFF800000> : vector<1xf32>
    %1968 = vector.multi_reduction <maximumf>, %1967, %cst_375 [1, 2] : vector<1x32x1xf32> to vector<1xf32>
    %1969 = vector.shape_cast %1968 : vector<1xf32> to vector<1x1x1xf32>
    %1970 = vector.extract %1969[0, 0, 0] : f32 from vector<1x1x1xf32>
    %1971 = vector.broadcast %1970 : f32 to vector<32x1xf32>
    %1972 = arith.cmpf oeq, %1966, %1971 : vector<32x1xf32>
    %c32_i32_376 = arith.constant 32 : i32
    %1973 = vector.broadcast %c32_i32_376 : i32 to vector<32x1xi32>
    %1974 = arith.select %1972, %2, %1973 : vector<32x1xi1>, vector<32x1xi32>
    %1975 = vector.shape_cast %1974 : vector<32x1xi32> to vector<1x32x1xi32>
    %cst_377 = arith.constant dense<2147483647> : vector<1xi32>
    %1976 = vector.multi_reduction <minsi>, %1975, %cst_377 [1, 2] : vector<1x32x1xi32> to vector<1xi32>
    %1977 = vector.shape_cast %1976 : vector<1xi32> to vector<1x1x1xi32>
    %1978 = vector.extract %1977[0, 0, 0] : i32 from vector<1x1x1xi32>
    %1979 = vector.broadcast %1978 : i32 to vector<32x1xi32>
    %1980 = arith.cmpi eq, %2, %1979 : vector<32x1xi32>
    %cst_378 = arith.constant 0.000000e+00 : f32
    %1981 = vector.shape_cast %1980 : vector<32x1xi1> to vector<32x1xi1>
    %1982 = vector.broadcast %1981 : vector<32x1xi1> to vector<32x128xi1>
    %1983 = vector.broadcast %cst_378 : f32 to vector<32x128xf32>
    %1984 = arith.select %1982, %1955, %1983 : vector<32x128xi1>, vector<32x128xf32>
    %cst_379 = arith.constant dense<0.000000e+00> : vector<128xf32>
    %1985 = vector.multi_reduction <add>, %1984, %cst_379 [0] : vector<32x128xf32> to vector<128xf32>
    %1986 = vector.shape_cast %1985 : vector<128xf32> to vector<1x128xf32>
    %1987 = vector.extract_strided_slice %1955 {offsets = [31, 0], sizes = [1, 128], strides = [1, 1]} : vector<32x128xf32> to vector<1x128xf32>
    %1988 = vector.extract_strided_slice %1986 {offsets = [0, 31], sizes = [1, 1], strides = [1, 1]} : vector<1x128xf32> to vector<1x1xf32>
    %1989 = vector.shape_cast %1988 : vector<1x1xf32> to vector<1x1x1xf32>
    %cst_380 = arith.constant dense<0.000000e+00> : vector<1xf32>
    %1990 = vector.multi_reduction <add>, %1989, %cst_380 [1, 2] : vector<1x1x1xf32> to vector<1xf32>
    %1991 = vector.shape_cast %1990 : vector<1xf32> to vector<1x1x1xf32>
    %1992 = vector.extract %1991[0, 0, 0] : f32 from vector<1x1x1xf32>
    %cst_381 = arith.constant 1.000000e+00 : f32
    %1993 = arith.divf %cst_381, %1992 : f32
    %1994 = vector.broadcast %1993 : f32 to vector<1x128xf32>
    %1995 = arith.mulf %1986, %1994 : vector<1x128xf32>
    %1996 = vector.extract_strided_slice %1956 {offsets = [31, 0], sizes = [1, 1], strides = [1, 1]} : vector<32x1xf32> to vector<1x1xf32>
    %1997 = vector.shape_cast %1996 : vector<1x1xf32> to vector<1x1x1xf32>
    %cst_382 = arith.constant dense<0.000000e+00> : vector<1xf32>
    %1998 = vector.multi_reduction <add>, %1997, %cst_382 [1, 2] : vector<1x1x1xf32> to vector<1xf32>
    %1999 = vector.shape_cast %1998 : vector<1xf32> to vector<1x1x1xf32>
    %2000 = vector.extract %1999[0, 0, 0] : f32 from vector<1x1x1xf32>
    %2001 = vector.broadcast %2000 : f32 to vector<32x1xf32>
    %2002 = arith.select %1980, %2001, %1956 : vector<32x1xi1>, vector<32x1xf32>
    %cst_383 = arith.constant 0.000000e+00 : f32
    %2003 = vector.broadcast %cst_383 : f32 to vector<32x1xf32>
    %2004 = arith.select %1958, %2003, %2002 : vector<32x1xi1>, vector<32x1xf32>
    %2005 = vector.shape_cast %1980 : vector<32x1xi1> to vector<32x1xi1>
    %2006 = vector.broadcast %2005 : vector<32x1xi1> to vector<32x128xi1>
    %2007 = vector.shape_cast %1987 : vector<1x128xf32> to vector<1x128xf32>
    %2008 = vector.broadcast %2007 : vector<1x128xf32> to vector<32x128xf32>
    %2009 = arith.select %2006, %2008, %1955 : vector<32x128xi1>, vector<32x128xf32>
    %2010 = vector.broadcast %2004 : vector<32x1xf32> to vector<32x128xf32>
    %2011 = vector.broadcast %1995 : vector<1x128xf32> to vector<32x128xf32>
    %2012 = arith.mulf %2010, %2011 : vector<32x128xf32>
    %2013 = arith.subf %2009, %2012 : vector<32x128xf32>
    %2014 = vector.shape_cast %1958 : vector<32x1xi1> to vector<32x1xi1>
    %2015 = vector.broadcast %2014 : vector<32x1xi1> to vector<32x128xi1>
    %2016 = vector.shape_cast %1995 : vector<1x128xf32> to vector<1x128xf32>
    %2017 = vector.broadcast %2016 : vector<1x128xf32> to vector<32x128xf32>
    %2018 = arith.select %2015, %2017, %2013 : vector<32x128xi1>, vector<32x128xf32>
    %c0_384 = arith.constant 0 : index
    %c0_385 = arith.constant 0 : index
    %c0_386 = arith.constant 0 : index
    %2019 = vector.load %arg2[%c0_384, %c0_385, %c0_386] : memref<1x32x128xf32, #tpu.memory_space<vmem>>, vector<1x32x128xf32>
    %2020 = vector.shape_cast %2019 : vector<1x32x128xf32> to vector<32x128xf32>
    %2021 = vector.shape_cast %2018 : vector<32x128xf32> to vector<1x32x128xf32>
    tpu.vector_store %arg2[%c0_384, %c0_385, %c0_386], %2021 {strides = array<i32>} : memref<1x32x128xf32, #tpu.memory_space<vmem>>, vector<1x32x128xf32>,
    return
  }
  func.func @transform_0(%arg0: i32) -> (i32, i32, i32) {
    %c0_i32 = arith.constant 0 : i32
    %c0_i32_0 = arith.constant 0 : i32
    %c0_i32_1 = arith.constant 0 : i32
    return %arg0, %c0_i32, %c0_i32_0 : i32, i32, i32
  }
  func.func @transform_1(%arg0: i32) -> (i32, i32, i32) {
    %c0_i32 = arith.constant 0 : i32
    %c0_i32_0 = arith.constant 0 : i32
    %c0_i32_1 = arith.constant 0 : i32
    return %arg0, %c0_i32, %c0_i32_0 : i32, i32, i32
  }
}

</mosaic_0001>

<bundles_post_ra>
// kernel: tpu_custom_call.1
= control target key start
LH: loop header
LB: loop body
LE: loop exit
PB: predicated region body
PF: predicated region fallthrough
CT: control target
= control target key end

     0   :  { %6 = vsyncpa [#allocation3], 0  ;;  %s9856_s0 = inlined_call_operand.hbm [shape: f32[1,32,128], index: 0, kind: input, shape index: {}]   ;;  %s9857_s1 = inlined_call_operand.hbm [shape: f32[1,32,128], index: 1, kind: output, shape index: {}]  }
   0x1   :  { %7 = vsyncpa [#allocation4], 0  ;;  %s6448_s6 = smov [#allocation2]   ;;  %s6400_s10 = scalar_lea.hbm %s9856_s0, 512 }
   0x2   :  { %s13_s7 = sshll.u32 %s6448_s6, 4  ;;  %p6401_p0 = scmp.ne.s32.totalorder %s9856_s0, %s6400_s10  ;;  %s14_s7 = int_to_ptr.vmem [resolvable:$true] %s13_s7 }
   0x3   :  { %p6404_p1 = scmp.lt.u32.totalorder %s6400_s10, %s9856_s0 }
   0x5   :  { %p6406_p2 = pnand %p6404_p1, %p6401_p0 }
   0x7   :  { %6409 = shalt.err (!%p6406_p2)
}
   0x8   :  { %s6410_s15 = scalar_lea.vmem %s14_s7, 512  ;;  %p6415_p4 = scmp.lt.s32.totalorder %s14_s7, %s14_s7 }
   0x9   :  { %p6411_p3 = scmp.ne.s32.totalorder %s14_s7, %s6410_s15  ;;  %p6416_p5 = scmp.lt.s32.totalorder %s6410_s15, %s6410_s15 }
   0xb   :  { %p6417_p6 = por %p6416_p5, %p6415_p4 }
   0xd   :  { %p6418_p7 = pnand %p6417_p6, %p6411_p3 }
   0xf   :  { %6421 = shalt.err (!%p6418_p7)
}
  0x10   :  { %s6449_s16 = smov 128   ;;  %s6450_s17 = smov 8  }
  0x11   :  { %19 = dma.hbm_to_vmem [thread:$0]  %s9856_s0, 512, %s14_s7, [#allocation3], %s6449_s16, %s6449_s16, %s6450_s17  }
  0x12   :  { %6444 = dma.done.wait [#allocation3], 512  }
  0x13   :  { %6445 = vsyncadd [#allocation3], 4294966784  ;;  %v6541_v0 = vld [vmem:[#allocation2] sm:$0xff]  ;;  %v6543_v1 = vld [vmem:[#allocation2 + $0x8] sm:$0xff]  ;;  %vm56_vm0 = vcmask 7168   ;;  %v27_v22 = vlaneseq  ;;  %s6452_s25 = smov 127  }
  0x14   :  { %v6545_v2 = vld [vmem:[#allocation2 + $0x10] sm:$0xff]  ;;  %v6547_v3 = vld [vmem:[#allocation2 + $0x18] sm:$0xff]  ;;  %v48_v4 = vand.u32 2147483647, %v6541_v0  ;;  %v49_v5 = vand.u32 2147483647, %v6543_v1 }
  0x15   :  { %v50_v6 = vand.u32 2147483647, %v6545_v2  ;;  %v51_v7 = vand.u32 2147483647, %v6547_v3  ;;  %v6557_v23 = vshrl.u32 %v27_v22, 7  ;;  %s6454_s2 = smov 126  }
  0x16   :  { %v57_v8 = vsel %vm56_vm0, %v48_v4, -inf  ;;  %v58_v9 = vsel %vm56_vm0, %v49_v5, -inf  ;;  %s6456_s8 = smov 125   ;;  %s6458_s14 = smov 124  }
  0x17   :  { %v59_v10 = vsel %vm56_vm0, %v50_v6, -inf  ;;  %v60_v11 = vsel %vm56_vm0, %v51_v7, -inf  ;;  %v61_v12 = vmax.f32 %v57_v8, %v58_v9  ;;  %v6560_v24 = vadd.s32 8, %v6557_v23 }
  0x18   :  { %v62_v13 = vmax.f32 %v59_v10, %v60_v11  ;;  %v6563_v25 = vadd.s32 16, %v6557_v23  ;;  %v6566_v26 = vadd.s32 24, %v6557_v23 }
  0x1a   :  { %v63_v14 = vmax.f32 %v61_v12, %v62_v13 }
  0x1c   :  { %64 = vmax.xlane.f32.xlu0 %v63_v14 }
  0xa9   :  { %v65_v15 = vpop.xlane.xlu0 %64 }
  0xaa   :  { %v66_v16 = vrot.slane %v65_v15, 4 }
  0xac   :  { %v67_v17 = vmax.f32 %v65_v15, %v66_v16 }
  0xae   :  { %v68_v18 = vrot.slane %v67_v17, 2 }
  0xb0   :  { %v69_v19 = vmax.f32 %v67_v17, %v68_v18 }
  0xb2   :  { %v70_v20 = vrot.slane %v69_v19, 1 }
  0xb4   :  { %v71_v21 = vmax.f32 %v69_v19, %v70_v20  ;;  %v6623_v20 = vsub.s32 0, %v6557_v23 }
  0xb6   :  { %5885 = vpush %v71_v21 }
  0xe7   :  { %s5886_s0 = spop %5885 }
  0xe8   :  { %v73_v27 = vstv %s5886_s0 }
  0xe9   :  { %vm74_vm1 = vcmp.eq.f32.partialorder %v48_v4, %v73_v27  ;;  %vm75_vm2 = vcmp.eq.f32.partialorder %v49_v5, %v73_v27  ;;  %vm76_vm3 = vcmp.eq.f32.partialorder %v50_v6, %v73_v27  ;;  %vm77_vm4 = vcmp.eq.f32.partialorder %v51_v7, %v73_v27 }
  0xea   :  { %v78_v28 = vsel %vm74_vm1, %v6557_v23, 32  ;;  %v79_v29 = vsel %vm75_vm2, %v6560_v24, 32  ;;  %v80_v30 = vsel %vm76_vm3, %v6563_v25, 32  ;;  %v81_v31 = vsel %vm77_vm4, %v6566_v26, 32 }
  0xeb   :  { %v82_v32 = vsel %vm56_vm0, %v78_v28, 2147483647  ;;  %v83_v33 = vsel %vm56_vm0, %v79_v29, 2147483647  ;;  %v84_v34 = vsel %vm56_vm0, %v80_v30, 2147483647  ;;  %v163_v28 = vrot.slane %v6541_v0, %v6623_v20 }
  0xec   :  { %v85_v35 = vsel %vm56_vm0, %v81_v31, 2147483647  ;;  %vm86_vm5 = vcmp.lt.s32.totalorder %v82_v32, %v83_v33  ;;  %v6451_v4 = vmov 0   ;;  %vm32_vm0 = vcmp.eq.s32.totalorder %v6557_v23, 0 }
  0xed   :  { %v87_v36 = vsel %vm86_vm5, %v82_v32, %v83_v33  ;;  %vm88_vm6 = vcmp.lt.s32.totalorder %v84_v34, %v85_v35  ;;  %6274 = vset.pattern.permute.xlu1 %v6451_v4  ;;  %6273 = vset.pattern.permute.xlu0 %v6451_v4  ;;  %vm212_vm1 = vcmp.ge.s32.totalorder %v6557_v23, 1  ;;  %vm228_vm2 = vcmask 15368  }
  0xee   :  { %v89_v37 = vsel %vm88_vm6, %v84_v34, %v85_v35 }
  0xef   :  { %vm90_vm7 = vcmp.lt.s32.totalorder %v87_v36, %v89_v37 }
  0xf0   :  { %v91_v38 = vsel %vm90_vm7, %v87_v36, %v89_v37 }
  0xf1   :  { %v93_v39 = vshra.s32 %v91_v38, 16  ;;  %v92_v41 = vand.u32 65535, %v91_v38 }
  0xf3   :  { %v95_v40 = vcvt.s32.f32 %v93_v39  ;;  %v94_v43 = vcvt.s32.f32 %v92_v41 }
  0xf5   :  { %96 = vmin.xlane.f32.xlu0 %v95_v40 }
 0x182   :  { %v97_v42 = vpop.xlane.xlu0 %96 }
 0x183   :  { %vm98_vm8 = vcmp.eq.f32.partialorder %v95_v40, %v97_v42  ;;  %v103_v45 = vcvt.f32.s32 %v97_v42 }
 0x184   :  { %v99_v44 = vsel %vm98_vm8, %v94_v43, inf }
 0x185   :  { %100 = vmin.xlane.f32.xlu1 %v99_v44  ;;  %v104_v47 = vshll.u32 %v103_v45, 16 }
 0x212   :  { %v101_v46 = vpop.xlane.xlu1 %100 }
 0x213   :  { %v102_v48 = vcvt.f32.s32 %v101_v46 }
 0x215   :  { %v105_v49 = vadd.s32 %v104_v47, %v102_v48 }
 0x217   :  { %v106_v50 = vrot.slane %v105_v49, 4 }
 0x219   :  { %vm107_vm9 = vcmp.lt.s32.totalorder %v105_v49, %v106_v50 }
 0x21a   :  { %v108_v51 = vsel %vm107_vm9, %v105_v49, %v106_v50 }
 0x21b   :  { %v109_v52 = vrot.slane %v108_v51, 2 }
 0x21d   :  { %vm110_vm10 = vcmp.lt.s32.totalorder %v108_v51, %v109_v52 }
 0x21e   :  { %v111_v53 = vsel %vm110_vm10, %v108_v51, %v109_v52 }
 0x21f   :  { %v112_v54 = vrot.slane %v111_v53, 1 }
 0x221   :  { %vm113_vm11 = vcmp.lt.s32.totalorder %v111_v53, %v112_v54 }
 0x222   :  { %v114_v55 = vsel %vm113_vm11, %v111_v53, %v112_v54 }
 0x223   :  { %5887 = vpush %v114_v55 }
 0x254   :  { %s5888_s20 = spop %5887 }
 0x255   :  { %v6576_v56 = vstv %s5888_s20 }
 0x256   :  { %vm117_vm12 = vcmp.eq.s32.totalorder %v6557_v23, %v6576_v56  ;;  %vm118_vm13 = vcmp.eq.s32.totalorder %v6560_v24, %v6576_v56  ;;  %vm119_vm14 = vcmp.eq.s32.totalorder %v6563_v25, %v6576_v56  ;;  %vm120_vm15 = vcmp.eq.s32.totalorder %v6566_v26, %v6576_v56 }
 0x257   :  { %v129_v57 = vsel %vm117_vm12, %v6541_v0, 0.0  ;;  %v130_v58 = vsel %vm118_vm13, %v6543_v1, 0.0  ;;  %v131_v60 = vsel %vm119_vm14, %v6545_v2, 0.0  ;;  %v132_v62 = vsel %vm120_vm15, %v6547_v3, 0.0 }
 0x258   :  { %v133_v59 = vadd.f32 %v130_v58, %v129_v57  ;;  %v166_v33 = vsel %vm119_vm14, %v163_v28, %v6545_v2  ;;  %v165_v34 = vsel %vm118_vm13, %v163_v28, %v6543_v1  ;;  %v164_v35 = vsel %vm117_vm12, %v163_v28, %v6541_v0 }
 0x25a   :  { %v134_v61 = vadd.f32 %v133_v59, %v131_v60 }
 0x25c   :  { %v135_v63 = vadd.f32 %v134_v61, %v132_v62 }
 0x25e   :  { %v136_v5 = vrot.slane %v135_v63, 4 }
 0x260   :  { %v137_v6 = vadd.f32 %v136_v5, %v135_v63 }
 0x262   :  { %v138_v7 = vrot.slane %v137_v6, 2 }
 0x264   :  { %v139_v8 = vadd.f32 %v138_v7, %v137_v6 }
 0x266   :  { %v140_v9 = vrot.slane %v139_v8, 1 }
 0x268   :  { %v141_v10 = vadd.f32 %v140_v9, %v139_v8 }
 0x26a   :  { %5889 = vpush %v141_v10 }
 0x29b   :  { %s5890_s21 = spop %5889 }
 0x29c   :  { %v144_v11 = vstv %s5890_s21  ;;  %s6460_s21 = smov 123  }
 0x29d   :  { %6336 = vrcp.f32 %v144_v11 }
 0x2a7   :  { %v6337_v12 = vpop.eup %6336 }
 0x2a8   :  { %5891 = vpush %v6337_v12 }
 0x2a9   :  { %5893 = vpush %v6541_v0 }
 0x2d9   :  { %s5892_s22 = spop %5891 }
 0x2da   :  { %s5894_s23 = spop %5893  ;;  %v147_v19 = vstv %s5892_s22 }
 0x2db   :  { %v151_v13 = vstv %s5894_s23  ;;  %v148_v27 = vmul.f32 %v147_v19, %v141_v10 }
 0x2dc   :  { %v154_v14 = vsel %vm119_vm14, %v151_v13, %v6545_v2  ;;  %v153_v15 = vsel %vm118_vm13, %v151_v13, %v6543_v1  ;;  %v152_v16 = vsel %vm117_vm12, %v151_v13, %v6541_v0  ;;  %v155_v18 = vsel %vm120_vm15, %v151_v13, %v6547_v3 }
 0x2dd   :  { %180 = vperm.xlu1 %6274, %v154_v14   ;;  %175 = vperm.xlu0 %6273, %v153_v15   ;;  %v156_v17 = vsel %vm32_vm0, 0.0, %v152_v16  ;;  %v167_v1 = vsel %vm120_vm15, %v163_v28, %v6547_v3 }
 0x2e1   :  { %170 = vperm.xlu1 %6274, %v156_v17  }
 0x2e5   :  { %185 = vperm.xlu1 %6274, %v155_v18  }
 0x35c   :  { %v181_v21 = vpop.permute.xlu1 %180  ;;  %v176_v22 = vpop.permute.xlu0 %175 }
 0x35d   :  { %v190_v29 = vmul.f32 %v181_v21, %v148_v27  ;;  %v189_v30 = vmul.f32 %v176_v22, %v148_v27 }
 0x35f   :  { %v6639_v36 = vsub.f32 %v166_v33, %v190_v29  ;;  %v6641_v37 = vsub.f32 %v165_v34, %v189_v30 }
 0x360   :  { %v171_v31 = vpop.permute.xlu1 %170 }
 0x361   :  { %v188_v32 = vmul.f32 %v171_v31, %v148_v27  ;;  %v221_v42 = vand.u32 2147483647, %v6641_v37  ;;  %v222_v43 = vand.u32 2147483647, %v6639_v36 }
 0x363   :  { %v192_v38 = vsub.f32 %v164_v35, %v188_v32  ;;  %v230_v47 = vsel %vm228_vm2, %v221_v42, -inf  ;;  %v231_v48 = vsel %vm228_vm2, %v222_v43, -inf }
 0x364   :  { %v186_v39 = vpop.permute.xlu1 %185 }
 0x365   :  { %v6645_v40 = vsel %vm32_vm0, %v148_v27, %v192_v38  ;;  %v191_v2 = vmul.f32 %v186_v39, %v148_v27 }
 0x366   :  { %v220_v0 = vand.u32 2147483647, %v6645_v40  ;;  %v327_v13 = vrot.slane %v6645_v40, 1 }
 0x367   :  { %v6653_v41 = vsub.f32 %v167_v1, %v191_v2 }
 0x368   :  { %v224_v44 = vsel %vm212_vm1, %v220_v0, -1.0 }
 0x369   :  { %v223_v45 = vand.u32 2147483647, %v6653_v41  ;;  %v229_v46 = vsel %vm228_vm2, %v224_v44, -inf }
 0x36a   :  { %v233_v49 = vmax.f32 %v229_v46, %v230_v47 }
 0x36b   :  { %v232_v3 = vsel %vm228_vm2, %v223_v45, -inf }
 0x36c   :  { %v234_v50 = vmax.f32 %v231_v48, %v232_v3  ;;  %v6453_v3 = vmov 1  }
 0x36d   :  { %6275 = vset.pattern.permute.xlu1 %v6453_v3 }
 0x36e   :  { %v235_v51 = vmax.f32 %v233_v49, %v234_v50 }
 0x370   :  { %236 = vmax.xlane.f32.xlu1 %v235_v51 }
 0x3fd   :  { %v237_v52 = vpop.xlane.xlu1 %236 }
 0x3fe   :  { %v238_v53 = vrot.slane %v237_v52, 4 }
 0x400   :  { %v239_v54 = vmax.f32 %v237_v52, %v238_v53 }
 0x402   :  { %v240_v55 = vrot.slane %v239_v54, 2 }
 0x404   :  { %v241_v56 = vmax.f32 %v239_v54, %v240_v55 }
 0x406   :  { %v242_v57 = vrot.slane %v241_v56, 1 }
 0x408   :  { %v243_v58 = vmax.f32 %v241_v56, %v242_v57 }
 0x40a   :  { %5895 = vpush %v243_v58 }
 0x43b   :  { %s5896_s24 = spop %5895 }
 0x43c   :  { %v245_v59 = vstv %s5896_s24 }
 0x43d   :  { %vm246_vm3 = vcmp.eq.f32.partialorder %v224_v44, %v245_v59  ;;  %vm247_vm4 = vcmp.eq.f32.partialorder %v221_v42, %v245_v59  ;;  %vm248_vm5 = vcmp.eq.f32.partialorder %v222_v43, %v245_v59  ;;  %vm249_vm6 = vcmp.eq.f32.partialorder %v223_v45, %v245_v59 }
 0x43e   :  { %v250_v60 = vsel %vm246_vm3, %v6557_v23, 32  ;;  %v251_v61 = vsel %vm247_vm4, %v6560_v24, 32  ;;  %v252_v62 = vsel %vm248_vm5, %v6563_v25, 32  ;;  %v253_v63 = vsel %vm249_vm6, %v6566_v26, 32 }
 0x43f   :  { %v254_v4 = vsel %vm228_vm2, %v250_v60, 2147483647  ;;  %v255_v5 = vsel %vm228_vm2, %v251_v61, 2147483647  ;;  %v256_v6 = vsel %vm228_vm2, %v252_v62, 2147483647 }
 0x440   :  { %v257_v7 = vsel %vm228_vm2, %v253_v63, 2147483647  ;;  %vm258_vm7 = vcmp.lt.s32.totalorder %v254_v4, %v255_v5  ;;  %vm208_vm2 = vcmp.eq.s32.totalorder %v6557_v23, 1  ;;  %v6719_v61 = vsub.s32 1, %v6557_v23 }
 0x441   :  { %v259_v8 = vsel %vm258_vm7, %v254_v4, %v255_v5  ;;  %vm260_vm8 = vcmp.lt.s32.totalorder %v256_v6, %v257_v7  ;;  %vm393_vm3 = vcmp.ge.s32.totalorder %v6557_v23, 2  ;;  %vm409_vm4 = vcmask 23568  }
 0x442   :  { %v261_v9 = vsel %vm260_vm8, %v256_v6, %v257_v7  ;;  %v344_v6 = vrot.slane %v6645_v40, %v6719_v61 }
 0x443   :  { %vm262_vm9 = vcmp.lt.s32.totalorder %v259_v8, %v261_v9 }
 0x444   :  { %v263_v10 = vsel %vm262_vm9, %v259_v8, %v261_v9 }
 0x445   :  { %v265_v11 = vshra.s32 %v263_v10, 16  ;;  %v264_v14 = vand.u32 65535, %v263_v10 }
 0x447   :  { %v267_v12 = vcvt.s32.f32 %v265_v11  ;;  %v266_v16 = vcvt.s32.f32 %v264_v14 }
 0x449   :  { %268 = vmin.xlane.f32.xlu0 %v267_v12 }
 0x45f   :  { %328 = vrot.lane.b32.xlu0 %v327_v13, %s6452_s25 }
 0x4d6   :  { %v269_v15 = vpop.xlane.xlu0 %268 }
 0x4d7   :  { %vm270_vm10 = vcmp.eq.f32.partialorder %v267_v12, %v269_v15  ;;  %v275_v18 = vcvt.f32.s32 %v269_v15 }
 0x4d8   :  { %v271_v17 = vsel %vm270_vm10, %v266_v16, inf }
 0x4d9   :  { %272 = vmin.xlane.f32.xlu1 %v271_v17  ;;  %v276_v21 = vshll.u32 %v275_v18, 16 }
 0x4da   :  { %v329_v52 = vpop.permute.xlu0 %328 }
 0x566   :  { %v273_v19 = vpop.xlane.xlu1 %272 }
 0x567   :  { %v274_v22 = vcvt.f32.s32 %v273_v19 }
 0x569   :  { %v277_v27 = vadd.s32 %v276_v21, %v274_v22 }
 0x56b   :  { %v278_v28 = vrot.slane %v277_v27, 4 }
 0x56d   :  { %vm279_vm11 = vcmp.lt.s32.totalorder %v277_v27, %v278_v28 }
 0x56e   :  { %v280_v29 = vsel %vm279_vm11, %v277_v27, %v278_v28 }
 0x56f   :  { %v281_v30 = vrot.slane %v280_v29, 2 }
 0x571   :  { %vm282_vm12 = vcmp.lt.s32.totalorder %v280_v29, %v281_v30 }
 0x572   :  { %v283_v31 = vsel %vm282_vm12, %v280_v29, %v281_v30 }
 0x573   :  { %v284_v32 = vrot.slane %v283_v31, 1 }
 0x575   :  { %vm285_vm13 = vcmp.lt.s32.totalorder %v283_v31, %v284_v32 }
 0x576   :  { %v286_v33 = vsel %vm285_vm13, %v283_v31, %v284_v32 }
 0x577   :  { %5897 = vpush %v286_v33 }
 0x5a8   :  { %s5898_s26 = spop %5897 }
 0x5a9   :  { %v6672_v34 = vstv %s5898_s26 }
 0x5aa   :  { %vm289_vm14 = vcmp.eq.s32.totalorder %v6557_v23, %v6672_v34  ;;  %vm290_vm15 = vcmp.eq.s32.totalorder %v6560_v24, %v6672_v34  ;;  %vm291_vm0 = vcmp.eq.s32.totalorder %v6563_v25, %v6672_v34  ;;  %vm292_vm1 = vcmp.eq.s32.totalorder %v6566_v26, %v6672_v34 }
 0x5ab   :  { %v301_v35 = vsel %vm289_vm14, %v6645_v40, 0.0  ;;  %v302_v38 = vsel %vm290_vm15, %v6641_v37, 0.0  ;;  %v303_v2 = vsel %vm291_vm0, %v6639_v36, 0.0  ;;  %v304_v0 = vsel %vm292_vm1, %v6653_v41, 0.0 }
 0x5ac   :  { %v305_v39 = vadd.f32 %v302_v38, %v301_v35  ;;  %v346_v9 = vsel %vm290_vm15, %v344_v6, %v6641_v37  ;;  %v347_v10 = vsel %vm291_vm0, %v344_v6, %v6639_v36  ;;  %v345_v11 = vsel %vm289_vm14, %v344_v6, %v6645_v40 }
 0x5ae   :  { %v306_v1 = vadd.f32 %v305_v39, %v303_v2 }
 0x5b0   :  { %v307_v42 = vadd.f32 %v306_v1, %v304_v0 }
 0x5b2   :  { %v308_v43 = vrot.slane %v307_v42, 4 }
 0x5b4   :  { %v309_v44 = vadd.f32 %v308_v43, %v307_v42 }
 0x5b6   :  { %v310_v45 = vrot.slane %v309_v44, 2 }
 0x5b8   :  { %v311_v46 = vadd.f32 %v310_v45, %v309_v44 }
 0x5ba   :  { %v312_v47 = vrot.slane %v311_v46, 1 }
 0x5bc   :  { %v313_v48 = vadd.f32 %v312_v47, %v311_v46 }
 0x5be   :  { %316 = vrot.lane.b32.xlu1 %v313_v48, %s6452_s25 }
 0x630   :  { %v317_v49 = vpop.permute.xlu1 %316 }
 0x631   :  { %5899 = vpush %v317_v49 }
 0x662   :  { %s5900_s27 = spop %5899 }
 0x663   :  { %v320_v50 = vstv %s5900_s27  ;;  %s6462_s27 = smov 122  }
 0x664   :  { %6338 = vrcp.f32 %v320_v50 }
 0x66e   :  { %v6339_v51 = vpop.eup %6338 }
 0x66f   :  { %5901 = vpush %v6339_v51 }
 0x670   :  { %5903 = vpush %v329_v52 }
 0x6a0   :  { %s5902_s28 = spop %5901 }
 0x6a1   :  { %s5904_s29 = spop %5903  ;;  %v323_v60 = vstv %s5902_s28 }
 0x6a2   :  { %v332_v53 = vstv %s5904_s29  ;;  %v324_v63 = vmul.f32 %v323_v60, %v313_v48 }
 0x6a3   :  { %v334_v54 = vsel %vm290_vm15, %v332_v53, %v6641_v37  ;;  %v335_v55 = vsel %vm291_vm0, %v332_v53, %v6639_v36  ;;  %v333_v56 = vsel %vm289_vm14, %v332_v53, %v6645_v40  ;;  %v336_v58 = vsel %vm292_vm1, %v332_v53, %v6653_v41 }
 0x6a4   :  { %356 = vperm.xlu1 %6275, %v334_v54   ;;  %v337_v57 = vsel %vm208_vm2, 0.0, %v333_v56  ;;  %v348_v36 = vsel %vm292_vm1, %v344_v6, %v6653_v41 }
 0x6a8   :  { %361 = vperm.xlu1 %6275, %v335_v55  }
 0x6ac   :  { %351 = vperm.xlu1 %6275, %v337_v57  }
 0x6b0   :  { %366 = vperm.xlu1 %6275, %v336_v58  }
 0x723   :  { %v357_v59 = vpop.permute.xlu1 %356 }
 0x724   :  { %v370_v4 = vmul.f32 %v357_v59, %v324_v63 }
 0x726   :  { %v6735_v12 = vsub.f32 %v346_v9, %v370_v4 }
 0x727   :  { %v362_v62 = vpop.permute.xlu1 %361 }
 0x728   :  { %v371_v5 = vmul.f32 %v362_v62, %v324_v63  ;;  %v402_v18 = vand.u32 2147483647, %v6735_v12 }
 0x72a   :  { %v6737_v13 = vsub.f32 %v347_v10, %v371_v5  ;;  %v411_v28 = vsel %vm409_vm4, %v402_v18, -inf }
 0x72b   :  { %v352_v7 = vpop.permute.xlu1 %351 }
 0x72c   :  { %v369_v8 = vmul.f32 %v352_v7, %v324_v63  ;;  %v403_v19 = vand.u32 2147483647, %v6737_v13 }
 0x72e   :  { %v373_v14 = vsub.f32 %v345_v11, %v369_v8  ;;  %v412_v29 = vsel %vm409_vm4, %v403_v19, -inf }
 0x72f   :  { %v367_v15 = vpop.permute.xlu1 %366 }
 0x730   :  { %v6741_v16 = vsel %vm208_vm2, %v324_v63, %v373_v14  ;;  %v372_v37 = vmul.f32 %v367_v15, %v324_v63 }
 0x731   :  { %v401_v40 = vand.u32 2147483647, %v6741_v16  ;;  %v508_v58 = vrot.slane %v6741_v16, 2 }
 0x732   :  { %v6749_v17 = vsub.f32 %v348_v36, %v372_v37 }
 0x733   :  { %v405_v21 = vsel %vm393_vm3, %v401_v40, -1.0 }
 0x734   :  { %v404_v22 = vand.u32 2147483647, %v6749_v17  ;;  %v410_v27 = vsel %vm409_vm4, %v405_v21, -inf }
 0x735   :  { %v414_v30 = vmax.f32 %v410_v27, %v411_v28 }
 0x736   :  { %v413_v41 = vsel %vm409_vm4, %v404_v22, -inf }
 0x737   :  { %v415_v31 = vmax.f32 %v412_v29, %v413_v41 }
 0x739   :  { %v416_v32 = vmax.f32 %v414_v30, %v415_v31  ;;  %v6455_v30 = vmov 2  }
 0x73a   :  { %6277 = vset.pattern.permute.xlu0 %v6455_v30  ;;  %6276 = vset.pattern.permute.xlu1 %v6455_v30 }
 0x73b   :  { %417 = vmax.xlane.f32.xlu1 %v416_v32 }
 0x7c8   :  { %v418_v33 = vpop.xlane.xlu1 %417 }
 0x7c9   :  { %v419_v34 = vrot.slane %v418_v33, 4 }
 0x7cb   :  { %v420_v35 = vmax.f32 %v418_v33, %v419_v34 }
 0x7cd   :  { %v421_v38 = vrot.slane %v420_v35, 2 }
 0x7cf   :  { %v422_v39 = vmax.f32 %v420_v35, %v421_v38 }
 0x7d1   :  { %v423_v2 = vrot.slane %v422_v39, 1 }
 0x7d3   :  { %v424_v1 = vmax.f32 %v422_v39, %v423_v2 }
 0x7d5   :  { %5905 = vpush %v424_v1 }
 0x806   :  { %s5906_s30 = spop %5905 }
 0x807   :  { %v426_v0 = vstv %s5906_s30 }
 0x808   :  { %vm427_vm5 = vcmp.eq.f32.partialorder %v405_v21, %v426_v0  ;;  %vm428_vm6 = vcmp.eq.f32.partialorder %v402_v18, %v426_v0  ;;  %vm429_vm7 = vcmp.eq.f32.partialorder %v403_v19, %v426_v0  ;;  %vm430_vm8 = vcmp.eq.f32.partialorder %v404_v22, %v426_v0 }
 0x809   :  { %v431_v42 = vsel %vm427_vm5, %v6557_v23, 32  ;;  %v432_v43 = vsel %vm428_vm6, %v6560_v24, 32  ;;  %v433_v44 = vsel %vm429_vm7, %v6563_v25, 32  ;;  %v434_v45 = vsel %vm430_vm8, %v6566_v26, 32 }
 0x80a   :  { %v435_v46 = vsel %vm409_vm4, %v431_v42, 2147483647  ;;  %v436_v47 = vsel %vm409_vm4, %v432_v43, 2147483647  ;;  %v437_v48 = vsel %vm409_vm4, %v433_v44, 2147483647 }
 0x80b   :  { %v438_v3 = vsel %vm409_vm4, %v434_v45, 2147483647  ;;  %vm439_vm9 = vcmp.lt.s32.totalorder %v435_v46, %v436_v47  ;;  %vm389_vm4 = vcmp.eq.s32.totalorder %v6557_v23, 2  ;;  %v6815_v43 = vsub.s32 2, %v6557_v23 }
 0x80c   :  { %v440_v49 = vsel %vm439_vm9, %v435_v46, %v436_v47  ;;  %vm441_vm10 = vcmp.lt.s32.totalorder %v437_v48, %v438_v3  ;;  %vm574_vm5 = vcmp.ge.s32.totalorder %v6557_v23, 3  ;;  %vm590_vm6 = vcmask 31768  }
 0x80d   :  { %v442_v50 = vsel %vm441_vm10, %v437_v48, %v438_v3  ;;  %v525_v3 = vrot.slane %v6741_v16, %v6815_v43 }
 0x80e   :  { %vm443_vm11 = vcmp.lt.s32.totalorder %v440_v49, %v442_v50 }
 0x80f   :  { %v444_v51 = vsel %vm443_vm11, %v440_v49, %v442_v50 }
 0x810   :  { %v446_v52 = vshra.s32 %v444_v51, 16  ;;  %v445_v54 = vand.u32 65535, %v444_v51 }
 0x812   :  { %v448_v53 = vcvt.s32.f32 %v446_v52  ;;  %v447_v56 = vcvt.s32.f32 %v445_v54 }
 0x814   :  { %449 = vmin.xlane.f32.xlu0 %v448_v53 }
 0x8a1   :  { %v450_v55 = vpop.xlane.xlu0 %449 }
 0x8a2   :  { %vm451_vm12 = vcmp.eq.f32.partialorder %v448_v53, %v450_v55  ;;  %v456_v59 = vcvt.f32.s32 %v450_v55 }
 0x8a3   :  { %v452_v57 = vsel %vm451_vm12, %v447_v56, inf }
 0x8a4   :  { %453 = vmin.xlane.f32.xlu0 %v452_v57  ;;  %v457_v62 = vshll.u32 %v456_v59, 16 }
 0x8ba   :  { %509 = vrot.lane.b32.xlu0 %v508_v58, %s6454_s2 }
 0x931   :  { %v454_v60 = vpop.xlane.xlu0 %453 }
 0x932   :  { %v455_v63 = vcvt.f32.s32 %v454_v60 }
 0x934   :  { %v458_v4 = vadd.s32 %v457_v62, %v455_v63 }
 0x935   :  { %v510_v34 = vpop.permute.xlu0 %509 }
 0x936   :  { %v459_v5 = vrot.slane %v458_v4, 4 }
 0x938   :  { %vm460_vm13 = vcmp.lt.s32.totalorder %v458_v4, %v459_v5 }
 0x939   :  { %v461_v6 = vsel %vm460_vm13, %v458_v4, %v459_v5 }
 0x93a   :  { %v462_v7 = vrot.slane %v461_v6, 2 }
 0x93c   :  { %vm463_vm14 = vcmp.lt.s32.totalorder %v461_v6, %v462_v7 }
 0x93d   :  { %v464_v8 = vsel %vm463_vm14, %v461_v6, %v462_v7 }
 0x93e   :  { %v465_v9 = vrot.slane %v464_v8, 1 }
 0x940   :  { %vm466_vm15 = vcmp.lt.s32.totalorder %v464_v8, %v465_v9 }
 0x941   :  { %v467_v10 = vsel %vm466_vm15, %v464_v8, %v465_v9 }
 0x942   :  { %5907 = vpush %v467_v10 }
 0x973   :  { %s5908_s3 = spop %5907 }
 0x974   :  { %v6768_v11 = vstv %s5908_s3 }
 0x975   :  { %vm470_vm0 = vcmp.eq.s32.totalorder %v6557_v23, %v6768_v11  ;;  %vm471_vm1 = vcmp.eq.s32.totalorder %v6560_v24, %v6768_v11  ;;  %vm472_vm2 = vcmp.eq.s32.totalorder %v6563_v25, %v6768_v11  ;;  %vm473_vm3 = vcmp.eq.s32.totalorder %v6566_v26, %v6768_v11 }
 0x976   :  { %v482_v14 = vsel %vm470_vm0, %v6741_v16, 0.0  ;;  %v483_v15 = vsel %vm471_vm1, %v6735_v12, 0.0  ;;  %v484_v36 = vsel %vm472_vm2, %v6737_v13, 0.0  ;;  %v485_v18 = vsel %vm473_vm3, %v6749_v17, 0.0 }
 0x977   :  { %v486_v37 = vadd.f32 %v483_v15, %v482_v14  ;;  %v528_v51 = vsel %vm472_vm2, %v525_v3, %v6737_v13  ;;  %v527_v52 = vsel %vm471_vm1, %v525_v3, %v6735_v12  ;;  %v526_v53 = vsel %vm470_vm0, %v525_v3, %v6741_v16 }
 0x979   :  { %v487_v40 = vadd.f32 %v486_v37, %v484_v36 }
 0x97b   :  { %v488_v19 = vadd.f32 %v487_v40, %v485_v18 }
 0x97d   :  { %v489_v21 = vrot.slane %v488_v19, 4 }
 0x97f   :  { %v490_v22 = vadd.f32 %v489_v21, %v488_v19 }
 0x981   :  { %v491_v27 = vrot.slane %v490_v22, 2 }
 0x983   :  { %v492_v28 = vadd.f32 %v491_v27, %v490_v22 }
 0x985   :  { %v493_v29 = vrot.slane %v492_v28, 1 }
 0x987   :  { %v494_v41 = vadd.f32 %v493_v29, %v492_v28 }
 0x989   :  { %497 = vrot.lane.b32.xlu1 %v494_v41, %s6454_s2 }
 0x9fb   :  { %v498_v31 = vpop.permute.xlu1 %497 }
 0x9fc   :  { %5909 = vpush %v498_v31 }
 0xa2d   :  { %s5910_s4 = spop %5909 }
 0xa2e   :  { %v501_v32 = vstv %s5910_s4  ;;  %s6464_s4 = smov 121  }
 0xa2f   :  { %6340 = vrcp.f32 %v501_v32 }
 0xa39   :  { %v6341_v33 = vpop.eup %6340 }
 0xa3a   :  { %5911 = vpush %v6341_v33 }
 0xa3b   :  { %5913 = vpush %v510_v34 }
 0xa6b   :  { %s5912_s5 = spop %5911 }
 0xa6c   :  { %s5914_s6 = spop %5913  ;;  %v504_v42 = vstv %s5912_s5 }
 0xa6d   :  { %v513_v35 = vstv %s5914_s6  ;;  %v505_v46 = vmul.f32 %v504_v42, %v494_v41 }
 0xa6e   :  { %v516_v38 = vsel %vm472_vm2, %v513_v35, %v6737_v13  ;;  %v515_v39 = vsel %vm471_vm1, %v513_v35, %v6735_v12  ;;  %v514_v2 = vsel %vm470_vm0, %v513_v35, %v6741_v16  ;;  %v517_v0 = vsel %vm473_vm3, %v513_v35, %v6749_v17 }
 0xa6f   :  { %542 = vperm.xlu0 %6277, %v516_v38   ;;  %537 = vperm.xlu1 %6276, %v515_v39   ;;  %v518_v1 = vsel %vm389_vm4, 0.0, %v514_v2  ;;  %v529_v12 = vsel %vm473_vm3, %v525_v3, %v6749_v17 }
 0xa73   :  { %532 = vperm.xlu1 %6276, %v518_v1  }
 0xa77   :  { %547 = vperm.xlu1 %6276, %v517_v0  }
 0xaee   :  { %v543_v44 = vpop.permute.xlu0 %542  ;;  %v538_v45 = vpop.permute.xlu1 %537 }
 0xaef   :  { %v552_v47 = vmul.f32 %v543_v44, %v505_v46  ;;  %v551_v48 = vmul.f32 %v538_v45, %v505_v46 }
 0xaf1   :  { %v6831_v54 = vsub.f32 %v528_v51, %v552_v47  ;;  %v6833_v55 = vsub.f32 %v527_v52, %v551_v48 }
 0xaf2   :  { %v533_v49 = vpop.permute.xlu1 %532 }
 0xaf3   :  { %v550_v50 = vmul.f32 %v533_v49, %v505_v46  ;;  %v583_v60 = vand.u32 2147483647, %v6833_v55  ;;  %v584_v62 = vand.u32 2147483647, %v6831_v54 }
 0xaf5   :  { %v554_v56 = vsub.f32 %v526_v53, %v550_v50  ;;  %v592_v6 = vsel %vm590_vm6, %v583_v60, -inf  ;;  %v593_v7 = vsel %vm590_vm6, %v584_v62, -inf }
 0xaf6   :  { %v548_v57 = vpop.permute.xlu1 %547 }
 0xaf7   :  { %v6837_v58 = vsel %vm389_vm4, %v505_v46, %v554_v56  ;;  %v553_v13 = vmul.f32 %v548_v57, %v505_v46 }
 0xaf8   :  { %v582_v16 = vand.u32 2147483647, %v6837_v58  ;;  %v689_v42 = vrot.slane %v6837_v58, 3 }
 0xaf9   :  { %v6845_v59 = vsub.f32 %v529_v12, %v553_v13 }
 0xafa   :  { %v586_v63 = vsel %vm574_vm5, %v582_v16, -1.0 }
 0xafb   :  { %v585_v4 = vand.u32 2147483647, %v6845_v59  ;;  %v591_v5 = vsel %vm590_vm6, %v586_v63, -inf }
 0xafc   :  { %v595_v8 = vmax.f32 %v591_v5, %v592_v6 }
 0xafd   :  { %v594_v17 = vsel %vm590_vm6, %v585_v4, -inf }
 0xafe   :  { %v596_v9 = vmax.f32 %v593_v7, %v594_v17 }
 0xb00   :  { %v597_v10 = vmax.f32 %v595_v8, %v596_v9  ;;  %v6457_v9 = vmov 3  }
 0xb01   :  { %6279 = vset.pattern.permute.xlu0 %v6457_v9  ;;  %6278 = vset.pattern.permute.xlu1 %v6457_v9 }
 0xb02   :  { %598 = vmax.xlane.f32.xlu1 %v597_v10 }
 0xb8f   :  { %v599_v11 = vpop.xlane.xlu1 %598 }
 0xb90   :  { %v600_v14 = vrot.slane %v599_v11, 4 }
 0xb92   :  { %v601_v15 = vmax.f32 %v599_v11, %v600_v14 }
 0xb94   :  { %v602_v37 = vrot.slane %v601_v15, 2 }
 0xb96   :  { %v603_v36 = vmax.f32 %v601_v15, %v602_v37 }
 0xb98   :  { %v604_v40 = vrot.slane %v603_v36, 1 }
 0xb9a   :  { %v605_v18 = vmax.f32 %v603_v36, %v604_v40 }
 0xb9c   :  { %5915 = vpush %v605_v18 }
 0xbcd   :  { %s5916_s7 = spop %5915 }
 0xbce   :  { %v607_v19 = vstv %s5916_s7 }
 0xbcf   :  { %vm608_vm7 = vcmp.eq.f32.partialorder %v586_v63, %v607_v19  ;;  %vm609_vm8 = vcmp.eq.f32.partialorder %v583_v60, %v607_v19  ;;  %vm610_vm9 = vcmp.eq.f32.partialorder %v584_v62, %v607_v19  ;;  %vm611_vm10 = vcmp.eq.f32.partialorder %v585_v4, %v607_v19 }
 0xbd0   :  { %v612_v21 = vsel %vm608_vm7, %v6557_v23, 32  ;;  %v613_v22 = vsel %vm609_vm8, %v6560_v24, 32  ;;  %v614_v27 = vsel %vm610_vm9, %v6563_v25, 32  ;;  %v615_v28 = vsel %vm611_vm10, %v6566_v26, 32 }
 0xbd1   :  { %v616_v29 = vsel %vm590_vm6, %v612_v21, 2147483647  ;;  %v617_v41 = vsel %vm590_vm6, %v613_v22, 2147483647  ;;  %v618_v30 = vsel %vm590_vm6, %v614_v27, 2147483647 }
 0xbd2   :  { %v619_v31 = vsel %vm590_vm6, %v615_v28, 2147483647  ;;  %vm620_vm11 = vcmp.lt.s32.totalorder %v616_v29, %v617_v41  ;;  %vm570_vm6 = vcmp.eq.s32.totalorder %v6557_v23, 3  ;;  %v6911_v27 = vsub.s32 3, %v6557_v23 }
 0xbd3   :  { %v621_v32 = vsel %vm620_vm11, %v616_v29, %v617_v41  ;;  %vm622_vm12 = vcmp.lt.s32.totalorder %v618_v30, %v619_v31  ;;  %vm755_vm7 = vcmp.ge.s32.totalorder %v6557_v23, 4  ;;  %vm771_vm8 = vcmask 39968  }
 0xbd4   :  { %v623_v33 = vsel %vm622_vm12, %v618_v30, %v619_v31 }
 0xbd5   :  { %vm624_vm13 = vcmp.lt.s32.totalorder %v621_v32, %v623_v33 }
 0xbd6   :  { %v625_v34 = vsel %vm624_vm13, %v621_v32, %v623_v33  ;;  %v706_v32 = vrot.slane %v6837_v58, %v6911_v27 }
 0xbd7   :  { %v627_v35 = vshra.s32 %v625_v34, 16  ;;  %v626_v39 = vand.u32 65535, %v625_v34 }
 0xbd9   :  { %v629_v38 = vcvt.s32.f32 %v627_v35  ;;  %v628_v1 = vcvt.s32.f32 %v626_v39 }
 0xbdb   :  { %630 = vmin.xlane.f32.xlu0 %v629_v38 }
 0xc68   :  { %v631_v2 = vpop.xlane.xlu0 %630 }
 0xc69   :  { %vm632_vm14 = vcmp.eq.f32.partialorder %v629_v38, %v631_v2  ;;  %v637_v44 = vcvt.f32.s32 %v631_v2 }
 0xc6a   :  { %v633_v0 = vsel %vm632_vm14, %v628_v1, inf }
 0xc6b   :  { %634 = vmin.xlane.f32.xlu0 %v633_v0  ;;  %v638_v46 = vshll.u32 %v637_v44, 16 }
 0xc81   :  { %690 = vrot.lane.b32.xlu0 %v689_v42, %s6456_s8 }
 0xcf8   :  { %v635_v45 = vpop.xlane.xlu0 %634 }
 0xcf9   :  { %v636_v47 = vcvt.f32.s32 %v635_v45 }
 0xcfb   :  { %v639_v48 = vadd.s32 %v638_v46, %v636_v47 }
 0xcfc   :  { %v691_v15 = vpop.permute.xlu0 %690 }
 0xcfd   :  { %v640_v3 = vrot.slane %v639_v48, 4 }
 0xcff   :  { %vm641_vm15 = vcmp.lt.s32.totalorder %v639_v48, %v640_v3 }
 0xd00   :  { %v642_v49 = vsel %vm641_vm15, %v639_v48, %v640_v3 }
 0xd01   :  { %v643_v50 = vrot.slane %v642_v49, 2 }
 0xd03   :  { %vm644_vm0 = vcmp.lt.s32.totalorder %v642_v49, %v643_v50 }
 0xd04   :  { %v645_v51 = vsel %vm644_vm0, %v642_v49, %v643_v50 }
 0xd05   :  { %v646_v52 = vrot.slane %v645_v51, 1 }
 0xd07   :  { %vm647_vm1 = vcmp.lt.s32.totalorder %v645_v51, %v646_v52 }
 0xd08   :  { %v648_v53 = vsel %vm647_vm1, %v645_v51, %v646_v52 }
 0xd09   :  { %5917 = vpush %v648_v53 }
 0xd3a   :  { %s5918_s9 = spop %5917 }
 0xd3b   :  { %v6864_v56 = vstv %s5918_s9 }
 0xd3c   :  { %vm651_vm2 = vcmp.eq.s32.totalorder %v6557_v23, %v6864_v56  ;;  %vm652_vm3 = vcmp.eq.s32.totalorder %v6560_v24, %v6864_v56  ;;  %vm653_vm4 = vcmp.eq.s32.totalorder %v6563_v25, %v6864_v56  ;;  %vm654_vm5 = vcmp.eq.s32.totalorder %v6566_v26, %v6864_v56 }
 0xd3d   :  { %v663_v57 = vsel %vm651_vm2, %v6837_v58, 0.0  ;;  %v664_v13 = vsel %vm652_vm3, %v6833_v55, 0.0  ;;  %v665_v16 = vsel %vm653_vm4, %v6831_v54, 0.0  ;;  %v666_v62 = vsel %vm654_vm5, %v6845_v59, 0.0 }
 0xd3e   :  { %v667_v12 = vadd.f32 %v664_v13, %v663_v57  ;;  %v709_v35 = vsel %vm653_vm4, %v706_v32, %v6831_v54  ;;  %v708_v38 = vsel %vm652_vm3, %v706_v32, %v6833_v55  ;;  %v707_v39 = vsel %vm651_vm2, %v706_v32, %v6837_v58 }
 0xd40   :  { %v668_v60 = vadd.f32 %v667_v12, %v665_v16 }
 0xd42   :  { %v669_v63 = vadd.f32 %v668_v60, %v666_v62 }
 0xd44   :  { %v670_v4 = vrot.slane %v669_v63, 4 }
 0xd46   :  { %v671_v5 = vadd.f32 %v670_v4, %v669_v63 }
 0xd48   :  { %v672_v6 = vrot.slane %v671_v5, 2 }
 0xd4a   :  { %v673_v7 = vadd.f32 %v672_v6, %v671_v5 }
 0xd4c   :  { %v674_v17 = vrot.slane %v673_v7, 1 }
 0xd4e   :  { %v675_v8 = vadd.f32 %v674_v17, %v673_v7 }
 0xd50   :  { %678 = vrot.lane.b32.xlu1 %v675_v8, %s6456_s8 }
 0xdc2   :  { %v679_v10 = vpop.permute.xlu1 %678 }
 0xdc3   :  { %5919 = vpush %v679_v10 }
 0xdf4   :  { %s5920_s10 = spop %5919 }
 0xdf5   :  { %v682_v11 = vstv %s5920_s10 }
 0xdf6   :  { %6342 = vrcp.f32 %v682_v11 }
 0xe00   :  { %v6343_v14 = vpop.eup %6342 }
 0xe01   :  { %5921 = vpush %v6343_v14 }
 0xe02   :  { %5923 = vpush %v691_v15 }
 0xe32   :  { %s5922_s11 = spop %5921 }
 0xe33   :  { %s5924_s12 = spop %5923  ;;  %v685_v22 = vstv %s5922_s11  ;;  %s6467_s11 = smov 120  }
 0xe34   :  { %v694_v37 = vstv %s5924_s12  ;;  %v686_v41 = vmul.f32 %v685_v22, %v675_v8 }
 0xe35   :  { %v697_v36 = vsel %vm653_vm4, %v694_v37, %v6831_v54  ;;  %v696_v40 = vsel %vm652_vm3, %v694_v37, %v6833_v55  ;;  %v695_v18 = vsel %vm651_vm2, %v694_v37, %v6837_v58  ;;  %v698_v21 = vsel %vm654_vm5, %v694_v37, %v6845_v59 }
 0xe36   :  { %723 = vperm.xlu0 %6279, %v697_v36   ;;  %718 = vperm.xlu1 %6278, %v696_v40   ;;  %v699_v19 = vsel %vm570_vm6, 0.0, %v695_v18  ;;  %v710_v55 = vsel %vm654_vm5, %v706_v32, %v6845_v59 }
 0xe3a   :  { %713 = vperm.xlu1 %6278, %v699_v19  }
 0xe3e   :  { %728 = vperm.xlu1 %6278, %v698_v21  }
 0xeb5   :  { %v724_v28 = vpop.permute.xlu0 %723  ;;  %v719_v29 = vpop.permute.xlu1 %718 }
 0xeb6   :  { %v733_v30 = vmul.f32 %v724_v28, %v686_v41  ;;  %v732_v31 = vmul.f32 %v719_v29, %v686_v41 }
 0xeb8   :  { %v6927_v2 = vsub.f32 %v709_v35, %v733_v30  ;;  %v6929_v1 = vsub.f32 %v708_v38, %v732_v31 }
 0xeb9   :  { %v714_v33 = vpop.permute.xlu1 %713 }
 0xeba   :  { %v731_v34 = vmul.f32 %v714_v33, %v686_v41  ;;  %v764_v46 = vand.u32 2147483647, %v6929_v1  ;;  %v765_v47 = vand.u32 2147483647, %v6927_v2 }
 0xebc   :  { %v735_v0 = vsub.f32 %v707_v39, %v731_v34  ;;  %v773_v50 = vsel %vm771_vm8, %v764_v46, -inf  ;;  %v774_v51 = vsel %vm771_vm8, %v765_v47, -inf }
 0xebd   :  { %v729_v42 = vpop.permute.xlu1 %728 }
 0xebe   :  { %v6933_v44 = vsel %vm570_vm6, %v686_v41, %v735_v0  ;;  %v734_v54 = vmul.f32 %v729_v42, %v686_v41 }
 0xebf   :  { %v763_v58 = vand.u32 2147483647, %v6933_v44  ;;  %v870_v28 = vrot.slane %v6933_v44, 4 }
 0xec0   :  { %v6941_v45 = vsub.f32 %v710_v55, %v734_v54 }
 0xec1   :  { %v767_v48 = vsel %vm755_vm7, %v763_v58, -1.0 }
 0xec2   :  { %v766_v3 = vand.u32 2147483647, %v6941_v45  ;;  %v772_v49 = vsel %vm771_vm8, %v767_v48, -inf }
 0xec3   :  { %v776_v52 = vmax.f32 %v772_v49, %v773_v50 }
 0xec4   :  { %v775_v59 = vsel %vm771_vm8, %v766_v3, -inf }
 0xec5   :  { %v777_v53 = vmax.f32 %v774_v51, %v775_v59 }
 0xec7   :  { %v778_v56 = vmax.f32 %v776_v52, %v777_v53 }
 0xec9   :  { %779 = vmax.xlane.f32.xlu1 %v778_v56  ;;  %v6459_v56 = vmov 4  }
 0xeca   :  { %6281 = vset.pattern.permute.xlu0 %v6459_v56  ;;  %6280 = vset.pattern.permute.xlu1 %v6459_v56 }
 0xf56   :  { %v780_v57 = vpop.xlane.xlu1 %779 }
 0xf57   :  { %v781_v13 = vrot.slane %v780_v57, 4 }
 0xf59   :  { %v782_v12 = vmax.f32 %v780_v57, %v781_v13 }
 0xf5b   :  { %v783_v16 = vrot.slane %v782_v12, 2 }
 0xf5d   :  { %v784_v60 = vmax.f32 %v782_v12, %v783_v16 }
 0xf5f   :  { %v785_v62 = vrot.slane %v784_v60, 1 }
 0xf61   :  { %v786_v63 = vmax.f32 %v784_v60, %v785_v62 }
 0xf63   :  { %5925 = vpush %v786_v63 }
 0xf94   :  { %s5926_s13 = spop %5925 }
 0xf95   :  { %v788_v4 = vstv %s5926_s13 }
 0xf96   :  { %vm789_vm9 = vcmp.eq.f32.partialorder %v767_v48, %v788_v4  ;;  %vm790_vm10 = vcmp.eq.f32.partialorder %v764_v46, %v788_v4  ;;  %vm791_vm11 = vcmp.eq.f32.partialorder %v765_v47, %v788_v4  ;;  %vm792_vm12 = vcmp.eq.f32.partialorder %v766_v3, %v788_v4 }
 0xf97   :  { %v793_v5 = vsel %vm789_vm9, %v6557_v23, 32  ;;  %v794_v6 = vsel %vm790_vm10, %v6560_v24, 32  ;;  %v795_v7 = vsel %vm791_vm11, %v6563_v25, 32  ;;  %v796_v17 = vsel %vm792_vm12, %v6566_v26, 32 }
 0xf98   :  { %v797_v8 = vsel %vm771_vm8, %v793_v5, 2147483647  ;;  %v798_v9 = vsel %vm771_vm8, %v794_v6, 2147483647  ;;  %v799_v10 = vsel %vm771_vm8, %v795_v7, 2147483647 }
 0xf99   :  { %v800_v11 = vsel %vm771_vm8, %v796_v17, 2147483647  ;;  %vm801_vm13 = vcmp.lt.s32.totalorder %v797_v8, %v798_v9  ;;  %vm751_vm8 = vcmp.eq.s32.totalorder %v6557_v23, 4  ;;  %v7007_v17 = vsub.s32 4, %v6557_v23 }
 0xf9a   :  { %v802_v14 = vsel %vm801_vm13, %v797_v8, %v798_v9  ;;  %vm803_vm14 = vcmp.lt.s32.totalorder %v799_v10, %v800_v11  ;;  %vm936_vm9 = vcmp.ge.s32.totalorder %v6557_v23, 5  ;;  %vm952_vm10 = vcmask 48168  }
 0xf9b   :  { %v804_v15 = vsel %vm803_vm14, %v799_v10, %v800_v11 }
 0xf9c   :  { %vm805_vm15 = vcmp.lt.s32.totalorder %v802_v14, %v804_v15 }
 0xf9d   :  { %v806_v37 = vsel %vm805_vm15, %v802_v14, %v804_v15  ;;  %v887_v15 = vrot.slane %v6933_v44, %v7007_v17 }
 0xf9e   :  { %v808_v36 = vshra.s32 %v806_v37, 16  ;;  %v807_v18 = vand.u32 65535, %v806_v37 }
 0xfa0   :  { %v810_v40 = vcvt.s32.f32 %v808_v36  ;;  %v809_v21 = vcvt.s32.f32 %v807_v18 }
 0xfa2   :  { %811 = vmin.xlane.f32.xlu0 %v810_v40 }
0x102f   :  { %v812_v19 = vpop.xlane.xlu0 %811 }
0x1030   :  { %vm813_vm0 = vcmp.eq.f32.partialorder %v810_v40, %v812_v19  ;;  %v818_v29 = vcvt.f32.s32 %v812_v19 }
0x1031   :  { %v814_v22 = vsel %vm813_vm0, %v809_v21, inf }
0x1032   :  { %815 = vmin.xlane.f32.xlu0 %v814_v22  ;;  %v819_v30 = vshll.u32 %v818_v29, 16 }
0x1048   :  { %871 = vrot.lane.b32.xlu0 %v870_v28, %s6458_s14 }
0x10bf   :  { %v816_v41 = vpop.xlane.xlu0 %815 }
0x10c0   :  { %v817_v31 = vcvt.f32.s32 %v816_v41 }
0x10c2   :  { %v820_v32 = vadd.s32 %v819_v30, %v817_v31 }
0x10c3   :  { %v872_v16 = vpop.permute.xlu0 %871 }
0x10c4   :  { %v821_v33 = vrot.slane %v820_v32, 4 }
0x10c6   :  { %vm822_vm1 = vcmp.lt.s32.totalorder %v820_v32, %v821_v33 }
0x10c7   :  { %v823_v34 = vsel %vm822_vm1, %v820_v32, %v821_v33 }
0x10c8   :  { %v824_v35 = vrot.slane %v823_v34, 2 }
0x10ca   :  { %vm825_vm2 = vcmp.lt.s32.totalorder %v823_v34, %v824_v35 }
0x10cb   :  { %v826_v38 = vsel %vm825_vm2, %v823_v34, %v824_v35 }
0x10cc   :  { %v827_v39 = vrot.slane %v826_v38, 1 }
0x10ce   :  { %vm828_vm3 = vcmp.lt.s32.totalorder %v826_v38, %v827_v39 }
0x10cf   :  { %v829_v0 = vsel %vm828_vm3, %v826_v38, %v827_v39 }
0x10d0   :  { %5927 = vpush %v829_v0 }
0x1101   :  { %s5928_s15 = spop %5927 }
0x1102   :  { %v6960_v42 = vstv %s5928_s15 }
0x1103   :  { %vm832_vm4 = vcmp.eq.s32.totalorder %v6557_v23, %v6960_v42  ;;  %vm833_vm5 = vcmp.eq.s32.totalorder %v6560_v24, %v6960_v42  ;;  %vm834_vm6 = vcmp.eq.s32.totalorder %v6563_v25, %v6960_v42  ;;  %vm835_vm7 = vcmp.eq.s32.totalorder %v6566_v26, %v6960_v42 }
0x1104   :  { %v844_v54 = vsel %vm832_vm4, %v6933_v44, 0.0  ;;  %v845_v55 = vsel %vm833_vm5, %v6929_v1, 0.0  ;;  %v846_v46 = vsel %vm834_vm6, %v6927_v2, 0.0  ;;  %v847_v48 = vsel %vm835_vm7, %v6941_v45, 0.0 }
0x1105   :  { %v848_v58 = vadd.f32 %v845_v55, %v844_v54  ;;  %v890_v40 = vsel %vm834_vm6, %v887_v15, %v6927_v2  ;;  %v889_v18 = vsel %vm833_vm5, %v887_v15, %v6929_v1  ;;  %v888_v19 = vsel %vm832_vm4, %v887_v15, %v6933_v44 }
0x1107   :  { %v849_v47 = vadd.f32 %v848_v58, %v846_v46 }
0x1109   :  { %v850_v3 = vadd.f32 %v849_v47, %v847_v48 }
0x110b   :  { %v851_v49 = vrot.slane %v850_v3, 4 }
0x110d   :  { %v852_v50 = vadd.f32 %v851_v49, %v850_v3 }
0x110f   :  { %v853_v51 = vrot.slane %v852_v50, 2 }
0x1111   :  { %v854_v59 = vadd.f32 %v853_v51, %v852_v50 }
0x1113   :  { %v855_v52 = vrot.slane %v854_v59, 1 }
0x1115   :  { %v856_v53 = vadd.f32 %v855_v52, %v854_v59 }
0x1117   :  { %859 = vrot.lane.b32.xlu1 %v856_v53, %s6458_s14 }
0x1189   :  { %v860_v57 = vpop.permute.xlu1 %859 }
0x118a   :  { %5929 = vpush %v860_v57 }
0x11bb   :  { %s5930_s18 = spop %5929 }
0x11bc   :  { %v863_v13 = vstv %s5930_s18 }
0x11bd   :  { %6344 = vrcp.f32 %v863_v13 }
0x11c7   :  { %v6345_v12 = vpop.eup %6344 }
0x11c8   :  { %5931 = vpush %v6345_v12 }
0x11c9   :  { %5933 = vpush %v872_v16 }
0x11f9   :  { %s5932_s19 = spop %5931 }
0x11fa   :  { %s5934_s0 = spop %5933  ;;  %v866_v7 = vstv %s5932_s19  ;;  %s6469_s19 = smov 119  }
0x11fb   :  { %v875_v60 = vstv %s5934_s0  ;;  %v867_v10 = vmul.f32 %v866_v7, %v856_v53 }
0x11fc   :  { %v878_v62 = vsel %vm834_vm6, %v875_v60, %v6927_v2  ;;  %v877_v63 = vsel %vm833_vm5, %v875_v60, %v6929_v1  ;;  %v876_v4 = vsel %vm832_vm4, %v875_v60, %v6933_v44  ;;  %v879_v6 = vsel %vm835_vm7, %v875_v60, %v6941_v45 }
0x11fd   :  { %904 = vperm.xlu0 %6281, %v878_v62   ;;  %899 = vperm.xlu1 %6280, %v877_v63   ;;  %v880_v5 = vsel %vm751_vm8, 0.0, %v876_v4  ;;  %v891_v1 = vsel %vm835_vm7, %v887_v15, %v6941_v45 }
0x1201   :  { %894 = vperm.xlu1 %6280, %v880_v5  }
0x1205   :  { %909 = vperm.xlu1 %6280, %v879_v6  }
0x127c   :  { %v905_v8 = vpop.permute.xlu0 %904  ;;  %v900_v9 = vpop.permute.xlu1 %899 }
0x127d   :  { %v914_v11 = vmul.f32 %v905_v8, %v867_v10  ;;  %v913_v14 = vmul.f32 %v900_v9, %v867_v10 }
0x127f   :  { %v7023_v21 = vsub.f32 %v890_v40, %v914_v11  ;;  %v7025_v22 = vsub.f32 %v889_v18, %v913_v14 }
0x1280   :  { %v895_v37 = vpop.permute.xlu1 %894 }
0x1281   :  { %v912_v36 = vmul.f32 %v895_v37, %v867_v10  ;;  %v945_v31 = vand.u32 2147483647, %v7025_v22  ;;  %v946_v32 = vand.u32 2147483647, %v7023_v21 }
0x1283   :  { %v916_v28 = vsub.f32 %v888_v19, %v912_v36  ;;  %v954_v38 = vsel %vm952_vm10, %v945_v31, -inf  ;;  %v955_v39 = vsel %vm952_vm10, %v946_v32, -inf }
0x1284   :  { %v910_v29 = vpop.permute.xlu1 %909 }
0x1285   :  { %v7029_v41 = vsel %vm751_vm8, %v867_v10, %v916_v28  ;;  %v915_v2 = vmul.f32 %v910_v29, %v867_v10 }
0x1286   :  { %v944_v44 = vand.u32 2147483647, %v7029_v41  ;;  %v1051_v9 = vrot.slane %v7029_v41, 5 }
0x1287   :  { %v7037_v30 = vsub.f32 %v891_v1, %v915_v2 }
0x1288   :  { %v948_v33 = vsel %vm936_vm9, %v944_v44, -1.0 }
0x1289   :  { %v947_v34 = vand.u32 2147483647, %v7037_v30  ;;  %v953_v35 = vsel %vm952_vm10, %v948_v33, -inf }
0x128a   :  { %v957_v0 = vmax.f32 %v953_v35, %v954_v38 }
0x128b   :  { %v956_v45 = vsel %vm952_vm10, %v947_v34, -inf }
0x128c   :  { %v958_v42 = vmax.f32 %v955_v39, %v956_v45 }
0x128e   :  { %v959_v54 = vmax.f32 %v957_v0, %v958_v42 }
0x1290   :  { %960 = vmax.xlane.f32.xlu1 %v959_v54 }
0x131d   :  { %v961_v55 = vpop.xlane.xlu1 %960 }
0x131e   :  { %v962_v58 = vrot.slane %v961_v55, 4 }
0x1320   :  { %v963_v46 = vmax.f32 %v961_v55, %v962_v58  ;;  %v6461_v55 = vmov 5  }
0x1321   :  { %6283 = vset.pattern.permute.xlu0 %v6461_v55  ;;  %6282 = vset.pattern.permute.xlu1 %v6461_v55 }
0x1322   :  { %v964_v47 = vrot.slane %v963_v46, 2 }
0x1324   :  { %v965_v48 = vmax.f32 %v963_v46, %v964_v47 }
0x1326   :  { %v966_v3 = vrot.slane %v965_v48, 1 }
0x1328   :  { %v967_v49 = vmax.f32 %v965_v48, %v966_v3 }
0x132a   :  { %5935 = vpush %v967_v49 }
0x135b   :  { %s5936_s20 = spop %5935 }
0x135c   :  { %v969_v50 = vstv %s5936_s20 }
0x135d   :  { %vm970_vm11 = vcmp.eq.f32.partialorder %v948_v33, %v969_v50  ;;  %vm971_vm12 = vcmp.eq.f32.partialorder %v945_v31, %v969_v50  ;;  %vm972_vm13 = vcmp.eq.f32.partialorder %v946_v32, %v969_v50  ;;  %vm973_vm14 = vcmp.eq.f32.partialorder %v947_v34, %v969_v50 }
0x135e   :  { %v974_v51 = vsel %vm970_vm11, %v6557_v23, 32  ;;  %v975_v59 = vsel %vm971_vm12, %v6560_v24, 32  ;;  %v976_v52 = vsel %vm972_vm13, %v6563_v25, 32  ;;  %v977_v53 = vsel %vm973_vm14, %v6566_v26, 32 }
0x135f   :  { %v978_v56 = vsel %vm952_vm10, %v974_v51, 2147483647  ;;  %v979_v57 = vsel %vm952_vm10, %v975_v59, 2147483647  ;;  %v980_v13 = vsel %vm952_vm10, %v976_v52, 2147483647 }
0x1360   :  { %v981_v12 = vsel %vm952_vm10, %v977_v53, 2147483647  ;;  %vm982_vm15 = vcmp.lt.s32.totalorder %v978_v56, %v979_v57  ;;  %vm932_vm10 = vcmp.eq.s32.totalorder %v6557_v23, 5  ;;  %vm1117_vm11 = vcmp.ge.s32.totalorder %v6557_v23, 6 }
0x1361   :  { %v983_v16 = vsel %vm982_vm15, %v978_v56, %v979_v57  ;;  %vm984_vm0 = vcmp.lt.s32.totalorder %v980_v13, %v981_v12  ;;  %v7103_v56 = vsub.s32 5, %v6557_v23  ;;  %vm1133_vm12 = vcmask 56368  }
0x1362   :  { %v985_v60 = vsel %vm984_vm0, %v980_v13, %v981_v12 }
0x1363   :  { %vm986_vm1 = vcmp.lt.s32.totalorder %v983_v16, %v985_v60 }
0x1364   :  { %v987_v62 = vsel %vm986_vm1, %v983_v16, %v985_v60 }
0x1365   :  { %v989_v63 = vshra.s32 %v987_v62, 16  ;;  %v988_v5 = vand.u32 65535, %v987_v62  ;;  %v1068_v62 = vrot.slane %v7029_v41, %v7103_v56 }
0x1367   :  { %v991_v4 = vcvt.s32.f32 %v989_v63  ;;  %v990_v7 = vcvt.s32.f32 %v988_v5 }
0x1369   :  { %992 = vmin.xlane.f32.xlu0 %v991_v4 }
0x13f6   :  { %v993_v6 = vpop.xlane.xlu0 %992 }
0x13f7   :  { %vm994_vm2 = vcmp.eq.f32.partialorder %v991_v4, %v993_v6  ;;  %v999_v10 = vcvt.f32.s32 %v993_v6 }
0x13f8   :  { %v995_v8 = vsel %vm994_vm2, %v990_v7, inf }
0x13f9   :  { %996 = vmin.xlane.f32.xlu0 %v995_v8  ;;  %v1000_v14 = vshll.u32 %v999_v10, 16 }
0x140f   :  { %1052 = vrot.lane.b32.xlu0 %v1051_v9, %s6460_s21 }
0x1486   :  { %v997_v11 = vpop.xlane.xlu0 %996 }
0x1487   :  { %v998_v15 = vcvt.f32.s32 %v997_v11 }
0x1489   :  { %v1001_v37 = vadd.s32 %v1000_v14, %v998_v15 }
0x148a   :  { %v1053_v48 = vpop.permute.xlu0 %1052 }
0x148b   :  { %v1002_v36 = vrot.slane %v1001_v37, 4 }
0x148d   :  { %vm1003_vm3 = vcmp.lt.s32.totalorder %v1001_v37, %v1002_v36 }
0x148e   :  { %v1004_v40 = vsel %vm1003_vm3, %v1001_v37, %v1002_v36 }
0x148f   :  { %v1005_v18 = vrot.slane %v1004_v40, 2 }
0x1491   :  { %vm1006_vm4 = vcmp.lt.s32.totalorder %v1004_v40, %v1005_v18 }
0x1492   :  { %v1007_v19 = vsel %vm1006_vm4, %v1004_v40, %v1005_v18 }
0x1493   :  { %v1008_v28 = vrot.slane %v1007_v19, 1 }
0x1495   :  { %vm1009_vm5 = vcmp.lt.s32.totalorder %v1007_v19, %v1008_v28 }
0x1496   :  { %v1010_v29 = vsel %vm1009_vm5, %v1007_v19, %v1008_v28 }
0x1497   :  { %5937 = vpush %v1010_v29 }
0x14c8   :  { %s5938_s22 = spop %5937 }
0x14c9   :  { %v7056_v2 = vstv %s5938_s22 }
0x14ca   :  { %vm1013_vm6 = vcmp.eq.s32.totalorder %v6557_v23, %v7056_v2  ;;  %vm1014_vm7 = vcmp.eq.s32.totalorder %v6560_v24, %v7056_v2  ;;  %vm1015_vm8 = vcmp.eq.s32.totalorder %v6563_v25, %v7056_v2  ;;  %vm1016_vm9 = vcmp.eq.s32.totalorder %v6566_v26, %v7056_v2 }
0x14cb   :  { %v1025_v1 = vsel %vm1013_vm6, %v7029_v41, 0.0  ;;  %v1026_v44 = vsel %vm1014_vm7, %v7025_v22, 0.0  ;;  %v1027_v32 = vsel %vm1015_vm8, %v7023_v21, 0.0  ;;  %v1028_v34 = vsel %vm1016_vm9, %v7037_v30, 0.0 }
0x14cc   :  { %v1029_v31 = vadd.f32 %v1026_v44, %v1025_v1  ;;  %v1071_v5 = vsel %vm1015_vm8, %v1068_v62, %v7023_v21  ;;  %v1070_v6 = vsel %vm1014_vm7, %v1068_v62, %v7025_v22  ;;  %v1069_v7 = vsel %vm1013_vm6, %v1068_v62, %v7029_v41 }
0x14ce   :  { %v1030_v33 = vadd.f32 %v1029_v31, %v1027_v32 }
0x14d0   :  { %v1031_v35 = vadd.f32 %v1030_v33, %v1028_v34 }
0x14d2   :  { %v1032_v38 = vrot.slane %v1031_v35, 4 }
0x14d4   :  { %v1033_v39 = vadd.f32 %v1032_v38, %v1031_v35 }
0x14d6   :  { %v1034_v45 = vrot.slane %v1033_v39, 2 }
0x14d8   :  { %v1035_v0 = vadd.f32 %v1034_v45, %v1033_v39 }
0x14da   :  { %v1036_v42 = vrot.slane %v1035_v0, 1 }
0x14dc   :  { %v1037_v54 = vadd.f32 %v1036_v42, %v1035_v0 }
0x14de   :  { %1040 = vrot.lane.b32.xlu1 %v1037_v54, %s6460_s21 }
0x1550   :  { %v1041_v58 = vpop.permute.xlu1 %1040 }
0x1551   :  { %5939 = vpush %v1041_v58 }
0x1582   :  { %s5940_s23 = spop %5939 }
0x1583   :  { %v1044_v46 = vstv %s5940_s23 }
0x1584   :  { %6346 = vrcp.f32 %v1044_v46 }
0x158e   :  { %v6347_v47 = vpop.eup %6346 }
0x158f   :  { %5941 = vpush %v6347_v47 }
0x1590   :  { %5943 = vpush %v1053_v48 }
0x15c0   :  { %s5942_s24 = spop %5941 }
0x15c1   :  { %s5944_s25 = spop %5943  ;;  %v1047_v53 = vstv %s5942_s24  ;;  %s6471_s24 = smov 118  }
0x15c2   :  { %v1056_v3 = vstv %s5944_s25  ;;  %v1048_v12 = vmul.f32 %v1047_v53, %v1037_v54 }
0x15c3   :  { %v1059_v49 = vsel %vm1015_vm8, %v1056_v3, %v7023_v21  ;;  %v1058_v50 = vsel %vm1014_vm7, %v1056_v3, %v7025_v22  ;;  %v1057_v51 = vsel %vm1013_vm6, %v1056_v3, %v7029_v41  ;;  %v1060_v52 = vsel %vm1016_vm9, %v1056_v3, %v7037_v30 }
0x15c4   :  { %1085 = vperm.xlu0 %6283, %v1059_v49   ;;  %1080 = vperm.xlu1 %6282, %v1058_v50   ;;  %v1061_v59 = vsel %vm932_vm10, 0.0, %v1057_v51  ;;  %v1072_v22 = vsel %vm1016_vm9, %v1068_v62, %v7037_v30 }
0x15c8   :  { %1075 = vperm.xlu1 %6282, %v1061_v59  }
0x15cc   :  { %1090 = vperm.xlu1 %6282, %v1060_v52  }
0x1643   :  { %v1086_v57 = vpop.permute.xlu0 %1085  ;;  %v1081_v13 = vpop.permute.xlu1 %1080 }
0x1644   :  { %v1095_v16 = vmul.f32 %v1086_v57, %v1048_v12  ;;  %v1094_v60 = vmul.f32 %v1081_v13, %v1048_v12 }
0x1646   :  { %v7119_v8 = vsub.f32 %v1071_v5, %v1095_v16  ;;  %v7121_v9 = vsub.f32 %v1070_v6, %v1094_v60 }
0x1647   :  { %v1076_v63 = vpop.permute.xlu1 %1075 }
0x1648   :  { %v1093_v4 = vmul.f32 %v1076_v63, %v1048_v12  ;;  %v1126_v37 = vand.u32 2147483647, %v7121_v9  ;;  %v1127_v36 = vand.u32 2147483647, %v7119_v8 }
0x164a   :  { %v1097_v10 = vsub.f32 %v1069_v7, %v1093_v4  ;;  %v1135_v28 = vsel %vm1133_vm12, %v1126_v37, -inf  ;;  %v1136_v29 = vsel %vm1133_vm12, %v1127_v36, -inf }
0x164b   :  { %v1091_v11 = vpop.permute.xlu1 %1090 }
0x164c   :  { %v7125_v14 = vsel %vm932_vm10, %v1048_v12, %v1097_v10  ;;  %v1096_v21 = vmul.f32 %v1091_v11, %v1048_v12 }
0x164d   :  { %v1125_v41 = vand.u32 2147483647, %v7125_v14  ;;  %v1232_v12 = vrot.slane %v7125_v14, 6 }
0x164e   :  { %v7133_v15 = vsub.f32 %v1072_v22, %v1096_v21 }
0x164f   :  { %v1129_v40 = vsel %vm1117_vm11, %v1125_v41, -1.0 }
0x1650   :  { %v1128_v18 = vand.u32 2147483647, %v7133_v15  ;;  %v1134_v19 = vsel %vm1133_vm12, %v1129_v40, -inf }
0x1651   :  { %v1138_v2 = vmax.f32 %v1134_v19, %v1135_v28 }
0x1652   :  { %v1137_v30 = vsel %vm1133_vm12, %v1128_v18, -inf }
0x1653   :  { %v1139_v1 = vmax.f32 %v1136_v29, %v1137_v30 }
0x1655   :  { %v1140_v44 = vmax.f32 %v1138_v2, %v1139_v1 }
0x1657   :  { %1141 = vmax.xlane.f32.xlu1 %v1140_v44 }
0x16e4   :  { %v1142_v31 = vpop.xlane.xlu1 %1141 }
0x16e5   :  { %v1143_v32 = vrot.slane %v1142_v31, 4 }
0x16e7   :  { %v1144_v33 = vmax.f32 %v1142_v31, %v1143_v32  ;;  %v6463_v32 = vmov 6  }
0x16e8   :  { %6285 = vset.pattern.permute.xlu0 %v6463_v32  ;;  %6284 = vset.pattern.permute.xlu1 %v6463_v32 }
0x16e9   :  { %v1145_v34 = vrot.slane %v1144_v33, 2 }
0x16eb   :  { %v1146_v35 = vmax.f32 %v1144_v33, %v1145_v34 }
0x16ed   :  { %v1147_v38 = vrot.slane %v1146_v35, 1 }
0x16ef   :  { %v1148_v39 = vmax.f32 %v1146_v35, %v1147_v38 }
0x16f1   :  { %5945 = vpush %v1148_v39 }
0x1722   :  { %s5946_s26 = spop %5945 }
0x1723   :  { %v1150_v45 = vstv %s5946_s26 }
0x1724   :  { %vm1151_vm13 = vcmp.eq.f32.partialorder %v1129_v40, %v1150_v45  ;;  %vm1152_vm14 = vcmp.eq.f32.partialorder %v1126_v37, %v1150_v45  ;;  %vm1153_vm15 = vcmp.eq.f32.partialorder %v1127_v36, %v1150_v45  ;;  %vm1154_vm0 = vcmp.eq.f32.partialorder %v1128_v18, %v1150_v45 }
0x1725   :  { %v1155_v0 = vsel %vm1151_vm13, %v6557_v23, 32  ;;  %v1156_v42 = vsel %vm1152_vm14, %v6560_v24, 32  ;;  %v1157_v54 = vsel %vm1153_vm15, %v6563_v25, 32  ;;  %v1158_v55 = vsel %vm1154_vm0, %v6566_v26, 32 }
0x1726   :  { %v1159_v58 = vsel %vm1133_vm12, %v1155_v0, 2147483647  ;;  %v1160_v46 = vsel %vm1133_vm12, %v1156_v42, 2147483647  ;;  %v1161_v47 = vsel %vm1133_vm12, %v1157_v54, 2147483647 }
0x1727   :  { %v1162_v48 = vsel %vm1133_vm12, %v1158_v55, 2147483647  ;;  %vm1163_vm1 = vcmp.lt.s32.totalorder %v1159_v58, %v1160_v46  ;;  %vm1113_vm12 = vcmp.eq.s32.totalorder %v6557_v23, 6  ;;  %vm1298_vm13 = vcmp.ge.s32.totalorder %v6557_v23, 7 }
0x1728   :  { %v1164_v3 = vsel %vm1163_vm1, %v1159_v58, %v1160_v46  ;;  %vm1165_vm2 = vcmp.lt.s32.totalorder %v1161_v47, %v1162_v48  ;;  %v7199_v46 = vsub.s32 6, %v6557_v23  ;;  %vm1314_vm14 = vcmask 64568  }
0x1729   :  { %v1166_v49 = vsel %vm1165_vm2, %v1161_v47, %v1162_v48 }
0x172a   :  { %vm1167_vm3 = vcmp.lt.s32.totalorder %v1164_v3, %v1166_v49 }
0x172b   :  { %v1168_v50 = vsel %vm1167_vm3, %v1164_v3, %v1166_v49 }
0x172c   :  { %v1170_v51 = vshra.s32 %v1168_v50, 16  ;;  %v1169_v52 = vand.u32 65535, %v1168_v50 }
0x172e   :  { %v1172_v59 = vcvt.s32.f32 %v1170_v51  ;;  %v1171_v57 = vcvt.s32.f32 %v1169_v52  ;;  %v1249_v51 = vrot.slane %v7125_v14, %v7199_v46 }
0x1730   :  { %1173 = vmin.xlane.f32.xlu0 %v1172_v59 }
0x17bd   :  { %v1174_v53 = vpop.xlane.xlu0 %1173 }
0x17be   :  { %vm1175_vm4 = vcmp.eq.f32.partialorder %v1172_v59, %v1174_v53  ;;  %v1180_v16 = vcvt.f32.s32 %v1174_v53 }
0x17bf   :  { %v1176_v13 = vsel %vm1175_vm4, %v1171_v57, inf }
0x17c0   :  { %1177 = vmin.xlane.f32.xlu0 %v1176_v13  ;;  %v1181_v62 = vshll.u32 %v1180_v16, 16 }
0x17d6   :  { %1233 = vrot.lane.b32.xlu0 %v1232_v12, %s6462_s27 }
0x184d   :  { %v1178_v60 = vpop.xlane.xlu0 %1177 }
0x184e   :  { %v1179_v63 = vcvt.f32.s32 %v1178_v60 }
0x1850   :  { %v1182_v4 = vadd.s32 %v1181_v62, %v1179_v63 }
0x1851   :  { %v1234_v38 = vpop.permute.xlu0 %1233 }
0x1852   :  { %v1183_v5 = vrot.slane %v1182_v4, 4 }
0x1854   :  { %vm1184_vm5 = vcmp.lt.s32.totalorder %v1182_v4, %v1183_v5 }
0x1855   :  { %v1185_v6 = vsel %vm1184_vm5, %v1182_v4, %v1183_v5 }
0x1856   :  { %v1186_v7 = vrot.slane %v1185_v6, 2 }
0x1858   :  { %vm1187_vm6 = vcmp.lt.s32.totalorder %v1185_v6, %v1186_v7 }
0x1859   :  { %v1188_v10 = vsel %vm1187_vm6, %v1185_v6, %v1186_v7 }
0x185a   :  { %v1189_v11 = vrot.slane %v1188_v10, 1 }
0x185c   :  { %vm1190_vm7 = vcmp.lt.s32.totalorder %v1188_v10, %v1189_v11 }
0x185d   :  { %v1191_v21 = vsel %vm1190_vm7, %v1188_v10, %v1189_v11 }
0x185e   :  { %5947 = vpush %v1191_v21 }
0x188f   :  { %s5948_s28 = spop %5947 }
0x1890   :  { %v7152_v22 = vstv %s5948_s28 }
0x1891   :  { %vm1194_vm8 = vcmp.eq.s32.totalorder %v6557_v23, %v7152_v22  ;;  %vm1195_vm9 = vcmp.eq.s32.totalorder %v6560_v24, %v7152_v22  ;;  %vm1196_vm10 = vcmp.eq.s32.totalorder %v6563_v25, %v7152_v22  ;;  %vm1197_vm11 = vcmp.eq.s32.totalorder %v6566_v26, %v7152_v22 }
0x1892   :  { %v1206_v41 = vsel %vm1194_vm8, %v7125_v14, 0.0  ;;  %v1207_v37 = vsel %vm1195_vm9, %v7121_v9, 0.0  ;;  %v1208_v40 = vsel %vm1196_vm10, %v7119_v8, 0.0  ;;  %v1209_v19 = vsel %vm1197_vm11, %v7133_v15, 0.0 }
0x1893   :  { %v1210_v36 = vadd.f32 %v1207_v37, %v1206_v41  ;;  %v1252_v53 = vsel %vm1196_vm10, %v1249_v51, %v7119_v8  ;;  %v1251_v57 = vsel %vm1195_vm9, %v1249_v51, %v7121_v9  ;;  %v1250_v13 = vsel %vm1194_vm8, %v1249_v51, %v7125_v14 }
0x1895   :  { %v1211_v18 = vadd.f32 %v1210_v36, %v1208_v40 }
0x1897   :  { %v1212_v28 = vadd.f32 %v1211_v18, %v1209_v19 }
0x1899   :  { %v1213_v29 = vrot.slane %v1212_v28, 4 }
0x189b   :  { %v1214_v30 = vadd.f32 %v1213_v29, %v1212_v28 }
0x189d   :  { %v1215_v2 = vrot.slane %v1214_v30, 2 }
0x189f   :  { %v1216_v1 = vadd.f32 %v1215_v2, %v1214_v30 }
0x18a1   :  { %v1217_v44 = vrot.slane %v1216_v1, 1 }
0x18a3   :  { %v1218_v31 = vadd.f32 %v1217_v44, %v1216_v1 }
0x18a5   :  { %1221 = vrot.lane.b32.xlu1 %v1218_v31, %s6462_s27 }
0x1917   :  { %v1222_v33 = vpop.permute.xlu1 %1221 }
0x1918   :  { %5949 = vpush %v1222_v33 }
0x1949   :  { %s5950_s29 = spop %5949 }
0x194a   :  { %v1225_v34 = vstv %s5950_s29 }
0x194b   :  { %6348 = vrcp.f32 %v1225_v34 }
0x1955   :  { %v6349_v35 = vpop.eup %6348 }
0x1956   :  { %5951 = vpush %v6349_v35 }
0x1957   :  { %5953 = vpush %v1234_v38 }
0x1987   :  { %s5952_s30 = spop %5951 }
0x1988   :  { %s5954_s2 = spop %5953  ;;  %v1228_v58 = vstv %s5952_s30  ;;  %s6473_s30 = smov 117  }
0x1989   :  { %v1237_v39 = vstv %s5954_s2  ;;  %v1229_v3 = vmul.f32 %v1228_v58, %v1218_v31 }
0x198a   :  { %v1240_v45 = vsel %vm1196_vm10, %v1237_v39, %v7119_v8  ;;  %v1239_v0 = vsel %vm1195_vm9, %v1237_v39, %v7121_v9  ;;  %v1238_v42 = vsel %vm1194_vm8, %v1237_v39, %v7125_v14  ;;  %v1241_v55 = vsel %vm1197_vm11, %v1237_v39, %v7133_v15 }
0x198b   :  { %1266 = vperm.xlu0 %6285, %v1240_v45   ;;  %1261 = vperm.xlu1 %6284, %v1239_v0   ;;  %v1242_v54 = vsel %vm1113_vm12, 0.0, %v1238_v42  ;;  %v1253_v9 = vsel %vm1197_vm11, %v1249_v51, %v7133_v15 }
0x198f   :  { %1256 = vperm.xlu1 %6284, %v1242_v54  }
0x1993   :  { %1271 = vperm.xlu1 %6284, %v1241_v55  }
0x1a0a   :  { %v1267_v47 = vpop.permute.xlu0 %1266  ;;  %v1262_v48 = vpop.permute.xlu1 %1261 }
0x1a0b   :  { %v1276_v49 = vmul.f32 %v1267_v47, %v1229_v3  ;;  %v1275_v50 = vmul.f32 %v1262_v48, %v1229_v3 }
0x1a0d   :  { %v7215_v12 = vsub.f32 %v1252_v53, %v1276_v49  ;;  %v7217_v16 = vsub.f32 %v1251_v57, %v1275_v50 }
0x1a0e   :  { %v1257_v59 = vpop.permute.xlu1 %1256 }
0x1a0f   :  { %v1274_v52 = vmul.f32 %v1257_v59, %v1229_v3  ;;  %v1307_v5 = vand.u32 2147483647, %v7217_v16  ;;  %v1308_v6 = vand.u32 2147483647, %v7215_v12 }
0x1a11   :  { %v1278_v60 = vsub.f32 %v1250_v13, %v1274_v52  ;;  %v1316_v21 = vsel %vm1314_vm14, %v1307_v5, -inf  ;;  %v1317_v41 = vsel %vm1314_vm14, %v1308_v6, -inf }
0x1a12   :  { %v1272_v62 = vpop.permute.xlu1 %1271 }
0x1a13   :  { %v7221_v63 = vsel %vm1113_vm12, %v1229_v3, %v1278_v60  ;;  %v1277_v8 = vmul.f32 %v1272_v62, %v1229_v3 }
0x1a14   :  { %v1306_v14 = vand.u32 2147483647, %v7221_v63  ;;  %v1413_v49 = vrot.slane %v7221_v63, 7 }
0x1a15   :  { %v7229_v4 = vsub.f32 %v1253_v9, %v1277_v8 }
0x1a16   :  { %v1310_v7 = vsel %vm1298_vm13, %v1306_v14, -1.0 }
0x1a17   :  { %v1309_v10 = vand.u32 2147483647, %v7229_v4  ;;  %v1315_v11 = vsel %vm1314_vm14, %v1310_v7, -inf }
0x1a18   :  { %v1319_v22 = vmax.f32 %v1315_v11, %v1316_v21 }
0x1a19   :  { %v1318_v15 = vsel %vm1314_vm14, %v1309_v10, -inf }
0x1a1a   :  { %v1320_v37 = vmax.f32 %v1317_v41, %v1318_v15 }
0x1a1c   :  { %v1321_v36 = vmax.f32 %v1319_v22, %v1320_v37 }
0x1a1e   :  { %1322 = vmax.xlane.f32.xlu1 %v1321_v36 }
0x1aab   :  { %v1323_v40 = vpop.xlane.xlu1 %1322 }
0x1aac   :  { %v1324_v18 = vrot.slane %v1323_v40, 4 }
0x1aae   :  { %v1325_v19 = vmax.f32 %v1323_v40, %v1324_v18 }
0x1ab0   :  { %v1326_v28 = vrot.slane %v1325_v19, 2 }
0x1ab2   :  { %v1327_v29 = vmax.f32 %v1325_v19, %v1326_v28  ;;  %v6465_v19 = vmov 7  }
0x1ab3   :  { %6287 = vset.pattern.permute.xlu0 %v6465_v19  ;;  %6286 = vset.pattern.permute.xlu1 %v6465_v19 }
0x1ab4   :  { %v1328_v30 = vrot.slane %v1327_v29, 1 }
0x1ab6   :  { %v1329_v2 = vmax.f32 %v1327_v29, %v1328_v30 }
0x1ab8   :  { %5955 = vpush %v1329_v2 }
0x1ae9   :  { %s5956_s3 = spop %5955 }
0x1aea   :  { %v1331_v1 = vstv %s5956_s3 }
0x1aeb   :  { %vm1332_vm15 = vcmp.eq.f32.partialorder %v1310_v7, %v1331_v1  ;;  %vm1333_vm0 = vcmp.eq.f32.partialorder %v1307_v5, %v1331_v1  ;;  %vm1334_vm1 = vcmp.eq.f32.partialorder %v1308_v6, %v1331_v1  ;;  %vm1335_vm2 = vcmp.eq.f32.partialorder %v1309_v10, %v1331_v1 }
0x1aec   :  { %v1336_v44 = vsel %vm1332_vm15, %v6557_v23, 32  ;;  %v1337_v31 = vsel %vm1333_vm0, %v6560_v24, 32  ;;  %v1338_v32 = vsel %vm1334_vm1, %v6563_v25, 32  ;;  %v1339_v33 = vsel %vm1335_vm2, %v6566_v26, 32 }
0x1aed   :  { %v1340_v34 = vsel %vm1314_vm14, %v1336_v44, 2147483647  ;;  %v1341_v35 = vsel %vm1314_vm14, %v1337_v31, 2147483647  ;;  %v1342_v38 = vsel %vm1314_vm14, %v1338_v32, 2147483647 }
0x1aee   :  { %v1343_v39 = vsel %vm1314_vm14, %v1339_v33, 2147483647  ;;  %vm1344_vm3 = vcmp.lt.s32.totalorder %v1340_v34, %v1341_v35  ;;  %vm1495_vm14 = vcmask 72768  }
0x1aef   :  { %v1345_v45 = vsel %vm1344_vm3, %v1340_v34, %v1341_v35  ;;  %vm1346_vm4 = vcmp.lt.s32.totalorder %v1342_v38, %v1343_v39  ;;  %v7293_v34 = vsub.s32 7, %v6557_v23 }
0x1af0   :  { %v1347_v0 = vsel %vm1346_vm4, %v1342_v38, %v1343_v39 }
0x1af1   :  { %vm1348_vm5 = vcmp.lt.s32.totalorder %v1345_v45, %v1347_v0  ;;  %v7299_v38 = vrot.slane %v7221_v63, %v7293_v34 }
0x1af2   :  { %v1349_v42 = vsel %vm1348_vm5, %v1345_v45, %v1347_v0 }
0x1af3   :  { %v1351_v54 = vshra.s32 %v1349_v42, 16  ;;  %v1350_v58 = vand.u32 65535, %v1349_v42 }
0x1af5   :  { %v1353_v55 = vcvt.s32.f32 %v1351_v54  ;;  %v1352_v48 = vcvt.s32.f32 %v1350_v58 }
0x1af7   :  { %1354 = vmin.xlane.f32.xlu0 %v1353_v55 }
0x1b84   :  { %v1355_v47 = vpop.xlane.xlu0 %1354 }
0x1b85   :  { %vm1356_vm6 = vcmp.eq.f32.partialorder %v1353_v55, %v1355_v47  ;;  %v1361_v50 = vcvt.f32.s32 %v1355_v47 }
0x1b86   :  { %v1357_v3 = vsel %vm1356_vm6, %v1352_v48, inf  ;;  %vm1294_vm6 = vcmp.eq.s32.totalorder %v6557_v23, 7 }
0x1b87   :  { %1358 = vmin.xlane.f32.xlu0 %v1357_v3  ;;  %v1362_v59 = vshll.u32 %v1361_v50, 16 }
0x1b9d   :  { %1414 = vrot.lane.b32.xlu0 %v1413_v49, %s6464_s4 }
0x1c14   :  { %v1359_v51 = vpop.xlane.xlu0 %1358 }
0x1c15   :  { %v1360_v52 = vcvt.f32.s32 %v1359_v51 }
0x1c17   :  { %v1363_v53 = vadd.s32 %v1362_v59, %v1360_v52  ;;  %v6466_v59 = vmov -inf  }
0x1c18   :  { %v1415_v2 = vpop.permute.xlu0 %1414  ;;  %v1496_v52 = vsel %vm1495_vm14, -1.0, %v6466_v59 }
0x1c19   :  { %v1364_v57 = vrot.slane %v1363_v53, 4 }
0x1c1b   :  { %vm1365_vm7 = vcmp.lt.s32.totalorder %v1363_v53, %v1364_v57 }
0x1c1c   :  { %v1366_v13 = vsel %vm1365_vm7, %v1363_v53, %v1364_v57 }
0x1c1d   :  { %v1367_v60 = vrot.slane %v1366_v13, 2 }
0x1c1f   :  { %vm1368_vm8 = vcmp.lt.s32.totalorder %v1366_v13, %v1367_v60 }
0x1c20   :  { %v1369_v62 = vsel %vm1368_vm8, %v1366_v13, %v1367_v60 }
0x1c21   :  { %v1370_v8 = vrot.slane %v1369_v62, 1 }
0x1c23   :  { %vm1371_vm9 = vcmp.lt.s32.totalorder %v1369_v62, %v1370_v8 }
0x1c24   :  { %v1372_v9 = vsel %vm1371_vm9, %v1369_v62, %v1370_v8 }
0x1c25   :  { %5957 = vpush %v1372_v9 }
0x1c56   :  { %s5958_s5 = spop %5957 }
0x1c57   :  { %v7248_v14 = vstv %s5958_s5 }
0x1c58   :  { %vm1375_vm10 = vcmp.eq.s32.totalorder %v6557_v23, %v7248_v14  ;;  %vm1376_vm11 = vcmp.eq.s32.totalorder %v6560_v24, %v7248_v14  ;;  %vm1377_vm12 = vcmp.eq.s32.totalorder %v6563_v25, %v7248_v14  ;;  %vm1378_vm13 = vcmp.eq.s32.totalorder %v6566_v26, %v7248_v14 }
0x1c59   :  { %v1387_v5 = vsel %vm1375_vm10, %v7221_v63, 0.0  ;;  %v1388_v6 = vsel %vm1376_vm11, %v7217_v16, 0.0  ;;  %v1389_v10 = vsel %vm1377_vm12, %v7215_v12, 0.0  ;;  %v1390_v21 = vsel %vm1378_vm13, %v7229_v4, 0.0 }
0x1c5a   :  { %v1391_v7 = vadd.f32 %v1388_v6, %v1387_v5  ;;  %v1434_v54 = vsel %vm1378_vm13, %v7299_v38, %v7229_v4  ;;  %v1432_v55 = vsel %vm1376_vm11, %v7299_v38, %v7217_v16 }
0x1c5c   :  { %v1392_v11 = vadd.f32 %v1391_v7, %v1389_v10 }
0x1c5e   :  { %v1393_v41 = vadd.f32 %v1392_v11, %v1390_v21 }
0x1c60   :  { %v1394_v15 = vrot.slane %v1393_v41, 4 }
0x1c62   :  { %v1395_v22 = vadd.f32 %v1394_v15, %v1393_v41 }
0x1c64   :  { %v1396_v37 = vrot.slane %v1395_v22, 2 }
0x1c66   :  { %v1397_v36 = vadd.f32 %v1396_v37, %v1395_v22 }
0x1c68   :  { %v1398_v40 = vrot.slane %v1397_v36, 1 }
0x1c6a   :  { %v1399_v18 = vadd.f32 %v1398_v40, %v1397_v36 }
0x1c6c   :  { %1402 = vrot.lane.b32.xlu1 %v1399_v18, %s6464_s4 }
0x1cde   :  { %v1403_v28 = vpop.permute.xlu1 %1402 }
0x1cdf   :  { %5959 = vpush %v1403_v28 }
0x1d10   :  { %s5960_s6 = spop %5959 }
0x1d11   :  { %v1406_v29 = vstv %s5960_s6 }
0x1d12   :  { %6350 = vrcp.f32 %v1406_v29 }
0x1d1c   :  { %v6351_v30 = vpop.eup %6350 }
0x1d1d   :  { %5961 = vpush %v6351_v30 }
0x1d1e   :  { %5963 = vpush %v1415_v2 }
0x1d4e   :  { %s5962_s7 = spop %5961 }
0x1d4f   :  { %s5964_s8 = spop %5963  ;;  %v1409_v33 = vstv %s5962_s7  ;;  %s6475_s7 = smov 116  }
0x1d50   :  { %v7275_v1 = vstv %s5964_s8  ;;  %v7295_v35 = vmul.f32 %v1409_v33, %v1399_v18 }
0x1d51   :  { %v1422_v44 = vsel %vm1378_vm13, %v7275_v1, %v7229_v4  ;;  %v1420_v31 = vsel %vm1376_vm11, %v7275_v1, %v7217_v16  ;;  %v1421_v32 = vsel %vm1377_vm12, %v7275_v1, %v7215_v12  ;;  %v1433_v4 = vsel %vm1377_vm12, %v7299_v38, %v7215_v12 }
0x1d52   :  { %1452 = vperm.xlu0 %6287, %v1422_v44   ;;  %1442 = vperm.xlu1 %6286, %v1420_v31   ;;  %v1419_v31 = vsel %vm1375_vm10, %v7275_v1, %v7221_v63 }
0x1d56   :  { %1447 = vperm.xlu1 %6286, %v1421_v32   ;;  %v1423_v32 = vsel %vm1294_vm6, 0.0, %v1419_v31 }
0x1dd1   :  { %v1453_v39 = vpop.permute.xlu0 %1452  ;;  %v1443_v45 = vpop.permute.xlu1 %1442 }
0x1dd2   :  { %v1458_v0 = vmul.f32 %v1453_v39, %v7295_v35  ;;  %v1456_v42 = vmul.f32 %v1443_v45, %v7295_v35 }
0x1dd4   :  { %v7313_v58 = vsub.f32 %v1434_v54, %v1458_v0  ;;  %v7315_v47 = vsub.f32 %v1432_v55, %v1456_v42 }
0x1dd5   :  { %v1448_v48 = vpop.permute.xlu1 %1447 }
0x1dd6   :  { %v1457_v3 = vmul.f32 %v1448_v48, %v7295_v35  ;;  %v1488_v49 = vand.u32 2147483647, %v7315_v47  ;;  %v1490_v16 = vand.u32 2147483647, %v7313_v58  ;;  %v7411_v31 = vrot.slane %v7315_v47, %v6623_v20 }
0x1dd8   :  { %v7324_v50 = vsub.f32 %v1433_v4, %v1457_v3  ;;  %v1497_v53 = vsel %vm1495_vm14, %v1488_v49, -inf  ;;  %v1499_v13 = vsel %vm1495_vm14, %v1490_v16, -inf }
0x1dd9   :  { %v1500_v60 = vmax.f32 %v1496_v52, %v1497_v53 }
0x1dda   :  { %v1489_v51 = vand.u32 2147483647, %v7324_v50 }
0x1ddc   :  { %v1498_v57 = vsel %vm1495_vm14, %v1489_v51, -inf }
0x1ddd   :  { %v1501_v62 = vmax.f32 %v1498_v57, %v1499_v13  ;;  %v1431_v13 = vsel %vm1375_vm10, %v7299_v38, %v7221_v63 }
0x1ddf   :  { %v1502_v12 = vmax.f32 %v1500_v60, %v1501_v62 }
0x1de1   :  { %1503 = vmax.xlane.f32.xlu1 %v1502_v12 }
0x1e6e   :  { %v1504_v8 = vpop.xlane.xlu1 %1503 }
0x1e6f   :  { %v1505_v9 = vrot.slane %v1504_v8, 4 }
0x1e71   :  { %v1506_v5 = vmax.f32 %v1504_v8, %v1505_v9 }
0x1e73   :  { %v1507_v6 = vrot.slane %v1506_v5, 2 }
0x1e75   :  { %v1508_v7 = vmax.f32 %v1506_v5, %v1507_v6 }
0x1e77   :  { %v1509_v10 = vrot.slane %v1508_v7, 1 }
0x1e79   :  { %v1510_v11 = vmax.f32 %v1508_v7, %v1509_v10 }
0x1e7b   :  { %5965 = vpush %v1510_v11 }
0x1eac   :  { %s5966_s9 = spop %5965 }
0x1ead   :  { %v1512_v21 = vstv %s5966_s9 }
0x1eae   :  { %vm5837_vm15 = vcmp.eq.f32.partialorder %v1512_v21, -1.0  ;;  %vm1514_vm0 = vcmp.eq.f32.partialorder %v1488_v49, %v1512_v21  ;;  %vm1515_vm1 = vcmp.eq.f32.partialorder %v1489_v51, %v1512_v21  ;;  %vm1516_vm2 = vcmp.eq.f32.partialorder %v1490_v16, %v1512_v21 }
0x1eaf   :  { %v1517_v41 = vsel %vm5837_vm15, %v6557_v23, 32  ;;  %v1518_v15 = vsel %vm1514_vm0, %v6560_v24, 32  ;;  %v1519_v22 = vsel %vm1515_vm1, %v6563_v25, 32  ;;  %v1520_v37 = vsel %vm1516_vm2, %v6566_v26, 32 }
0x1eb0   :  { %v1521_v36 = vsel %vm1495_vm14, %v1517_v41, 2147483647  ;;  %v1522_v40 = vsel %vm1495_vm14, %v1518_v15, 2147483647  ;;  %v1523_v18 = vsel %vm1495_vm14, %v1519_v22, 2147483647 }
0x1eb1   :  { %v1524_v19 = vsel %vm1495_vm14, %v1520_v37, 2147483647  ;;  %vm1525_vm3 = vcmp.lt.s32.totalorder %v1521_v36, %v1522_v40  ;;  %v6468_v15 = vmov 8   ;;  %vm1476_vm15 = vcmp.eq.s32.totalorder %v6560_v24, 8 }
0x1eb2   :  { %v1526_v28 = vsel %vm1525_vm3, %v1521_v36, %v1522_v40  ;;  %vm1527_vm4 = vcmp.lt.s32.totalorder %v1523_v18, %v1524_v19  ;;  %6289 = vset.pattern.permute.xlu1 %v6468_v15  ;;  %vm1660_vm0 = vcmp.ge.s32.totalorder %v6560_v24, 9  ;;  %vm1675_vm1 = vcmask 80968  }
0x1eb3   :  { %v1528_v29 = vsel %vm1527_vm4, %v1523_v18, %v1524_v19 }
0x1eb4   :  { %vm1529_vm5 = vcmp.lt.s32.totalorder %v1526_v28, %v1528_v29 }
0x1eb5   :  { %v1530_v30 = vsel %vm1529_vm5, %v1526_v28, %v1528_v29 }
0x1eb6   :  { %v1532_v2 = vshra.s32 %v1530_v30, 16  ;;  %v1531_v33 = vand.u32 65535, %v1530_v30 }
0x1eb8   :  { %v1534_v44 = vcvt.s32.f32 %v1532_v2  ;;  %v1533_v45 = vcvt.s32.f32 %v1531_v33 }
0x1eba   :  { %1535 = vmin.xlane.f32.xlu0 %v1534_v44 }
0x1ed0   :  { %1437 = vperm.xlu0 %6287, %v1423_v32  }
0x1ed4   :  { %6288 = vset.pattern.permute.xlu0 %v6468_v15 }
0x1f47   :  { %v1536_v39 = vpop.xlane.xlu0 %1535 }
0x1f48   :  { %vm1537_vm7 = vcmp.eq.f32.partialorder %v1534_v44, %v1536_v39  ;;  %v1542_v42 = vcvt.f32.s32 %v1536_v39 }
0x1f49   :  { %v1538_v0 = vsel %vm1537_vm7, %v1533_v45, inf }
0x1f4a   :  { %1539 = vmin.xlane.f32.xlu1 %v1538_v0  ;;  %v1543_v55 = vshll.u32 %v1542_v42, 16 }
0x1f4f   :  { %v1438_v53 = vpop.permute.xlu0 %1437 }
0x1f50   :  { %v1455_v57 = vmul.f32 %v1438_v53, %v7295_v35 }
0x1f52   :  { %v1459_v60 = vsub.f32 %v1431_v13, %v1455_v57 }
0x1f54   :  { %v7360_v12 = vsel %vm1294_vm6, %v7295_v35, %v1459_v60 }
0x1fd7   :  { %v1540_v54 = vpop.xlane.xlu1 %1539 }
0x1fd8   :  { %v1541_v48 = vcvt.f32.s32 %v1540_v54 }
0x1fda   :  { %v1544_v3 = vadd.s32 %v1543_v55, %v1541_v48 }
0x1fdc   :  { %v1545_v49 = vrot.slane %v1544_v3, 4 }
0x1fde   :  { %vm1546_vm8 = vcmp.lt.s32.totalorder %v1544_v3, %v1545_v49 }
0x1fdf   :  { %v1547_v4 = vsel %vm1546_vm8, %v1544_v3, %v1545_v49 }
0x1fe0   :  { %v1548_v16 = vrot.slane %v1547_v4, 2 }
0x1fe2   :  { %vm1549_vm9 = vcmp.lt.s32.totalorder %v1547_v4, %v1548_v16 }
0x1fe3   :  { %v1550_v1 = vsel %vm1549_vm9, %v1547_v4, %v1548_v16 }
0x1fe4   :  { %v1551_v51 = vrot.slane %v1550_v1, 1 }
0x1fe6   :  { %vm1552_vm11 = vcmp.lt.s32.totalorder %v1550_v1, %v1551_v51 }
0x1fe7   :  { %v1553_v52 = vsel %vm1552_vm11, %v1550_v1, %v1551_v51  ;;  %v1676_v1 = vsel %vm1675_vm1, -1.0, %v6466_v59 }
0x1fe8   :  { %5967 = vpush %v1553_v52 }
0x2019   :  { %s5968_s10 = spop %5967 }
0x201a   :  { %v7355_v62 = vstv %s5968_s10 }
0x201b   :  { %vm1556_vm12 = vcmp.eq.s32.totalorder %v6557_v23, %v7355_v62  ;;  %vm1557_vm13 = vcmp.eq.s32.totalorder %v6560_v24, %v7355_v62  ;;  %vm1558_vm14 = vcmp.eq.s32.totalorder %v6563_v25, %v7355_v62  ;;  %vm1559_vm10 = vcmp.eq.s32.totalorder %v6566_v26, %v7355_v62 }
0x201c   :  { %v1568_v63 = vsel %vm1556_vm12, %v7360_v12, 0.0  ;;  %v1569_v14 = vsel %vm1557_vm13, %v7315_v47, 0.0  ;;  %v1570_v38 = vsel %vm1558_vm14, %v7324_v50, 0.0  ;;  %v1571_v9 = vsel %vm1559_vm10, %v7313_v58, 0.0 }
0x201d   :  { %v1572_v35 = vadd.f32 %v1569_v14, %v1568_v63  ;;  %v1613_v45 = vsel %vm1558_vm14, %v7411_v31, %v7324_v50  ;;  %v1612_v54 = vsel %vm1557_vm13, %v7411_v31, %v7315_v47 }
0x201f   :  { %v1573_v8 = vadd.f32 %v1572_v35, %v1570_v38 }
0x2021   :  { %v1574_v5 = vadd.f32 %v1573_v8, %v1571_v9 }
0x2023   :  { %v1575_v6 = vrot.slane %v1574_v5, 4 }
0x2025   :  { %v1576_v7 = vadd.f32 %v1575_v6, %v1574_v5 }
0x2027   :  { %v1577_v10 = vrot.slane %v1576_v7, 2 }
0x2029   :  { %v1578_v11 = vadd.f32 %v1577_v10, %v1576_v7 }
0x202b   :  { %v1579_v21 = vrot.slane %v1578_v11, 1 }
0x202d   :  { %v1580_v41 = vadd.f32 %v1579_v21, %v1578_v11 }
0x202f   :  { %1583 = vrot.lane.b32.xlu1 %v1580_v41, %s6467_s11 }
0x2033   :  { %1594 = vrot.lane.b32.xlu1 %v7315_v47, %s6467_s11 }
0x20a1   :  { %v1584_v22 = vpop.permute.xlu1 %1583 }
0x20a2   :  { %5969 = vpush %v1584_v22 }
0x20a5   :  { %v1595_v40 = vpop.permute.xlu1 %1594 }
0x20d3   :  { %s5970_s12 = spop %5969 }
0x20d4   :  { %v1587_v37 = vstv %s5970_s12 }
0x20d5   :  { %6352 = vrcp.f32 %v1587_v37 }
0x20df   :  { %v6353_v36 = vpop.eup %6352 }
0x20e0   :  { %5971 = vpush %v6353_v36 }
0x20e1   :  { %5973 = vpush %v1595_v40 }
0x2111   :  { %s5972_s13 = spop %5971 }
0x2112   :  { %s5974_s14 = spop %5973  ;;  %v1590_v2 = vstv %s5972_s13  ;;  %s6477_s13 = smov 115  }
0x2113   :  { %v7388_v18 = vstv %s5974_s14  ;;  %v7407_v44 = vmul.f32 %v1590_v2, %v1580_v41 }
0x2114   :  { %v1601_v19 = vsel %vm1558_vm14, %v7388_v18, %v7324_v50  ;;  %v1600_v28 = vsel %vm1557_vm13, %v7388_v18, %v7315_v47  ;;  %v1602_v30 = vsel %vm1559_vm10, %v7388_v18, %v7313_v58  ;;  %v1614_v50 = vsel %vm1559_vm10, %v7411_v31, %v7313_v58 }
0x2115   :  { %1627 = vperm.xlu1 %6289, %v1601_v19   ;;  %v1604_v29 = vsel %vm1476_vm15, 0.0, %v1600_v28 }
0x2116   :  { %1622 = vperm.xlu0 %6288, %v1604_v29  }
0x2119   :  { %1632 = vperm.xlu1 %6289, %v1602_v30  }
0x2194   :  { %v1628_v32 = vpop.permute.xlu1 %1627 }
0x2195   :  { %v1637_v33 = vmul.f32 %v1628_v32, %v7407_v44  ;;  %v1623_v39 = vpop.permute.xlu0 %1622 }
0x2196   :  { %v1636_v0 = vmul.f32 %v1623_v39, %v7407_v44 }
0x2197   :  { %v7420_v42 = vsub.f32 %v1613_v45, %v1637_v33  ;;  %v1599_v45 = vsel %vm1556_vm12, %v7388_v18, %v7360_v12  ;;  %v1611_v18 = vsel %vm1556_vm12, %v7411_v31, %v7360_v12 }
0x2198   :  { %v1640_v55 = vsub.f32 %v1612_v54, %v1636_v0  ;;  %v1633_v48 = vpop.permute.xlu1 %1632 }
0x2199   :  { %v1638_v3 = vmul.f32 %v1633_v48, %v7407_v44  ;;  %v1669_v16 = vand.u32 2147483647, %v7420_v42 }
0x219a   :  { %v7431_v49 = vsel %vm1476_vm15, %v7407_v44, %v1640_v55 }
0x219b   :  { %v7439_v4 = vsub.f32 %v1614_v50, %v1638_v3  ;;  %v1668_v47 = vand.u32 2147483647, %v7431_v49  ;;  %v1678_v57 = vsel %vm1675_vm1, %v1669_v16, -inf }
0x219d   :  { %v1670_v51 = vand.u32 2147483647, %v7439_v4  ;;  %v1672_v52 = vsel %vm1660_vm0, %v1668_v47, -1.0 }
0x219e   :  { %v1677_v53 = vsel %vm1675_vm1, %v1672_v52, -inf }
0x219f   :  { %v1679_v58 = vsel %vm1675_vm1, %v1670_v51, -inf  ;;  %v1680_v13 = vmax.f32 %v1676_v1, %v1677_v53 }
0x21a0   :  { %v1681_v60 = vmax.f32 %v1678_v57, %v1679_v58 }
0x21a2   :  { %v1682_v63 = vmax.f32 %v1680_v13, %v1681_v60 }
0x21a4   :  { %1683 = vmax.xlane.f32.xlu0 %v1682_v63 }
0x2231   :  { %v1684_v14 = vpop.xlane.xlu0 %1683 }
0x2232   :  { %v1685_v35 = vrot.slane %v1684_v14, 4 }
0x2234   :  { %v1686_v38 = vmax.f32 %v1684_v14, %v1685_v35 }
0x2236   :  { %v1687_v8 = vrot.slane %v1686_v38, 2 }
0x2238   :  { %v1688_v9 = vmax.f32 %v1686_v38, %v1687_v8 }
0x223a   :  { %v1689_v5 = vrot.slane %v1688_v9, 1 }
0x223c   :  { %v1690_v6 = vmax.f32 %v1688_v9, %v1689_v5 }
0x223e   :  { %5975 = vpush %v1690_v6 }
0x226f   :  { %s5976_s15 = spop %5975 }
0x2270   :  { %v1692_v7 = vstv %s5976_s15 }
0x2271   :  { %vm5838_vm2 = vcmp.eq.f32.partialorder %v1692_v7, -1.0  ;;  %vm1694_vm3 = vcmp.eq.f32.partialorder %v1672_v52, %v1692_v7  ;;  %vm1695_vm4 = vcmp.eq.f32.partialorder %v1669_v16, %v1692_v7  ;;  %vm1696_vm5 = vcmp.eq.f32.partialorder %v1670_v51, %v1692_v7 }
0x2272   :  { %v1697_v10 = vsel %vm5838_vm2, %v6557_v23, 32  ;;  %v1698_v11 = vsel %vm1694_vm3, %v6560_v24, 32  ;;  %v1699_v21 = vsel %vm1695_vm4, %v6563_v25, 32  ;;  %v1700_v41 = vsel %vm1696_vm5, %v6566_v26, 32 }
0x2273   :  { %v1701_v15 = vsel %vm1675_vm1, %v1697_v10, 2147483647  ;;  %v1702_v22 = vsel %vm1675_vm1, %v1698_v11, 2147483647  ;;  %v1703_v37 = vsel %vm1675_vm1, %v1699_v21, 2147483647 }
0x2274   :  { %v1704_v36 = vsel %vm1675_vm1, %v1700_v41, 2147483647  ;;  %vm1705_vm6 = vcmp.lt.s32.totalorder %v1701_v15, %v1702_v22  ;;  %v1774_v7 = vrot.slane %v7431_v49, 1  ;;  %v6470_v10 = vmov 9  }
0x2275   :  { %v1706_v40 = vsel %vm1705_vm6, %v1701_v15, %v1702_v22  ;;  %vm1707_vm7 = vcmp.lt.s32.totalorder %v1703_v37, %v1704_v36  ;;  %6291 = vset.pattern.permute.xlu1 %v6470_v10  ;;  %vm1656_vm1 = vcmp.eq.s32.totalorder %v6560_v24, 9  ;;  %vm1841_vm2 = vcmp.ge.s32.totalorder %v6560_v24, 10 }
0x2276   :  { %v1708_v19 = vsel %vm1707_vm7, %v1703_v37, %v1704_v36  ;;  %vm1856_vm3 = vcmask 89168  }
0x2277   :  { %vm1709_vm8 = vcmp.lt.s32.totalorder %v1706_v40, %v1708_v19 }
0x2278   :  { %v1710_v28 = vsel %vm1709_vm8, %v1706_v40, %v1708_v19 }
0x2279   :  { %v1712_v29 = vshra.s32 %v1710_v28, 16  ;;  %v1711_v2 = vand.u32 65535, %v1710_v28 }
0x227b   :  { %v1714_v30 = vcvt.s32.f32 %v1712_v29  ;;  %v1713_v33 = vcvt.s32.f32 %v1711_v2 }
0x227d   :  { %1715 = vmin.xlane.f32.xlu1 %v1714_v30 }
0x230a   :  { %v1716_v32 = vpop.xlane.xlu1 %1715 }
0x230b   :  { %vm1717_vm9 = vcmp.eq.f32.partialorder %v1714_v30, %v1716_v32  ;;  %v1722_v0 = vcvt.f32.s32 %v1716_v32  ;;  %v7521_v30 = vrot.slane %v7431_v49, %v6719_v61 }
0x230c   :  { %v1718_v39 = vsel %vm1717_vm9, %v1713_v33, inf }
0x230d   :  { %1719 = vmin.xlane.f32.xlu0 %v1718_v39  ;;  %v1723_v55 = vshll.u32 %v1722_v0, 16 }
0x2323   :  { %1617 = vperm.xlu0 %6288, %v1599_v45  }
0x2327   :  { %6290 = vset.pattern.permute.xlu0 %v6470_v10 }
0x239a   :  { %v1720_v54 = vpop.xlane.xlu0 %1719 }
0x239b   :  { %v1721_v48 = vcvt.f32.s32 %v1720_v54 }
0x239d   :  { %v1724_v3 = vadd.s32 %v1723_v55, %v1721_v48 }
0x239f   :  { %v1725_v50 = vrot.slane %v1724_v3, 4 }
0x23a1   :  { %vm1726_vm11 = vcmp.lt.s32.totalorder %v1724_v3, %v1725_v50 }
0x23a2   :  { %v1727_v47 = vsel %vm1726_vm11, %v1724_v3, %v1725_v50  ;;  %v1618_v53 = vpop.permute.xlu0 %1617 }
0x23a3   :  { %v1728_v16 = vrot.slane %v1727_v47, 2  ;;  %v1635_v57 = vmul.f32 %v1618_v53, %v7407_v44 }
0x23a5   :  { %vm1729_vm13 = vcmp.lt.s32.totalorder %v1727_v47, %v1728_v16  ;;  %v7468_v58 = vsub.f32 %v1611_v18, %v1635_v57 }
0x23a6   :  { %v1730_v1 = vsel %vm1729_vm13, %v1727_v47, %v1728_v16 }
0x23a7   :  { %v1731_v51 = vrot.slane %v1730_v1, 1 }
0x23a9   :  { %vm1732_vm14 = vcmp.lt.s32.totalorder %v1730_v1, %v1731_v51 }
0x23aa   :  { %v1733_v52 = vsel %vm1732_vm14, %v1730_v1, %v1731_v51  ;;  %v1857_v1 = vsel %vm1856_vm3, -1.0, %v6466_v59 }
0x23ab   :  { %5977 = vpush %v1733_v52 }
0x23dc   :  { %s5978_s18 = spop %5977 }
0x23dd   :  { %v7470_v13 = vstv %s5978_s18 }
0x23de   :  { %vm1736_vm10 = vcmp.eq.s32.totalorder %v6557_v23, %v7470_v13  ;;  %vm1737_vm15 = vcmp.eq.s32.totalorder %v6560_v24, %v7470_v13  ;;  %vm1738_vm0 = vcmp.eq.s32.totalorder %v6563_v25, %v7470_v13  ;;  %vm1739_vm12 = vcmp.eq.s32.totalorder %v6566_v26, %v7470_v13 }
0x23df   :  { %v1748_v62 = vsel %vm1736_vm10, %v7468_v58, 0.0  ;;  %v1749_v12 = vsel %vm1737_vm15, %v7431_v49, 0.0  ;;  %v1750_v31 = vsel %vm1738_vm0, %v7420_v42, 0.0  ;;  %v1751_v63 = vsel %vm1739_vm12, %v7439_v4, 0.0 }
0x23e0   :  { %v1752_v44 = vadd.f32 %v1749_v12, %v1748_v62  ;;  %v1794_v39 = vsel %vm1738_vm0, %v7521_v30, %v7420_v42  ;;  %v1793_v54 = vsel %vm1737_vm15, %v7521_v30, %v7431_v49 }
0x23e2   :  { %v1753_v60 = vadd.f32 %v1752_v44, %v1750_v31 }
0x23e4   :  { %v1754_v14 = vadd.f32 %v1753_v60, %v1751_v63 }
0x23e6   :  { %v1755_v35 = vrot.slane %v1754_v14, 4 }
0x23e8   :  { %v1756_v38 = vadd.f32 %v1755_v35, %v1754_v14 }
0x23ea   :  { %v1757_v8 = vrot.slane %v1756_v38, 2 }
0x23ec   :  { %v1758_v9 = vadd.f32 %v1757_v8, %v1756_v38 }
0x23ee   :  { %v1759_v5 = vrot.slane %v1758_v9, 1 }
0x23f0   :  { %v1760_v6 = vadd.f32 %v1759_v5, %v1758_v9 }
0x23f2   :  { %1763 = vrot.lane.b32.xlu1 %v1760_v6, %s6469_s19 }
0x23f6   :  { %1775 = vrot.lane.b32.xlu1 %v1774_v7, %s6469_s19 }
0x2464   :  { %v1764_v11 = vpop.permute.xlu1 %1763 }
0x2465   :  { %5979 = vpush %v1764_v11 }
0x2468   :  { %v1776_v15 = vpop.permute.xlu1 %1775 }
0x2496   :  { %s5980_s0 = spop %5979 }
0x2497   :  { %v1767_v21 = vstv %s5980_s0 }
0x2498   :  { %6354 = vrcp.f32 %v1767_v21 }
0x24a2   :  { %v6355_v41 = vpop.eup %6354 }
0x24a3   :  { %5981 = vpush %v6355_v41 }
0x24a4   :  { %5983 = vpush %v1776_v15 }
0x24d4   :  { %s5982_s20 = spop %5981 }
0x24d5   :  { %s5984_s21 = spop %5983  ;;  %v1770_v28 = vstv %s5982_s20  ;;  %s6479_s20 = smov 114  }
0x24d6   :  { %v7498_v22 = vstv %s5984_s21  ;;  %v7517_v29 = vmul.f32 %v1770_v28, %v1760_v6 }
0x24d7   :  { %v1782_v37 = vsel %vm1738_vm0, %v7498_v22, %v7420_v42  ;;  %v1781_v36 = vsel %vm1737_vm15, %v7498_v22, %v7431_v49  ;;  %v1783_v19 = vsel %vm1739_vm12, %v7498_v22, %v7439_v4  ;;  %v1795_v42 = vsel %vm1739_vm12, %v7521_v30, %v7439_v4 }
0x24d8   :  { %1808 = vperm.xlu1 %6291, %v1782_v37   ;;  %v1785_v40 = vsel %vm1656_vm1, 0.0, %v1781_v36 }
0x24d9   :  { %1803 = vperm.xlu0 %6290, %v1785_v40  }
0x24dc   :  { %1813 = vperm.xlu1 %6291, %v1783_v19  }
0x2557   :  { %v1809_v2 = vpop.permute.xlu1 %1808 }
0x2558   :  { %v1818_v32 = vmul.f32 %v1809_v2, %v7517_v29  ;;  %v1804_v33 = vpop.permute.xlu0 %1803 }
0x2559   :  { %v1817_v45 = vmul.f32 %v1804_v33, %v7517_v29 }
0x255a   :  { %v7530_v0 = vsub.f32 %v1794_v39, %v1818_v32  ;;  %v1780_v39 = vsel %vm1736_vm10, %v7498_v22, %v7468_v58  ;;  %v1792_v22 = vsel %vm1736_vm10, %v7521_v30, %v7468_v58 }
0x255b   :  { %v1821_v55 = vsub.f32 %v1793_v54, %v1817_v45  ;;  %v1814_v48 = vpop.permute.xlu1 %1813 }
0x255c   :  { %v1819_v3 = vmul.f32 %v1814_v48, %v7517_v29  ;;  %v1850_v16 = vand.u32 2147483647, %v7530_v0 }
0x255d   :  { %v7541_v50 = vsel %vm1656_vm1, %v7517_v29, %v1821_v55 }
0x255e   :  { %v7549_v47 = vsub.f32 %v1795_v42, %v1819_v3  ;;  %v1849_v49 = vand.u32 2147483647, %v7541_v50  ;;  %v1859_v57 = vsel %vm1856_vm3, %v1850_v16, -inf }
0x2560   :  { %v1851_v51 = vand.u32 2147483647, %v7549_v47  ;;  %v1853_v52 = vsel %vm1841_vm2, %v1849_v49, -1.0 }
0x2561   :  { %v1858_v53 = vsel %vm1856_vm3, %v1853_v52, -inf }
0x2562   :  { %v1860_v4 = vsel %vm1856_vm3, %v1851_v51, -inf  ;;  %v1861_v18 = vmax.f32 %v1857_v1, %v1858_v53 }
0x2563   :  { %v1862_v62 = vmax.f32 %v1859_v57, %v1860_v4 }
0x2565   :  { %v1863_v12 = vmax.f32 %v1861_v18, %v1862_v62 }
0x2567   :  { %1864 = vmax.xlane.f32.xlu0 %v1863_v12 }
0x25f4   :  { %v1865_v44 = vpop.xlane.xlu0 %1864 }
0x25f5   :  { %v1866_v31 = vrot.slane %v1865_v44, 4 }
0x25f7   :  { %v1867_v60 = vmax.f32 %v1865_v44, %v1866_v31 }
0x25f9   :  { %v1868_v63 = vrot.slane %v1867_v60, 2 }
0x25fb   :  { %v1869_v14 = vmax.f32 %v1867_v60, %v1868_v63 }
0x25fd   :  { %v1870_v35 = vrot.slane %v1869_v14, 1 }
0x25ff   :  { %v1871_v38 = vmax.f32 %v1869_v14, %v1870_v35 }
0x2601   :  { %5985 = vpush %v1871_v38 }
0x2632   :  { %s5986_s22 = spop %5985 }
0x2633   :  { %v1873_v8 = vstv %s5986_s22 }
0x2634   :  { %vm5839_vm4 = vcmp.eq.f32.partialorder %v1873_v8, -1.0  ;;  %vm1875_vm5 = vcmp.eq.f32.partialorder %v1853_v52, %v1873_v8  ;;  %vm1876_vm6 = vcmp.eq.f32.partialorder %v1850_v16, %v1873_v8  ;;  %vm1877_vm7 = vcmp.eq.f32.partialorder %v1851_v51, %v1873_v8 }
0x2635   :  { %v1878_v9 = vsel %vm5839_vm4, %v6557_v23, 32  ;;  %v1879_v5 = vsel %vm1875_vm5, %v6560_v24, 32  ;;  %v1880_v6 = vsel %vm1876_vm6, %v6563_v25, 32  ;;  %v1881_v7 = vsel %vm1877_vm7, %v6566_v26, 32 }
0x2636   :  { %v1882_v10 = vsel %vm1856_vm3, %v1878_v9, 2147483647  ;;  %v1883_v11 = vsel %vm1856_vm3, %v1879_v5, 2147483647  ;;  %v1884_v21 = vsel %vm1856_vm3, %v1880_v6, 2147483647 }
0x2637   :  { %v1885_v41 = vsel %vm1856_vm3, %v1881_v7, 2147483647  ;;  %vm1886_vm8 = vcmp.lt.s32.totalorder %v1882_v10, %v1883_v11  ;;  %v1955_v8 = vrot.slane %v7541_v50, 2  ;;  %v6472_v9 = vmov 10  }
0x2638   :  { %vm1888_vm9 = vcmp.lt.s32.totalorder %v1884_v21, %v1885_v41  ;;  %v1887_v15 = vsel %vm1886_vm8, %v1882_v10, %v1883_v11  ;;  %6293 = vset.pattern.permute.xlu1 %v6472_v9  ;;  %vm1837_vm3 = vcmp.eq.s32.totalorder %v6560_v24, 10  ;;  %vm2022_vm4 = vcmp.ge.s32.totalorder %v6560_v24, 11 }
0x2639   :  { %v1889_v37 = vsel %vm1888_vm9, %v1884_v21, %v1885_v41  ;;  %vm2037_vm5 = vcmask 97368  }
0x263a   :  { %vm1890_vm11 = vcmp.lt.s32.totalorder %v1887_v15, %v1889_v37 }
0x263b   :  { %v1891_v36 = vsel %vm1890_vm11, %v1887_v15, %v1889_v37 }
0x263c   :  { %v1893_v40 = vshra.s32 %v1891_v36, 16  ;;  %v1892_v28 = vand.u32 65535, %v1891_v36 }
0x263e   :  { %v1895_v19 = vcvt.s32.f32 %v1893_v40  ;;  %v1894_v32 = vcvt.s32.f32 %v1892_v28 }
0x2640   :  { %1896 = vmin.xlane.f32.xlu1 %v1895_v19 }
0x26cd   :  { %v1897_v2 = vpop.xlane.xlu1 %1896 }
0x26ce   :  { %vm1898_vm13 = vcmp.eq.f32.partialorder %v1895_v19, %v1897_v2  ;;  %v1903_v45 = vcvt.f32.s32 %v1897_v2  ;;  %v7631_v19 = vrot.slane %v7541_v50, %v6815_v43 }
0x26cf   :  { %v1899_v33 = vsel %vm1898_vm13, %v1894_v32, inf }
0x26d0   :  { %1900 = vmin.xlane.f32.xlu0 %v1899_v33  ;;  %v1904_v55 = vshll.u32 %v1903_v45, 16 }
0x26e6   :  { %1798 = vperm.xlu0 %6290, %v1780_v39  }
0x26ea   :  { %6292 = vset.pattern.permute.xlu0 %v6472_v9 }
0x275d   :  { %v1901_v54 = vpop.xlane.xlu0 %1900 }
0x275e   :  { %v1902_v48 = vcvt.f32.s32 %v1901_v54 }
0x2760   :  { %v1905_v3 = vadd.s32 %v1904_v55, %v1902_v48 }
0x2762   :  { %v1906_v42 = vrot.slane %v1905_v3, 4 }
0x2764   :  { %vm1907_vm14 = vcmp.lt.s32.totalorder %v1905_v3, %v1906_v42 }
0x2765   :  { %v1908_v49 = vsel %vm1907_vm14, %v1905_v3, %v1906_v42  ;;  %v1799_v53 = vpop.permute.xlu0 %1798 }
0x2766   :  { %v1909_v16 = vrot.slane %v1908_v49, 2  ;;  %v1816_v57 = vmul.f32 %v1799_v53, %v7517_v29 }
0x2768   :  { %vm1910_vm15 = vcmp.lt.s32.totalorder %v1908_v49, %v1909_v16  ;;  %v7578_v4 = vsub.f32 %v1792_v22, %v1816_v57 }
0x2769   :  { %v1911_v1 = vsel %vm1910_vm15, %v1908_v49, %v1909_v16 }
0x276a   :  { %v1912_v51 = vrot.slane %v1911_v1, 1 }
0x276c   :  { %vm1913_vm0 = vcmp.lt.s32.totalorder %v1911_v1, %v1912_v51 }
0x276d   :  { %v1914_v52 = vsel %vm1913_vm0, %v1911_v1, %v1912_v51  ;;  %v2038_v1 = vsel %vm2037_vm5, -1.0, %v6466_v59 }
0x276e   :  { %5987 = vpush %v1914_v52 }
0x279f   :  { %s5988_s23 = spop %5987 }
0x27a0   :  { %v7580_v18 = vstv %s5988_s23 }
0x27a1   :  { %vm1917_vm12 = vcmp.eq.s32.totalorder %v6557_v23, %v7580_v18  ;;  %vm1918_vm1 = vcmp.eq.s32.totalorder %v6560_v24, %v7580_v18  ;;  %vm1919_vm2 = vcmp.eq.s32.totalorder %v6563_v25, %v7580_v18  ;;  %vm1920_vm10 = vcmp.eq.s32.totalorder %v6566_v26, %v7580_v18 }
0x27a2   :  { %v1929_v13 = vsel %vm1917_vm12, %v7578_v4, 0.0  ;;  %v1930_v58 = vsel %vm1918_vm1, %v7541_v50, 0.0  ;;  %v1931_v30 = vsel %vm1919_vm2, %v7530_v0, 0.0  ;;  %v1932_v12 = vsel %vm1920_vm10, %v7549_v47, 0.0 }
0x27a3   :  { %v1933_v29 = vadd.f32 %v1930_v58, %v1929_v13  ;;  %v1975_v33 = vsel %vm1919_vm2, %v7631_v19, %v7530_v0  ;;  %v1974_v54 = vsel %vm1918_vm1, %v7631_v19, %v7541_v50 }
0x27a5   :  { %v1934_v62 = vadd.f32 %v1933_v29, %v1931_v30 }
0x27a7   :  { %v1935_v44 = vadd.f32 %v1934_v62, %v1932_v12 }
0x27a9   :  { %v1936_v31 = vrot.slane %v1935_v44, 4 }
0x27ab   :  { %v1937_v60 = vadd.f32 %v1936_v31, %v1935_v44 }
0x27ad   :  { %v1938_v63 = vrot.slane %v1937_v60, 2 }
0x27af   :  { %v1939_v14 = vadd.f32 %v1938_v63, %v1937_v60 }
0x27b1   :  { %v1940_v35 = vrot.slane %v1939_v14, 1 }
0x27b3   :  { %v1941_v38 = vadd.f32 %v1940_v35, %v1939_v14 }
0x27b5   :  { %1944 = vrot.lane.b32.xlu1 %v1941_v38, %s6471_s24 }
0x27b9   :  { %1956 = vrot.lane.b32.xlu1 %v1955_v8, %s6471_s24 }
0x2827   :  { %v1945_v5 = vpop.permute.xlu1 %1944 }
0x2828   :  { %5989 = vpush %v1945_v5 }
0x282b   :  { %v1957_v10 = vpop.permute.xlu1 %1956 }
0x2859   :  { %s5990_s25 = spop %5989 }
0x285a   :  { %v1948_v6 = vstv %s5990_s25 }
0x285b   :  { %6356 = vrcp.f32 %v1948_v6 }
0x2865   :  { %v6357_v7 = vpop.eup %6356 }
0x2866   :  { %5991 = vpush %v6357_v7 }
0x2867   :  { %5993 = vpush %v1957_v10 }
0x2897   :  { %s5992_s26 = spop %5991 }
0x2898   :  { %s5994_s27 = spop %5993  ;;  %v1951_v36 = vstv %s5992_s26  ;;  %s6481_s26 = smov 113  }
0x2899   :  { %v7608_v11 = vstv %s5994_s27  ;;  %v7627_v40 = vmul.f32 %v1951_v36, %v1941_v38 }
0x289a   :  { %v1963_v21 = vsel %vm1919_vm2, %v7608_v11, %v7530_v0  ;;  %v1962_v41 = vsel %vm1918_vm1, %v7608_v11, %v7541_v50  ;;  %v1964_v37 = vsel %vm1920_vm10, %v7608_v11, %v7549_v47  ;;  %v1976_v0 = vsel %vm1920_vm10, %v7631_v19, %v7549_v47 }
0x289b   :  { %1989 = vperm.xlu1 %6293, %v1963_v21   ;;  %v1966_v15 = vsel %vm1837_vm3, 0.0, %v1962_v41 }
0x289c   :  { %1984 = vperm.xlu0 %6292, %v1966_v15  }
0x289f   :  { %1994 = vperm.xlu1 %6293, %v1964_v37  }
0x291a   :  { %v1990_v28 = vpop.permute.xlu1 %1989 }
0x291b   :  { %v1999_v2 = vmul.f32 %v1990_v28, %v7627_v40  ;;  %v1985_v32 = vpop.permute.xlu0 %1984 }
0x291c   :  { %v1998_v39 = vmul.f32 %v1985_v32, %v7627_v40 }
0x291d   :  { %v7640_v45 = vsub.f32 %v1975_v33, %v1999_v2  ;;  %v1961_v33 = vsel %vm1917_vm12, %v7608_v11, %v7578_v4  ;;  %v1973_v11 = vsel %vm1917_vm12, %v7631_v19, %v7578_v4 }
0x291e   :  { %v2002_v55 = vsub.f32 %v1974_v54, %v1998_v39  ;;  %v1995_v48 = vpop.permute.xlu1 %1994 }
0x291f   :  { %v2000_v3 = vmul.f32 %v1995_v48, %v7627_v40  ;;  %v2031_v16 = vand.u32 2147483647, %v7640_v45 }
0x2920   :  { %v7651_v42 = vsel %vm1837_vm3, %v7627_v40, %v2002_v55 }
0x2921   :  { %v7659_v49 = vsub.f32 %v1976_v0, %v2000_v3  ;;  %v2030_v50 = vand.u32 2147483647, %v7651_v42  ;;  %v2040_v57 = vsel %vm2037_vm5, %v2031_v16, -inf }
0x2923   :  { %v2032_v51 = vand.u32 2147483647, %v7659_v49  ;;  %v2034_v52 = vsel %vm2022_vm4, %v2030_v50, -1.0 }
0x2924   :  { %v2039_v53 = vsel %vm2037_vm5, %v2034_v52, -inf }
0x2925   :  { %v2041_v47 = vsel %vm2037_vm5, %v2032_v51, -inf  ;;  %v2042_v22 = vmax.f32 %v2038_v1, %v2039_v53 }
0x2926   :  { %v2043_v13 = vmax.f32 %v2040_v57, %v2041_v47 }
0x2928   :  { %v2044_v58 = vmax.f32 %v2042_v22, %v2043_v13 }
0x292a   :  { %2045 = vmax.xlane.f32.xlu0 %v2044_v58 }
0x29b7   :  { %v2046_v29 = vpop.xlane.xlu0 %2045 }
0x29b8   :  { %v2047_v30 = vrot.slane %v2046_v29, 4 }
0x29ba   :  { %v2048_v62 = vmax.f32 %v2046_v29, %v2047_v30 }
0x29bc   :  { %v2049_v12 = vrot.slane %v2048_v62, 2 }
0x29be   :  { %v2050_v44 = vmax.f32 %v2048_v62, %v2049_v12 }
0x29c0   :  { %v2051_v31 = vrot.slane %v2050_v44, 1 }
0x29c2   :  { %v2052_v60 = vmax.f32 %v2050_v44, %v2051_v31 }
0x29c4   :  { %5995 = vpush %v2052_v60 }
0x29f5   :  { %s5996_s28 = spop %5995 }
0x29f6   :  { %v2054_v63 = vstv %s5996_s28 }
0x29f7   :  { %vm5840_vm6 = vcmp.eq.f32.partialorder %v2054_v63, -1.0  ;;  %vm2056_vm7 = vcmp.eq.f32.partialorder %v2034_v52, %v2054_v63  ;;  %vm2057_vm8 = vcmp.eq.f32.partialorder %v2031_v16, %v2054_v63  ;;  %vm2058_vm9 = vcmp.eq.f32.partialorder %v2032_v51, %v2054_v63 }
0x29f8   :  { %v2059_v14 = vsel %vm5840_vm6, %v6557_v23, 32  ;;  %v2060_v35 = vsel %vm2056_vm7, %v6560_v24, 32  ;;  %v2061_v38 = vsel %vm2057_vm8, %v6563_v25, 32  ;;  %v2062_v8 = vsel %vm2058_vm9, %v6566_v26, 32 }
0x29f9   :  { %v2063_v9 = vsel %vm2037_vm5, %v2059_v14, 2147483647  ;;  %v2064_v5 = vsel %vm2037_vm5, %v2060_v35, 2147483647  ;;  %v2065_v6 = vsel %vm2037_vm5, %v2061_v38, 2147483647 }
0x29fa   :  { %v2066_v7 = vsel %vm2037_vm5, %v2062_v8, 2147483647  ;;  %vm2067_vm11 = vcmp.lt.s32.totalorder %v2063_v9, %v2064_v5  ;;  %v2136_v63 = vrot.slane %v7651_v42, 3  ;;  %v6474_v14 = vmov 11  }
0x29fb   :  { %vm2069_vm13 = vcmp.lt.s32.totalorder %v2065_v6, %v2066_v7  ;;  %v2068_v10 = vsel %vm2067_vm11, %v2063_v9, %v2064_v5  ;;  %6295 = vset.pattern.permute.xlu1 %v6474_v14  ;;  %vm2018_vm5 = vcmp.eq.s32.totalorder %v6560_v24, 11  ;;  %vm2203_vm6 = vcmp.ge.s32.totalorder %v6560_v24, 12 }
0x29fc   :  { %v2070_v21 = vsel %vm2069_vm13, %v2065_v6, %v2066_v7  ;;  %vm2218_vm7 = vcmask 105568  }
0x29fd   :  { %vm2071_vm14 = vcmp.lt.s32.totalorder %v2068_v10, %v2070_v21 }
0x29fe   :  { %v2072_v41 = vsel %vm2071_vm14, %v2068_v10, %v2070_v21 }
0x29ff   :  { %v2074_v15 = vshra.s32 %v2072_v41, 16  ;;  %v2073_v36 = vand.u32 65535, %v2072_v41 }
0x2a01   :  { %v2076_v37 = vcvt.s32.f32 %v2074_v15  ;;  %v2075_v2 = vcvt.s32.f32 %v2073_v36 }
0x2a03   :  { %2077 = vmin.xlane.f32.xlu1 %v2076_v37 }
0x2a90   :  { %v2078_v28 = vpop.xlane.xlu1 %2077 }
0x2a91   :  { %vm2079_vm15 = vcmp.eq.f32.partialorder %v2076_v37, %v2078_v28  ;;  %v2084_v39 = vcvt.f32.s32 %v2078_v28  ;;  %v7741_v37 = vrot.slane %v7651_v42, %v6911_v27 }
0x2a92   :  { %v2080_v32 = vsel %vm2079_vm15, %v2075_v2, inf }
0x2a93   :  { %2081 = vmin.xlane.f32.xlu0 %v2080_v32  ;;  %v2085_v55 = vshll.u32 %v2084_v39, 16 }
0x2aa9   :  { %1979 = vperm.xlu0 %6292, %v1961_v33  }
0x2aad   :  { %6294 = vset.pattern.permute.xlu0 %v6474_v14 }
0x2b20   :  { %v2082_v54 = vpop.xlane.xlu0 %2081 }
0x2b21   :  { %v2083_v48 = vcvt.f32.s32 %v2082_v54 }
0x2b23   :  { %v2086_v3 = vadd.s32 %v2085_v55, %v2083_v48 }
0x2b25   :  { %v2087_v0 = vrot.slane %v2086_v3, 4 }
0x2b27   :  { %vm2088_vm0 = vcmp.lt.s32.totalorder %v2086_v3, %v2087_v0 }
0x2b28   :  { %v2089_v50 = vsel %vm2088_vm0, %v2086_v3, %v2087_v0  ;;  %v1980_v53 = vpop.permute.xlu0 %1979 }
0x2b29   :  { %v2090_v16 = vrot.slane %v2089_v50, 2  ;;  %v1997_v57 = vmul.f32 %v1980_v53, %v7627_v40 }
0x2b2b   :  { %vm2091_vm1 = vcmp.lt.s32.totalorder %v2089_v50, %v2090_v16  ;;  %v7688_v47 = vsub.f32 %v1973_v11, %v1997_v57 }
0x2b2c   :  { %v2092_v1 = vsel %vm2091_vm1, %v2089_v50, %v2090_v16 }
0x2b2d   :  { %v2093_v51 = vrot.slane %v2092_v1, 1 }
0x2b2f   :  { %vm2094_vm2 = vcmp.lt.s32.totalorder %v2092_v1, %v2093_v51 }
0x2b30   :  { %v2095_v52 = vsel %vm2094_vm2, %v2092_v1, %v2093_v51  ;;  %v2219_v1 = vsel %vm2218_vm7, -1.0, %v6466_v59 }
0x2b31   :  { %5997 = vpush %v2095_v52 }
0x2b62   :  { %s5998_s29 = spop %5997 }
0x2b63   :  { %v7690_v22 = vstv %s5998_s29 }
0x2b64   :  { %vm2098_vm10 = vcmp.eq.s32.totalorder %v6557_v23, %v7690_v22  ;;  %vm2099_vm3 = vcmp.eq.s32.totalorder %v6560_v24, %v7690_v22  ;;  %vm2100_vm4 = vcmp.eq.s32.totalorder %v6563_v25, %v7690_v22  ;;  %vm2101_vm12 = vcmp.eq.s32.totalorder %v6566_v26, %v7690_v22 }
0x2b65   :  { %v2110_v18 = vsel %vm2098_vm10, %v7688_v47, 0.0  ;;  %v2111_v4 = vsel %vm2099_vm3, %v7651_v42, 0.0  ;;  %v2112_v19 = vsel %vm2100_vm4, %v7640_v45, 0.0  ;;  %v2113_v58 = vsel %vm2101_vm12, %v7659_v49, 0.0 }
0x2b66   :  { %v2114_v40 = vadd.f32 %v2111_v4, %v2110_v18  ;;  %v2156_v32 = vsel %vm2100_vm4, %v7741_v37, %v7640_v45  ;;  %v2155_v54 = vsel %vm2099_vm3, %v7741_v37, %v7651_v42 }
0x2b68   :  { %v2115_v13 = vadd.f32 %v2114_v40, %v2112_v19 }
0x2b6a   :  { %v2116_v29 = vadd.f32 %v2115_v13, %v2113_v58 }
0x2b6c   :  { %v2117_v30 = vrot.slane %v2116_v29, 4 }
0x2b6e   :  { %v2118_v62 = vadd.f32 %v2117_v30, %v2116_v29 }
0x2b70   :  { %v2119_v12 = vrot.slane %v2118_v62, 2 }
0x2b72   :  { %v2120_v44 = vadd.f32 %v2119_v12, %v2118_v62 }
0x2b74   :  { %v2121_v31 = vrot.slane %v2120_v44, 1 }
0x2b76   :  { %v2122_v60 = vadd.f32 %v2121_v31, %v2120_v44 }
0x2b78   :  { %2125 = vrot.lane.b32.xlu1 %v2122_v60, %s6473_s30 }
0x2b7c   :  { %2137 = vrot.lane.b32.xlu1 %v2136_v63, %s6473_s30 }
0x2bea   :  { %v2126_v35 = vpop.permute.xlu1 %2125 }
0x2beb   :  { %5999 = vpush %v2126_v35 }
0x2bee   :  { %v2138_v9 = vpop.permute.xlu1 %2137 }
0x2c1c   :  { %s6000_s2 = spop %5999 }
0x2c1d   :  { %v2129_v38 = vstv %s6000_s2 }
0x2c1e   :  { %6358 = vrcp.f32 %v2129_v38 }
0x2c28   :  { %v6359_v8 = vpop.eup %6358 }
0x2c29   :  { %6001 = vpush %v6359_v8 }
0x2c2a   :  { %6003 = vpush %v2138_v9 }
0x2c5a   :  { %s6002_s3 = spop %6001 }
0x2c5b   :  { %s6004_s4 = spop %6003  ;;  %v2132_v41 = vstv %s6002_s3  ;;  %s6483_s3 = smov 112  }
0x2c5c   :  { %v7718_v5 = vstv %s6004_s4  ;;  %v7737_v15 = vmul.f32 %v2132_v41, %v2122_v60 }
0x2c5d   :  { %v2144_v6 = vsel %vm2100_vm4, %v7718_v5, %v7640_v45  ;;  %v2143_v7 = vsel %vm2099_vm3, %v7718_v5, %v7651_v42  ;;  %v2145_v21 = vsel %vm2101_vm12, %v7718_v5, %v7659_v49  ;;  %v2157_v45 = vsel %vm2101_vm12, %v7741_v37, %v7659_v49 }
0x2c5e   :  { %2170 = vperm.xlu1 %6295, %v2144_v6   ;;  %v2147_v10 = vsel %vm2018_vm5, 0.0, %v2143_v7 }
0x2c5f   :  { %2165 = vperm.xlu0 %6294, %v2147_v10  }
0x2c62   :  { %2175 = vperm.xlu1 %6295, %v2145_v21  }
0x2cdd   :  { %v2171_v36 = vpop.permute.xlu1 %2170 }
0x2cde   :  { %v2180_v28 = vmul.f32 %v2171_v36, %v7737_v15  ;;  %v2166_v2 = vpop.permute.xlu0 %2165 }
0x2cdf   :  { %v2179_v33 = vmul.f32 %v2166_v2, %v7737_v15 }
0x2ce0   :  { %v7750_v39 = vsub.f32 %v2156_v32, %v2180_v28  ;;  %v2142_v32 = vsel %vm2098_vm10, %v7718_v5, %v7688_v47  ;;  %v2154_v5 = vsel %vm2098_vm10, %v7741_v37, %v7688_v47 }
0x2ce1   :  { %v2183_v55 = vsub.f32 %v2155_v54, %v2179_v33  ;;  %v2176_v48 = vpop.permute.xlu1 %2175 }
0x2ce2   :  { %v2181_v3 = vmul.f32 %v2176_v48, %v7737_v15  ;;  %v2212_v16 = vand.u32 2147483647, %v7750_v39 }
0x2ce3   :  { %v7761_v0 = vsel %vm2018_vm5, %v7737_v15, %v2183_v55 }
0x2ce4   :  { %v7769_v50 = vsub.f32 %v2157_v45, %v2181_v3  ;;  %v2211_v42 = vand.u32 2147483647, %v7761_v0  ;;  %v2221_v57 = vsel %vm2218_vm7, %v2212_v16, -inf }
0x2ce6   :  { %v2213_v51 = vand.u32 2147483647, %v7769_v50  ;;  %v2215_v52 = vsel %vm2203_vm6, %v2211_v42, -1.0 }
0x2ce7   :  { %v2220_v53 = vsel %vm2218_vm7, %v2215_v52, -inf }
0x2ce8   :  { %v2222_v49 = vsel %vm2218_vm7, %v2213_v51, -inf  ;;  %v2223_v11 = vmax.f32 %v2219_v1, %v2220_v53 }
0x2ce9   :  { %v2224_v18 = vmax.f32 %v2221_v57, %v2222_v49 }
0x2ceb   :  { %v2225_v4 = vmax.f32 %v2223_v11, %v2224_v18 }
0x2ced   :  { %2226 = vmax.xlane.f32.xlu0 %v2225_v4 }
0x2d7a   :  { %v2227_v40 = vpop.xlane.xlu0 %2226 }
0x2d7b   :  { %v2228_v19 = vrot.slane %v2227_v40, 4 }
0x2d7d   :  { %v2229_v13 = vmax.f32 %v2227_v40, %v2228_v19 }
0x2d7f   :  { %v2230_v58 = vrot.slane %v2229_v13, 2 }
0x2d81   :  { %v2231_v29 = vmax.f32 %v2229_v13, %v2230_v58 }
0x2d83   :  { %v2232_v30 = vrot.slane %v2231_v29, 1 }
0x2d85   :  { %v2233_v62 = vmax.f32 %v2231_v29, %v2232_v30 }
0x2d87   :  { %6005 = vpush %v2233_v62 }
0x2db8   :  { %s6006_s5 = spop %6005 }
0x2db9   :  { %v2235_v12 = vstv %s6006_s5 }
0x2dba   :  { %vm5841_vm8 = vcmp.eq.f32.partialorder %v2235_v12, -1.0  ;;  %vm2237_vm9 = vcmp.eq.f32.partialorder %v2215_v52, %v2235_v12  ;;  %vm2238_vm11 = vcmp.eq.f32.partialorder %v2212_v16, %v2235_v12  ;;  %vm2239_vm13 = vcmp.eq.f32.partialorder %v2213_v51, %v2235_v12 }
0x2dbb   :  { %v2240_v44 = vsel %vm5841_vm8, %v6557_v23, 32  ;;  %v2241_v31 = vsel %vm2237_vm9, %v6560_v24, 32  ;;  %v2242_v60 = vsel %vm2238_vm11, %v6563_v25, 32  ;;  %v2243_v63 = vsel %vm2239_vm13, %v6566_v26, 32 }
0x2dbc   :  { %v2244_v14 = vsel %vm2218_vm7, %v2240_v44, 2147483647  ;;  %v2245_v35 = vsel %vm2218_vm7, %v2241_v31, 2147483647  ;;  %v2246_v38 = vsel %vm2218_vm7, %v2242_v60, 2147483647 }
0x2dbd   :  { %v2247_v8 = vsel %vm2218_vm7, %v2243_v63, 2147483647  ;;  %vm2248_vm14 = vcmp.lt.s32.totalorder %v2244_v14, %v2245_v35  ;;  %v2317_v12 = vrot.slane %v7761_v0, 4  ;;  %v6476_v44 = vmov 12  }
0x2dbe   :  { %vm2250_vm15 = vcmp.lt.s32.totalorder %v2246_v38, %v2247_v8  ;;  %v2249_v9 = vsel %vm2248_vm14, %v2244_v14, %v2245_v35  ;;  %6297 = vset.pattern.permute.xlu1 %v6476_v44  ;;  %vm2199_vm7 = vcmp.eq.s32.totalorder %v6560_v24, 12  ;;  %vm2384_vm8 = vcmp.ge.s32.totalorder %v6560_v24, 13 }
0x2dbf   :  { %v2251_v6 = vsel %vm2250_vm15, %v2246_v38, %v2247_v8  ;;  %vm2399_vm9 = vcmask 113768  }
0x2dc0   :  { %vm2252_vm0 = vcmp.lt.s32.totalorder %v2249_v9, %v2251_v6 }
0x2dc1   :  { %v2253_v7 = vsel %vm2252_vm0, %v2249_v9, %v2251_v6 }
0x2dc2   :  { %v2255_v10 = vshra.s32 %v2253_v7, 16  ;;  %v2254_v41 = vand.u32 65535, %v2253_v7 }
0x2dc4   :  { %v2257_v21 = vcvt.s32.f32 %v2255_v10  ;;  %v2256_v28 = vcvt.s32.f32 %v2254_v41 }
0x2dc6   :  { %2258 = vmin.xlane.f32.xlu1 %v2257_v21 }
0x2e53   :  { %v2259_v36 = vpop.xlane.xlu1 %2258 }
0x2e54   :  { %vm2260_vm1 = vcmp.eq.f32.partialorder %v2257_v21, %v2259_v36  ;;  %v2265_v33 = vcvt.f32.s32 %v2259_v36  ;;  %v7851_v21 = vrot.slane %v7761_v0, %v7007_v17 }
0x2e55   :  { %v2261_v2 = vsel %vm2260_vm1, %v2256_v28, inf }
0x2e56   :  { %2262 = vmin.xlane.f32.xlu0 %v2261_v2  ;;  %v2266_v55 = vshll.u32 %v2265_v33, 16 }
0x2e6c   :  { %2160 = vperm.xlu0 %6294, %v2142_v32  }
0x2e70   :  { %6296 = vset.pattern.permute.xlu0 %v6476_v44 }
0x2ee3   :  { %v2263_v54 = vpop.xlane.xlu0 %2262 }
0x2ee4   :  { %v2264_v48 = vcvt.f32.s32 %v2263_v54 }
0x2ee6   :  { %v2267_v3 = vadd.s32 %v2266_v55, %v2264_v48 }
0x2ee8   :  { %v2268_v45 = vrot.slane %v2267_v3, 4 }
0x2eea   :  { %vm2269_vm2 = vcmp.lt.s32.totalorder %v2267_v3, %v2268_v45 }
0x2eeb   :  { %v2270_v42 = vsel %vm2269_vm2, %v2267_v3, %v2268_v45  ;;  %v2161_v53 = vpop.permute.xlu0 %2160 }
0x2eec   :  { %v2271_v16 = vrot.slane %v2270_v42, 2  ;;  %v2178_v57 = vmul.f32 %v2161_v53, %v7737_v15 }
0x2eee   :  { %vm2272_vm3 = vcmp.lt.s32.totalorder %v2270_v42, %v2271_v16  ;;  %v7798_v49 = vsub.f32 %v2154_v5, %v2178_v57 }
0x2eef   :  { %v2273_v1 = vsel %vm2272_vm3, %v2270_v42, %v2271_v16 }
0x2ef0   :  { %v2274_v51 = vrot.slane %v2273_v1, 1 }
0x2ef2   :  { %vm2275_vm4 = vcmp.lt.s32.totalorder %v2273_v1, %v2274_v51 }
0x2ef3   :  { %v2276_v52 = vsel %vm2275_vm4, %v2273_v1, %v2274_v51  ;;  %v2400_v1 = vsel %vm2399_vm9, -1.0, %v6466_v59 }
0x2ef4   :  { %6007 = vpush %v2276_v52 }
0x2f25   :  { %s6008_s6 = spop %6007 }
0x2f26   :  { %v7800_v11 = vstv %s6008_s6 }
0x2f27   :  { %vm2279_vm12 = vcmp.eq.s32.totalorder %v6557_v23, %v7800_v11  ;;  %vm2280_vm5 = vcmp.eq.s32.totalorder %v6560_v24, %v7800_v11  ;;  %vm2281_vm6 = vcmp.eq.s32.totalorder %v6563_v25, %v7800_v11  ;;  %vm2282_vm10 = vcmp.eq.s32.totalorder %v6566_v26, %v7800_v11 }
0x2f28   :  { %v2291_v22 = vsel %vm2279_vm12, %v7798_v49, 0.0  ;;  %v2292_v47 = vsel %vm2280_vm5, %v7761_v0, 0.0  ;;  %v2293_v37 = vsel %vm2281_vm6, %v7750_v39, 0.0  ;;  %v2294_v4 = vsel %vm2282_vm10, %v7769_v50, 0.0 }
0x2f29   :  { %v2295_v15 = vadd.f32 %v2292_v47, %v2291_v22  ;;  %v2337_v2 = vsel %vm2281_vm6, %v7851_v21, %v7750_v39  ;;  %v2336_v54 = vsel %vm2280_vm5, %v7851_v21, %v7761_v0 }
0x2f2b   :  { %v2296_v18 = vadd.f32 %v2295_v15, %v2293_v37 }
0x2f2d   :  { %v2297_v40 = vadd.f32 %v2296_v18, %v2294_v4 }
0x2f2f   :  { %v2298_v19 = vrot.slane %v2297_v40, 4 }
0x2f31   :  { %v2299_v13 = vadd.f32 %v2298_v19, %v2297_v40 }
0x2f33   :  { %v2300_v58 = vrot.slane %v2299_v13, 2 }
0x2f35   :  { %v2301_v29 = vadd.f32 %v2300_v58, %v2299_v13 }
0x2f37   :  { %v2302_v30 = vrot.slane %v2301_v29, 1 }
0x2f39   :  { %v2303_v62 = vadd.f32 %v2302_v30, %v2301_v29 }
0x2f3b   :  { %2306 = vrot.lane.b32.xlu1 %v2303_v62, %s6475_s7 }
0x2f3f   :  { %2318 = vrot.lane.b32.xlu1 %v2317_v12, %s6475_s7 }
0x2fad   :  { %v2307_v31 = vpop.permute.xlu1 %2306 }
0x2fae   :  { %6009 = vpush %v2307_v31 }
0x2fb1   :  { %v2319_v14 = vpop.permute.xlu1 %2318 }
0x2fdf   :  { %s6010_s8 = spop %6009 }
0x2fe0   :  { %v2310_v60 = vstv %s6010_s8 }
0x2fe1   :  { %6360 = vrcp.f32 %v2310_v60 }
0x2feb   :  { %v6361_v63 = vpop.eup %6360 }
0x2fec   :  { %6011 = vpush %v6361_v63 }
0x2fed   :  { %6013 = vpush %v2319_v14 }
0x301d   :  { %s6012_s9 = spop %6011 }
0x301e   :  { %s6014_s10 = spop %6013  ;;  %v2313_v7 = vstv %s6012_s9  ;;  %s6485_s9 = smov 111  }
0x301f   :  { %v7828_v35 = vstv %s6014_s10  ;;  %v7847_v10 = vmul.f32 %v2313_v7, %v2303_v62 }
0x3020   :  { %v2325_v38 = vsel %vm2281_vm6, %v7828_v35, %v7750_v39  ;;  %v2324_v8 = vsel %vm2280_vm5, %v7828_v35, %v7761_v0  ;;  %v2326_v6 = vsel %vm2282_vm10, %v7828_v35, %v7769_v50  ;;  %v2338_v39 = vsel %vm2282_vm10, %v7851_v21, %v7769_v50 }
0x3021   :  { %2351 = vperm.xlu1 %6297, %v2325_v38   ;;  %v2328_v9 = vsel %vm2199_vm7, 0.0, %v2324_v8 }
0x3022   :  { %2346 = vperm.xlu0 %6296, %v2328_v9  }
0x3025   :  { %2356 = vperm.xlu1 %6297, %v2326_v6  }
0x30a0   :  { %v2352_v41 = vpop.permute.xlu1 %2351 }
0x30a1   :  { %v2361_v36 = vmul.f32 %v2352_v41, %v7847_v10  ;;  %v2347_v28 = vpop.permute.xlu0 %2346 }
0x30a2   :  { %v2360_v32 = vmul.f32 %v2347_v28, %v7847_v10 }
0x30a3   :  { %v7860_v33 = vsub.f32 %v2337_v2, %v2361_v36  ;;  %v2323_v2 = vsel %vm2279_vm12, %v7828_v35, %v7798_v49  ;;  %v2335_v35 = vsel %vm2279_vm12, %v7851_v21, %v7798_v49 }
0x30a4   :  { %v2364_v55 = vsub.f32 %v2336_v54, %v2360_v32  ;;  %v2357_v48 = vpop.permute.xlu1 %2356 }
0x30a5   :  { %v2362_v3 = vmul.f32 %v2357_v48, %v7847_v10  ;;  %v2393_v16 = vand.u32 2147483647, %v7860_v33 }
0x30a6   :  { %v7871_v45 = vsel %vm2199_vm7, %v7847_v10, %v2364_v55 }
0x30a7   :  { %v7879_v42 = vsub.f32 %v2338_v39, %v2362_v3  ;;  %v2392_v0 = vand.u32 2147483647, %v7871_v45  ;;  %v2402_v57 = vsel %vm2399_vm9, %v2393_v16, -inf }
0x30a9   :  { %v2394_v51 = vand.u32 2147483647, %v7879_v42  ;;  %v2396_v52 = vsel %vm2384_vm8, %v2392_v0, -1.0 }
0x30aa   :  { %v2401_v53 = vsel %vm2399_vm9, %v2396_v52, -inf }
0x30ab   :  { %v2403_v50 = vsel %vm2399_vm9, %v2394_v51, -inf  ;;  %v2404_v5 = vmax.f32 %v2400_v1, %v2401_v53 }
0x30ac   :  { %v2405_v22 = vmax.f32 %v2402_v57, %v2403_v50 }
0x30ae   :  { %v2406_v47 = vmax.f32 %v2404_v5, %v2405_v22 }
0x30b0   :  { %2407 = vmax.xlane.f32.xlu0 %v2406_v47 }
0x313d   :  { %v2408_v15 = vpop.xlane.xlu0 %2407 }
0x313e   :  { %v2409_v37 = vrot.slane %v2408_v15, 4 }
0x3140   :  { %v2410_v18 = vmax.f32 %v2408_v15, %v2409_v37 }
0x3142   :  { %v2411_v4 = vrot.slane %v2410_v18, 2 }
0x3144   :  { %v2412_v40 = vmax.f32 %v2410_v18, %v2411_v4 }
0x3146   :  { %v2413_v19 = vrot.slane %v2412_v40, 1 }
0x3148   :  { %v2414_v13 = vmax.f32 %v2412_v40, %v2413_v19 }
0x314a   :  { %6015 = vpush %v2414_v13 }
0x317b   :  { %s6016_s11 = spop %6015 }
0x317c   :  { %v2416_v58 = vstv %s6016_s11 }
0x317d   :  { %vm5842_vm11 = vcmp.eq.f32.partialorder %v2416_v58, -1.0  ;;  %vm2418_vm13 = vcmp.eq.f32.partialorder %v2396_v52, %v2416_v58  ;;  %vm2419_vm14 = vcmp.eq.f32.partialorder %v2393_v16, %v2416_v58  ;;  %vm2420_vm15 = vcmp.eq.f32.partialorder %v2394_v51, %v2416_v58 }
0x317e   :  { %v2421_v29 = vsel %vm5842_vm11, %v6557_v23, 32  ;;  %v2422_v30 = vsel %vm2418_vm13, %v6560_v24, 32  ;;  %v2423_v62 = vsel %vm2419_vm14, %v6563_v25, 32  ;;  %v2424_v12 = vsel %vm2420_vm15, %v6566_v26, 32 }
0x317f   :  { %v2425_v44 = vsel %vm2399_vm9, %v2421_v29, 2147483647  ;;  %v2426_v31 = vsel %vm2399_vm9, %v2422_v30, 2147483647  ;;  %v2427_v60 = vsel %vm2399_vm9, %v2423_v62, 2147483647 }
0x3180   :  { %v2428_v63 = vsel %vm2399_vm9, %v2424_v12, 2147483647  ;;  %vm2429_vm0 = vcmp.lt.s32.totalorder %v2425_v44, %v2426_v31  ;;  %v2498_v58 = vrot.slane %v7871_v45, 5  ;;  %v6478_v29 = vmov 13  }
0x3181   :  { %vm2431_vm1 = vcmp.lt.s32.totalorder %v2427_v60, %v2428_v63  ;;  %v2430_v14 = vsel %vm2429_vm0, %v2425_v44, %v2426_v31  ;;  %6299 = vset.pattern.permute.xlu1 %v6478_v29  ;;  %vm2380_vm9 = vcmp.eq.s32.totalorder %v6560_v24, 13  ;;  %vm2565_vm11 = vcmp.ge.s32.totalorder %v6560_v24, 14 }
0x3182   :  { %v2432_v38 = vsel %vm2431_vm1, %v2427_v60, %v2428_v63  ;;  %vm2580_vm13 = vcmask 121968  }
0x3183   :  { %vm2433_vm2 = vcmp.lt.s32.totalorder %v2430_v14, %v2432_v38 }
0x3184   :  { %v2434_v8 = vsel %vm2433_vm2, %v2430_v14, %v2432_v38 }
0x3185   :  { %v2436_v9 = vshra.s32 %v2434_v8, 16  ;;  %v2435_v7 = vand.u32 65535, %v2434_v8 }
0x3187   :  { %v2438_v6 = vcvt.s32.f32 %v2436_v9  ;;  %v2437_v36 = vcvt.s32.f32 %v2435_v7 }
0x3189   :  { %2439 = vmin.xlane.f32.xlu1 %v2438_v6 }
0x3216   :  { %v2440_v41 = vpop.xlane.xlu1 %2439 }
0x3217   :  { %vm2441_vm3 = vcmp.eq.f32.partialorder %v2438_v6, %v2440_v41  ;;  %v2446_v32 = vcvt.f32.s32 %v2440_v41  ;;  %v7961_v6 = vrot.slane %v7871_v45, %v7103_v56 }
0x3218   :  { %v2442_v28 = vsel %vm2441_vm3, %v2437_v36, inf }
0x3219   :  { %2443 = vmin.xlane.f32.xlu0 %v2442_v28  ;;  %v2447_v55 = vshll.u32 %v2446_v32, 16 }
0x322f   :  { %2341 = vperm.xlu0 %6296, %v2323_v2  }
0x3233   :  { %6298 = vset.pattern.permute.xlu0 %v6478_v29 }
0x32a6   :  { %v2444_v54 = vpop.xlane.xlu0 %2443 }
0x32a7   :  { %v2445_v48 = vcvt.f32.s32 %v2444_v54 }
0x32a9   :  { %v2448_v3 = vadd.s32 %v2447_v55, %v2445_v48 }
0x32ab   :  { %v2449_v39 = vrot.slane %v2448_v3, 4 }
0x32ad   :  { %vm2450_vm4 = vcmp.lt.s32.totalorder %v2448_v3, %v2449_v39 }
0x32ae   :  { %v2451_v0 = vsel %vm2450_vm4, %v2448_v3, %v2449_v39  ;;  %v2342_v53 = vpop.permute.xlu0 %2341 }
0x32af   :  { %v2452_v16 = vrot.slane %v2451_v0, 2  ;;  %v2359_v57 = vmul.f32 %v2342_v53, %v7847_v10 }
0x32b1   :  { %vm2453_vm5 = vcmp.lt.s32.totalorder %v2451_v0, %v2452_v16  ;;  %v7908_v50 = vsub.f32 %v2335_v35, %v2359_v57 }
0x32b2   :  { %v2454_v1 = vsel %vm2453_vm5, %v2451_v0, %v2452_v16 }
0x32b3   :  { %v2455_v51 = vrot.slane %v2454_v1, 1 }
0x32b5   :  { %vm2456_vm6 = vcmp.lt.s32.totalorder %v2454_v1, %v2455_v51 }
0x32b6   :  { %v2457_v52 = vsel %vm2456_vm6, %v2454_v1, %v2455_v51  ;;  %v2581_v1 = vsel %vm2580_vm13, -1.0, %v6466_v59 }
0x32b7   :  { %6017 = vpush %v2457_v52 }
0x32e8   :  { %s6018_s12 = spop %6017 }
0x32e9   :  { %v7910_v5 = vstv %s6018_s12 }
0x32ea   :  { %vm2460_vm10 = vcmp.eq.s32.totalorder %v6557_v23, %v7910_v5  ;;  %vm2461_vm7 = vcmp.eq.s32.totalorder %v6560_v24, %v7910_v5  ;;  %vm2462_vm8 = vcmp.eq.s32.totalorder %v6563_v25, %v7910_v5  ;;  %vm2463_vm12 = vcmp.eq.s32.totalorder %v6566_v26, %v7910_v5 }
0x32eb   :  { %v2472_v11 = vsel %vm2460_vm10, %v7908_v50, 0.0  ;;  %v2473_v49 = vsel %vm2461_vm7, %v7871_v45, 0.0  ;;  %v2474_v21 = vsel %vm2462_vm8, %v7860_v33, 0.0  ;;  %v2475_v47 = vsel %vm2463_vm12, %v7879_v42, 0.0 }
0x32ec   :  { %v2476_v10 = vadd.f32 %v2473_v49, %v2472_v11  ;;  %v2518_v28 = vsel %vm2462_vm8, %v7961_v6, %v7860_v33  ;;  %v2517_v54 = vsel %vm2461_vm7, %v7961_v6, %v7871_v45 }
0x32ee   :  { %v2477_v22 = vadd.f32 %v2476_v10, %v2474_v21 }
0x32f0   :  { %v2478_v15 = vadd.f32 %v2477_v22, %v2475_v47 }
0x32f2   :  { %v2479_v37 = vrot.slane %v2478_v15, 4 }
0x32f4   :  { %v2480_v18 = vadd.f32 %v2479_v37, %v2478_v15 }
0x32f6   :  { %v2481_v4 = vrot.slane %v2480_v18, 2 }
0x32f8   :  { %v2482_v40 = vadd.f32 %v2481_v4, %v2480_v18 }
0x32fa   :  { %v2483_v19 = vrot.slane %v2482_v40, 1 }
0x32fc   :  { %v2484_v13 = vadd.f32 %v2483_v19, %v2482_v40 }
0x32fe   :  { %2487 = vrot.lane.b32.xlu1 %v2484_v13, %s6477_s13 }
0x3302   :  { %2499 = vrot.lane.b32.xlu1 %v2498_v58, %s6477_s13 }
0x3370   :  { %v2488_v30 = vpop.permute.xlu1 %2487 }
0x3371   :  { %6019 = vpush %v2488_v30 }
0x3374   :  { %v2500_v44 = vpop.permute.xlu1 %2499 }
0x33a2   :  { %s6020_s14 = spop %6019 }
0x33a3   :  { %v2491_v62 = vstv %s6020_s14 }
0x33a4   :  { %6362 = vrcp.f32 %v2491_v62 }
0x33ae   :  { %v6363_v12 = vpop.eup %6362 }
0x33af   :  { %6021 = vpush %v6363_v12 }
0x33b0   :  { %6023 = vpush %v2500_v44 }
0x33e0   :  { %s6022_s15 = spop %6021 }
0x33e1   :  { %s6024_s18 = spop %6023  ;;  %v2494_v8 = vstv %s6022_s15  ;;  %s6487_s15 = smov 110  }
0x33e2   :  { %v7938_v31 = vstv %s6024_s18  ;;  %v7957_v9 = vmul.f32 %v2494_v8, %v2484_v13 }
0x33e3   :  { %v2506_v60 = vsel %vm2462_vm8, %v7938_v31, %v7860_v33  ;;  %v2505_v63 = vsel %vm2461_vm7, %v7938_v31, %v7871_v45  ;;  %v2507_v38 = vsel %vm2463_vm12, %v7938_v31, %v7879_v42  ;;  %v2519_v33 = vsel %vm2463_vm12, %v7961_v6, %v7879_v42 }
0x33e4   :  { %2532 = vperm.xlu1 %6299, %v2506_v60   ;;  %v2509_v14 = vsel %vm2380_vm9, 0.0, %v2505_v63 }
0x33e5   :  { %2527 = vperm.xlu0 %6298, %v2509_v14  }
0x33e8   :  { %2537 = vperm.xlu1 %6299, %v2507_v38  }
0x3463   :  { %v2533_v7 = vpop.permute.xlu1 %2532 }
0x3464   :  { %v2542_v41 = vmul.f32 %v2533_v7, %v7957_v9  ;;  %v2528_v36 = vpop.permute.xlu0 %2527 }
0x3465   :  { %v2541_v2 = vmul.f32 %v2528_v36, %v7957_v9 }
0x3466   :  { %v7970_v32 = vsub.f32 %v2518_v28, %v2542_v41  ;;  %v2504_v28 = vsel %vm2460_vm10, %v7938_v31, %v7908_v50  ;;  %v2516_v31 = vsel %vm2460_vm10, %v7961_v6, %v7908_v50 }
0x3467   :  { %v2545_v55 = vsub.f32 %v2517_v54, %v2541_v2  ;;  %v2538_v48 = vpop.permute.xlu1 %2537 }
0x3468   :  { %v2543_v3 = vmul.f32 %v2538_v48, %v7957_v9  ;;  %v2574_v16 = vand.u32 2147483647, %v7970_v32 }
0x3469   :  { %v7981_v39 = vsel %vm2380_vm9, %v7957_v9, %v2545_v55 }
0x346a   :  { %v7989_v0 = vsub.f32 %v2519_v33, %v2543_v3  ;;  %v2573_v45 = vand.u32 2147483647, %v7981_v39  ;;  %v2583_v57 = vsel %vm2580_vm13, %v2574_v16, -inf }
0x346c   :  { %v2575_v51 = vand.u32 2147483647, %v7989_v0  ;;  %v2577_v52 = vsel %vm2565_vm11, %v2573_v45, -1.0 }
0x346d   :  { %v2582_v53 = vsel %vm2580_vm13, %v2577_v52, -inf }
0x346e   :  { %v2584_v42 = vsel %vm2580_vm13, %v2575_v51, -inf  ;;  %v2585_v35 = vmax.f32 %v2581_v1, %v2582_v53 }
0x346f   :  { %v2586_v11 = vmax.f32 %v2583_v57, %v2584_v42 }
0x3471   :  { %v2587_v49 = vmax.f32 %v2585_v35, %v2586_v11 }
0x3473   :  { %2588 = vmax.xlane.f32.xlu0 %v2587_v49 }
0x3500   :  { %v2589_v10 = vpop.xlane.xlu0 %2588 }
0x3501   :  { %v2590_v21 = vrot.slane %v2589_v10, 4 }
0x3503   :  { %v2591_v22 = vmax.f32 %v2589_v10, %v2590_v21 }
0x3505   :  { %v2592_v47 = vrot.slane %v2591_v22, 2 }
0x3507   :  { %v2593_v15 = vmax.f32 %v2591_v22, %v2592_v47 }
0x3509   :  { %v2594_v37 = vrot.slane %v2593_v15, 1 }
0x350b   :  { %v2595_v18 = vmax.f32 %v2593_v15, %v2594_v37 }
0x350d   :  { %6025 = vpush %v2595_v18 }
0x353e   :  { %s6026_s19 = spop %6025 }
0x353f   :  { %v2597_v4 = vstv %s6026_s19 }
0x3540   :  { %vm5843_vm14 = vcmp.eq.f32.partialorder %v2597_v4, -1.0  ;;  %vm2599_vm15 = vcmp.eq.f32.partialorder %v2577_v52, %v2597_v4  ;;  %vm2600_vm0 = vcmp.eq.f32.partialorder %v2574_v16, %v2597_v4  ;;  %vm2601_vm1 = vcmp.eq.f32.partialorder %v2575_v51, %v2597_v4 }
0x3541   :  { %v2602_v40 = vsel %vm5843_vm14, %v6557_v23, 32  ;;  %v2603_v19 = vsel %vm2599_vm15, %v6560_v24, 32  ;;  %v2604_v13 = vsel %vm2600_vm0, %v6563_v25, 32  ;;  %v2605_v58 = vsel %vm2601_vm1, %v6566_v26, 32 }
0x3542   :  { %v2606_v29 = vsel %vm2580_vm13, %v2602_v40, 2147483647  ;;  %v2607_v30 = vsel %vm2580_vm13, %v2603_v19, 2147483647  ;;  %v2608_v62 = vsel %vm2580_vm13, %v2604_v13, 2147483647 }
0x3543   :  { %v2609_v12 = vsel %vm2580_vm13, %v2605_v58, 2147483647  ;;  %vm2610_vm2 = vcmp.lt.s32.totalorder %v2606_v29, %v2607_v30  ;;  %v2679_v4 = vrot.slane %v7981_v39, 6  ;;  %v6480_v40 = vmov 14  }
0x3544   :  { %vm2612_vm3 = vcmp.lt.s32.totalorder %v2608_v62, %v2609_v12  ;;  %v2611_v44 = vsel %vm2610_vm2, %v2606_v29, %v2607_v30  ;;  %6301 = vset.pattern.permute.xlu1 %v6480_v40  ;;  %vm2561_vm13 = vcmp.eq.s32.totalorder %v6560_v24, 14  ;;  %vm2746_vm14 = vcmp.ge.s32.totalorder %v6560_v24, 15 }
0x3545   :  { %v2613_v60 = vsel %vm2612_vm3, %v2608_v62, %v2609_v12  ;;  %vm2761_vm15 = vcmask 130168  }
0x3546   :  { %vm2614_vm4 = vcmp.lt.s32.totalorder %v2611_v44, %v2613_v60 }
0x3547   :  { %v2615_v63 = vsel %vm2614_vm4, %v2611_v44, %v2613_v60 }
0x3548   :  { %v2617_v14 = vshra.s32 %v2615_v63, 16  ;;  %v2616_v8 = vand.u32 65535, %v2615_v63 }
0x354a   :  { %v2619_v38 = vcvt.s32.f32 %v2617_v14  ;;  %v2618_v41 = vcvt.s32.f32 %v2616_v8 }
0x354c   :  { %2620 = vmin.xlane.f32.xlu1 %v2619_v38 }
0x35d9   :  { %v2621_v7 = vpop.xlane.xlu1 %2620 }
0x35da   :  { %vm2622_vm5 = vcmp.eq.f32.partialorder %v2619_v38, %v2621_v7  ;;  %v2627_v2 = vcvt.f32.s32 %v2621_v7  ;;  %v8071_v38 = vrot.slane %v7981_v39, %v7199_v46 }
0x35db   :  { %v2623_v36 = vsel %vm2622_vm5, %v2618_v41, inf }
0x35dc   :  { %2624 = vmin.xlane.f32.xlu0 %v2623_v36  ;;  %v2628_v55 = vshll.u32 %v2627_v2, 16 }
0x35f2   :  { %2522 = vperm.xlu0 %6298, %v2504_v28  }
0x35f6   :  { %6300 = vset.pattern.permute.xlu0 %v6480_v40 }
0x3669   :  { %v2625_v54 = vpop.xlane.xlu0 %2624 }
0x366a   :  { %v2626_v48 = vcvt.f32.s32 %v2625_v54 }
0x366c   :  { %v2629_v3 = vadd.s32 %v2628_v55, %v2626_v48 }
0x366e   :  { %v2630_v33 = vrot.slane %v2629_v3, 4 }
0x3670   :  { %vm2631_vm6 = vcmp.lt.s32.totalorder %v2629_v3, %v2630_v33 }
0x3671   :  { %v2632_v45 = vsel %vm2631_vm6, %v2629_v3, %v2630_v33  ;;  %v2523_v53 = vpop.permute.xlu0 %2522 }
0x3672   :  { %v2633_v16 = vrot.slane %v2632_v45, 2  ;;  %v2540_v57 = vmul.f32 %v2523_v53, %v7957_v9 }
0x3674   :  { %vm2634_vm7 = vcmp.lt.s32.totalorder %v2632_v45, %v2633_v16  ;;  %v8018_v42 = vsub.f32 %v2516_v31, %v2540_v57 }
0x3675   :  { %v2635_v1 = vsel %vm2634_vm7, %v2632_v45, %v2633_v16 }
0x3676   :  { %v2636_v51 = vrot.slane %v2635_v1, 1 }
0x3678   :  { %vm2637_vm8 = vcmp.lt.s32.totalorder %v2635_v1, %v2636_v51 }
0x3679   :  { %v2638_v52 = vsel %vm2637_vm8, %v2635_v1, %v2636_v51  ;;  %v2762_v1 = vsel %vm2761_vm15, -1.0, %v6466_v59 }
0x367a   :  { %6027 = vpush %v2638_v52 }
0x36ab   :  { %s6028_s0 = spop %6027 }
0x36ac   :  { %v8020_v35 = vstv %s6028_s0 }
0x36ad   :  { %vm2641_vm12 = vcmp.eq.s32.totalorder %v6557_v23, %v8020_v35  ;;  %vm2642_vm9 = vcmp.eq.s32.totalorder %v6560_v24, %v8020_v35  ;;  %vm2643_vm11 = vcmp.eq.s32.totalorder %v6563_v25, %v8020_v35  ;;  %vm2644_vm10 = vcmp.eq.s32.totalorder %v6566_v26, %v8020_v35 }
0x36ae   :  { %v2653_v5 = vsel %vm2641_vm12, %v8018_v42, 0.0  ;;  %v2654_v50 = vsel %vm2642_vm9, %v7981_v39, 0.0  ;;  %v2655_v6 = vsel %vm2643_vm11, %v7970_v32, 0.0  ;;  %v2656_v49 = vsel %vm2644_vm10, %v7989_v0, 0.0 }
0x36af   :  { %v2657_v9 = vadd.f32 %v2654_v50, %v2653_v5  ;;  %v2699_v36 = vsel %vm2643_vm11, %v8071_v38, %v7970_v32  ;;  %v2698_v54 = vsel %vm2642_vm9, %v8071_v38, %v7981_v39 }
0x36b1   :  { %v2658_v11 = vadd.f32 %v2657_v9, %v2655_v6 }
0x36b3   :  { %v2659_v10 = vadd.f32 %v2658_v11, %v2656_v49 }
0x36b5   :  { %v2660_v21 = vrot.slane %v2659_v10, 4 }
0x36b7   :  { %v2661_v22 = vadd.f32 %v2660_v21, %v2659_v10 }
0x36b9   :  { %v2662_v47 = vrot.slane %v2661_v22, 2 }
0x36bb   :  { %v2663_v15 = vadd.f32 %v2662_v47, %v2661_v22 }
0x36bd   :  { %v2664_v37 = vrot.slane %v2663_v15, 1 }
0x36bf   :  { %v2665_v18 = vadd.f32 %v2664_v37, %v2663_v15 }
0x36c1   :  { %2668 = vrot.lane.b32.xlu1 %v2665_v18, %s6479_s20 }
0x36c5   :  { %2680 = vrot.lane.b32.xlu1 %v2679_v4, %s6479_s20 }
0x3733   :  { %v2669_v19 = vpop.permute.xlu1 %2668 }
0x3734   :  { %6029 = vpush %v2669_v19 }
0x3737   :  { %v2681_v29 = vpop.permute.xlu1 %2680 }
0x3765   :  { %s6030_s21 = spop %6029 }
0x3766   :  { %v2672_v13 = vstv %s6030_s21 }
0x3767   :  { %6364 = vrcp.f32 %v2672_v13 }
0x3771   :  { %v6365_v58 = vpop.eup %6364 }
0x3772   :  { %6031 = vpush %v6365_v58 }
0x3773   :  { %6033 = vpush %v2681_v29 }
0x37a3   :  { %s6032_s22 = spop %6031 }
0x37a4   :  { %s6034_s23 = spop %6033  ;;  %v2675_v63 = vstv %s6032_s22  ;;  %s6489_s22 = smov 109  }
0x37a5   :  { %v8048_v30 = vstv %s6034_s23  ;;  %v8067_v14 = vmul.f32 %v2675_v63, %v2665_v18 }
0x37a6   :  { %v2687_v62 = vsel %vm2643_vm11, %v8048_v30, %v7970_v32  ;;  %v2686_v12 = vsel %vm2642_vm9, %v8048_v30, %v7981_v39  ;;  %v2688_v60 = vsel %vm2644_vm10, %v8048_v30, %v7989_v0  ;;  %v2700_v32 = vsel %vm2644_vm10, %v8071_v38, %v7989_v0 }
0x37a7   :  { %2713 = vperm.xlu1 %6301, %v2687_v62   ;;  %v2690_v44 = vsel %vm2561_vm13, 0.0, %v2686_v12 }
0x37a8   :  { %2708 = vperm.xlu0 %6300, %v2690_v44  }
0x37ab   :  { %2718 = vperm.xlu1 %6301, %v2688_v60  }
0x3826   :  { %v2714_v8 = vpop.permute.xlu1 %2713 }
0x3827   :  { %v2723_v7 = vmul.f32 %v2714_v8, %v8067_v14  ;;  %v2709_v41 = vpop.permute.xlu0 %2708 }
0x3828   :  { %v2722_v28 = vmul.f32 %v2709_v41, %v8067_v14 }
0x3829   :  { %v8080_v2 = vsub.f32 %v2699_v36, %v2723_v7  ;;  %v2685_v36 = vsel %vm2641_vm12, %v8048_v30, %v8018_v42  ;;  %v2697_v30 = vsel %vm2641_vm12, %v8071_v38, %v8018_v42 }
0x382a   :  { %v2726_v55 = vsub.f32 %v2698_v54, %v2722_v28  ;;  %v2719_v48 = vpop.permute.xlu1 %2718 }
0x382b   :  { %v2724_v3 = vmul.f32 %v2719_v48, %v8067_v14  ;;  %v2755_v16 = vand.u32 2147483647, %v8080_v2 }
0x382c   :  { %v8091_v33 = vsel %vm2561_vm13, %v8067_v14, %v2726_v55 }
0x382d   :  { %v8099_v45 = vsub.f32 %v2700_v32, %v2724_v3  ;;  %v2754_v39 = vand.u32 2147483647, %v8091_v33  ;;  %v2764_v57 = vsel %vm2761_vm15, %v2755_v16, -inf }
0x382f   :  { %v2756_v51 = vand.u32 2147483647, %v8099_v45  ;;  %v2758_v52 = vsel %vm2746_vm14, %v2754_v39, -1.0 }
0x3830   :  { %v2763_v53 = vsel %vm2761_vm15, %v2758_v52, -inf }
0x3831   :  { %v2765_v0 = vsel %vm2761_vm15, %v2756_v51, -inf  ;;  %v2766_v31 = vmax.f32 %v2762_v1, %v2763_v53 }
0x3832   :  { %v2767_v5 = vmax.f32 %v2764_v57, %v2765_v0 }
0x3834   :  { %v2768_v50 = vmax.f32 %v2766_v31, %v2767_v5 }
0x3836   :  { %2769 = vmax.xlane.f32.xlu0 %v2768_v50 }
0x38c3   :  { %v2770_v9 = vpop.xlane.xlu0 %2769 }
0x38c4   :  { %v2771_v6 = vrot.slane %v2770_v9, 4 }
0x38c6   :  { %v2772_v11 = vmax.f32 %v2770_v9, %v2771_v6 }
0x38c8   :  { %v2773_v49 = vrot.slane %v2772_v11, 2 }
0x38ca   :  { %v2774_v10 = vmax.f32 %v2772_v11, %v2773_v49 }
0x38cc   :  { %v2775_v21 = vrot.slane %v2774_v10, 1 }
0x38ce   :  { %v2776_v22 = vmax.f32 %v2774_v10, %v2775_v21 }
0x38d0   :  { %6035 = vpush %v2776_v22 }
0x3901   :  { %s6036_s24 = spop %6035 }
0x3902   :  { %v2778_v47 = vstv %s6036_s24 }
0x3903   :  { %vm5844_vm0 = vcmp.eq.f32.partialorder %v2778_v47, -1.0  ;;  %vm2780_vm1 = vcmp.eq.f32.partialorder %v2758_v52, %v2778_v47  ;;  %vm2781_vm2 = vcmp.eq.f32.partialorder %v2755_v16, %v2778_v47  ;;  %vm2782_vm3 = vcmp.eq.f32.partialorder %v2756_v51, %v2778_v47 }
0x3904   :  { %v2783_v15 = vsel %vm5844_vm0, %v6557_v23, 32  ;;  %v2784_v37 = vsel %vm2780_vm1, %v6560_v24, 32  ;;  %v2785_v18 = vsel %vm2781_vm2, %v6563_v25, 32  ;;  %v2786_v4 = vsel %vm2782_vm3, %v6566_v26, 32 }
0x3905   :  { %v2787_v40 = vsel %vm2761_vm15, %v2783_v15, 2147483647  ;;  %v2788_v19 = vsel %vm2761_vm15, %v2784_v37, 2147483647  ;;  %v2789_v13 = vsel %vm2761_vm15, %v2785_v18, 2147483647 }
0x3906   :  { %v2790_v58 = vsel %vm2761_vm15, %v2786_v4, 2147483647  ;;  %vm2791_vm4 = vcmp.lt.s32.totalorder %v2787_v40, %v2788_v19  ;;  %v2860_v47 = vrot.slane %v8091_v33, 7  ;;  %v6482_v15 = vmov 15  }
0x3907   :  { %vm2793_vm5 = vcmp.lt.s32.totalorder %v2789_v13, %v2790_v58  ;;  %v2792_v29 = vsel %vm2791_vm4, %v2787_v40, %v2788_v19  ;;  %6303 = vset.pattern.permute.xlu1 %v6482_v15  ;;  %vm2942_vm15 = vcmask 138368   ;;  %vm2742_vm0 = vcmp.eq.s32.totalorder %v6560_v24, 15 }
0x3908   :  { %v2794_v62 = vsel %vm2793_vm5, %v2789_v13, %v2790_v58 }
0x3909   :  { %vm2795_vm6 = vcmp.lt.s32.totalorder %v2792_v29, %v2794_v62 }
0x390a   :  { %v2796_v12 = vsel %vm2795_vm6, %v2792_v29, %v2794_v62 }
0x390b   :  { %v2798_v44 = vshra.s32 %v2796_v12, 16  ;;  %v2797_v63 = vand.u32 65535, %v2796_v12  ;;  %v8173_v12 = vrot.slane %v8091_v33, %v7293_v34 }
0x390d   :  { %v2800_v60 = vcvt.s32.f32 %v2798_v44  ;;  %v2799_v7 = vcvt.s32.f32 %v2797_v63 }
0x390f   :  { %2801 = vmin.xlane.f32.xlu1 %v2800_v60 }
0x399c   :  { %v2802_v8 = vpop.xlane.xlu1 %2801 }
0x399d   :  { %vm2803_vm7 = vcmp.eq.f32.partialorder %v2800_v60, %v2802_v8  ;;  %v2808_v28 = vcvt.f32.s32 %v2802_v8 }
0x399e   :  { %v2804_v41 = vsel %vm2803_vm7, %v2799_v7, inf }
0x399f   :  { %2805 = vmin.xlane.f32.xlu0 %v2804_v41  ;;  %v2809_v55 = vshll.u32 %v2808_v28, 16 }
0x39b5   :  { %2703 = vperm.xlu0 %6300, %v2685_v36  }
0x39b9   :  { %6302 = vset.pattern.permute.xlu0 %v6482_v15 }
0x3a2c   :  { %v2806_v54 = vpop.xlane.xlu0 %2805 }
0x3a2d   :  { %v2807_v48 = vcvt.f32.s32 %v2806_v54 }
0x3a2f   :  { %v2810_v3 = vadd.s32 %v2809_v55, %v2807_v48  ;;  %v2943_v48 = vsel %vm2942_vm15, -1.0, %v6466_v59 }
0x3a31   :  { %v2811_v32 = vrot.slane %v2810_v3, 4 }
0x3a33   :  { %vm2812_vm8 = vcmp.lt.s32.totalorder %v2810_v3, %v2811_v32 }
0x3a34   :  { %v2813_v39 = vsel %vm2812_vm8, %v2810_v3, %v2811_v32  ;;  %v2704_v53 = vpop.permute.xlu0 %2703 }
0x3a35   :  { %v2814_v16 = vrot.slane %v2813_v39, 2  ;;  %v2721_v57 = vmul.f32 %v2704_v53, %v8067_v14 }
0x3a37   :  { %vm2815_vm9 = vcmp.lt.s32.totalorder %v2813_v39, %v2814_v16  ;;  %v8128_v0 = vsub.f32 %v2697_v30, %v2721_v57 }
0x3a38   :  { %v2816_v1 = vsel %vm2815_vm9, %v2813_v39, %v2814_v16 }
0x3a39   :  { %v2817_v51 = vrot.slane %v2816_v1, 1 }
0x3a3b   :  { %vm2818_vm11 = vcmp.lt.s32.totalorder %v2816_v1, %v2817_v51 }
0x3a3c   :  { %v2819_v52 = vsel %vm2818_vm11, %v2816_v1, %v2817_v51 }
0x3a3d   :  { %6037 = vpush %v2819_v52 }
0x3a6e   :  { %s6038_s25 = spop %6037 }
0x3a6f   :  { %v8130_v31 = vstv %s6038_s25 }
0x3a70   :  { %vm2822_vm10 = vcmp.eq.s32.totalorder %v6557_v23, %v8130_v31  ;;  %vm2823_vm13 = vcmp.eq.s32.totalorder %v6560_v24, %v8130_v31  ;;  %vm2824_vm14 = vcmp.eq.s32.totalorder %v6563_v25, %v8130_v31  ;;  %vm2825_vm12 = vcmp.eq.s32.totalorder %v6566_v26, %v8130_v31 }
0x3a71   :  { %v2834_v35 = vsel %vm2822_vm10, %v8128_v0, 0.0  ;;  %v2835_v42 = vsel %vm2823_vm13, %v8091_v33, 0.0  ;;  %v2836_v38 = vsel %vm2824_vm14, %v8080_v2, 0.0  ;;  %v2837_v50 = vsel %vm2825_vm12, %v8099_v45, 0.0 }
0x3a72   :  { %v2838_v14 = vadd.f32 %v2835_v42, %v2834_v35  ;;  %v2881_v7 = vsel %vm2825_vm12, %v8173_v12, %v8099_v45  ;;  %v2880_v41 = vsel %vm2824_vm14, %v8173_v12, %v8080_v2 }
0x3a74   :  { %v2839_v5 = vadd.f32 %v2838_v14, %v2836_v38 }
0x3a76   :  { %v2840_v9 = vadd.f32 %v2839_v5, %v2837_v50 }
0x3a78   :  { %v2841_v6 = vrot.slane %v2840_v9, 4 }
0x3a7a   :  { %v2842_v11 = vadd.f32 %v2841_v6, %v2840_v9 }
0x3a7c   :  { %v2843_v49 = vrot.slane %v2842_v11, 2 }
0x3a7e   :  { %v2844_v10 = vadd.f32 %v2843_v49, %v2842_v11 }
0x3a80   :  { %v2845_v21 = vrot.slane %v2844_v10, 1 }
0x3a82   :  { %v2846_v22 = vadd.f32 %v2845_v21, %v2844_v10 }
0x3a84   :  { %2849 = vrot.lane.b32.xlu1 %v2846_v22, %s6481_s26 }
0x3a88   :  { %2861 = vrot.lane.b32.xlu1 %v2860_v47, %s6481_s26 }
0x3af6   :  { %v2850_v37 = vpop.permute.xlu1 %2849 }
0x3af7   :  { %6039 = vpush %v2850_v37 }
0x3afa   :  { %v2862_v40 = vpop.permute.xlu1 %2861 }
0x3b28   :  { %s6040_s27 = spop %6039 }
0x3b29   :  { %v2853_v18 = vstv %s6040_s27 }
0x3b2a   :  { %6366 = vrcp.f32 %v2853_v18 }
0x3b34   :  { %v6367_v4 = vpop.eup %6366 }
0x3b35   :  { %6041 = vpush %v6367_v4 }
0x3b36   :  { %6043 = vpush %v2862_v40 }
0x3b66   :  { %s6042_s28 = spop %6041 }
0x3b67   :  { %s6044_s29 = spop %6043  ;;  %v2856_v29 = vstv %s6042_s28  ;;  %s6491_s28 = smov 108  }
0x3b68   :  { %v8157_v19 = vstv %s6044_s29  ;;  %v8169_v62 = vmul.f32 %v2856_v29, %v2846_v22 }
0x3b69   :  { %v2869_v13 = vsel %vm2825_vm12, %v8157_v19, %v8099_v45  ;;  %v2868_v58 = vsel %vm2824_vm14, %v8157_v19, %v8080_v2  ;;  %v2867_v2 = vsel %vm2823_vm13, %v8157_v19, %v8091_v33 }
0x3b6a   :  { %2899 = vperm.xlu1 %6303, %v2869_v13   ;;  %2894 = vperm.xlu0 %6302, %v2868_v58   ;;  %v2871_v16 = vsel %vm2742_vm0, 0.0, %v2867_v2  ;;  %v2866_v13 = vsel %vm2822_vm10, %v8157_v19, %v8128_v0 }
0x3be9   :  { %v2900_v44 = vpop.permute.xlu1 %2899  ;;  %v2895_v60 = vpop.permute.xlu0 %2894 }
0x3bea   :  { %v2905_v63 = vmul.f32 %v2900_v44, %v8169_v62  ;;  %v2904_v8 = vmul.f32 %v2895_v60, %v8169_v62 }
0x3bec   :  { %v8187_v36 = vsub.f32 %v2881_v7, %v2905_v63  ;;  %v8189_v28 = vsub.f32 %v2880_v41, %v2904_v8 }
0x3bee   :  { %v2936_v54 = vand.u32 2147483647, %v8189_v28  ;;  %v2937_v55 = vand.u32 2147483647, %v8187_v36 }
0x3bf0   :  { %v2945_v45 = vsel %vm2942_vm15, %v2936_v54, -inf  ;;  %v2946_v3 = vsel %vm2942_vm15, %v2937_v55, -inf }
0x3bf1   :  { %v2948_v32 = vmax.f32 %v2945_v45, %v2946_v3 }
0x3bf3   :  { %v2949_v39 = vmax.f32 %v2943_v48, %v2948_v32  ;;  %v2879_v32 = vsel %vm2823_vm13, %v8173_v12, %v8091_v33 }
0x3bf5   :  { %2950 = vmax.xlane.f32.xlu1 %v2949_v39 }
0x3c06   :  { %2889 = vperm.xlu1 %6303, %v2871_v16   ;;  %v2878_v16 = vsel %vm2822_vm10, %v8173_v12, %v8128_v0 }
0x3c82   :  { %v2951_v1 = vpop.xlane.xlu1 %2950 }
0x3c83   :  { %v2952_v51 = vrot.slane %v2951_v1, 4 }
0x3c85   :  { %v2953_v52 = vmax.f32 %v2951_v1, %v2952_v51 }
0x3c86   :  { %v2890_v45 = vpop.permute.xlu1 %2889 }
0x3c87   :  { %v2954_v53 = vrot.slane %v2953_v52, 2  ;;  %v2903_v3 = vmul.f32 %v2890_v45, %v8169_v62 }
0x3c89   :  { %v2955_v57 = vmax.f32 %v2953_v52, %v2954_v53  ;;  %v2907_v2 = vsub.f32 %v2879_v32, %v2903_v3 }
0x3c8b   :  { %v2956_v30 = vrot.slane %v2955_v57, 1  ;;  %v8237_v52 = vsel %vm2742_vm0, %v8169_v62, %v2907_v2  ;;  %vm3108_vm0 = vcmp.ge.s32.totalorder %v6563_v25, 17 }
0x3c8d   :  { %v2957_v35 = vmax.f32 %v2955_v57, %v2956_v30 }
0x3c8f   :  { %6045 = vpush %v2957_v35 }
0x3cc0   :  { %s6046_s30 = spop %6045 }
0x3cc1   :  { %v2959_v42 = vstv %s6046_s30 }
0x3cc2   :  { %vm5845_vm1 = vcmp.eq.f32.partialorder %v2959_v42, -1.0  ;;  %vm2962_vm2 = vcmp.eq.f32.partialorder %v2936_v54, %v2959_v42  ;;  %vm2963_vm3 = vcmp.eq.f32.partialorder %v2937_v55, %v2959_v42 }
0x3cc3   :  { %v2964_v14 = vsel %vm5845_vm1, %v6557_v23, 32  ;;  %v2965_v38 = vsel %vm5845_vm1, %v6560_v24, 32  ;;  %v2966_v5 = vsel %vm2962_vm2, %v6563_v25, 32  ;;  %v2967_v50 = vsel %vm2963_vm3, %v6566_v26, 32 }
0x3cc4   :  { %v2968_v9 = vsel %vm2942_vm15, %v2964_v14, 2147483647  ;;  %v2969_v6 = vsel %vm2942_vm15, %v2965_v38, 2147483647  ;;  %v2970_v11 = vsel %vm2942_vm15, %v2966_v5, 2147483647 }
0x3cc5   :  { %v2971_v49 = vsel %vm2942_vm15, %v2967_v50, 2147483647  ;;  %vm2972_vm4 = vcmp.lt.s32.totalorder %v2968_v9, %v2969_v6  ;;  %v6484_v50 = vmov 16   ;;  %vm2924_vm15 = vcmp.eq.s32.totalorder %v6563_v25, 16 }
0x3cc6   :  { %v2973_v10 = vsel %vm2972_vm4, %v2968_v9, %v2969_v6  ;;  %vm2974_vm5 = vcmp.lt.s32.totalorder %v2970_v11, %v2971_v49  ;;  %6305 = vset.pattern.permute.xlu1 %v6484_v50  ;;  %vm3122_vm1 = vcmask 146568  }
0x3cc7   :  { %v2975_v21 = vsel %vm2974_vm5, %v2970_v11, %v2971_v49 }
0x3cc8   :  { %vm2976_vm6 = vcmp.lt.s32.totalorder %v2973_v10, %v2975_v21 }
0x3cc9   :  { %v2977_v22 = vsel %vm2976_vm6, %v2973_v10, %v2975_v21 }
0x3cca   :  { %v2979_v47 = vshra.s32 %v2977_v22, 16  ;;  %v2978_v37 = vand.u32 65535, %v2977_v22 }
0x3ccc   :  { %v2981_v15 = vcvt.s32.f32 %v2979_v47  ;;  %v2980_v4 = vcvt.s32.f32 %v2978_v37 }
0x3cce   :  { %2982 = vmin.xlane.f32.xlu0 %v2981_v15 }
0x3d5b   :  { %v2983_v18 = vpop.xlane.xlu0 %2982 }
0x3d5c   :  { %vm2984_vm7 = vcmp.eq.f32.partialorder %v2981_v15, %v2983_v18  ;;  %v2989_v58 = vcvt.f32.s32 %v2983_v18  ;;  %v8283_v18 = vrot.slane %v8189_v28, %v6623_v20 }
0x3d5d   :  { %v2985_v40 = vsel %vm2984_vm7, %v2980_v4, inf }
0x3d5e   :  { %2986 = vmin.xlane.f32.xlu0 %v2985_v40  ;;  %v2990_v44 = vshll.u32 %v2989_v58, 16 }
0x3d74   :  { %2884 = vperm.xlu0 %6302, %v2866_v13  }
0x3d78   :  { %6304 = vset.pattern.permute.xlu0 %v6484_v50 }
0x3deb   :  { %v2987_v29 = vpop.xlane.xlu0 %2986 }
0x3dec   :  { %v2988_v60 = vcvt.f32.s32 %v2987_v29 }
0x3dee   :  { %v2991_v63 = vadd.s32 %v2990_v44, %v2988_v60 }
0x3df0   :  { %v2992_v8 = vrot.slane %v2991_v63, 4 }
0x3df2   :  { %vm2993_vm8 = vcmp.lt.s32.totalorder %v2991_v63, %v2992_v8 }
0x3df3   :  { %v2994_v7 = vsel %vm2993_vm8, %v2991_v63, %v2992_v8  ;;  %v2885_v19 = vpop.permute.xlu0 %2884 }
0x3df4   :  { %v2995_v41 = vrot.slane %v2994_v7, 2  ;;  %v2902_v39 = vmul.f32 %v2885_v19, %v8169_v62 }
0x3df6   :  { %vm2996_vm9 = vcmp.lt.s32.totalorder %v2994_v7, %v2995_v41  ;;  %v8230_v1 = vsub.f32 %v2878_v16, %v2902_v39 }
0x3df7   :  { %v2997_v54 = vsel %vm2996_vm9, %v2994_v7, %v2995_v41 }
0x3df8   :  { %v2998_v55 = vrot.slane %v2997_v54, 1 }
0x3dfa   :  { %vm2999_vm11 = vcmp.lt.s32.totalorder %v2997_v54, %v2998_v55 }
0x3dfb   :  { %v3000_v48 = vsel %vm2999_vm11, %v2997_v54, %v2998_v55  ;;  %v3123_v54 = vsel %vm3122_vm1, -1.0, %v6466_v59 }
0x3dfc   :  { %6047 = vpush %v3000_v48 }
0x3e2d   :  { %s6048_s2 = spop %6047 }
0x3e2e   :  { %v8232_v51 = vstv %s6048_s2 }
0x3e2f   :  { %vm3003_vm13 = vcmp.eq.s32.totalorder %v6557_v23, %v8232_v51  ;;  %vm3004_vm14 = vcmp.eq.s32.totalorder %v6560_v24, %v8232_v51  ;;  %vm3005_vm12 = vcmp.eq.s32.totalorder %v6563_v25, %v8232_v51  ;;  %vm3006_vm10 = vcmp.eq.s32.totalorder %v6566_v26, %v8232_v51 }
0x3e30   :  { %v3015_v33 = vsel %vm3003_vm13, %v8230_v1, 0.0  ;;  %v3016_v0 = vsel %vm3004_vm14, %v8237_v52, 0.0  ;;  %v3017_v62 = vsel %vm3005_vm12, %v8189_v28, 0.0  ;;  %v3018_v53 = vsel %vm3006_vm10, %v8187_v36, 0.0 }
0x3e31   :  { %v3019_v31 = vadd.f32 %v3016_v0, %v3015_v33  ;;  %v3061_v58 = vsel %vm3006_vm10, %v8283_v18, %v8187_v36  ;;  %v3060_v60 = vsel %vm3005_vm12, %v8283_v18, %v8189_v28 }
0x3e33   :  { %v3020_v12 = vadd.f32 %v3019_v31, %v3017_v62 }
0x3e35   :  { %v3021_v57 = vadd.f32 %v3020_v12, %v3018_v53 }
0x3e37   :  { %v3022_v30 = vrot.slane %v3021_v57, 4 }
0x3e39   :  { %v3023_v35 = vadd.f32 %v3022_v30, %v3021_v57 }
0x3e3b   :  { %v3024_v42 = vrot.slane %v3023_v35, 2 }
0x3e3d   :  { %v3025_v14 = vadd.f32 %v3024_v42, %v3023_v35 }
0x3e3f   :  { %v3026_v38 = vrot.slane %v3025_v14, 1 }
0x3e41   :  { %v3027_v5 = vadd.f32 %v3026_v38, %v3025_v14 }
0x3e43   :  { %3030 = vrot.lane.b32.xlu1 %v3027_v5, %s6483_s3 }
0x3e47   :  { %3041 = vrot.lane.b32.xlu1 %v8189_v28, %s6483_s3 }
0x3eb5   :  { %v3031_v9 = vpop.permute.xlu1 %3030 }
0x3eb6   :  { %6049 = vpush %v3031_v9 }
0x3eb9   :  { %v3042_v49 = vpop.permute.xlu1 %3041 }
0x3ee7   :  { %s6050_s4 = spop %6049 }
0x3ee8   :  { %v3034_v6 = vstv %s6050_s4 }
0x3ee9   :  { %6368 = vrcp.f32 %v3034_v6 }
0x3ef3   :  { %v6369_v11 = vpop.eup %6368 }
0x3ef4   :  { %6051 = vpush %v6369_v11 }
0x3ef5   :  { %6053 = vpush %v3042_v49 }
0x3f25   :  { %s6052_s5 = spop %6051 }
0x3f26   :  { %s6054_s6 = spop %6053  ;;  %v3037_v15 = vstv %s6052_s5  ;;  %s6493_s5 = smov 107  }
0x3f27   :  { %v8265_v10 = vstv %s6054_s6  ;;  %v8279_v37 = vmul.f32 %v3037_v15, %v3027_v5 }
0x3f28   :  { %v3049_v21 = vsel %vm3006_vm10, %v8265_v10, %v8187_v36  ;;  %v3048_v22 = vsel %vm3005_vm12, %v8265_v10, %v8189_v28  ;;  %v3046_v3 = vsel %vm3003_vm13, %v8265_v10, %v8230_v1 }
0x3f29   :  { %3079 = vperm.xlu1 %6305, %v3049_v21   ;;  %v3052_v47 = vsel %vm2924_vm15, 0.0, %v3048_v22 }
0x3f2a   :  { %3074 = vperm.xlu0 %6304, %v3052_v47   ;;  %v3047_v47 = vsel %vm3004_vm14, %v8265_v10, %v8237_v52 }
0x3fa8   :  { %v3080_v4 = vpop.permute.xlu1 %3079 }
0x3fa9   :  { %v3085_v40 = vmul.f32 %v3080_v4, %v8279_v37  ;;  %v3075_v13 = vpop.permute.xlu0 %3074 }
0x3faa   :  { %v3084_v29 = vmul.f32 %v3075_v13, %v8279_v37 }
0x3fab   :  { %v8292_v44 = vsub.f32 %v3061_v58, %v3085_v40 }
0x3fac   :  { %v3088_v63 = vsub.f32 %v3060_v60, %v3084_v29 }
0x3fad   :  { %v3117_v36 = vand.u32 2147483647, %v8292_v44 }
0x3fae   :  { %v8302_v8 = vsel %vm2924_vm15, %v8279_v37, %v3088_v63 }
0x3faf   :  { %v3116_v7 = vand.u32 2147483647, %v8302_v8  ;;  %v3126_v28 = vsel %vm3122_vm1, %v3117_v36, -inf }
0x3fb1   :  { %v3120_v41 = vsel %vm3108_vm0, %v3116_v7, -1.0  ;;  %vm3104_vm0 = vcmp.eq.s32.totalorder %v6563_v25, 17 }
0x3fb2   :  { %v3125_v55 = vsel %vm3122_vm1, %v3120_v41, -inf }
0x3fb3   :  { %v3128_v48 = vmax.f32 %v3125_v55, %v3126_v28 }
0x3fb5   :  { %v3129_v45 = vmax.f32 %v3123_v54, %v3128_v48  ;;  %v3058_v48 = vsel %vm3003_vm13, %v8283_v18, %v8230_v1 }
0x3fb7   :  { %3130 = vmax.xlane.f32.xlu1 %v3129_v45  ;;  %v3059_v45 = vsel %vm3004_vm14, %v8283_v18, %v8237_v52 }
0x3fc8   :  { %3064 = vperm.xlu1 %6305, %v3046_v3  }
0x4044   :  { %v3131_v19 = vpop.xlane.xlu1 %3130 }
0x4045   :  { %v3132_v32 = vrot.slane %v3131_v19, 4 }
0x4047   :  { %v3133_v39 = vmax.f32 %v3131_v19, %v3132_v32 }
0x4048   :  { %v3065_v54 = vpop.permute.xlu1 %3064 }
0x4049   :  { %v3134_v2 = vrot.slane %v3133_v39, 2  ;;  %v3082_v10 = vmul.f32 %v3065_v54, %v8279_v37 }
0x404b   :  { %v3135_v16 = vmax.f32 %v3133_v39, %v3134_v2  ;;  %v8341_v3 = vsub.f32 %v3058_v48, %v3082_v10 }
0x404d   :  { %v3136_v33 = vrot.slane %v3135_v16, 1 }
0x404f   :  { %v3137_v0 = vmax.f32 %v3135_v16, %v3136_v33 }
0x4051   :  { %6055 = vpush %v3137_v0 }
0x4082   :  { %s6056_s7 = spop %6055 }
0x4083   :  { %v3139_v31 = vstv %s6056_s7 }
0x4084   :  { %vm5847_vm2 = vcmp.eq.f32.partialorder %v3139_v31, -1.0  ;;  %vm3142_vm3 = vcmp.eq.f32.partialorder %v3120_v41, %v3139_v31  ;;  %vm3143_vm4 = vcmp.eq.f32.partialorder %v3117_v36, %v3139_v31 }
0x4085   :  { %v3144_v62 = vsel %vm5847_vm2, %v6557_v23, 32  ;;  %v3145_v12 = vsel %vm5847_vm2, %v6560_v24, 32  ;;  %v3146_v53 = vsel %vm3142_vm3, %v6563_v25, 32  ;;  %v3147_v57 = vsel %vm3143_vm4, %v6566_v26, 32 }
0x4086   :  { %v3148_v30 = vsel %vm3122_vm1, %v3144_v62, 2147483647  ;;  %v3149_v35 = vsel %vm3122_vm1, %v3145_v12, 2147483647  ;;  %v3150_v42 = vsel %vm3122_vm1, %v3146_v53, 2147483647 }
0x4087   :  { %v3151_v14 = vsel %vm3122_vm1, %v3147_v57, 2147483647  ;;  %vm3152_vm5 = vcmp.lt.s32.totalorder %v3148_v30, %v3149_v35  ;;  %v3221_v53 = vrot.slane %v8302_v8, 1  ;;  %v6486_v57 = vmov 17  }
0x4088   :  { %v3153_v38 = vsel %vm3152_vm5, %v3148_v30, %v3149_v35  ;;  %vm3154_vm6 = vcmp.lt.s32.totalorder %v3150_v42, %v3151_v14  ;;  %6307 = vset.pattern.permute.xlu1 %v6486_v57  ;;  %vm3289_vm1 = vcmp.ge.s32.totalorder %v6563_v25, 18  ;;  %vm3303_vm2 = vcmask 154768  }
0x4089   :  { %v3155_v5 = vsel %vm3154_vm6, %v3150_v42, %v3151_v14 }
0x408a   :  { %vm3156_vm7 = vcmp.lt.s32.totalorder %v3153_v38, %v3155_v5 }
0x408b   :  { %v3157_v50 = vsel %vm3156_vm7, %v3153_v38, %v3155_v5 }
0x408c   :  { %v3159_v9 = vshra.s32 %v3157_v50, 16  ;;  %v3158_v11 = vand.u32 65535, %v3157_v50 }
0x408e   :  { %v3161_v6 = vcvt.s32.f32 %v3159_v9  ;;  %v3160_v21 = vcvt.s32.f32 %v3158_v11 }
0x4090   :  { %3162 = vmin.xlane.f32.xlu0 %v3161_v6 }
0x411d   :  { %v3163_v49 = vpop.xlane.xlu0 %3162 }
0x411e   :  { %vm3164_vm8 = vcmp.eq.f32.partialorder %v3161_v6, %v3163_v49  ;;  %v3169_v15 = vcvt.f32.s32 %v3163_v49  ;;  %v8391_v49 = vrot.slane %v8302_v8, %v6719_v61 }
0x411f   :  { %v3165_v22 = vsel %vm3164_vm8, %v3160_v21, inf }
0x4120   :  { %3166 = vmin.xlane.f32.xlu0 %v3165_v22  ;;  %v3170_v40 = vshll.u32 %v3169_v15, 16 }
0x4136   :  { %3069 = vperm.xlu0 %6304, %v3047_v47  }
0x413a   :  { %6306 = vset.pattern.permute.xlu0 %v6486_v57 }
0x41ad   :  { %v3167_v4 = vpop.xlane.xlu0 %3166 }
0x41ae   :  { %v3168_v13 = vcvt.f32.s32 %v3167_v4 }
0x41b0   :  { %v3171_v58 = vadd.s32 %v3170_v40, %v3168_v13 }
0x41b2   :  { %v3172_v29 = vrot.slane %v3171_v58, 4 }
0x41b4   :  { %vm3173_vm9 = vcmp.lt.s32.totalorder %v3171_v58, %v3172_v29 }
0x41b5   :  { %v3174_v60 = vsel %vm3173_vm9, %v3171_v58, %v3172_v29  ;;  %v3070_v55 = vpop.permute.xlu0 %3069 }
0x41b6   :  { %v3175_v63 = vrot.slane %v3174_v60, 2  ;;  %v3083_v28 = vmul.f32 %v3070_v55, %v8279_v37 }
0x41b8   :  { %vm3176_vm11 = vcmp.lt.s32.totalorder %v3174_v60, %v3175_v63  ;;  %v8343_v19 = vsub.f32 %v3059_v45, %v3083_v28 }
0x41b9   :  { %v3177_v36 = vsel %vm3176_vm11, %v3174_v60, %v3175_v63 }
0x41ba   :  { %v3178_v7 = vrot.slane %v3177_v36, 1 }
0x41bc   :  { %vm3179_vm12 = vcmp.lt.s32.totalorder %v3177_v36, %v3178_v7 }
0x41bd   :  { %v3180_v41 = vsel %vm3179_vm12, %v3177_v36, %v3178_v7  ;;  %v3304_v36 = vsel %vm3303_vm2, -1.0, %v6466_v59 }
0x41be   :  { %6057 = vpush %v3180_v41 }
0x41ef   :  { %s6058_s8 = spop %6057 }
0x41f0   :  { %v8345_v32 = vstv %s6058_s8 }
0x41f1   :  { %vm3183_vm10 = vcmp.eq.s32.totalorder %v6557_v23, %v8345_v32  ;;  %vm3184_vm15 = vcmp.eq.s32.totalorder %v6560_v24, %v8345_v32  ;;  %vm3185_vm13 = vcmp.eq.s32.totalorder %v6563_v25, %v8345_v32  ;;  %vm3186_vm14 = vcmp.eq.s32.totalorder %v6566_v26, %v8345_v32 }
0x41f2   :  { %v3195_v1 = vsel %vm3183_vm10, %v8341_v3, 0.0  ;;  %v3196_v51 = vsel %vm3184_vm15, %v8343_v19, 0.0  ;;  %v3197_v37 = vsel %vm3185_vm13, %v8302_v8, 0.0  ;;  %v3198_v39 = vsel %vm3186_vm14, %v8292_v44, 0.0 }
0x41f3   :  { %v3199_v52 = vadd.f32 %v3196_v51, %v3195_v1  ;;  %v3242_v15 = vsel %vm3186_vm14, %v8391_v49, %v8292_v44  ;;  %v3241_v13 = vsel %vm3185_vm13, %v8391_v49, %v8302_v8 }
0x41f5   :  { %v3200_v18 = vadd.f32 %v3199_v52, %v3197_v37 }
0x41f7   :  { %v3201_v2 = vadd.f32 %v3200_v18, %v3198_v39 }
0x41f9   :  { %v3202_v16 = vrot.slane %v3201_v2, 4 }
0x41fb   :  { %v3203_v33 = vadd.f32 %v3202_v16, %v3201_v2 }
0x41fd   :  { %v3204_v0 = vrot.slane %v3203_v33, 2 }
0x41ff   :  { %v3205_v31 = vadd.f32 %v3204_v0, %v3203_v33 }
0x4201   :  { %v3206_v62 = vrot.slane %v3205_v31, 1 }
0x4203   :  { %v3207_v12 = vadd.f32 %v3206_v62, %v3205_v31 }
0x4205   :  { %3210 = vrot.lane.b32.xlu1 %v3207_v12, %s6485_s9 }
0x4209   :  { %3222 = vrot.lane.b32.xlu1 %v3221_v53, %s6485_s9 }
0x4277   :  { %v3211_v30 = vpop.permute.xlu1 %3210 }
0x4278   :  { %6059 = vpush %v3211_v30 }
0x427b   :  { %v3223_v14 = vpop.permute.xlu1 %3222 }
0x42a9   :  { %s6060_s10 = spop %6059 }
0x42aa   :  { %v3214_v35 = vstv %s6060_s10 }
0x42ab   :  { %6370 = vrcp.f32 %v3214_v35 }
0x42b5   :  { %v6371_v42 = vpop.eup %6370 }
0x42b6   :  { %6061 = vpush %v6371_v42 }
0x42b7   :  { %6063 = vpush %v3223_v14 }
0x42e7   :  { %s6062_s11 = spop %6061 }
0x42e8   :  { %s6064_s12 = spop %6063  ;;  %v3217_v6 = vstv %s6062_s11  ;;  %s6495_s11 = smov 106  }
0x42e9   :  { %v8373_v38 = vstv %s6064_s12  ;;  %v8387_v11 = vmul.f32 %v3217_v6, %v3207_v12 }
0x42ea   :  { %v3230_v5 = vsel %vm3186_vm14, %v8373_v38, %v8292_v44  ;;  %v3229_v50 = vsel %vm3185_vm13, %v8373_v38, %v8302_v8  ;;  %v3227_v55 = vsel %vm3183_vm10, %v8373_v38, %v8341_v3 }
0x42eb   :  { %3260 = vperm.xlu1 %6307, %v3230_v5   ;;  %v3233_v9 = vsel %vm3104_vm0, 0.0, %v3229_v50 }
0x42ec   :  { %3255 = vperm.xlu0 %6306, %v3233_v9   ;;  %v3228_v9 = vsel %vm3184_vm15, %v8373_v38, %v8343_v19 }
0x436a   :  { %v3261_v21 = vpop.permute.xlu1 %3260 }
0x436b   :  { %v3266_v22 = vmul.f32 %v3261_v21, %v8387_v11  ;;  %v3256_v47 = vpop.permute.xlu0 %3255 }
0x436c   :  { %v3265_v4 = vmul.f32 %v3256_v47, %v8387_v11 }
0x436d   :  { %v8400_v40 = vsub.f32 %v3242_v15, %v3266_v22 }
0x436e   :  { %v3269_v58 = vsub.f32 %v3241_v13, %v3265_v4 }
0x436f   :  { %v3298_v44 = vand.u32 2147483647, %v8400_v40 }
0x4370   :  { %v8410_v29 = vsel %vm3104_vm0, %v8387_v11, %v3269_v58 }
0x4371   :  { %v3297_v60 = vand.u32 2147483647, %v8410_v29  ;;  %v3307_v8 = vsel %vm3303_vm2, %v3298_v44, -inf }
0x4373   :  { %v3301_v63 = vsel %vm3289_vm1, %v3297_v60, -1.0  ;;  %vm3285_vm1 = vcmp.eq.s32.totalorder %v6563_v25, 18 }
0x4374   :  { %v3306_v7 = vsel %vm3303_vm2, %v3301_v63, -inf }
0x4375   :  { %v3309_v41 = vmax.f32 %v3306_v7, %v3307_v8 }
0x4377   :  { %v3310_v54 = vmax.f32 %v3304_v36, %v3309_v41  ;;  %v3239_v41 = vsel %vm3183_vm10, %v8391_v49, %v8341_v3 }
0x4379   :  { %3311 = vmax.xlane.f32.xlu1 %v3310_v54  ;;  %v3240_v54 = vsel %vm3184_vm15, %v8391_v49, %v8343_v19 }
0x438a   :  { %3245 = vperm.xlu1 %6307, %v3227_v55  }
0x4406   :  { %v3312_v10 = vpop.xlane.xlu1 %3311 }
0x4407   :  { %v3313_v28 = vrot.slane %v3312_v10, 4 }
0x4409   :  { %v3314_v48 = vmax.f32 %v3312_v10, %v3313_v28 }
0x440a   :  { %v3246_v36 = vpop.permute.xlu1 %3245 }
0x440b   :  { %v3315_v45 = vrot.slane %v3314_v48, 2  ;;  %v3263_v38 = vmul.f32 %v3246_v36, %v8387_v11 }
0x440d   :  { %v3316_v1 = vmax.f32 %v3314_v48, %v3315_v45  ;;  %v8449_v55 = vsub.f32 %v3239_v41, %v3263_v38 }
0x440f   :  { %v3317_v51 = vrot.slane %v3316_v1, 1 }
0x4411   :  { %v3318_v52 = vmax.f32 %v3316_v1, %v3317_v51 }
0x4413   :  { %6065 = vpush %v3318_v52 }
0x4444   :  { %s6066_s13 = spop %6065 }
0x4445   :  { %v3320_v37 = vstv %s6066_s13 }
0x4446   :  { %vm5849_vm3 = vcmp.eq.f32.partialorder %v3320_v37, -1.0  ;;  %vm3323_vm4 = vcmp.eq.f32.partialorder %v3301_v63, %v3320_v37  ;;  %vm3324_vm5 = vcmp.eq.f32.partialorder %v3298_v44, %v3320_v37 }
0x4447   :  { %v3325_v18 = vsel %vm5849_vm3, %v6557_v23, 32  ;;  %v3326_v39 = vsel %vm5849_vm3, %v6560_v24, 32  ;;  %v3327_v2 = vsel %vm3323_vm4, %v6563_v25, 32  ;;  %v3328_v16 = vsel %vm3324_vm5, %v6566_v26, 32 }
0x4448   :  { %v3329_v33 = vsel %vm3303_vm2, %v3325_v18, 2147483647  ;;  %v3330_v0 = vsel %vm3303_vm2, %v3326_v39, 2147483647  ;;  %v3331_v31 = vsel %vm3303_vm2, %v3327_v2, 2147483647 }
0x4449   :  { %v3332_v62 = vsel %vm3303_vm2, %v3328_v16, 2147483647  ;;  %vm3333_vm6 = vcmp.lt.s32.totalorder %v3329_v33, %v3330_v0  ;;  %v3402_v2 = vrot.slane %v8410_v29, 2  ;;  %v6488_v16 = vmov 18  }
0x444a   :  { %v3334_v12 = vsel %vm3333_vm6, %v3329_v33, %v3330_v0  ;;  %vm3335_vm7 = vcmp.lt.s32.totalorder %v3331_v31, %v3332_v62  ;;  %6309 = vset.pattern.permute.xlu1 %v6488_v16  ;;  %vm3470_vm2 = vcmp.ge.s32.totalorder %v6563_v25, 19  ;;  %vm3484_vm3 = vcmask 162968  }
0x444b   :  { %v3336_v53 = vsel %vm3335_vm7, %v3331_v31, %v3332_v62 }
0x444c   :  { %vm3337_vm8 = vcmp.lt.s32.totalorder %v3334_v12, %v3336_v53 }
0x444d   :  { %v3338_v57 = vsel %vm3337_vm8, %v3334_v12, %v3336_v53 }
0x444e   :  { %v3340_v30 = vshra.s32 %v3338_v57, 16  ;;  %v3339_v42 = vand.u32 65535, %v3338_v57 }
0x4450   :  { %v3342_v35 = vcvt.s32.f32 %v3340_v30  ;;  %v3341_v5 = vcvt.s32.f32 %v3339_v42 }
0x4452   :  { %3343 = vmin.xlane.f32.xlu0 %v3342_v35 }
0x44df   :  { %v3344_v14 = vpop.xlane.xlu0 %3343 }
0x44e0   :  { %vm3345_vm9 = vcmp.eq.f32.partialorder %v3342_v35, %v3344_v14  ;;  %v3350_v6 = vcvt.f32.s32 %v3344_v14  ;;  %v8499_v14 = vrot.slane %v8410_v29, %v6815_v43 }
0x44e1   :  { %v3346_v50 = vsel %vm3345_vm9, %v3341_v5, inf }
0x44e2   :  { %3347 = vmin.xlane.f32.xlu0 %v3346_v50  ;;  %v3351_v22 = vshll.u32 %v3350_v6, 16 }
0x44f8   :  { %3250 = vperm.xlu0 %6306, %v3228_v9  }
0x44fc   :  { %6308 = vset.pattern.permute.xlu0 %v6488_v16 }
0x456f   :  { %v3348_v21 = vpop.xlane.xlu0 %3347 }
0x4570   :  { %v3349_v47 = vcvt.f32.s32 %v3348_v21 }
0x4572   :  { %v3352_v15 = vadd.s32 %v3351_v22, %v3349_v47 }
0x4574   :  { %v3353_v4 = vrot.slane %v3352_v15, 4 }
0x4576   :  { %vm3354_vm11 = vcmp.lt.s32.totalorder %v3352_v15, %v3353_v4 }
0x4577   :  { %v3355_v13 = vsel %vm3354_vm11, %v3352_v15, %v3353_v4  ;;  %v3251_v7 = vpop.permute.xlu0 %3250 }
0x4578   :  { %v3356_v58 = vrot.slane %v3355_v13, 2  ;;  %v3264_v8 = vmul.f32 %v3251_v7, %v8387_v11 }
0x457a   :  { %vm3357_vm12 = vcmp.lt.s32.totalorder %v3355_v13, %v3356_v58  ;;  %v8451_v10 = vsub.f32 %v3240_v54, %v3264_v8 }
0x457b   :  { %v3358_v44 = vsel %vm3357_vm12, %v3355_v13, %v3356_v58 }
0x457c   :  { %v3359_v60 = vrot.slane %v3358_v44, 1 }
0x457e   :  { %vm3360_vm13 = vcmp.lt.s32.totalorder %v3358_v44, %v3359_v60 }
0x457f   :  { %v3361_v63 = vsel %vm3360_vm13, %v3358_v44, %v3359_v60  ;;  %v3485_v44 = vsel %vm3484_vm3, -1.0, %v6466_v59 }
0x4580   :  { %6067 = vpush %v3361_v63 }
0x45b1   :  { %s6068_s14 = spop %6067 }
0x45b2   :  { %v8453_v28 = vstv %s6068_s14 }
0x45b3   :  { %vm3364_vm14 = vcmp.eq.s32.totalorder %v6557_v23, %v8453_v28  ;;  %vm3365_vm0 = vcmp.eq.s32.totalorder %v6560_v24, %v8453_v28  ;;  %vm3366_vm10 = vcmp.eq.s32.totalorder %v6563_v25, %v8453_v28  ;;  %vm3367_vm15 = vcmp.eq.s32.totalorder %v6566_v26, %v8453_v28 }
0x45b4   :  { %v3376_v3 = vsel %vm3364_vm14, %v8449_v55, 0.0  ;;  %v3377_v19 = vsel %vm3365_vm0, %v8451_v10, 0.0  ;;  %v3378_v11 = vsel %vm3366_vm10, %v8410_v29, 0.0  ;;  %v3379_v48 = vsel %vm3367_vm15, %v8400_v40, 0.0 }
0x45b5   :  { %v3380_v32 = vadd.f32 %v3377_v19, %v3376_v3  ;;  %v3423_v6 = vsel %vm3367_vm15, %v8499_v14, %v8400_v40  ;;  %v3422_v47 = vsel %vm3366_vm10, %v8499_v14, %v8410_v29 }
0x45b7   :  { %v3381_v49 = vadd.f32 %v3380_v32, %v3378_v11 }
0x45b9   :  { %v3382_v45 = vadd.f32 %v3381_v49, %v3379_v48 }
0x45bb   :  { %v3383_v1 = vrot.slane %v3382_v45, 4 }
0x45bd   :  { %v3384_v51 = vadd.f32 %v3383_v1, %v3382_v45 }
0x45bf   :  { %v3385_v52 = vrot.slane %v3384_v51, 2 }
0x45c1   :  { %v3386_v37 = vadd.f32 %v3385_v52, %v3384_v51 }
0x45c3   :  { %v3387_v18 = vrot.slane %v3386_v37, 1 }
0x45c5   :  { %v3388_v39 = vadd.f32 %v3387_v18, %v3386_v37 }
0x45c7   :  { %3391 = vrot.lane.b32.xlu1 %v3388_v39, %s6487_s15 }
0x45cb   :  { %3403 = vrot.lane.b32.xlu1 %v3402_v2, %s6487_s15 }
0x4639   :  { %v3392_v33 = vpop.permute.xlu1 %3391 }
0x463a   :  { %6069 = vpush %v3392_v33 }
0x463d   :  { %v3404_v62 = vpop.permute.xlu1 %3403 }
0x466b   :  { %s6070_s18 = spop %6069 }
0x466c   :  { %v3395_v0 = vstv %s6070_s18 }
0x466d   :  { %6372 = vrcp.f32 %v3395_v0 }
0x4677   :  { %v6373_v31 = vpop.eup %6372 }
0x4678   :  { %6071 = vpush %v6373_v31 }
0x4679   :  { %6073 = vpush %v3404_v62 }
0x46a9   :  { %s6072_s19 = spop %6071 }
0x46aa   :  { %s6074_s0 = spop %6073  ;;  %v3398_v35 = vstv %s6072_s19  ;;  %s6497_s19 = smov 105  }
0x46ab   :  { %v8481_v12 = vstv %s6074_s0  ;;  %v8495_v42 = vmul.f32 %v3398_v35, %v3388_v39 }
0x46ac   :  { %v3411_v53 = vsel %vm3367_vm15, %v8481_v12, %v8400_v40  ;;  %v3410_v57 = vsel %vm3366_vm10, %v8481_v12, %v8410_v29  ;;  %v3408_v7 = vsel %vm3364_vm14, %v8481_v12, %v8449_v55 }
0x46ad   :  { %3441 = vperm.xlu1 %6309, %v3411_v53   ;;  %v3414_v30 = vsel %vm3285_vm1, 0.0, %v3410_v57 }
0x46ae   :  { %3436 = vperm.xlu0 %6308, %v3414_v30   ;;  %v3409_v30 = vsel %vm3365_vm0, %v8481_v12, %v8451_v10 }
0x472c   :  { %v3442_v5 = vpop.permute.xlu1 %3441 }
0x472d   :  { %v3447_v50 = vmul.f32 %v3442_v5, %v8495_v42  ;;  %v3437_v9 = vpop.permute.xlu0 %3436 }
0x472e   :  { %v3446_v21 = vmul.f32 %v3437_v9, %v8495_v42 }
0x472f   :  { %v8508_v22 = vsub.f32 %v3423_v6, %v3447_v50 }
0x4730   :  { %v3450_v15 = vsub.f32 %v3422_v47, %v3446_v21 }
0x4731   :  { %v3479_v40 = vand.u32 2147483647, %v8508_v22 }
0x4732   :  { %v8518_v4 = vsel %vm3285_vm1, %v8495_v42, %v3450_v15 }
0x4733   :  { %v3478_v13 = vand.u32 2147483647, %v8518_v4  ;;  %v3488_v29 = vsel %vm3484_vm3, %v3479_v40, -inf }
0x4735   :  { %v3482_v58 = vsel %vm3470_vm2, %v3478_v13, -1.0  ;;  %vm3466_vm2 = vcmp.eq.s32.totalorder %v6563_v25, 19 }
0x4736   :  { %v3487_v60 = vsel %vm3484_vm3, %v3482_v58, -inf }
0x4737   :  { %v3490_v63 = vmax.f32 %v3487_v60, %v3488_v29 }
0x4739   :  { %v3491_v36 = vmax.f32 %v3485_v44, %v3490_v63  ;;  %v3420_v63 = vsel %vm3364_vm14, %v8499_v14, %v8449_v55 }
0x473b   :  { %3492 = vmax.xlane.f32.xlu1 %v3491_v36  ;;  %v3421_v36 = vsel %vm3365_vm0, %v8499_v14, %v8451_v10 }
0x474c   :  { %3426 = vperm.xlu1 %6309, %v3408_v7  }
0x47c8   :  { %v3493_v38 = vpop.xlane.xlu1 %3492 }
0x47c9   :  { %v3494_v8 = vrot.slane %v3493_v38, 4 }
0x47cb   :  { %v3495_v41 = vmax.f32 %v3493_v38, %v3494_v8 }
0x47cc   :  { %v3427_v44 = vpop.permute.xlu1 %3426 }
0x47cd   :  { %v3496_v54 = vrot.slane %v3495_v41, 2  ;;  %v3444_v12 = vmul.f32 %v3427_v44, %v8495_v42 }
0x47cf   :  { %v3497_v3 = vmax.f32 %v3495_v41, %v3496_v54  ;;  %v8557_v7 = vsub.f32 %v3420_v63, %v3444_v12 }
0x47d1   :  { %v3498_v19 = vrot.slane %v3497_v3, 1 }
0x47d3   :  { %v3499_v32 = vmax.f32 %v3497_v3, %v3498_v19 }
0x47d5   :  { %6075 = vpush %v3499_v32 }
0x4806   :  { %s6076_s20 = spop %6075 }
0x4807   :  { %v3501_v11 = vstv %s6076_s20 }
0x4808   :  { %vm5851_vm4 = vcmp.eq.f32.partialorder %v3501_v11, -1.0  ;;  %vm3504_vm5 = vcmp.eq.f32.partialorder %v3482_v58, %v3501_v11  ;;  %vm3505_vm6 = vcmp.eq.f32.partialorder %v3479_v40, %v3501_v11 }
0x4809   :  { %v3506_v49 = vsel %vm5851_vm4, %v6557_v23, 32  ;;  %v3507_v48 = vsel %vm5851_vm4, %v6560_v24, 32  ;;  %v3508_v45 = vsel %vm3504_vm5, %v6563_v25, 32  ;;  %v3509_v1 = vsel %vm3505_vm6, %v6566_v26, 32 }
0x480a   :  { %v3510_v51 = vsel %vm3484_vm3, %v3506_v49, 2147483647  ;;  %v3511_v52 = vsel %vm3484_vm3, %v3507_v48, 2147483647  ;;  %v3512_v37 = vsel %vm3484_vm3, %v3508_v45, 2147483647 }
0x480b   :  { %v3513_v18 = vsel %vm3484_vm3, %v3509_v1, 2147483647  ;;  %vm3514_vm7 = vcmp.lt.s32.totalorder %v3510_v51, %v3511_v52  ;;  %v3583_v45 = vrot.slane %v8518_v4, 3  ;;  %v6490_v1 = vmov 19  }
0x480c   :  { %v3515_v39 = vsel %vm3514_vm7, %v3510_v51, %v3511_v52  ;;  %vm3516_vm8 = vcmp.lt.s32.totalorder %v3512_v37, %v3513_v18  ;;  %6311 = vset.pattern.permute.xlu1 %v6490_v1  ;;  %vm3651_vm3 = vcmp.ge.s32.totalorder %v6563_v25, 20  ;;  %vm3665_vm4 = vcmask 171168  }
0x480d   :  { %v3517_v2 = vsel %vm3516_vm8, %v3512_v37, %v3513_v18 }
0x480e   :  { %vm3518_vm9 = vcmp.lt.s32.totalorder %v3515_v39, %v3517_v2 }
0x480f   :  { %v3519_v16 = vsel %vm3518_vm9, %v3515_v39, %v3517_v2 }
0x4810   :  { %v3521_v33 = vshra.s32 %v3519_v16, 16  ;;  %v3520_v31 = vand.u32 65535, %v3519_v16 }
0x4812   :  { %v3523_v0 = vcvt.s32.f32 %v3521_v33  ;;  %v3522_v53 = vcvt.s32.f32 %v3520_v31 }
0x4814   :  { %3524 = vmin.xlane.f32.xlu0 %v3523_v0 }
0x48a1   :  { %v3525_v62 = vpop.xlane.xlu0 %3524 }
0x48a2   :  { %vm3526_vm11 = vcmp.eq.f32.partialorder %v3523_v0, %v3525_v62  ;;  %v3531_v35 = vcvt.f32.s32 %v3525_v62  ;;  %v8607_v62 = vrot.slane %v8518_v4, %v6911_v27 }
0x48a3   :  { %v3527_v57 = vsel %vm3526_vm11, %v3522_v53, inf }
0x48a4   :  { %3528 = vmin.xlane.f32.xlu0 %v3527_v57  ;;  %v3532_v50 = vshll.u32 %v3531_v35, 16 }
0x48ba   :  { %3431 = vperm.xlu0 %6308, %v3409_v30  }
0x48be   :  { %6310 = vset.pattern.permute.xlu0 %v6490_v1 }
0x4931   :  { %v3529_v5 = vpop.xlane.xlu0 %3528 }
0x4932   :  { %v3530_v9 = vcvt.f32.s32 %v3529_v5 }
0x4934   :  { %v3533_v6 = vadd.s32 %v3532_v50, %v3530_v9 }
0x4936   :  { %v3534_v21 = vrot.slane %v3533_v6, 4 }
0x4938   :  { %vm3535_vm12 = vcmp.lt.s32.totalorder %v3533_v6, %v3534_v21 }
0x4939   :  { %v3536_v47 = vsel %vm3535_vm12, %v3533_v6, %v3534_v21  ;;  %v3432_v60 = vpop.permute.xlu0 %3431 }
0x493a   :  { %v3537_v15 = vrot.slane %v3536_v47, 2  ;;  %v3445_v29 = vmul.f32 %v3432_v60, %v8495_v42 }
0x493c   :  { %vm3538_vm13 = vcmp.lt.s32.totalorder %v3536_v47, %v3537_v15  ;;  %v8559_v38 = vsub.f32 %v3421_v36, %v3445_v29 }
0x493d   :  { %v3539_v40 = vsel %vm3538_vm13, %v3536_v47, %v3537_v15 }
0x493e   :  { %v3540_v13 = vrot.slane %v3539_v40, 1 }
0x4940   :  { %vm3541_vm10 = vcmp.lt.s32.totalorder %v3539_v40, %v3540_v13 }
0x4941   :  { %v3542_v58 = vsel %vm3541_vm10, %v3539_v40, %v3540_v13  ;;  %v3666_v40 = vsel %vm3665_vm4, -1.0, %v6466_v59 }
0x4942   :  { %6077 = vpush %v3542_v58 }
0x4973   :  { %s6078_s21 = spop %6077 }
0x4974   :  { %v8561_v8 = vstv %s6078_s21 }
0x4975   :  { %vm3545_vm15 = vcmp.eq.s32.totalorder %v6557_v23, %v8561_v8  ;;  %vm3546_vm1 = vcmp.eq.s32.totalorder %v6560_v24, %v8561_v8  ;;  %vm3547_vm14 = vcmp.eq.s32.totalorder %v6563_v25, %v8561_v8  ;;  %vm3548_vm0 = vcmp.eq.s32.totalorder %v6566_v26, %v8561_v8 }
0x4976   :  { %v3557_v55 = vsel %vm3545_vm15, %v8557_v7, 0.0  ;;  %v3558_v10 = vsel %vm3546_vm1, %v8559_v38, 0.0  ;;  %v3559_v42 = vsel %vm3547_vm14, %v8518_v4, 0.0  ;;  %v3560_v41 = vsel %vm3548_vm0, %v8508_v22, 0.0 }
0x4977   :  { %v3561_v28 = vadd.f32 %v3558_v10, %v3557_v55  ;;  %v3604_v35 = vsel %vm3548_vm0, %v8607_v62, %v8508_v22  ;;  %v3603_v9 = vsel %vm3547_vm14, %v8607_v62, %v8518_v4 }
0x4979   :  { %v3562_v14 = vadd.f32 %v3561_v28, %v3559_v42 }
0x497b   :  { %v3563_v54 = vadd.f32 %v3562_v14, %v3560_v41 }
0x497d   :  { %v3564_v3 = vrot.slane %v3563_v54, 4 }
0x497f   :  { %v3565_v19 = vadd.f32 %v3564_v3, %v3563_v54 }
0x4981   :  { %v3566_v32 = vrot.slane %v3565_v19, 2 }
0x4983   :  { %v3567_v11 = vadd.f32 %v3566_v32, %v3565_v19 }
0x4985   :  { %v3568_v49 = vrot.slane %v3567_v11, 1 }
0x4987   :  { %v3569_v48 = vadd.f32 %v3568_v49, %v3567_v11 }
0x4989   :  { %3572 = vrot.lane.b32.xlu1 %v3569_v48, %s6489_s22 }
0x498d   :  { %3584 = vrot.lane.b32.xlu1 %v3583_v45, %s6489_s22 }
0x49fb   :  { %v3573_v51 = vpop.permute.xlu1 %3572 }
0x49fc   :  { %6079 = vpush %v3573_v51 }
0x49ff   :  { %v3585_v18 = vpop.permute.xlu1 %3584 }
0x4a2d   :  { %s6080_s23 = spop %6079 }
0x4a2e   :  { %v3576_v52 = vstv %s6080_s23  ;;  %s6499_s23 = smov 104  }
0x4a2f   :  { %6374 = vrcp.f32 %v3576_v52 }
0x4a39   :  { %v6375_v37 = vpop.eup %6374 }
0x4a3a   :  { %6081 = vpush %v6375_v37 }
0x4a3b   :  { %6083 = vpush %v3585_v18 }
0x4a6b   :  { %s6082_s24 = spop %6081 }
0x4a6c   :  { %s6084_s25 = spop %6083  ;;  %v3579_v0 = vstv %s6082_s24 }
0x4a6d   :  { %v8589_v39 = vstv %s6084_s25  ;;  %v8603_v31 = vmul.f32 %v3579_v0, %v3569_v48 }
0x4a6e   :  { %v3592_v2 = vsel %vm3548_vm0, %v8589_v39, %v8508_v22  ;;  %v3591_v16 = vsel %vm3547_vm14, %v8589_v39, %v8518_v4  ;;  %v3589_v60 = vsel %vm3545_vm15, %v8589_v39, %v8557_v7 }
0x4a6f   :  { %3622 = vperm.xlu1 %6311, %v3592_v2   ;;  %v3595_v33 = vsel %vm3466_vm2, 0.0, %v3591_v16 }
0x4a70   :  { %3617 = vperm.xlu0 %6310, %v3595_v33   ;;  %v3590_v33 = vsel %vm3546_vm1, %v8589_v39, %v8559_v38 }
0x4aee   :  { %v3623_v53 = vpop.permute.xlu1 %3622 }
0x4aef   :  { %v3628_v57 = vmul.f32 %v3623_v53, %v8603_v31  ;;  %v3618_v30 = vpop.permute.xlu0 %3617 }
0x4af0   :  { %v3627_v5 = vmul.f32 %v3618_v30, %v8603_v31 }
0x4af1   :  { %v8616_v50 = vsub.f32 %v3604_v35, %v3628_v57 }
0x4af2   :  { %v3631_v6 = vsub.f32 %v3603_v9, %v3627_v5 }
0x4af3   :  { %v3660_v22 = vand.u32 2147483647, %v8616_v50 }
0x4af4   :  { %v8626_v21 = vsel %vm3466_vm2, %v8603_v31, %v3631_v6 }
0x4af5   :  { %v3659_v47 = vand.u32 2147483647, %v8626_v21  ;;  %v3669_v4 = vsel %vm3665_vm4, %v3660_v22, -inf }
0x4af7   :  { %v3663_v15 = vsel %vm3651_vm3, %v3659_v47, -1.0  ;;  %vm3647_vm3 = vcmp.eq.s32.totalorder %v6563_v25, 20 }
0x4af8   :  { %v3668_v13 = vsel %vm3665_vm4, %v3663_v15, -inf }
0x4af9   :  { %v3671_v58 = vmax.f32 %v3668_v13, %v3669_v4 }
0x4afb   :  { %v3672_v44 = vmax.f32 %v3666_v40, %v3671_v58  ;;  %v3601_v58 = vsel %vm3545_vm15, %v8607_v62, %v8557_v7 }
0x4afd   :  { %3673 = vmax.xlane.f32.xlu1 %v3672_v44  ;;  %v3602_v44 = vsel %vm3546_vm1, %v8607_v62, %v8559_v38 }
0x4b0e   :  { %3607 = vperm.xlu1 %6311, %v3589_v60  }
0x4b8a   :  { %v3674_v12 = vpop.xlane.xlu1 %3673 }
0x4b8b   :  { %v3675_v29 = vrot.slane %v3674_v12, 4 }
0x4b8d   :  { %v3676_v63 = vmax.f32 %v3674_v12, %v3675_v29 }
0x4b8e   :  { %v3608_v40 = vpop.permute.xlu1 %3607 }
0x4b8f   :  { %v3677_v36 = vrot.slane %v3676_v63, 2  ;;  %v3625_v39 = vmul.f32 %v3608_v40, %v8603_v31 }
0x4b91   :  { %v3678_v55 = vmax.f32 %v3676_v63, %v3677_v36  ;;  %v8665_v60 = vsub.f32 %v3601_v58, %v3625_v39 }
0x4b93   :  { %v3679_v10 = vrot.slane %v3678_v55, 1 }
0x4b95   :  { %v3680_v28 = vmax.f32 %v3678_v55, %v3679_v10 }
0x4b97   :  { %6085 = vpush %v3680_v28 }
0x4bc8   :  { %s6086_s26 = spop %6085 }
0x4bc9   :  { %v3682_v42 = vstv %s6086_s26 }
0x4bca   :  { %vm5853_vm5 = vcmp.eq.f32.partialorder %v3682_v42, -1.0  ;;  %vm3685_vm6 = vcmp.eq.f32.partialorder %v3663_v15, %v3682_v42  ;;  %vm3686_vm7 = vcmp.eq.f32.partialorder %v3660_v22, %v3682_v42 }
0x4bcb   :  { %v3687_v14 = vsel %vm5853_vm5, %v6557_v23, 32  ;;  %v3688_v41 = vsel %vm5853_vm5, %v6560_v24, 32  ;;  %v3689_v54 = vsel %vm3685_vm6, %v6563_v25, 32  ;;  %v3690_v3 = vsel %vm3686_vm7, %v6566_v26, 32 }
0x4bcc   :  { %v3691_v19 = vsel %vm3665_vm4, %v3687_v14, 2147483647  ;;  %v3692_v32 = vsel %vm3665_vm4, %v3688_v41, 2147483647  ;;  %v3693_v11 = vsel %vm3665_vm4, %v3689_v54, 2147483647 }
0x4bcd   :  { %v3694_v49 = vsel %vm3665_vm4, %v3690_v3, 2147483647  ;;  %vm3695_vm8 = vcmp.lt.s32.totalorder %v3691_v19, %v3692_v32  ;;  %v3764_v54 = vrot.slane %v8626_v21, 4  ;;  %v6492_v3 = vmov 20  }
0x4bce   :  { %v3696_v48 = vsel %vm3695_vm8, %v3691_v19, %v3692_v32  ;;  %vm3697_vm9 = vcmp.lt.s32.totalorder %v3693_v11, %v3694_v49  ;;  %6313 = vset.pattern.permute.xlu1 %v6492_v3  ;;  %vm3832_vm4 = vcmp.ge.s32.totalorder %v6563_v25, 21  ;;  %vm3846_vm5 = vcmask 179368  }
0x4bcf   :  { %v3698_v45 = vsel %vm3697_vm9, %v3693_v11, %v3694_v49 }
0x4bd0   :  { %vm3699_vm11 = vcmp.lt.s32.totalorder %v3696_v48, %v3698_v45 }
0x4bd1   :  { %v3700_v1 = vsel %vm3699_vm11, %v3696_v48, %v3698_v45 }
0x4bd2   :  { %v3702_v51 = vshra.s32 %v3700_v1, 16  ;;  %v3701_v37 = vand.u32 65535, %v3700_v1 }
0x4bd4   :  { %v3704_v52 = vcvt.s32.f32 %v3702_v51  ;;  %v3703_v2 = vcvt.s32.f32 %v3701_v37 }
0x4bd6   :  { %3705 = vmin.xlane.f32.xlu0 %v3704_v52 }
0x4c63   :  { %v3706_v18 = vpop.xlane.xlu0 %3705 }
0x4c64   :  { %vm3707_vm12 = vcmp.eq.f32.partialorder %v3704_v52, %v3706_v18  ;;  %v3712_v0 = vcvt.f32.s32 %v3706_v18  ;;  %v8715_v18 = vrot.slane %v8626_v21, %v7007_v17 }
0x4c65   :  { %v3708_v16 = vsel %vm3707_vm12, %v3703_v2, inf }
0x4c66   :  { %3709 = vmin.xlane.f32.xlu0 %v3708_v16  ;;  %v3713_v57 = vshll.u32 %v3712_v0, 16 }
0x4c7c   :  { %3612 = vperm.xlu0 %6310, %v3590_v33  }
0x4c80   :  { %6312 = vset.pattern.permute.xlu0 %v6492_v3 }
0x4cf3   :  { %v3710_v53 = vpop.xlane.xlu0 %3709 }
0x4cf4   :  { %v3711_v30 = vcvt.f32.s32 %v3710_v53 }
0x4cf6   :  { %v3714_v35 = vadd.s32 %v3713_v57, %v3711_v30 }
0x4cf8   :  { %v3715_v5 = vrot.slane %v3714_v35, 4 }
0x4cfa   :  { %vm3716_vm13 = vcmp.lt.s32.totalorder %v3714_v35, %v3715_v5 }
0x4cfb   :  { %v3717_v9 = vsel %vm3716_vm13, %v3714_v35, %v3715_v5  ;;  %v3613_v13 = vpop.permute.xlu0 %3612 }
0x4cfc   :  { %v3718_v6 = vrot.slane %v3717_v9, 2  ;;  %v3626_v4 = vmul.f32 %v3613_v13, %v8603_v31 }
0x4cfe   :  { %vm3719_vm10 = vcmp.lt.s32.totalorder %v3717_v9, %v3718_v6  ;;  %v8667_v12 = vsub.f32 %v3602_v44, %v3626_v4 }
0x4cff   :  { %v3720_v22 = vsel %vm3719_vm10, %v3717_v9, %v3718_v6 }
0x4d00   :  { %v3721_v47 = vrot.slane %v3720_v22, 1 }
0x4d02   :  { %vm3722_vm14 = vcmp.lt.s32.totalorder %v3720_v22, %v3721_v47 }
0x4d03   :  { %v3723_v15 = vsel %vm3722_vm14, %v3720_v22, %v3721_v47  ;;  %v3847_v22 = vsel %vm3846_vm5, -1.0, %v6466_v59 }
0x4d04   :  { %6087 = vpush %v3723_v15 }
0x4d35   :  { %s6088_s27 = spop %6087 }
0x4d36   :  { %v8669_v29 = vstv %s6088_s27 }
0x4d37   :  { %vm3726_vm0 = vcmp.eq.s32.totalorder %v6557_v23, %v8669_v29  ;;  %vm3727_vm2 = vcmp.eq.s32.totalorder %v6560_v24, %v8669_v29  ;;  %vm3728_vm15 = vcmp.eq.s32.totalorder %v6563_v25, %v8669_v29  ;;  %vm3729_vm1 = vcmp.eq.s32.totalorder %v6566_v26, %v8669_v29 }
0x4d38   :  { %v3738_v7 = vsel %vm3726_vm0, %v8665_v60, 0.0  ;;  %v3739_v38 = vsel %vm3727_vm2, %v8667_v12, 0.0  ;;  %v3740_v31 = vsel %vm3728_vm15, %v8626_v21, 0.0  ;;  %v3741_v63 = vsel %vm3729_vm1, %v8616_v50, 0.0 }
0x4d39   :  { %v3742_v8 = vadd.f32 %v3739_v38, %v3738_v7  ;;  %v3785_v0 = vsel %vm3729_vm1, %v8715_v18, %v8616_v50  ;;  %v3784_v30 = vsel %vm3728_vm15, %v8715_v18, %v8626_v21 }
0x4d3b   :  { %v3743_v62 = vadd.f32 %v3742_v8, %v3740_v31 }
0x4d3d   :  { %v3744_v36 = vadd.f32 %v3743_v62, %v3741_v63 }
0x4d3f   :  { %v3745_v55 = vrot.slane %v3744_v36, 4 }
0x4d41   :  { %v3746_v10 = vadd.f32 %v3745_v55, %v3744_v36 }
0x4d43   :  { %v3747_v28 = vrot.slane %v3746_v10, 2 }
0x4d45   :  { %v3748_v42 = vadd.f32 %v3747_v28, %v3746_v10 }
0x4d47   :  { %v3749_v14 = vrot.slane %v3748_v42, 1 }
0x4d49   :  { %v3750_v41 = vadd.f32 %v3749_v14, %v3748_v42 }
0x4d4b   :  { %3753 = vrot.lane.b32.xlu1 %v3750_v41, %s6491_s28 }
0x4d4f   :  { %3765 = vrot.lane.b32.xlu1 %v3764_v54, %s6491_s28 }
0x4dbd   :  { %v3754_v19 = vpop.permute.xlu1 %3753 }
0x4dbe   :  { %6089 = vpush %v3754_v19 }
0x4dc1   :  { %v3766_v49 = vpop.permute.xlu1 %3765 }
0x4def   :  { %s6090_s29 = spop %6089 }
0x4df0   :  { %v3757_v32 = vstv %s6090_s29  ;;  %s6501_s29 = smov 103  }
0x4df1   :  { %6376 = vrcp.f32 %v3757_v32 }
0x4dfb   :  { %v6377_v11 = vpop.eup %6376 }
0x4dfc   :  { %6091 = vpush %v6377_v11 }
0x4dfd   :  { %6093 = vpush %v3766_v49 }
0x4e2d   :  { %s6092_s30 = spop %6091 }
0x4e2e   :  { %s6094_s2 = spop %6093  ;;  %v3760_v52 = vstv %s6092_s30 }
0x4e2f   :  { %v8697_v48 = vstv %s6094_s2  ;;  %v8711_v37 = vmul.f32 %v3760_v52, %v3750_v41 }
0x4e30   :  { %v3773_v45 = vsel %vm3729_vm1, %v8697_v48, %v8616_v50  ;;  %v3772_v1 = vsel %vm3728_vm15, %v8697_v48, %v8626_v21  ;;  %v3770_v13 = vsel %vm3726_vm0, %v8697_v48, %v8665_v60 }
0x4e31   :  { %3803 = vperm.xlu1 %6313, %v3773_v45   ;;  %v3776_v51 = vsel %vm3647_vm3, 0.0, %v3772_v1 }
0x4e32   :  { %3798 = vperm.xlu0 %6312, %v3776_v51   ;;  %v3771_v51 = vsel %vm3727_vm2, %v8697_v48, %v8667_v12 }
0x4eb0   :  { %v3804_v2 = vpop.permute.xlu1 %3803 }
0x4eb1   :  { %v3809_v16 = vmul.f32 %v3804_v2, %v8711_v37  ;;  %v3799_v33 = vpop.permute.xlu0 %3798 }
0x4eb2   :  { %v3808_v53 = vmul.f32 %v3799_v33, %v8711_v37 }
0x4eb3   :  { %v8724_v57 = vsub.f32 %v3785_v0, %v3809_v16 }
0x4eb4   :  { %v3812_v35 = vsub.f32 %v3784_v30, %v3808_v53 }
0x4eb5   :  { %v3841_v50 = vand.u32 2147483647, %v8724_v57 }
0x4eb6   :  { %v8734_v5 = vsel %vm3647_vm3, %v8711_v37, %v3812_v35 }
0x4eb7   :  { %v3840_v9 = vand.u32 2147483647, %v8734_v5  ;;  %v3850_v21 = vsel %vm3846_vm5, %v3841_v50, -inf }
0x4eb9   :  { %v3844_v6 = vsel %vm3832_vm4, %v3840_v9, -1.0  ;;  %vm3828_vm4 = vcmp.eq.s32.totalorder %v6563_v25, 21 }
0x4eba   :  { %v3849_v47 = vsel %vm3846_vm5, %v3844_v6, -inf }
0x4ebb   :  { %v3852_v15 = vmax.f32 %v3849_v47, %v3850_v21 }
0x4ebd   :  { %v3853_v40 = vmax.f32 %v3847_v22, %v3852_v15  ;;  %v3782_v15 = vsel %vm3726_vm0, %v8715_v18, %v8665_v60 }
0x4ebf   :  { %3854 = vmax.xlane.f32.xlu1 %v3853_v40  ;;  %v3783_v40 = vsel %vm3727_vm2, %v8715_v18, %v8667_v12 }
0x4ed0   :  { %3788 = vperm.xlu1 %6313, %v3770_v13  }
0x4f4c   :  { %v3855_v39 = vpop.xlane.xlu1 %3854 }
0x4f4d   :  { %v3856_v4 = vrot.slane %v3855_v39, 4 }
0x4f4f   :  { %v3857_v58 = vmax.f32 %v3855_v39, %v3856_v4 }
0x4f50   :  { %v3789_v22 = vpop.permute.xlu1 %3788 }
0x4f51   :  { %v3858_v44 = vrot.slane %v3857_v58, 2  ;;  %v3806_v48 = vmul.f32 %v3789_v22, %v8711_v37 }
0x4f53   :  { %v3859_v7 = vmax.f32 %v3857_v58, %v3858_v44  ;;  %v8773_v13 = vsub.f32 %v3782_v15, %v3806_v48 }
0x4f55   :  { %v3860_v38 = vrot.slane %v3859_v7, 1 }
0x4f57   :  { %v3861_v8 = vmax.f32 %v3859_v7, %v3860_v38 }
0x4f59   :  { %6095 = vpush %v3861_v8 }
0x4f8a   :  { %s6096_s3 = spop %6095 }
0x4f8b   :  { %v3863_v31 = vstv %s6096_s3 }
0x4f8c   :  { %vm5855_vm6 = vcmp.eq.f32.partialorder %v3863_v31, -1.0  ;;  %vm3866_vm7 = vcmp.eq.f32.partialorder %v3844_v6, %v3863_v31  ;;  %vm3867_vm8 = vcmp.eq.f32.partialorder %v3841_v50, %v3863_v31 }
0x4f8d   :  { %v3868_v62 = vsel %vm5855_vm6, %v6557_v23, 32  ;;  %v3869_v63 = vsel %vm5855_vm6, %v6560_v24, 32  ;;  %v3870_v36 = vsel %vm3866_vm7, %v6563_v25, 32  ;;  %v3871_v55 = vsel %vm3867_vm8, %v6566_v26, 32 }
0x4f8e   :  { %v3872_v10 = vsel %vm3846_vm5, %v3868_v62, 2147483647  ;;  %v3873_v28 = vsel %vm3846_vm5, %v3869_v63, 2147483647  ;;  %v3874_v42 = vsel %vm3846_vm5, %v3870_v36, 2147483647 }
0x4f8f   :  { %v3875_v14 = vsel %vm3846_vm5, %v3871_v55, 2147483647  ;;  %vm3876_vm9 = vcmp.lt.s32.totalorder %v3872_v10, %v3873_v28  ;;  %v3945_v36 = vrot.slane %v8734_v5, 5  ;;  %v6494_v55 = vmov 21  }
0x4f90   :  { %v3877_v41 = vsel %vm3876_vm9, %v3872_v10, %v3873_v28  ;;  %vm3878_vm11 = vcmp.lt.s32.totalorder %v3874_v42, %v3875_v14  ;;  %6315 = vset.pattern.permute.xlu1 %v6494_v55  ;;  %vm4013_vm5 = vcmp.ge.s32.totalorder %v6563_v25, 22  ;;  %vm4027_vm6 = vcmask 187568  }
0x4f91   :  { %v3879_v54 = vsel %vm3878_vm11, %v3874_v42, %v3875_v14 }
0x4f92   :  { %vm3880_vm12 = vcmp.lt.s32.totalorder %v3877_v41, %v3879_v54 }
0x4f93   :  { %v3881_v3 = vsel %vm3880_vm12, %v3877_v41, %v3879_v54 }
0x4f94   :  { %v3883_v19 = vshra.s32 %v3881_v3, 16  ;;  %v3882_v11 = vand.u32 65535, %v3881_v3 }
0x4f96   :  { %v3885_v32 = vcvt.s32.f32 %v3883_v19  ;;  %v3884_v45 = vcvt.s32.f32 %v3882_v11 }
0x4f98   :  { %3886 = vmin.xlane.f32.xlu0 %v3885_v32 }
0x5025   :  { %v3887_v49 = vpop.xlane.xlu0 %3886 }
0x5026   :  { %vm3888_vm13 = vcmp.eq.f32.partialorder %v3885_v32, %v3887_v49  ;;  %v3893_v52 = vcvt.f32.s32 %v3887_v49  ;;  %v8823_v49 = vrot.slane %v8734_v5, %v7103_v56 }
0x5027   :  { %v3889_v1 = vsel %vm3888_vm13, %v3884_v45, inf }
0x5028   :  { %3890 = vmin.xlane.f32.xlu0 %v3889_v1  ;;  %v3894_v16 = vshll.u32 %v3893_v52, 16 }
0x503e   :  { %3793 = vperm.xlu0 %6312, %v3771_v51  }
0x5042   :  { %6314 = vset.pattern.permute.xlu0 %v6494_v55 }
0x50b5   :  { %v3891_v2 = vpop.xlane.xlu0 %3890 }
0x50b6   :  { %v3892_v33 = vcvt.f32.s32 %v3891_v2 }
0x50b8   :  { %v3895_v0 = vadd.s32 %v3894_v16, %v3892_v33 }
0x50ba   :  { %v3896_v53 = vrot.slane %v3895_v0, 4 }
0x50bc   :  { %vm3897_vm10 = vcmp.lt.s32.totalorder %v3895_v0, %v3896_v53 }
0x50bd   :  { %v3898_v30 = vsel %vm3897_vm10, %v3895_v0, %v3896_v53  ;;  %v3794_v47 = vpop.permute.xlu0 %3793 }
0x50be   :  { %v3899_v35 = vrot.slane %v3898_v30, 2  ;;  %v3807_v21 = vmul.f32 %v3794_v47, %v8711_v37 }
0x50c0   :  { %vm3900_vm14 = vcmp.lt.s32.totalorder %v3898_v30, %v3899_v35  ;;  %v8775_v39 = vsub.f32 %v3783_v40, %v3807_v21 }
0x50c1   :  { %v3901_v50 = vsel %vm3900_vm14, %v3898_v30, %v3899_v35 }
0x50c2   :  { %v3902_v9 = vrot.slane %v3901_v50, 1 }
0x50c4   :  { %vm3903_vm15 = vcmp.lt.s32.totalorder %v3901_v50, %v3902_v9 }
0x50c5   :  { %v3904_v6 = vsel %vm3903_vm15, %v3901_v50, %v3902_v9  ;;  %v4028_v50 = vsel %vm4027_vm6, -1.0, %v6466_v59 }
0x50c6   :  { %6097 = vpush %v3904_v6 }
0x50f7   :  { %s6098_s4 = spop %6097 }
0x50f8   :  { %v8777_v4 = vstv %s6098_s4 }
0x50f9   :  { %vm3907_vm1 = vcmp.eq.s32.totalorder %v6557_v23, %v8777_v4  ;;  %vm3908_vm3 = vcmp.eq.s32.totalorder %v6560_v24, %v8777_v4  ;;  %vm3909_vm0 = vcmp.eq.s32.totalorder %v6563_v25, %v8777_v4  ;;  %vm3910_vm2 = vcmp.eq.s32.totalorder %v6566_v26, %v8777_v4 }
0x50fa   :  { %v3919_v60 = vsel %vm3907_vm1, %v8773_v13, 0.0  ;;  %v3920_v12 = vsel %vm3908_vm3, %v8775_v39, 0.0  ;;  %v3921_v37 = vsel %vm3909_vm0, %v8734_v5, 0.0  ;;  %v3922_v58 = vsel %vm3910_vm2, %v8724_v57, 0.0 }
0x50fb   :  { %v3923_v29 = vadd.f32 %v3920_v12, %v3919_v60  ;;  %v3966_v52 = vsel %vm3910_vm2, %v8823_v49, %v8724_v57  ;;  %v3965_v33 = vsel %vm3909_vm0, %v8823_v49, %v8734_v5 }
0x50fd   :  { %v3924_v18 = vadd.f32 %v3923_v29, %v3921_v37 }
0x50ff   :  { %v3925_v44 = vadd.f32 %v3924_v18, %v3922_v58 }
0x5101   :  { %v3926_v7 = vrot.slane %v3925_v44, 4 }
0x5103   :  { %v3927_v38 = vadd.f32 %v3926_v7, %v3925_v44 }
0x5105   :  { %v3928_v8 = vrot.slane %v3927_v38, 2 }
0x5107   :  { %v3929_v31 = vadd.f32 %v3928_v8, %v3927_v38 }
0x5109   :  { %v3930_v62 = vrot.slane %v3929_v31, 1 }
0x510b   :  { %v3931_v63 = vadd.f32 %v3930_v62, %v3929_v31 }
0x510d   :  { %3934 = vrot.lane.b32.xlu1 %v3931_v63, %s6493_s5 }
0x5111   :  { %3946 = vrot.lane.b32.xlu1 %v3945_v36, %s6493_s5 }
0x517f   :  { %v3935_v10 = vpop.permute.xlu1 %3934 }
0x5180   :  { %6099 = vpush %v3935_v10 }
0x5183   :  { %v3947_v14 = vpop.permute.xlu1 %3946 }
0x51b1   :  { %s6100_s6 = spop %6099 }
0x51b2   :  { %v3938_v28 = vstv %s6100_s6  ;;  %s6503_s6 = smov 102  }
0x51b3   :  { %6378 = vrcp.f32 %v3938_v28 }
0x51bd   :  { %v6379_v42 = vpop.eup %6378 }
0x51be   :  { %6101 = vpush %v6379_v42 }
0x51bf   :  { %6103 = vpush %v3947_v14 }
0x51ef   :  { %s6102_s7 = spop %6101 }
0x51f0   :  { %s6104_s8 = spop %6103  ;;  %v3941_v32 = vstv %s6102_s7 }
0x51f1   :  { %v8805_v41 = vstv %s6104_s8  ;;  %v8819_v11 = vmul.f32 %v3941_v32, %v3931_v63 }
0x51f2   :  { %v3954_v54 = vsel %vm3910_vm2, %v8805_v41, %v8724_v57  ;;  %v3953_v3 = vsel %vm3909_vm0, %v8805_v41, %v8734_v5  ;;  %v3951_v47 = vsel %vm3907_vm1, %v8805_v41, %v8773_v13 }
0x51f3   :  { %3984 = vperm.xlu1 %6315, %v3954_v54   ;;  %v3957_v19 = vsel %vm3828_vm4, 0.0, %v3953_v3 }
0x51f4   :  { %3979 = vperm.xlu0 %6314, %v3957_v19   ;;  %v3952_v19 = vsel %vm3908_vm3, %v8805_v41, %v8775_v39 }
0x5272   :  { %v3985_v45 = vpop.permute.xlu1 %3984 }
0x5273   :  { %v3990_v1 = vmul.f32 %v3985_v45, %v8819_v11  ;;  %v3980_v51 = vpop.permute.xlu0 %3979 }
0x5274   :  { %v3989_v2 = vmul.f32 %v3980_v51, %v8819_v11 }
0x5275   :  { %v8832_v16 = vsub.f32 %v3966_v52, %v3990_v1 }
0x5276   :  { %v3993_v0 = vsub.f32 %v3965_v33, %v3989_v2 }
0x5277   :  { %v4022_v57 = vand.u32 2147483647, %v8832_v16 }
0x5278   :  { %v8842_v53 = vsel %vm3828_vm4, %v8819_v11, %v3993_v0 }
0x5279   :  { %v4021_v30 = vand.u32 2147483647, %v8842_v53  ;;  %v4031_v5 = vsel %vm4027_vm6, %v4022_v57, -inf }
0x527b   :  { %v4025_v35 = vsel %vm4013_vm5, %v4021_v30, -1.0  ;;  %vm4009_vm5 = vcmp.eq.s32.totalorder %v6563_v25, 22 }
0x527c   :  { %v4030_v9 = vsel %vm4027_vm6, %v4025_v35, -inf }
0x527d   :  { %v4033_v6 = vmax.f32 %v4030_v9, %v4031_v5 }
0x527f   :  { %v4034_v22 = vmax.f32 %v4028_v50, %v4033_v6  ;;  %v3963_v6 = vsel %vm3907_vm1, %v8823_v49, %v8773_v13 }
0x5281   :  { %4035 = vmax.xlane.f32.xlu1 %v4034_v22  ;;  %v3964_v22 = vsel %vm3908_vm3, %v8823_v49, %v8775_v39 }
0x5292   :  { %3969 = vperm.xlu1 %6315, %v3951_v47  }
0x530e   :  { %v4036_v48 = vpop.xlane.xlu1 %4035 }
0x530f   :  { %v4037_v21 = vrot.slane %v4036_v48, 4 }
0x5311   :  { %v4038_v15 = vmax.f32 %v4036_v48, %v4037_v21 }
0x5312   :  { %v3970_v50 = vpop.permute.xlu1 %3969 }
0x5313   :  { %v4039_v40 = vrot.slane %v4038_v15, 2  ;;  %v3987_v41 = vmul.f32 %v3970_v50, %v8819_v11 }
0x5315   :  { %v4040_v60 = vmax.f32 %v4038_v15, %v4039_v40  ;;  %v8881_v47 = vsub.f32 %v3963_v6, %v3987_v41 }
0x5317   :  { %v4041_v12 = vrot.slane %v4040_v60, 1 }
0x5319   :  { %v4042_v29 = vmax.f32 %v4040_v60, %v4041_v12 }
0x531b   :  { %6105 = vpush %v4042_v29 }
0x534c   :  { %s6106_s9 = spop %6105 }
0x534d   :  { %v4044_v37 = vstv %s6106_s9 }
0x534e   :  { %vm5857_vm7 = vcmp.eq.f32.partialorder %v4044_v37, -1.0  ;;  %vm4047_vm8 = vcmp.eq.f32.partialorder %v4025_v35, %v4044_v37  ;;  %vm4048_vm9 = vcmp.eq.f32.partialorder %v4022_v57, %v4044_v37 }
0x534f   :  { %v4049_v18 = vsel %vm5857_vm7, %v6557_v23, 32  ;;  %v4050_v58 = vsel %vm5857_vm7, %v6560_v24, 32  ;;  %v4051_v44 = vsel %vm4047_vm8, %v6563_v25, 32  ;;  %v4052_v7 = vsel %vm4048_vm9, %v6566_v26, 32 }
0x5350   :  { %v4053_v38 = vsel %vm4027_vm6, %v4049_v18, 2147483647  ;;  %v4054_v8 = vsel %vm4027_vm6, %v4050_v58, 2147483647  ;;  %v4055_v31 = vsel %vm4027_vm6, %v4051_v44, 2147483647 }
0x5351   :  { %v4056_v62 = vsel %vm4027_vm6, %v4052_v7, 2147483647  ;;  %vm4057_vm11 = vcmp.lt.s32.totalorder %v4053_v38, %v4054_v8  ;;  %v4126_v44 = vrot.slane %v8842_v53, 6  ;;  %v6496_v7 = vmov 22  }
0x5352   :  { %v4058_v63 = vsel %vm4057_vm11, %v4053_v38, %v4054_v8  ;;  %vm4059_vm12 = vcmp.lt.s32.totalorder %v4055_v31, %v4056_v62  ;;  %6317 = vset.pattern.permute.xlu1 %v6496_v7  ;;  %vm4194_vm6 = vcmp.ge.s32.totalorder %v6563_v25, 23  ;;  %vm4208_vm7 = vcmask 195768  }
0x5353   :  { %v4060_v36 = vsel %vm4059_vm12, %v4055_v31, %v4056_v62 }
0x5354   :  { %vm4061_vm13 = vcmp.lt.s32.totalorder %v4058_v63, %v4060_v36 }
0x5355   :  { %v4062_v55 = vsel %vm4061_vm13, %v4058_v63, %v4060_v36 }
0x5356   :  { %v4064_v10 = vshra.s32 %v4062_v55, 16  ;;  %v4063_v42 = vand.u32 65535, %v4062_v55 }
0x5358   :  { %v4066_v28 = vcvt.s32.f32 %v4064_v10  ;;  %v4065_v54 = vcvt.s32.f32 %v4063_v42 }
0x535a   :  { %4067 = vmin.xlane.f32.xlu0 %v4066_v28 }
0x53e7   :  { %v4068_v14 = vpop.xlane.xlu0 %4067 }
0x53e8   :  { %vm4069_vm10 = vcmp.eq.f32.partialorder %v4066_v28, %v4068_v14  ;;  %v4074_v32 = vcvt.f32.s32 %v4068_v14  ;;  %v8931_v14 = vrot.slane %v8842_v53, %v7199_v46 }
0x53e9   :  { %v4070_v3 = vsel %vm4069_vm10, %v4065_v54, inf }
0x53ea   :  { %4071 = vmin.xlane.f32.xlu0 %v4070_v3  ;;  %v4075_v1 = vshll.u32 %v4074_v32, 16 }
0x5400   :  { %3974 = vperm.xlu0 %6314, %v3952_v19  }
0x5404   :  { %6316 = vset.pattern.permute.xlu0 %v6496_v7 }
0x5477   :  { %v4072_v45 = vpop.xlane.xlu0 %4071 }
0x5478   :  { %v4073_v51 = vcvt.f32.s32 %v4072_v45 }
0x547a   :  { %v4076_v52 = vadd.s32 %v4075_v1, %v4073_v51 }
0x547c   :  { %v4077_v2 = vrot.slane %v4076_v52, 4 }
0x547e   :  { %vm4078_vm14 = vcmp.lt.s32.totalorder %v4076_v52, %v4077_v2 }
0x547f   :  { %v4079_v33 = vsel %vm4078_vm14, %v4076_v52, %v4077_v2  ;;  %v3975_v9 = vpop.permute.xlu0 %3974 }
0x5480   :  { %v4080_v0 = vrot.slane %v4079_v33, 2  ;;  %v3988_v5 = vmul.f32 %v3975_v9, %v8819_v11 }
0x5482   :  { %vm4081_vm15 = vcmp.lt.s32.totalorder %v4079_v33, %v4080_v0  ;;  %v8883_v48 = vsub.f32 %v3964_v22, %v3988_v5 }
0x5483   :  { %v4082_v57 = vsel %vm4081_vm15, %v4079_v33, %v4080_v0 }
0x5484   :  { %v4083_v30 = vrot.slane %v4082_v57, 1 }
0x5486   :  { %vm4084_vm0 = vcmp.lt.s32.totalorder %v4082_v57, %v4083_v30 }
0x5487   :  { %v4085_v35 = vsel %vm4084_vm0, %v4082_v57, %v4083_v30  ;;  %v4209_v57 = vsel %vm4208_vm7, -1.0, %v6466_v59 }
0x5488   :  { %6107 = vpush %v4085_v35 }
0x54b9   :  { %s6108_s10 = spop %6107 }
0x54ba   :  { %v8885_v21 = vstv %s6108_s10 }
0x54bb   :  { %vm4088_vm2 = vcmp.eq.s32.totalorder %v6557_v23, %v8885_v21  ;;  %vm4089_vm4 = vcmp.eq.s32.totalorder %v6560_v24, %v8885_v21  ;;  %vm4090_vm1 = vcmp.eq.s32.totalorder %v6563_v25, %v8885_v21  ;;  %vm4091_vm3 = vcmp.eq.s32.totalorder %v6566_v26, %v8885_v21 }
0x54bc   :  { %v4100_v13 = vsel %vm4088_vm2, %v8881_v47, 0.0  ;;  %v4101_v39 = vsel %vm4089_vm4, %v8883_v48, 0.0  ;;  %v4102_v11 = vsel %vm4090_vm1, %v8842_v53, 0.0  ;;  %v4103_v15 = vsel %vm4091_vm3, %v8832_v16, 0.0 }
0x54bd   :  { %v4104_v4 = vadd.f32 %v4101_v39, %v4100_v13  ;;  %v4147_v32 = vsel %vm4091_vm3, %v8931_v14, %v8832_v16  ;;  %v4146_v51 = vsel %vm4090_vm1, %v8931_v14, %v8842_v53 }
0x54bf   :  { %v4105_v49 = vadd.f32 %v4104_v4, %v4102_v11 }
0x54c1   :  { %v4106_v40 = vadd.f32 %v4105_v49, %v4103_v15 }
0x54c3   :  { %v4107_v60 = vrot.slane %v4106_v40, 4 }
0x54c5   :  { %v4108_v12 = vadd.f32 %v4107_v60, %v4106_v40 }
0x54c7   :  { %v4109_v29 = vrot.slane %v4108_v12, 2 }
0x54c9   :  { %v4110_v37 = vadd.f32 %v4109_v29, %v4108_v12 }
0x54cb   :  { %v4111_v18 = vrot.slane %v4110_v37, 1 }
0x54cd   :  { %v4112_v58 = vadd.f32 %v4111_v18, %v4110_v37 }
0x54cf   :  { %4115 = vrot.lane.b32.xlu1 %v4112_v58, %s6495_s11 }
0x54d3   :  { %4127 = vrot.lane.b32.xlu1 %v4126_v44, %s6495_s11 }
0x5541   :  { %v4116_v38 = vpop.permute.xlu1 %4115 }
0x5542   :  { %6109 = vpush %v4116_v38 }
0x5545   :  { %v4128_v62 = vpop.permute.xlu1 %4127 }
0x5573   :  { %s6110_s12 = spop %6109 }
0x5574   :  { %v4119_v8 = vstv %s6110_s12  ;;  %s6505_s12 = smov 101  }
0x5575   :  { %6380 = vrcp.f32 %v4119_v8 }
0x557f   :  { %v6381_v31 = vpop.eup %6380 }
0x5580   :  { %6111 = vpush %v6381_v31 }
0x5581   :  { %6113 = vpush %v4128_v62 }
0x55b1   :  { %s6112_s13 = spop %6111 }
0x55b2   :  { %s6114_s14 = spop %6113  ;;  %v4122_v28 = vstv %s6112_s13 }
0x55b3   :  { %v8913_v63 = vstv %s6114_s14  ;;  %v8927_v42 = vmul.f32 %v4122_v28, %v4112_v58 }
0x55b4   :  { %v4135_v36 = vsel %vm4091_vm3, %v8913_v63, %v8832_v16  ;;  %v4134_v55 = vsel %vm4090_vm1, %v8913_v63, %v8842_v53  ;;  %v4132_v9 = vsel %vm4088_vm2, %v8913_v63, %v8881_v47 }
0x55b5   :  { %4165 = vperm.xlu1 %6317, %v4135_v36   ;;  %v4138_v10 = vsel %vm4009_vm5, 0.0, %v4134_v55 }
0x55b6   :  { %4160 = vperm.xlu0 %6316, %v4138_v10   ;;  %v4133_v10 = vsel %vm4089_vm4, %v8913_v63, %v8883_v48 }
0x5634   :  { %v4166_v54 = vpop.permute.xlu1 %4165 }
0x5635   :  { %v4171_v3 = vmul.f32 %v4166_v54, %v8927_v42  ;;  %v4161_v19 = vpop.permute.xlu0 %4160 }
0x5636   :  { %v4170_v45 = vmul.f32 %v4161_v19, %v8927_v42 }
0x5637   :  { %v8940_v1 = vsub.f32 %v4147_v32, %v4171_v3 }
0x5638   :  { %v4174_v52 = vsub.f32 %v4146_v51, %v4170_v45 }
0x5639   :  { %v4203_v16 = vand.u32 2147483647, %v8940_v1 }
0x563a   :  { %v8950_v2 = vsel %vm4009_vm5, %v8927_v42, %v4174_v52 }
0x563b   :  { %v4202_v33 = vand.u32 2147483647, %v8950_v2  ;;  %v4212_v53 = vsel %vm4208_vm7, %v4203_v16, -inf }
0x563d   :  { %v4206_v0 = vsel %vm4194_vm6, %v4202_v33, -1.0  ;;  %vm4389_vm6 = vcmask 203968  }
0x563e   :  { %v4211_v30 = vsel %vm4208_vm7, %v4206_v0, -inf }
0x563f   :  { %v4214_v35 = vmax.f32 %v4211_v30, %v4212_v53 }
0x5641   :  { %v4215_v50 = vmax.f32 %v4209_v57, %v4214_v35  ;;  %v4144_v35 = vsel %vm4088_vm2, %v8931_v14, %v8881_v47 }
0x5643   :  { %4216 = vmax.xlane.f32.xlu1 %v4215_v50  ;;  %v4145_v50 = vsel %vm4089_vm4, %v8931_v14, %v8883_v48 }
0x5654   :  { %4150 = vperm.xlu1 %6317, %v4132_v9  }
0x56d0   :  { %v4217_v41 = vpop.xlane.xlu1 %4216 }
0x56d1   :  { %v4218_v5 = vrot.slane %v4217_v41, 4 }
0x56d3   :  { %v4219_v6 = vmax.f32 %v4217_v41, %v4218_v5 }
0x56d4   :  { %v4151_v57 = vpop.permute.xlu1 %4150 }
0x56d5   :  { %v4220_v22 = vrot.slane %v4219_v6, 2  ;;  %v4168_v63 = vmul.f32 %v4151_v57, %v8927_v42 }
0x56d7   :  { %v4221_v13 = vmax.f32 %v4219_v6, %v4220_v22  ;;  %v8989_v9 = vsub.f32 %v4144_v35, %v4168_v63 }
0x56d9   :  { %v4222_v39 = vrot.slane %v4221_v13, 1 }
0x56db   :  { %v4223_v4 = vmax.f32 %v4221_v13, %v4222_v39 }
0x56dd   :  { %6115 = vpush %v4223_v4 }
0x570e   :  { %s6116_s15 = spop %6115 }
0x570f   :  { %v4225_v11 = vstv %s6116_s15 }
0x5710   :  { %vm5859_vm8 = vcmp.eq.f32.partialorder %v4225_v11, -1.0  ;;  %vm4228_vm9 = vcmp.eq.f32.partialorder %v4206_v0, %v4225_v11  ;;  %vm4229_vm11 = vcmp.eq.f32.partialorder %v4203_v16, %v4225_v11 }
0x5711   :  { %v4230_v49 = vsel %vm5859_vm8, %v6557_v23, 32  ;;  %v4231_v15 = vsel %vm5859_vm8, %v6560_v24, 32  ;;  %v4232_v40 = vsel %vm4228_vm9, %v6563_v25, 32  ;;  %v4233_v60 = vsel %vm4229_vm11, %v6566_v26, 32 }
0x5712   :  { %v4234_v12 = vsel %vm4208_vm7, %v4230_v49, 2147483647  ;;  %v4235_v29 = vsel %vm4208_vm7, %v4231_v15, 2147483647  ;;  %v4236_v37 = vsel %vm4208_vm7, %v4232_v40, 2147483647 }
0x5713   :  { %v4237_v18 = vsel %vm4208_vm7, %v4233_v60, 2147483647  ;;  %vm4238_vm12 = vcmp.lt.s32.totalorder %v4234_v12, %v4235_v29  ;;  %v4307_v40 = vrot.slane %v8950_v2, 7  ;;  %v6498_v60 = vmov 23  }
0x5714   :  { %v4239_v58 = vsel %vm4238_vm12, %v4234_v12, %v4235_v29  ;;  %vm4240_vm13 = vcmp.lt.s32.totalorder %v4236_v37, %v4237_v18  ;;  %6319 = vset.pattern.permute.xlu1 %v6498_v60 }
0x5715   :  { %v4241_v44 = vsel %vm4240_vm13, %v4236_v37, %v4237_v18 }
0x5716   :  { %vm4242_vm10 = vcmp.lt.s32.totalorder %v4239_v58, %v4241_v44 }
0x5717   :  { %v4243_v7 = vsel %vm4242_vm10, %v4239_v58, %v4241_v44  ;;  %vm4190_vm10 = vcmp.eq.s32.totalorder %v6563_v25, 23 }
0x5718   :  { %v4245_v38 = vshra.s32 %v4243_v7, 16  ;;  %v4244_v31 = vand.u32 65535, %v4243_v7 }
0x571a   :  { %v4247_v8 = vcvt.s32.f32 %v4245_v38  ;;  %v4246_v36 = vcvt.s32.f32 %v4244_v31 }
0x571c   :  { %4248 = vmin.xlane.f32.xlu0 %v4247_v8 }
0x57a9   :  { %v4249_v62 = vpop.xlane.xlu0 %4248 }
0x57aa   :  { %vm4250_vm14 = vcmp.eq.f32.partialorder %v4247_v8, %v4249_v62  ;;  %v4255_v28 = vcvt.f32.s32 %v4249_v62  ;;  %v9028_v8 = vrot.slane %v8950_v2, %v7293_v34 }
0x57ab   :  { %v4251_v55 = vsel %vm4250_vm14, %v4246_v36, inf }
0x57ac   :  { %4252 = vmin.xlane.f32.xlu0 %v4251_v55  ;;  %v4256_v3 = vshll.u32 %v4255_v28, 16  ;;  %v4390_v28 = vsel %vm4389_vm6, -1.0, %v6466_v59 }
0x57c2   :  { %4155 = vperm.xlu0 %6316, %v4133_v10  }
0x57c6   :  { %6318 = vset.pattern.permute.xlu0 %v6498_v60 }
0x5839   :  { %v4253_v54 = vpop.xlane.xlu0 %4252 }
0x583a   :  { %v4254_v19 = vcvt.f32.s32 %v4253_v54 }
0x583c   :  { %v4257_v32 = vadd.s32 %v4256_v3, %v4254_v19 }
0x583e   :  { %v4258_v45 = vrot.slane %v4257_v32, 4 }
0x5840   :  { %vm4259_vm15 = vcmp.lt.s32.totalorder %v4257_v32, %v4258_v45 }
0x5841   :  { %v4260_v51 = vsel %vm4259_vm15, %v4257_v32, %v4258_v45  ;;  %v4156_v30 = vpop.permute.xlu0 %4155 }
0x5842   :  { %v4261_v52 = vrot.slane %v4260_v51, 2  ;;  %v4169_v53 = vmul.f32 %v4156_v30, %v8927_v42 }
0x5844   :  { %vm4262_vm0 = vcmp.lt.s32.totalorder %v4260_v51, %v4261_v52  ;;  %v8991_v41 = vsub.f32 %v4145_v50, %v4169_v53 }
0x5845   :  { %v4263_v16 = vsel %vm4262_vm0, %v4260_v51, %v4261_v52 }
0x5846   :  { %v4264_v33 = vrot.slane %v4263_v16, 1 }
0x5848   :  { %vm4265_vm1 = vcmp.lt.s32.totalorder %v4263_v16, %v4264_v33 }
0x5849   :  { %v4266_v0 = vsel %vm4265_vm1, %v4263_v16, %v4264_v33 }
0x584a   :  { %6117 = vpush %v4266_v0 }
0x587b   :  { %s6118_s18 = spop %6117 }
0x587c   :  { %v8993_v5 = vstv %s6118_s18 }
0x587d   :  { %vm4269_vm3 = vcmp.eq.s32.totalorder %v6557_v23, %v8993_v5  ;;  %vm4270_vm5 = vcmp.eq.s32.totalorder %v6560_v24, %v8993_v5  ;;  %vm4271_vm2 = vcmp.eq.s32.totalorder %v6563_v25, %v8993_v5  ;;  %vm4272_vm4 = vcmp.eq.s32.totalorder %v6566_v26, %v8993_v5 }
0x587e   :  { %v4281_v47 = vsel %vm4269_vm3, %v8989_v9, 0.0  ;;  %v4282_v48 = vsel %vm4270_vm5, %v8991_v41, 0.0  ;;  %v4283_v42 = vsel %vm4271_vm2, %v8950_v2, 0.0  ;;  %v4284_v6 = vsel %vm4272_vm4, %v8940_v1, 0.0 }
0x587f   :  { %v4285_v21 = vadd.f32 %v4282_v48, %v4281_v47  ;;  %v4328_v36 = vsel %vm4272_vm4, %v9028_v8, %v8940_v1 }
0x5881   :  { %v4286_v14 = vadd.f32 %v4285_v21, %v4283_v42 }
0x5883   :  { %v4287_v22 = vadd.f32 %v4286_v14, %v4284_v6 }
0x5885   :  { %v4288_v13 = vrot.slane %v4287_v22, 4 }
0x5887   :  { %v4289_v39 = vadd.f32 %v4288_v13, %v4287_v22 }
0x5889   :  { %v4290_v4 = vrot.slane %v4289_v39, 2 }
0x588b   :  { %v4291_v11 = vadd.f32 %v4290_v4, %v4289_v39 }
0x588d   :  { %v4292_v49 = vrot.slane %v4291_v11, 1 }
0x588f   :  { %v4293_v15 = vadd.f32 %v4292_v49, %v4291_v11 }
0x5891   :  { %4296 = vrot.lane.b32.xlu1 %v4293_v15, %s6497_s19 }
0x5895   :  { %4308 = vrot.lane.b32.xlu1 %v4307_v40, %s6497_s19 }
0x5903   :  { %v4297_v12 = vpop.permute.xlu1 %4296 }
0x5904   :  { %6119 = vpush %v4297_v12 }
0x5907   :  { %v4309_v18 = vpop.permute.xlu1 %4308 }
0x5935   :  { %s6120_s0 = spop %6119 }
0x5936   :  { %v4300_v29 = vstv %s6120_s0  ;;  %s6507_s0 = smov 100  }
0x5937   :  { %6382 = vrcp.f32 %v4300_v29 }
0x5941   :  { %v6383_v37 = vpop.eup %6382 }
0x5942   :  { %6121 = vpush %v6383_v37 }
0x5943   :  { %6123 = vpush %v4309_v18 }
0x5973   :  { %s6122_s20 = spop %6121 }
0x5974   :  { %s6124_s21 = spop %6123  ;;  %v4303_v7 = vstv %s6122_s20 }
0x5975   :  { %v4312_v58 = vstv %s6124_s21  ;;  %v9024_v38 = vmul.f32 %v4303_v7, %v4293_v15 }
0x5976   :  { %v4316_v44 = vsel %vm4272_vm4, %v4312_v58, %v8940_v1  ;;  %v4313_v13 = vsel %vm4269_vm3, %v4312_v58, %v8989_v9  ;;  %v4314_v15 = vsel %vm4270_vm5, %v4312_v58, %v8991_v41  ;;  %v4315_v40 = vsel %vm4271_vm2, %v4312_v58, %v8950_v2 }
0x5977   :  { %4346 = vperm.xlu0 %6318, %v4316_v44   ;;  %v4319_v60 = vsel %vm4190_vm10, 0.0, %v4315_v40  ;;  %vm4372_vm4 = vcmp.eq.s32.totalorder %v6566_v26, 24 }
0x59f6   :  { %v4347_v31 = vpop.permute.xlu0 %4346 }
0x59f7   :  { %v4352_v62 = vmul.f32 %v4347_v31, %v9024_v38 }
0x59f9   :  { %v9036_v55 = vsub.f32 %v4328_v36, %v4352_v62 }
0x59fb   :  { %v4384_v10 = vand.u32 2147483647, %v9036_v55  ;;  %v9130_v40 = vrot.slane %v9036_v55, %v6623_v20 }
0x59fd   :  { %v4393_v54 = vsel %vm4389_vm6, %v4384_v10, -inf }
0x59fe   :  { %v4395_v3 = vmax.f32 %v4390_v28, %v4393_v54 }
0x5a00   :  { %v4396_v19 = vmax.f32 %v4390_v28, %v4395_v3 }
0x5a02   :  { %4397 = vmax.xlane.f32.xlu1 %v4396_v19 }
0x5a8f   :  { %v4398_v32 = vpop.xlane.xlu1 %4397 }
0x5a90   :  { %v4399_v45 = vrot.slane %v4398_v32, 4 }
0x5a92   :  { %v4400_v51 = vmax.f32 %v4398_v32, %v4399_v45 }
0x5a94   :  { %v4401_v52 = vrot.slane %v4400_v51, 2 }
0x5a96   :  { %v4402_v16 = vmax.f32 %v4400_v51, %v4401_v52  ;;  %v4327_v51 = vsel %vm4271_vm2, %v9028_v8, %v8950_v2  ;;  %v4325_v52 = vsel %vm4269_vm3, %v9028_v8, %v8989_v9 }
0x5a98   :  { %v4403_v33 = vrot.slane %v4402_v16, 1 }
0x5a9a   :  { %v4404_v1 = vmax.f32 %v4402_v16, %v4403_v33  ;;  %v4326_v16 = vsel %vm4270_vm5, %v9028_v8, %v8991_v41 }
0x5a9c   :  { %6125 = vpush %v4404_v1 }
0x5acd   :  { %s6126_s22 = spop %6125 }
0x5ace   :  { %v4406_v0 = vstv %s6126_s22 }
0x5acf   :  { %vm5861_vm7 = vcmp.eq.f32.partialorder %v4406_v0, -1.0  ;;  %vm4410_vm8 = vcmp.eq.f32.partialorder %v4384_v10, %v4406_v0 }
0x5ad0   :  { %v4411_v57 = vsel %vm5861_vm7, %v6557_v23, 32  ;;  %v4412_v30 = vsel %vm5861_vm7, %v6560_v24, 32  ;;  %v4413_v63 = vsel %vm5861_vm7, %v6563_v25, 32  ;;  %v4414_v53 = vsel %vm4410_vm8, %v6566_v26, 32 }
0x5ad1   :  { %v4415_v35 = vsel %vm4389_vm6, %v4411_v57, 2147483647  ;;  %v4416_v50 = vsel %vm4389_vm6, %v4412_v30, 2147483647  ;;  %v4417_v47 = vsel %vm4389_vm6, %v4413_v63, 2147483647 }
0x5ad2   :  { %v4418_v48 = vsel %vm4389_vm6, %v4414_v53, 2147483647  ;;  %vm4419_vm9 = vcmp.lt.s32.totalorder %v4415_v35, %v4416_v50  ;;  %vm4569_vm6 = vcmask 212168   ;;  %vm4556_vm7 = vcmp.ge.s32.totalorder %v6566_v26, 25 }
0x5ad3   :  { %v4420_v21 = vsel %vm4419_vm9, %v4415_v35, %v4416_v50  ;;  %vm4421_vm11 = vcmp.lt.s32.totalorder %v4417_v47, %v4418_v48  ;;  %v4570_v20 = vsel %vm4569_vm6, -1.0, %v6466_v59 }
0x5ad4   :  { %v4422_v42 = vsel %vm4421_vm11, %v4417_v47, %v4418_v48 }
0x5ad5   :  { %vm4423_vm12 = vcmp.lt.s32.totalorder %v4420_v21, %v4422_v42 }
0x5ad6   :  { %v4424_v14 = vsel %vm4423_vm12, %v4420_v21, %v4422_v42  ;;  %v6500_v42 = vmov 24  }
0x5ad7   :  { %v4426_v6 = vshra.s32 %v4424_v14, 16  ;;  %v4425_v39 = vand.u32 65535, %v4424_v14 }
0x5ad9   :  { %v4428_v22 = vcvt.s32.f32 %v4426_v6  ;;  %v4427_v11 = vcvt.s32.f32 %v4425_v39 }
0x5adb   :  { %4429 = vmin.xlane.f32.xlu0 %v4428_v22 }
0x5af1   :  { %4331 = vperm.xlu0 %6318, %v4313_v13  }
0x5af5   :  { %6320 = vset.pattern.permute.xlu0 %v6500_v42 }
0x5b68   :  { %v4430_v4 = vpop.xlane.xlu0 %4429 }
0x5b69   :  { %vm4431_vm13 = vcmp.eq.f32.partialorder %v4428_v22, %v4430_v4  ;;  %v4436_v12 = vcvt.f32.s32 %v4430_v4 }
0x5b6a   :  { %v4432_v49 = vsel %vm4431_vm13, %v4427_v11, inf }
0x5b6b   :  { %4433 = vmin.xlane.f32.xlu1 %v4432_v49  ;;  %v4437_v37 = vshll.u32 %v4436_v12, 16 }
0x5b70   :  { %v4332_v3 = vpop.permute.xlu0 %4331 }
0x5b71   :  { %v4349_v32 = vmul.f32 %v4332_v3, %v9024_v38 }
0x5b73   :  { %v9085_v1 = vsub.f32 %v4325_v52, %v4349_v32 }
0x5b7c   :  { %4336 = vperm.xlu1 %6319, %v4314_v15  }
0x5b80   :  { %4341 = vperm.xlu1 %6319, %v4319_v60  }
0x5b84   :  { %4488 = vrot.lane.b32.xlu1 %v9036_v55, %s6499_s23 }
0x5b85   :  { %6321 = vset.pattern.permute.xlu1 %v6500_v42 }
0x5bf8   :  { %v4434_v29 = vpop.xlane.xlu1 %4433 }
0x5bf9   :  { %v4435_v18 = vcvt.f32.s32 %v4434_v29 }
0x5bfb   :  { %v4438_v44 = vadd.s32 %v4437_v37, %v4435_v18 }
0x5bfc   :  { %v4337_v28 = vpop.permute.xlu1 %4336 }
0x5bfd   :  { %v4439_v7 = vrot.slane %v4438_v44, 4  ;;  %v4350_v45 = vmul.f32 %v4337_v28, %v9024_v38 }
0x5bff   :  { %vm4440_vm14 = vcmp.lt.s32.totalorder %v4438_v44, %v4439_v7  ;;  %v9087_v0 = vsub.f32 %v4326_v16, %v4350_v45 }
0x5c00   :  { %v4441_v31 = vsel %vm4440_vm14, %v4438_v44, %v4439_v7  ;;  %v4342_v54 = vpop.permute.xlu1 %4341 }
0x5c01   :  { %v4442_v62 = vrot.slane %v4441_v31, 2  ;;  %v4351_v19 = vmul.f32 %v4342_v54, %v9024_v38 }
0x5c03   :  { %vm4443_vm15 = vcmp.lt.s32.totalorder %v4441_v31, %v4442_v62  ;;  %v4355_v33 = vsub.f32 %v4327_v51, %v4351_v19 }
0x5c04   :  { %v4444_v36 = vsel %vm4443_vm15, %v4441_v31, %v4442_v62  ;;  %v4489_v13 = vpop.permute.xlu1 %4488 }
0x5c05   :  { %v4445_v58 = vrot.slane %v4444_v36, 1  ;;  %v9108_v41 = vsel %vm4190_vm10, %v9024_v38, %v4355_v33 }
0x5c07   :  { %vm4446_vm0 = vcmp.lt.s32.totalorder %v4444_v36, %v4445_v58 }
0x5c08   :  { %v4447_v10 = vsel %vm4446_vm0, %v4444_v36, %v4445_v58 }
0x5c09   :  { %6127 = vpush %v4447_v10 }
0x5c3a   :  { %s6128_s24 = spop %6127 }
0x5c3b   :  { %v9089_v57 = vstv %s6128_s24 }
0x5c3c   :  { %vm4450_vm1 = vcmp.eq.s32.totalorder %v6557_v23, %v9089_v57  ;;  %vm4451_vm3 = vcmp.eq.s32.totalorder %v6560_v24, %v9089_v57  ;;  %vm4452_vm2 = vcmp.eq.s32.totalorder %v6563_v25, %v9089_v57  ;;  %vm4453_vm5 = vcmp.eq.s32.totalorder %v6566_v26, %v9089_v57 }
0x5c3d   :  { %v4462_v2 = vsel %vm4450_vm1, %v9085_v1, 0.0  ;;  %v4463_v9 = vsel %vm4451_vm3, %v9087_v0, 0.0  ;;  %v4464_v8 = vsel %vm4452_vm2, %v9108_v41, 0.0  ;;  %v4465_v63 = vsel %vm4453_vm5, %v9036_v55, 0.0 }
0x5c3e   :  { %v4466_v5 = vadd.f32 %v4463_v9, %v4462_v2  ;;  %v4508_v29 = vsel %vm4453_vm5, %v9130_v40, %v9036_v55 }
0x5c40   :  { %v4467_v30 = vadd.f32 %v4466_v5, %v4464_v8 }
0x5c42   :  { %v4468_v53 = vadd.f32 %v4467_v30, %v4465_v63 }
0x5c44   :  { %v4469_v35 = vrot.slane %v4468_v53, 4 }
0x5c46   :  { %v4470_v50 = vadd.f32 %v4469_v35, %v4468_v53 }
0x5c48   :  { %v4471_v38 = vrot.slane %v4470_v50, 2 }
0x5c4a   :  { %v4472_v47 = vadd.f32 %v4471_v38, %v4470_v50 }
0x5c4c   :  { %v4473_v48 = vrot.slane %v4472_v47, 1 }
0x5c4e   :  { %v4474_v21 = vadd.f32 %v4473_v48, %v4472_v47 }
0x5c50   :  { %4477 = vrot.lane.b32.xlu0 %v4474_v21, %s6499_s23 }
0x5cc2   :  { %v4478_v14 = vpop.permute.xlu0 %4477 }
0x5cc3   :  { %6129 = vpush %v4478_v14 }
0x5cf4   :  { %s6130_s25 = spop %6129 }
0x5cf5   :  { %v4481_v6 = vstv %s6130_s25  ;;  %s6509_s25 = smov 99  }
0x5cf6   :  { %6384 = vrcp.f32 %v4481_v6 }
0x5d00   :  { %v6385_v22 = vpop.eup %6384 }
0x5d01   :  { %6131 = vpush %v6385_v22 }
0x5d02   :  { %6133 = vpush %v4489_v13 }
0x5d32   :  { %s6132_s26 = spop %6131 }
0x5d33   :  { %s6134_s27 = spop %6133  ;;  %v4484_v49 = vstv %s6132_s26 }
0x5d34   :  { %v4492_v39 = vstv %s6134_s27  ;;  %v9126_v15 = vmul.f32 %v4484_v49, %v4474_v21 }
0x5d35   :  { %v4496_v4 = vsel %vm4453_vm5, %v4492_v39, %v9036_v55  ;;  %v4493_v50 = vsel %vm4450_vm1, %v4492_v39, %v9085_v1  ;;  %v4494_v42 = vsel %vm4451_vm3, %v4492_v39, %v9087_v0  ;;  %v4495_v14 = vsel %vm4452_vm2, %v4492_v39, %v9108_v41 }
0x5d36   :  { %v4500_v11 = vsel %vm4372_vm4, 0.0, %v4496_v4 }
0x5d37   :  { %4526 = vperm.xlu0 %6320, %v4500_v11  }
0x5db6   :  { %v4527_v60 = vpop.permute.xlu0 %4526 }
0x5db7   :  { %v4532_v12 = vmul.f32 %v4527_v60, %v9126_v15 }
0x5db9   :  { %v4536_v37 = vsub.f32 %v4508_v29, %v4532_v12 }
0x5dbb   :  { %v9139_v18 = vsel %vm4372_vm4, %v9126_v15, %v4536_v37  ;;  %vm4552_vm4 = vcmp.eq.s32.totalorder %v6566_v26, 25 }
0x5dbc   :  { %v4564_v44 = vand.u32 2147483647, %v9139_v18  ;;  %v4668_v6 = vrot.slane %v9139_v18, 1 }
0x5dbe   :  { %v4568_v7 = vsel %vm4556_vm7, %v4564_v44, -1.0  ;;  %vm4737_vm7 = vcmp.ge.s32.totalorder %v6566_v26, 26 }
0x5dbf   :  { %v4573_v31 = vsel %vm4569_vm6, %v4568_v7, -inf }
0x5dc0   :  { %v4575_v62 = vmax.f32 %v4570_v20, %v4573_v31 }
0x5dc2   :  { %v4576_v36 = vmax.f32 %v4570_v20, %v4575_v62 }
0x5dc4   :  { %4577 = vmax.xlane.f32.xlu1 %v4576_v36 }
0x5e51   :  { %v4578_v58 = vpop.xlane.xlu1 %4577 }
0x5e52   :  { %v4579_v55 = vrot.slane %v4578_v58, 4 }
0x5e54   :  { %v4580_v10 = vmax.f32 %v4578_v58, %v4579_v55  ;;  %v4505_v55 = vsel %vm4450_vm1, %v9130_v40, %v9085_v1 }
0x5e56   :  { %v4581_v28 = vrot.slane %v4580_v10, 2 }
0x5e58   :  { %v4582_v54 = vmax.f32 %v4580_v10, %v4581_v28  ;;  %v4506_v10 = vsel %vm4451_vm3, %v9130_v40, %v9087_v0 }
0x5e5a   :  { %v4583_v3 = vrot.slane %v4582_v54, 1 }
0x5e5c   :  { %v4584_v19 = vmax.f32 %v4582_v54, %v4583_v3 }
0x5e5e   :  { %6135 = vpush %v4584_v19 }
0x5e8f   :  { %s6136_s28 = spop %6135 }
0x5e90   :  { %v4586_v32 = vstv %s6136_s28 }
0x5e91   :  { %vm5864_vm8 = vcmp.eq.f32.partialorder %v4586_v32, -1.0  ;;  %vm4590_vm9 = vcmp.eq.f32.partialorder %v4568_v7, %v4586_v32 }
0x5e92   :  { %v4591_v45 = vsel %vm5864_vm8, %v6557_v23, 32  ;;  %v4592_v51 = vsel %vm5864_vm8, %v6560_v24, 32  ;;  %v4593_v52 = vsel %vm5864_vm8, %v6563_v25, 32  ;;  %v4594_v16 = vsel %vm4590_vm9, %v6566_v26, 32 }
0x5e93   :  { %v4595_v33 = vsel %vm4569_vm6, %v4591_v45, 2147483647  ;;  %v4596_v2 = vsel %vm4569_vm6, %v4592_v51, 2147483647  ;;  %v4597_v9 = vsel %vm4569_vm6, %v4593_v52, 2147483647 }
0x5e94   :  { %v4598_v5 = vsel %vm4569_vm6, %v4594_v16, 2147483647  ;;  %vm4599_vm11 = vcmp.lt.s32.totalorder %v4595_v33, %v4596_v2  ;;  %vm4750_vm6 = vcmask 220368  }
0x5e95   :  { %v4600_v8 = vsel %vm4599_vm11, %v4595_v33, %v4596_v2  ;;  %vm4601_vm12 = vcmp.lt.s32.totalorder %v4597_v9, %v4598_v5 }
0x5e96   :  { %v4602_v30 = vsel %vm4601_vm12, %v4597_v9, %v4598_v5  ;;  %v6502_v5 = vmov 25  }
0x5e97   :  { %vm4603_vm13 = vcmp.lt.s32.totalorder %v4600_v8, %v4602_v30 }
0x5e98   :  { %v4604_v63 = vsel %vm4603_vm13, %v4600_v8, %v4602_v30 }
0x5e99   :  { %v4606_v53 = vshra.s32 %v4604_v63, 16  ;;  %v4605_v38 = vand.u32 65535, %v4604_v63 }
0x5e9b   :  { %v4608_v35 = vcvt.s32.f32 %v4606_v53  ;;  %v4607_v48 = vcvt.s32.f32 %v4605_v38 }
0x5e9d   :  { %4609 = vmin.xlane.f32.xlu0 %v4608_v35 }
0x5eb3   :  { %4511 = vperm.xlu0 %6320, %v4493_v50  }
0x5eb7   :  { %6322 = vset.pattern.permute.xlu0 %v6502_v5 }
0x5f2a   :  { %v4610_v47 = vpop.xlane.xlu0 %4609 }
0x5f2b   :  { %vm4611_vm10 = vcmp.eq.f32.partialorder %v4608_v35, %v4610_v47  ;;  %v4616_v22 = vcvt.f32.s32 %v4610_v47 }
0x5f2c   :  { %v4612_v21 = vsel %vm4611_vm10, %v4607_v48, inf }
0x5f2d   :  { %4613 = vmin.xlane.f32.xlu1 %v4612_v21  ;;  %v4617_v4 = vshll.u32 %v4616_v22, 16  ;;  %v9228_v21 = vrot.slane %v9139_v18, %v6719_v61  ;;  %v4751_v61 = vsel %vm4750_vm6, -1.0, %v6466_v59 }
0x5f32   :  { %v4512_v7 = vpop.permute.xlu0 %4511 }
0x5f33   :  { %v4529_v62 = vmul.f32 %v4512_v7, %v9126_v15 }
0x5f35   :  { %v9181_v28 = vsub.f32 %v4505_v55, %v4529_v62 }
0x5f3e   :  { %4516 = vperm.xlu1 %6321, %v4494_v42  }
0x5f42   :  { %4521 = vperm.xlu1 %6321, %v4495_v14  }
0x5f46   :  { %4669 = vrot.lane.b32.xlu1 %v4668_v6, %s6501_s29 }
0x5f47   :  { %6323 = vset.pattern.permute.xlu1 %v6502_v5 }
0x5fba   :  { %v4614_v13 = vpop.xlane.xlu1 %4613 }
0x5fbb   :  { %v4615_v11 = vcvt.f32.s32 %v4614_v13 }
0x5fbd   :  { %v4618_v49 = vadd.s32 %v4617_v4, %v4615_v11 }
0x5fbe   :  { %v4517_v20 = vpop.permute.xlu1 %4516 }
0x5fbf   :  { %v4619_v60 = vrot.slane %v4618_v49, 4  ;;  %v4530_v36 = vmul.f32 %v4517_v20, %v9126_v15 }
0x5fc1   :  { %vm4620_vm14 = vcmp.lt.s32.totalorder %v4618_v49, %v4619_v60  ;;  %v9183_v54 = vsub.f32 %v4506_v10, %v4530_v36 }
0x5fc2   :  { %v4621_v12 = vsel %vm4620_vm14, %v4618_v49, %v4619_v60  ;;  %v4522_v31 = vpop.permute.xlu1 %4521 }
0x5fc3   :  { %v4622_v29 = vrot.slane %v4621_v12, 2  ;;  %v4531_v58 = vmul.f32 %v4522_v31, %v9126_v15  ;;  %v4507_v15 = vsel %vm4452_vm2, %v9130_v40, %v9108_v41 }
0x5fc5   :  { %vm4623_vm15 = vcmp.lt.s32.totalorder %v4621_v12, %v4622_v29  ;;  %v9198_v1 = vsub.f32 %v4507_v15, %v4531_v58 }
0x5fc6   :  { %v4624_v37 = vsel %vm4623_vm15, %v4621_v12, %v4622_v29  ;;  %v4670_v53 = vpop.permute.xlu1 %4669 }
0x5fc7   :  { %v4625_v44 = vrot.slane %v4624_v37, 1 }
0x5fc9   :  { %vm4626_vm0 = vcmp.lt.s32.totalorder %v4624_v37, %v4625_v44 }
0x5fca   :  { %v4627_v39 = vsel %vm4626_vm0, %v4624_v37, %v4625_v44 }
0x5fcb   :  { %6137 = vpush %v4627_v39 }
0x5ffc   :  { %s6138_s30 = spop %6137 }
0x5ffd   :  { %v9185_v3 = vstv %s6138_s30 }
0x5ffe   :  { %vm4630_vm1 = vcmp.eq.s32.totalorder %v6557_v23, %v9185_v3  ;;  %vm4631_vm5 = vcmp.eq.s32.totalorder %v6560_v24, %v9185_v3  ;;  %vm4632_vm3 = vcmp.eq.s32.totalorder %v6563_v25, %v9185_v3  ;;  %vm4633_vm2 = vcmp.eq.s32.totalorder %v6566_v26, %v9185_v3 }
0x5fff   :  { %v4642_v0 = vsel %vm4630_vm1, %v9181_v28, 0.0  ;;  %v4643_v57 = vsel %vm4631_vm5, %v9183_v54, 0.0  ;;  %v4644_v40 = vsel %vm4632_vm3, %v9198_v1, 0.0  ;;  %v4645_v32 = vsel %vm4633_vm2, %v9139_v18, 0.0 }
0x6000   :  { %v4646_v41 = vadd.f32 %v4643_v57, %v4642_v0  ;;  %v4689_v6 = vsel %vm4633_vm2, %v9228_v21, %v9139_v18 }
0x6002   :  { %v4647_v19 = vadd.f32 %v4646_v41, %v4644_v40 }
0x6004   :  { %v4648_v45 = vadd.f32 %v4647_v19, %v4645_v32 }
0x6006   :  { %v4649_v51 = vrot.slane %v4648_v45, 4 }
0x6008   :  { %v4650_v52 = vadd.f32 %v4649_v51, %v4648_v45 }
0x600a   :  { %v4651_v16 = vrot.slane %v4650_v52, 2 }
0x600c   :  { %v4652_v33 = vadd.f32 %v4651_v16, %v4650_v52 }
0x600e   :  { %v4653_v2 = vrot.slane %v4652_v33, 1 }
0x6010   :  { %v4654_v9 = vadd.f32 %v4653_v2, %v4652_v33 }
0x6012   :  { %4657 = vrot.lane.b32.xlu0 %v4654_v9, %s6501_s29 }
0x6084   :  { %v4658_v8 = vpop.permute.xlu0 %4657 }
0x6085   :  { %6139 = vpush %v4658_v8 }
0x60b6   :  { %s6140_s2 = spop %6139 }
0x60b7   :  { %v4661_v30 = vstv %s6140_s2  ;;  %s6511_s2 = smov 98  }
0x60b8   :  { %6386 = vrcp.f32 %v4661_v30 }
0x60c2   :  { %v6387_v63 = vpop.eup %6386 }
0x60c3   :  { %6141 = vpush %v6387_v63 }
0x60c4   :  { %6143 = vpush %v4670_v53 }
0x60f4   :  { %s6142_s3 = spop %6141 }
0x60f5   :  { %s6144_s4 = spop %6143  ;;  %v4664_v47 = vstv %s6142_s3 }
0x60f6   :  { %v4673_v35 = vstv %s6144_s4  ;;  %v9224_v48 = vmul.f32 %v4664_v47, %v4654_v9 }
0x60f7   :  { %v4677_v50 = vsel %vm4633_vm2, %v4673_v35, %v9139_v18  ;;  %v4674_v51 = vsel %vm4630_vm1, %v4673_v35, %v9181_v28  ;;  %v4675_v9 = vsel %vm4631_vm5, %v4673_v35, %v9183_v54  ;;  %v4676_v5 = vsel %vm4632_vm3, %v4673_v35, %v9198_v1 }
0x60f8   :  { %v4681_v38 = vsel %vm4552_vm4, 0.0, %v4677_v50 }
0x60f9   :  { %4707 = vperm.xlu0 %6322, %v4681_v38  }
0x6178   :  { %v4708_v42 = vpop.permute.xlu0 %4707 }
0x6179   :  { %v4713_v14 = vmul.f32 %v4708_v42, %v9224_v48 }
0x617b   :  { %v4717_v22 = vsub.f32 %v4689_v6, %v4713_v14 }
0x617d   :  { %v9237_v13 = vsel %vm4552_vm4, %v9224_v48, %v4717_v22  ;;  %vm4733_vm4 = vcmp.eq.s32.totalorder %v6566_v26, 26 }
0x617e   :  { %v4745_v4 = vand.u32 2147483647, %v9237_v13  ;;  %v4849_v8 = vrot.slane %v9237_v13, 2 }
0x6180   :  { %v4749_v11 = vsel %vm4737_vm7, %v4745_v4, -1.0  ;;  %vm4918_vm7 = vcmp.ge.s32.totalorder %v6566_v26, 27 }
0x6181   :  { %v4754_v49 = vsel %vm4750_vm6, %v4749_v11, -inf }
0x6182   :  { %v4756_v60 = vmax.f32 %v4751_v61, %v4754_v49 }
0x6184   :  { %v4757_v12 = vmax.f32 %v4751_v61, %v4756_v60 }
0x6186   :  { %4758 = vmax.xlane.f32.xlu1 %v4757_v12 }
0x6213   :  { %v4759_v29 = vpop.xlane.xlu1 %4758 }
0x6214   :  { %v4760_v18 = vrot.slane %v4759_v29, 4 }
0x6216   :  { %v4761_v37 = vmax.f32 %v4759_v29, %v4760_v18  ;;  %v4686_v29 = vsel %vm4630_vm1, %v9228_v21, %v9181_v28  ;;  %v4687_v18 = vsel %vm4631_vm5, %v9228_v21, %v9183_v54 }
0x6218   :  { %v4762_v44 = vrot.slane %v4761_v37, 2 }
0x621a   :  { %v4763_v39 = vmax.f32 %v4761_v37, %v4762_v44 }
0x621c   :  { %v4764_v20 = vrot.slane %v4763_v39, 1 }
0x621e   :  { %v4765_v7 = vmax.f32 %v4763_v39, %v4764_v20 }
0x6220   :  { %6145 = vpush %v4765_v7 }
0x6251   :  { %s6146_s5 = spop %6145 }
0x6252   :  { %v4767_v31 = vstv %s6146_s5 }
0x6253   :  { %vm5867_vm8 = vcmp.eq.f32.partialorder %v4767_v31, -1.0  ;;  %vm4771_vm9 = vcmp.eq.f32.partialorder %v4749_v11, %v4767_v31 }
0x6254   :  { %v4772_v62 = vsel %vm5867_vm8, %v6557_v23, 32  ;;  %v4773_v36 = vsel %vm5867_vm8, %v6560_v24, 32  ;;  %v4774_v58 = vsel %vm5867_vm8, %v6563_v25, 32  ;;  %v4775_v55 = vsel %vm4771_vm9, %v6566_v26, 32 }
0x6255   :  { %v4776_v10 = vsel %vm4750_vm6, %v4772_v62, 2147483647  ;;  %v4777_v15 = vsel %vm4750_vm6, %v4773_v36, 2147483647  ;;  %v4778_v0 = vsel %vm4750_vm6, %v4774_v58, 2147483647 }
0x6256   :  { %v4779_v57 = vsel %vm4750_vm6, %v4775_v55, 2147483647  ;;  %vm4780_vm11 = vcmp.lt.s32.totalorder %v4776_v10, %v4777_v15  ;;  %vm4931_vm6 = vcmask 228568  }
0x6257   :  { %v4781_v41 = vsel %vm4780_vm11, %v4776_v10, %v4777_v15  ;;  %vm4782_vm12 = vcmp.lt.s32.totalorder %v4778_v0, %v4779_v57 }
0x6258   :  { %v4783_v40 = vsel %vm4782_vm12, %v4778_v0, %v4779_v57  ;;  %v6504_v0 = vmov 26  }
0x6259   :  { %vm4784_vm13 = vcmp.lt.s32.totalorder %v4781_v41, %v4783_v40 }
0x625a   :  { %v4785_v19 = vsel %vm4784_vm13, %v4781_v41, %v4783_v40 }
0x625b   :  { %v4787_v32 = vshra.s32 %v4785_v19, 16  ;;  %v4786_v52 = vand.u32 65535, %v4785_v19 }
0x625d   :  { %v4789_v45 = vcvt.s32.f32 %v4787_v32  ;;  %v4788_v33 = vcvt.s32.f32 %v4786_v52 }
0x625f   :  { %4790 = vmin.xlane.f32.xlu0 %v4789_v45 }
0x6275   :  { %4692 = vperm.xlu0 %6322, %v4674_v51  }
0x6279   :  { %6324 = vset.pattern.permute.xlu0 %v6504_v0 }
0x62ec   :  { %v4791_v16 = vpop.xlane.xlu0 %4790 }
0x62ed   :  { %vm4792_vm10 = vcmp.eq.f32.partialorder %v4789_v45, %v4791_v16  ;;  %v4797_v30 = vcvt.f32.s32 %v4791_v16 }
0x62ee   :  { %v4793_v2 = vsel %vm4792_vm10, %v4788_v33, inf  ;;  %v9326_v33 = vrot.slane %v9237_v13, %v6815_v43  ;;  %v4932_v43 = vsel %vm4931_vm6, -1.0, %v6466_v59 }
0x62ef   :  { %4794 = vmin.xlane.f32.xlu1 %v4793_v2  ;;  %v4798_v53 = vshll.u32 %v4797_v30, 16 }
0x62f4   :  { %v4693_v61 = vpop.permute.xlu0 %4692 }
0x62f5   :  { %v4710_v49 = vmul.f32 %v4693_v61, %v9224_v48 }
0x62f7   :  { %v9279_v37 = vsub.f32 %v4686_v29, %v4710_v49 }
0x6300   :  { %4697 = vperm.xlu1 %6323, %v4675_v9  }
0x6304   :  { %4702 = vperm.xlu1 %6323, %v4676_v5  }
0x6308   :  { %4850 = vrot.lane.b32.xlu1 %v4849_v8, %s6503_s6 }
0x6309   :  { %6325 = vset.pattern.permute.xlu1 %v6504_v0 }
0x637c   :  { %v4795_v63 = vpop.xlane.xlu1 %4794 }
0x637d   :  { %v4796_v50 = vcvt.f32.s32 %v4795_v63 }
0x637f   :  { %v4799_v38 = vadd.s32 %v4798_v53, %v4796_v50 }
0x6380   :  { %v4698_v4 = vpop.permute.xlu1 %4697 }
0x6381   :  { %v4800_v47 = vrot.slane %v4799_v38, 4  ;;  %v4711_v60 = vmul.f32 %v4698_v4, %v9224_v48 }
0x6383   :  { %vm4801_vm14 = vcmp.lt.s32.totalorder %v4799_v38, %v4800_v47  ;;  %v9281_v44 = vsub.f32 %v4687_v18, %v4711_v60 }
0x6384   :  { %v4802_v42 = vsel %vm4801_vm14, %v4799_v38, %v4800_v47  ;;  %v4703_v11 = vpop.permute.xlu1 %4702 }
0x6385   :  { %v4803_v14 = vrot.slane %v4802_v42, 2  ;;  %v4712_v12 = vmul.f32 %v4703_v11, %v9224_v48  ;;  %v4688_v48 = vsel %vm4632_vm3, %v9228_v21, %v9198_v1 }
0x6387   :  { %vm4804_vm15 = vcmp.lt.s32.totalorder %v4802_v42, %v4803_v14  ;;  %v9296_v28 = vsub.f32 %v4688_v48, %v4712_v12 }
0x6388   :  { %v4805_v6 = vsel %vm4804_vm15, %v4802_v42, %v4803_v14  ;;  %v4851_v19 = vpop.permute.xlu1 %4850 }
0x6389   :  { %v4806_v22 = vrot.slane %v4805_v6, 1 }
0x638b   :  { %vm4807_vm0 = vcmp.lt.s32.totalorder %v4805_v6, %v4806_v22 }
0x638c   :  { %v4808_v35 = vsel %vm4807_vm0, %v4805_v6, %v4806_v22 }
0x638d   :  { %6147 = vpush %v4808_v35 }
0x63be   :  { %s6148_s7 = spop %6147 }
0x63bf   :  { %v9283_v39 = vstv %s6148_s7 }
0x63c0   :  { %vm4811_vm1 = vcmp.eq.s32.totalorder %v6557_v23, %v9283_v39  ;;  %vm4812_vm2 = vcmp.eq.s32.totalorder %v6560_v24, %v9283_v39  ;;  %vm4813_vm5 = vcmp.eq.s32.totalorder %v6563_v25, %v9283_v39  ;;  %vm4814_vm3 = vcmp.eq.s32.totalorder %v6566_v26, %v9283_v39 }
0x63c1   :  { %v4823_v54 = vsel %vm4811_vm1, %v9279_v37, 0.0  ;;  %v4824_v3 = vsel %vm4812_vm2, %v9281_v44, 0.0  ;;  %v4825_v21 = vsel %vm4813_vm5, %v9296_v28, 0.0  ;;  %v4826_v7 = vsel %vm4814_vm3, %v9237_v13, 0.0 }
0x63c2   :  { %v4827_v1 = vadd.f32 %v4824_v3, %v4823_v54  ;;  %v4870_v5 = vsel %vm4814_vm3, %v9326_v33, %v9237_v13 }
0x63c4   :  { %v4828_v20 = vadd.f32 %v4827_v1, %v4825_v21 }
0x63c6   :  { %v4829_v31 = vadd.f32 %v4828_v20, %v4826_v7 }
0x63c8   :  { %v4830_v62 = vrot.slane %v4829_v31, 4 }
0x63ca   :  { %v4831_v36 = vadd.f32 %v4830_v62, %v4829_v31 }
0x63cc   :  { %v4832_v58 = vrot.slane %v4831_v36, 2 }
0x63ce   :  { %v4833_v55 = vadd.f32 %v4832_v58, %v4831_v36 }
0x63d0   :  { %v4834_v10 = vrot.slane %v4833_v55, 1 }
0x63d2   :  { %v4835_v15 = vadd.f32 %v4834_v10, %v4833_v55 }
0x63d4   :  { %4838 = vrot.lane.b32.xlu0 %v4835_v15, %s6503_s6 }
0x6446   :  { %v4839_v57 = vpop.permute.xlu0 %4838 }
0x6447   :  { %6149 = vpush %v4839_v57 }
0x6478   :  { %s6150_s8 = spop %6149 }
0x6479   :  { %v4842_v41 = vstv %s6150_s8  ;;  %s6513_s8 = smov 97  }
0x647a   :  { %6388 = vrcp.f32 %v4842_v41 }
0x6484   :  { %v6389_v40 = vpop.eup %6388 }
0x6485   :  { %6151 = vpush %v6389_v40 }
0x6486   :  { %6153 = vpush %v4851_v19 }
0x64b6   :  { %s6152_s9 = spop %6151 }
0x64b7   :  { %s6154_s10 = spop %6153  ;;  %v4845_v52 = vstv %s6152_s9 }
0x64b8   :  { %v4854_v32 = vstv %s6154_s10  ;;  %v9322_v16 = vmul.f32 %v4845_v52, %v4835_v15 }
0x64b9   :  { %v4858_v45 = vsel %vm4814_vm3, %v4854_v32, %v9237_v13  ;;  %v4855_v31 = vsel %vm4811_vm1, %v4854_v32, %v9279_v37  ;;  %v4856_v10 = vsel %vm4812_vm2, %v4854_v32, %v9281_v44  ;;  %v4857_v15 = vsel %vm4813_vm5, %v4854_v32, %v9296_v28 }
0x64ba   :  { %v4862_v51 = vsel %vm4733_vm4, 0.0, %v4858_v45 }
0x64bb   :  { %4888 = vperm.xlu0 %6324, %v4862_v51  }
0x653a   :  { %v4889_v2 = vpop.permute.xlu0 %4888 }
0x653b   :  { %v4894_v9 = vmul.f32 %v4889_v2, %v9322_v16 }
0x653d   :  { %v4898_v8 = vsub.f32 %v4870_v5, %v4894_v9 }
0x653f   :  { %v9335_v30 = vsel %vm4733_vm4, %v9322_v16, %v4898_v8  ;;  %vm4914_vm4 = vcmp.eq.s32.totalorder %v6566_v26, 27 }
0x6540   :  { %v4926_v63 = vand.u32 2147483647, %v9335_v30  ;;  %v5030_v0 = vrot.slane %v9335_v30, 3 }
0x6542   :  { %v4930_v53 = vsel %vm4918_vm7, %v4926_v63, -1.0  ;;  %vm5099_vm7 = vcmp.ge.s32.totalorder %v6566_v26, 28 }
0x6543   :  { %v4935_v50 = vsel %vm4931_vm6, %v4930_v53, -inf }
0x6544   :  { %v4937_v38 = vmax.f32 %v4932_v43, %v4935_v50 }
0x6546   :  { %v4938_v47 = vmax.f32 %v4932_v43, %v4937_v38 }
0x6548   :  { %4939 = vmax.xlane.f32.xlu1 %v4938_v47  ;;  %v4867_v47 = vsel %vm4811_vm1, %v9326_v33, %v9279_v37 }
0x65d5   :  { %v4940_v42 = vpop.xlane.xlu1 %4939 }
0x65d6   :  { %v4941_v13 = vrot.slane %v4940_v42, 4 }
0x65d8   :  { %v4942_v14 = vmax.f32 %v4940_v42, %v4941_v13  ;;  %v4868_v42 = vsel %vm4812_vm2, %v9326_v33, %v9281_v44 }
0x65da   :  { %v4943_v6 = vrot.slane %v4942_v14, 2 }
0x65dc   :  { %v4944_v22 = vmax.f32 %v4942_v14, %v4943_v6 }
0x65de   :  { %v4945_v35 = vrot.slane %v4944_v22, 1 }
0x65e0   :  { %v4946_v4 = vmax.f32 %v4944_v22, %v4945_v35 }
0x65e2   :  { %6155 = vpush %v4946_v4 }
0x6613   :  { %s6156_s11 = spop %6155 }
0x6614   :  { %v4948_v61 = vstv %s6156_s11 }
0x6615   :  { %vm5870_vm8 = vcmp.eq.f32.partialorder %v4948_v61, -1.0  ;;  %vm4952_vm9 = vcmp.eq.f32.partialorder %v4930_v53, %v4948_v61 }
0x6616   :  { %v4953_v11 = vsel %vm5870_vm8, %v6557_v23, 32  ;;  %v4954_v49 = vsel %vm5870_vm8, %v6560_v24, 32  ;;  %v4955_v60 = vsel %vm5870_vm8, %v6563_v25, 32  ;;  %v4956_v12 = vsel %vm4952_vm9, %v6566_v26, 32 }
0x6617   :  { %v4957_v29 = vsel %vm4931_vm6, %v4953_v11, 2147483647  ;;  %v4958_v18 = vsel %vm4931_vm6, %v4954_v49, 2147483647  ;;  %v4959_v48 = vsel %vm4931_vm6, %v4955_v60, 2147483647 }
0x6618   :  { %v4960_v54 = vsel %vm4931_vm6, %v4956_v12, 2147483647  ;;  %vm4961_vm11 = vcmp.lt.s32.totalorder %v4957_v29, %v4958_v18  ;;  %vm5112_vm6 = vcmask 236768  }
0x6619   :  { %v4962_v3 = vsel %vm4961_vm11, %v4957_v29, %v4958_v18  ;;  %vm4963_vm12 = vcmp.lt.s32.totalorder %v4959_v48, %v4960_v54  ;;  %v6506_v18 = vmov 27  }
0x661a   :  { %v4964_v1 = vsel %vm4963_vm12, %v4959_v48, %v4960_v54 }
0x661b   :  { %vm4965_vm13 = vcmp.lt.s32.totalorder %v4962_v3, %v4964_v1 }
0x661c   :  { %v4966_v21 = vsel %vm4965_vm13, %v4962_v3, %v4964_v1 }
0x661d   :  { %v4968_v20 = vshra.s32 %v4966_v21, 16  ;;  %v4967_v62 = vand.u32 65535, %v4966_v21 }
0x661f   :  { %v4970_v7 = vcvt.s32.f32 %v4968_v20  ;;  %v4969_v58 = vcvt.s32.f32 %v4967_v62 }
0x6621   :  { %4971 = vmin.xlane.f32.xlu0 %v4970_v7 }
0x6637   :  { %4873 = vperm.xlu0 %6324, %v4855_v31  }
0x663b   :  { %6326 = vset.pattern.permute.xlu0 %v6506_v18 }
0x66ae   :  { %v4972_v36 = vpop.xlane.xlu0 %4971 }
0x66af   :  { %vm4973_vm10 = vcmp.eq.f32.partialorder %v4970_v7, %v4972_v36  ;;  %v4978_v57 = vcvt.f32.s32 %v4972_v36  ;;  %v9424_v36 = vrot.slane %v9335_v30, %v6911_v27  ;;  %v5113_v27 = vsel %vm5112_vm6, -1.0, %v6466_v59 }
0x66b0   :  { %v4974_v55 = vsel %vm4973_vm10, %v4969_v58, inf }
0x66b1   :  { %4975 = vmin.xlane.f32.xlu1 %v4974_v55  ;;  %v4979_v40 = vshll.u32 %v4978_v57, 16 }
0x66b6   :  { %v4874_v63 = vpop.permute.xlu0 %4873 }
0x66b7   :  { %v4891_v53 = vmul.f32 %v4874_v63, %v9322_v16 }
0x66b9   :  { %v9377_v13 = vsub.f32 %v4867_v47, %v4891_v53 }
0x66c2   :  { %4878 = vperm.xlu1 %6325, %v4856_v10  }
0x66c6   :  { %4883 = vperm.xlu1 %6325, %v4857_v15  }
0x66ca   :  { %5031 = vrot.lane.b32.xlu1 %v5030_v0, %s6505_s12 }
0x66cb   :  { %6327 = vset.pattern.permute.xlu1 %v6506_v18 }
0x673e   :  { %v4976_v41 = vpop.xlane.xlu1 %4975 }
0x673f   :  { %v4977_v19 = vcvt.f32.s32 %v4976_v41 }
0x6741   :  { %v4980_v45 = vadd.s32 %v4979_v40, %v4977_v19 }
0x6742   :  { %v4879_v8 = vpop.permute.xlu1 %4878 }
0x6743   :  { %v4981_v51 = vrot.slane %v4980_v45, 4  ;;  %v4892_v50 = vmul.f32 %v4879_v8, %v9322_v16 }
0x6745   :  { %vm4982_vm14 = vcmp.lt.s32.totalorder %v4980_v45, %v4981_v51  ;;  %v9379_v14 = vsub.f32 %v4868_v42, %v4892_v50 }
0x6746   :  { %v4983_v52 = vsel %vm4982_vm14, %v4980_v45, %v4981_v51  ;;  %v4884_v43 = vpop.permute.xlu1 %4883 }
0x6747   :  { %v4984_v2 = vrot.slane %v4983_v52, 2  ;;  %v4893_v38 = vmul.f32 %v4884_v43, %v9322_v16  ;;  %v4869_v16 = vsel %vm4813_vm5, %v9326_v33, %v9296_v28 }
0x6749   :  { %vm4985_vm15 = vcmp.lt.s32.totalorder %v4983_v52, %v4984_v2  ;;  %v9394_v37 = vsub.f32 %v4869_v16, %v4893_v38 }
0x674a   :  { %v4986_v9 = vsel %vm4985_vm15, %v4983_v52, %v4984_v2  ;;  %v5032_v1 = vpop.permute.xlu1 %5031 }
0x674b   :  { %v4987_v5 = vrot.slane %v4986_v9, 1 }
0x674d   :  { %vm4988_vm0 = vcmp.lt.s32.totalorder %v4986_v9, %v4987_v5 }
0x674e   :  { %v4989_v32 = vsel %vm4988_vm0, %v4986_v9, %v4987_v5 }
0x674f   :  { %6157 = vpush %v4989_v32 }
0x6780   :  { %s6158_s13 = spop %6157 }
0x6781   :  { %v9381_v6 = vstv %s6158_s13  ;;  %s6515_s13 = smov [#allocation5]  }
0x6782   :  { %vm4992_vm1 = vcmp.eq.s32.totalorder %v6557_v23, %v9381_v6  ;;  %vm4993_vm3 = vcmp.eq.s32.totalorder %v6560_v24, %v9381_v6  ;;  %vm4994_vm2 = vcmp.eq.s32.totalorder %v6563_v25, %v9381_v6  ;;  %vm4995_vm5 = vcmp.eq.s32.totalorder %v6566_v26, %v9381_v6 }
0x6783   :  { %v5004_v44 = vsel %vm4992_vm1, %v9377_v13, 0.0  ;;  %v5005_v39 = vsel %vm4993_vm3, %v9379_v14, 0.0  ;;  %v5006_v33 = vsel %vm4994_vm2, %v9394_v37, 0.0  ;;  %v5007_v35 = vsel %vm4995_vm5, %v9335_v30, 0.0 }
0x6784   :  { %v5008_v28 = vadd.f32 %v5005_v39, %v5004_v44  ;;  %v5051_v10 = vsel %vm4995_vm5, %v9424_v36, %v9335_v30 }
0x6786   :  { %v5009_v22 = vadd.f32 %v5008_v28, %v5006_v33 }
0x6788   :  { %v5010_v4 = vadd.f32 %v5009_v22, %v5007_v35 }
0x678a   :  { %v5011_v61 = vrot.slane %v5010_v4, 4 }
0x678c   :  { %v5012_v11 = vadd.f32 %v5011_v61, %v5010_v4 }
0x678e   :  { %v5013_v49 = vrot.slane %v5012_v11, 2 }
0x6790   :  { %v5014_v60 = vadd.f32 %v5013_v49, %v5012_v11 }
0x6792   :  { %v5015_v12 = vrot.slane %v5014_v60, 1 }
0x6794   :  { %v5016_v29 = vadd.f32 %v5015_v12, %v5014_v60 }
0x6796   :  { %5019 = vrot.lane.b32.xlu0 %v5016_v29, %s6505_s12 }
0x6808   :  { %v5020_v48 = vpop.permute.xlu0 %5019 }
0x6809   :  { %6159 = vpush %v5020_v48 }
0x683a   :  { %s6160_s14 = spop %6159 }
0x683b   :  { %v5023_v54 = vstv %s6160_s14  ;;  %s5825_s14 = sshll.u32 %s6515_s13, 4  ;;  %s5826_s14 = int_to_ptr.vmem [resolvable:$true] %s5825_s14 }
0x683c   :  { %6390 = vrcp.f32 %v5023_v54  ;;  %p6427_p9 = scmp.lt.s32.totalorder %s5826_s14, %s5826_s14 }
0x6846   :  { %v6391_v3 = vpop.eup %6390 }
0x6847   :  { %6161 = vpush %v6391_v3 }
0x6848   :  { %6163 = vpush %v5032_v1 }
0x6878   :  { %s6162_s15 = spop %6161 }
0x6879   :  { %s6164_s18 = spop %6163  ;;  %v5026_v31 = vstv %s6162_s15  ;;  %s6422_s15 = scalar_lea.vmem %s5826_s14, 512 }
0x687a   :  { %v5035_v21 = vstv %s6164_s18  ;;  %v9420_v62 = vmul.f32 %v5026_v31, %v5016_v29  ;;  %p6423_p8 = scmp.ne.s32.totalorder %s5826_s14, %s6422_s15  ;;  %p6428_p10 = scmp.lt.s32.totalorder %s6422_s15, %s6422_s15 }
0x687b   :  { %v5039_v20 = vsel %vm4995_vm5, %v5035_v21, %v9335_v30  ;;  %v5036_v35 = vsel %vm4992_vm1, %v5035_v21, %v9377_v13  ;;  %v5037_v60 = vsel %vm4993_vm3, %v5035_v21, %v9379_v14  ;;  %v5038_v12 = vsel %vm4994_vm2, %v5035_v21, %v9394_v37 }
0x687c   :  { %v5043_v7 = vsel %vm4914_vm4, 0.0, %v5039_v20  ;;  %p6429_p11 = por %p6428_p10, %p6427_p9 }
0x687d   :  { %5069 = vperm.xlu0 %6326, %v5043_v7  }
0x687e   :  { %p6430_p12 = pnand %p6429_p11, %p6423_p8 }
0x68fc   :  { %v5070_v58 = vpop.permute.xlu0 %5069 }
0x68fd   :  { %v5075_v55 = vmul.f32 %v5070_v58, %v9420_v62 }
0x68ff   :  { %v5079_v15 = vsub.f32 %v5051_v10, %v5075_v55 }
0x6901   :  { %v9433_v0 = vsel %vm4914_vm4, %v9420_v62, %v5079_v15  ;;  %vm5095_vm4 = vcmp.eq.s32.totalorder %v6566_v26, 28 }
0x6902   :  { %v5107_v57 = vand.u32 2147483647, %v9433_v0  ;;  %v5211_v29 = vrot.slane %v9433_v0, 4 }
0x6904   :  { %v5111_v41 = vsel %vm5099_vm7, %v5107_v57, -1.0  ;;  %vm5280_vm7 = vcmp.ge.s32.totalorder %v6566_v26, 29 }
0x6905   :  { %v5116_v40 = vsel %vm5112_vm6, %v5111_v41, -inf }
0x6906   :  { %v5118_v19 = vmax.f32 %v5113_v27, %v5116_v40 }
0x6908   :  { %v5119_v45 = vmax.f32 %v5113_v27, %v5118_v19  ;;  %v5048_v19 = vsel %vm4992_vm1, %v9424_v36, %v9377_v13 }
0x690a   :  { %5120 = vmax.xlane.f32.xlu1 %v5119_v45  ;;  %v5049_v45 = vsel %vm4993_vm3, %v9424_v36, %v9379_v14 }
0x6997   :  { %v5121_v51 = vpop.xlane.xlu1 %5120 }
0x6998   :  { %v5122_v30 = vrot.slane %v5121_v51, 4 }
0x699a   :  { %v5123_v52 = vmax.f32 %v5121_v51, %v5122_v30 }
0x699c   :  { %v5124_v2 = vrot.slane %v5123_v52, 2 }
0x699e   :  { %v5125_v9 = vmax.f32 %v5123_v52, %v5124_v2 }
0x69a0   :  { %v5126_v5 = vrot.slane %v5125_v9, 1 }
0x69a2   :  { %v5127_v32 = vmax.f32 %v5125_v9, %v5126_v5 }
0x69a4   :  { %6165 = vpush %v5127_v32 }
0x69d5   :  { %s6166_s19 = spop %6165 }
0x69d6   :  { %v5129_v8 = vstv %s6166_s19 }
0x69d7   :  { %vm5873_vm8 = vcmp.eq.f32.partialorder %v5129_v8, -1.0  ;;  %vm5133_vm9 = vcmp.eq.f32.partialorder %v5111_v41, %v5129_v8 }
0x69d8   :  { %v5134_v63 = vsel %vm5873_vm8, %v6557_v23, 32  ;;  %v5135_v43 = vsel %vm5873_vm8, %v6560_v24, 32  ;;  %v5136_v53 = vsel %vm5873_vm8, %v6563_v25, 32  ;;  %v5137_v50 = vsel %vm5133_vm9, %v6566_v26, 32 }
0x69d9   :  { %v5138_v38 = vsel %vm5112_vm6, %v5134_v63, 2147483647  ;;  %v5139_v47 = vsel %vm5112_vm6, %v5135_v43, 2147483647  ;;  %v5140_v42 = vsel %vm5112_vm6, %v5136_v53, 2147483647 }
0x69da   :  { %v5141_v16 = vsel %vm5112_vm6, %v5137_v50, 2147483647  ;;  %vm5142_vm11 = vcmp.lt.s32.totalorder %v5138_v38, %v5139_v47  ;;  %vm5293_vm6 = vcmask 244968  }
0x69db   :  { %v5143_v44 = vsel %vm5142_vm11, %v5138_v38, %v5139_v47  ;;  %vm5144_vm12 = vcmp.lt.s32.totalorder %v5140_v42, %v5141_v16  ;;  %v6508_v38 = vmov 28  }
0x69dc   :  { %v5145_v39 = vsel %vm5144_vm12, %v5140_v42, %v5141_v16 }
0x69dd   :  { %vm5146_vm13 = vcmp.lt.s32.totalorder %v5143_v44, %v5145_v39 }
0x69de   :  { %v5147_v28 = vsel %vm5146_vm13, %v5143_v44, %v5145_v39 }
0x69df   :  { %v5149_v33 = vshra.s32 %v5147_v28, 16  ;;  %v5148_v4 = vand.u32 65535, %v5147_v28 }
0x69e1   :  { %v5151_v22 = vcvt.s32.f32 %v5149_v33  ;;  %v5150_v11 = vcvt.s32.f32 %v5148_v4  ;;  %v9522_v4 = vrot.slane %v9433_v0, %v7007_v17  ;;  %v5294_v17 = vsel %vm5293_vm6, -1.0, %v6466_v59 }
0x69e3   :  { %5152 = vmin.xlane.f32.xlu0 %v5151_v22 }
0x69f9   :  { %5054 = vperm.xlu0 %6326, %v5036_v35  }
0x69fd   :  { %6328 = vset.pattern.permute.xlu0 %v6508_v38 }
0x6a70   :  { %v5153_v61 = vpop.xlane.xlu0 %5152 }
0x6a71   :  { %vm5154_vm10 = vcmp.eq.f32.partialorder %v5151_v22, %v5153_v61  ;;  %v5159_v18 = vcvt.f32.s32 %v5153_v61 }
0x6a72   :  { %v5155_v49 = vsel %vm5154_vm10, %v5150_v11, inf }
0x6a73   :  { %5156 = vmin.xlane.f32.xlu1 %v5155_v49  ;;  %v5160_v54 = vshll.u32 %v5159_v18, 16 }
0x6a78   :  { %v5055_v15 = vpop.permute.xlu0 %5054 }
0x6a79   :  { %v5072_v27 = vmul.f32 %v5055_v15, %v9420_v62 }
0x6a7b   :  { %v9475_v51 = vsub.f32 %v5048_v19, %v5072_v27 }
0x6a84   :  { %5059 = vperm.xlu1 %6327, %v5037_v60  }
0x6a88   :  { %5064 = vperm.xlu1 %6327, %v5038_v12  }
0x6a8c   :  { %5212 = vrot.lane.b32.xlu1 %v5211_v29, %s6507_s0 }
0x6a8d   :  { %6329 = vset.pattern.permute.xlu1 %v6508_v38 }
0x6b00   :  { %v5157_v48 = vpop.xlane.xlu1 %5156 }
0x6b01   :  { %v5158_v3 = vcvt.f32.s32 %v5157_v48 }
0x6b03   :  { %v5161_v1 = vadd.s32 %v5160_v54, %v5158_v3 }
0x6b04   :  { %v5060_v10 = vpop.permute.xlu1 %5059 }
0x6b05   :  { %v5162_v20 = vrot.slane %v5161_v1, 4  ;;  %v5073_v41 = vmul.f32 %v5060_v10, %v9420_v62 }
0x6b07   :  { %vm5163_vm14 = vcmp.lt.s32.totalorder %v5161_v1, %v5162_v20  ;;  %v9477_v30 = vsub.f32 %v5049_v45, %v5073_v41 }
0x6b08   :  { %v5164_v7 = vsel %vm5163_vm14, %v5161_v1, %v5162_v20  ;;  %v5065_v57 = vpop.permute.xlu1 %5064 }
0x6b09   :  { %v5165_v31 = vrot.slane %v5164_v7, 2  ;;  %v5074_v40 = vmul.f32 %v5065_v57, %v9420_v62  ;;  %v5050_v62 = vsel %vm4994_vm2, %v9424_v36, %v9394_v37 }
0x6b0b   :  { %vm5166_vm15 = vcmp.lt.s32.totalorder %v5164_v7, %v5165_v31  ;;  %v9492_v13 = vsub.f32 %v5050_v62, %v5074_v40 }
0x6b0c   :  { %v5167_v58 = vsel %vm5166_vm15, %v5164_v7, %v5165_v31  ;;  %v5213_v44 = vpop.permute.xlu1 %5212 }
0x6b0d   :  { %v5168_v55 = vrot.slane %v5167_v58, 1 }
0x6b0f   :  { %vm5169_vm0 = vcmp.lt.s32.totalorder %v5167_v58, %v5168_v55 }
0x6b10   :  { %v5170_v21 = vsel %vm5169_vm0, %v5167_v58, %v5168_v55 }
0x6b11   :  { %6167 = vpush %v5170_v21 }
0x6b42   :  { %s6168_s20 = spop %6167 }
0x6b43   :  { %v9479_v52 = vstv %s6168_s20 }
0x6b44   :  { %vm5173_vm1 = vcmp.eq.s32.totalorder %v6557_v23, %v9479_v52  ;;  %vm5174_vm5 = vcmp.eq.s32.totalorder %v6560_v24, %v9479_v52  ;;  %vm5175_vm3 = vcmp.eq.s32.totalorder %v6563_v25, %v9479_v52  ;;  %vm5176_vm2 = vcmp.eq.s32.totalorder %v6566_v26, %v9479_v52 }
0x6b45   :  { %v5185_v14 = vsel %vm5173_vm1, %v9475_v51, 0.0  ;;  %v5186_v6 = vsel %vm5174_vm5, %v9477_v30, 0.0  ;;  %v5187_v36 = vsel %vm5175_vm3, %v9492_v13, 0.0  ;;  %v5188_v9 = vsel %vm5176_vm2, %v9433_v0, 0.0 }
0x6b46   :  { %v5189_v37 = vadd.f32 %v5186_v6, %v5185_v14  ;;  %v5232_v49 = vsel %vm5176_vm2, %v9522_v4, %v9433_v0 }
0x6b48   :  { %v5190_v2 = vadd.f32 %v5189_v37, %v5187_v36 }
0x6b4a   :  { %v5191_v5 = vadd.f32 %v5190_v2, %v5188_v9 }
0x6b4c   :  { %v5192_v32 = vrot.slane %v5191_v5, 4 }
0x6b4e   :  { %v5193_v8 = vadd.f32 %v5192_v32, %v5191_v5 }
0x6b50   :  { %v5194_v63 = vrot.slane %v5193_v8, 2 }
0x6b52   :  { %v5195_v43 = vadd.f32 %v5194_v63, %v5193_v8 }
0x6b54   :  { %v5196_v53 = vrot.slane %v5195_v43, 1 }
0x6b56   :  { %v5197_v50 = vadd.f32 %v5196_v53, %v5195_v43 }
0x6b58   :  { %5200 = vrot.lane.b32.xlu0 %v5197_v50, %s6507_s0 }
0x6bca   :  { %v5201_v47 = vpop.permute.xlu0 %5200 }
0x6bcb   :  { %6169 = vpush %v5201_v47 }
0x6bfc   :  { %s6170_s21 = spop %6169 }
0x6bfd   :  { %v5204_v42 = vstv %s6170_s21 }
0x6bfe   :  { %6392 = vrcp.f32 %v5204_v42 }
0x6c08   :  { %v6393_v16 = vpop.eup %6392 }
0x6c09   :  { %6171 = vpush %v6393_v16 }
0x6c0a   :  { %6173 = vpush %v5213_v44 }
0x6c3a   :  { %s6172_s22 = spop %6171 }
0x6c3b   :  { %s6174_s23 = spop %6173  ;;  %v5207_v22 = vstv %s6172_s22 }
0x6c3c   :  { %v5216_v39 = vstv %s6174_s23  ;;  %v9518_v35 = vmul.f32 %v5207_v22, %v5197_v50 }
0x6c3d   :  { %v5220_v28 = vsel %vm5176_vm2, %v5216_v39, %v9433_v0  ;;  %v5217_v2 = vsel %vm5173_vm1, %v5216_v39, %v9475_v51  ;;  %v5218_v63 = vsel %vm5174_vm5, %v5216_v39, %v9477_v30  ;;  %v5219_v43 = vsel %vm5175_vm3, %v5216_v39, %v9492_v13 }
0x6c3e   :  { %v5224_v33 = vsel %vm5095_vm4, 0.0, %v5220_v28 }
0x6c3f   :  { %5250 = vperm.xlu0 %6328, %v5224_v33  }
0x6cbe   :  { %v5251_v61 = vpop.permute.xlu0 %5250 }
0x6cbf   :  { %v5256_v11 = vmul.f32 %v5251_v61, %v9518_v35 }
0x6cc1   :  { %v5260_v60 = vsub.f32 %v5232_v49, %v5256_v11 }
0x6cc3   :  { %v9531_v12 = vsel %vm5095_vm4, %v9518_v35, %v5260_v60  ;;  %vm5276_vm4 = vcmp.eq.s32.totalorder %v6566_v26, 29 }
0x6cc4   :  { %v5288_v29 = vand.u32 2147483647, %v9531_v12  ;;  %v5392_v53 = vrot.slane %v9531_v12, 5 }
0x6cc6   :  { %v5292_v18 = vsel %vm5280_vm7, %v5288_v29, -1.0  ;;  %vm5461_vm7 = vcmp.ge.s32.totalorder %v6566_v26, 30 }
0x6cc7   :  { %v5297_v48 = vsel %vm5293_vm6, %v5292_v18, -inf }
0x6cc8   :  { %v5299_v54 = vmax.f32 %v5294_v17, %v5297_v48  ;;  %v5229_v48 = vsel %vm5173_vm1, %v9522_v4, %v9475_v51 }
0x6cca   :  { %v5300_v3 = vmax.f32 %v5294_v17, %v5299_v54  ;;  %v5230_v54 = vsel %vm5174_vm5, %v9522_v4, %v9477_v30 }
0x6ccc   :  { %5301 = vmax.xlane.f32.xlu1 %v5300_v3 }
0x6d59   :  { %v5302_v1 = vpop.xlane.xlu1 %5301 }
0x6d5a   :  { %v5303_v0 = vrot.slane %v5302_v1, 4 }
0x6d5c   :  { %v5304_v20 = vmax.f32 %v5302_v1, %v5303_v0 }
0x6d5e   :  { %v5305_v7 = vrot.slane %v5304_v20, 2 }
0x6d60   :  { %v5306_v31 = vmax.f32 %v5304_v20, %v5305_v7 }
0x6d62   :  { %v5307_v58 = vrot.slane %v5306_v31, 1 }
0x6d64   :  { %v5308_v55 = vmax.f32 %v5306_v31, %v5307_v58 }
0x6d66   :  { %6175 = vpush %v5308_v55 }
0x6d97   :  { %s6176_s24 = spop %6175 }
0x6d98   :  { %v5310_v21 = vstv %s6176_s24 }
0x6d99   :  { %vm5876_vm8 = vcmp.eq.f32.partialorder %v5310_v21, -1.0  ;;  %vm5314_vm9 = vcmp.eq.f32.partialorder %v5292_v18, %v5310_v21 }
0x6d9a   :  { %v5315_v10 = vsel %vm5876_vm8, %v6557_v23, 32  ;;  %v5316_v15 = vsel %vm5876_vm8, %v6560_v24, 32  ;;  %v5317_v57 = vsel %vm5876_vm8, %v6563_v25, 32  ;;  %v5318_v27 = vsel %vm5314_vm9, %v6566_v26, 32 }
0x6d9b   :  { %v5319_v41 = vsel %vm5293_vm6, %v5315_v10, 2147483647  ;;  %v5320_v40 = vsel %vm5293_vm6, %v5316_v15, 2147483647  ;;  %v5321_v19 = vsel %vm5293_vm6, %v5317_v57, 2147483647 }
0x6d9c   :  { %v5322_v45 = vsel %vm5293_vm6, %v5318_v27, 2147483647  ;;  %vm5323_vm11 = vcmp.lt.s32.totalorder %v5319_v41, %v5320_v40  ;;  %v6510_v27 = vmov 29   ;;  %vm5474_vm6 = vcmask 253168  }
0x6d9d   :  { %v5324_v62 = vsel %vm5323_vm11, %v5319_v41, %v5320_v40  ;;  %vm5325_vm12 = vcmp.lt.s32.totalorder %v5321_v19, %v5322_v45 }
0x6d9e   :  { %v5326_v14 = vsel %vm5325_vm12, %v5321_v19, %v5322_v45 }
0x6d9f   :  { %vm5327_vm13 = vcmp.lt.s32.totalorder %v5324_v62, %v5326_v14 }
0x6da0   :  { %v5328_v6 = vsel %vm5327_vm13, %v5324_v62, %v5326_v14 }
0x6da1   :  { %v5330_v37 = vshra.s32 %v5328_v6, 16  ;;  %v5329_v9 = vand.u32 65535, %v5328_v6 }
0x6da3   :  { %v5332_v36 = vcvt.s32.f32 %v5330_v37  ;;  %v5331_v32 = vcvt.s32.f32 %v5329_v9 }
0x6da5   :  { %5333 = vmin.xlane.f32.xlu0 %v5332_v36 }
0x6dbb   :  { %5235 = vperm.xlu0 %6328, %v5217_v2   ;;  %v9620_v2 = vrot.slane %v9531_v12, %v7103_v56  ;;  %v5475_v56 = vsel %vm5474_vm6, -1.0, %v6466_v59 }
0x6dbf   :  { %6330 = vset.pattern.permute.xlu0 %v6510_v27 }
0x6e32   :  { %v5334_v5 = vpop.xlane.xlu0 %5333 }
0x6e33   :  { %vm5335_vm10 = vcmp.eq.f32.partialorder %v5332_v36, %v5334_v5  ;;  %v5340_v50 = vcvt.f32.s32 %v5334_v5 }
0x6e34   :  { %v5336_v8 = vsel %vm5335_vm10, %v5331_v32, inf }
0x6e35   :  { %5337 = vmin.xlane.f32.xlu1 %v5336_v8  ;;  %v5341_v47 = vshll.u32 %v5340_v50, 16 }
0x6e3a   :  { %v5236_v49 = vpop.permute.xlu0 %5235 }
0x6e3b   :  { %v5253_v29 = vmul.f32 %v5236_v49, %v9518_v35 }
0x6e3d   :  { %v9573_v3 = vsub.f32 %v5229_v48, %v5253_v29 }
0x6e46   :  { %5240 = vperm.xlu1 %6329, %v5218_v63  }
0x6e4a   :  { %5245 = vperm.xlu1 %6329, %v5219_v43  }
0x6e4e   :  { %5393 = vrot.lane.b32.xlu1 %v5392_v53, %s6509_s25 }
0x6e4f   :  { %6331 = vset.pattern.permute.xlu1 %v6510_v27 }
0x6ec2   :  { %v5338_v38 = vpop.xlane.xlu1 %5337 }
0x6ec3   :  { %v5339_v42 = vcvt.f32.s32 %v5338_v38 }
0x6ec5   :  { %v5342_v16 = vadd.s32 %v5341_v47, %v5339_v42 }
0x6ec6   :  { %v5241_v11 = vpop.permute.xlu1 %5240 }
0x6ec7   :  { %v5343_v44 = vrot.slane %v5342_v16, 4  ;;  %v5254_v17 = vmul.f32 %v5241_v11, %v9518_v35 }
0x6ec9   :  { %vm5344_vm14 = vcmp.lt.s32.totalorder %v5342_v16, %v5343_v44  ;;  %v9575_v1 = vsub.f32 %v5230_v54, %v5254_v17 }
0x6eca   :  { %v5345_v28 = vsel %vm5344_vm14, %v5342_v16, %v5343_v44  ;;  %v5246_v60 = vpop.permute.xlu1 %5245 }
0x6ecb   :  { %v5346_v33 = vrot.slane %v5345_v28, 2  ;;  %v5255_v18 = vmul.f32 %v5246_v60, %v9518_v35  ;;  %v5231_v35 = vsel %vm5175_vm3, %v9522_v4, %v9492_v13 }
0x6ecd   :  { %vm5347_vm15 = vcmp.lt.s32.totalorder %v5345_v28, %v5346_v33  ;;  %v9590_v51 = vsub.f32 %v5231_v35, %v5255_v18 }
0x6ece   :  { %v5348_v22 = vsel %vm5347_vm15, %v5345_v28, %v5346_v33  ;;  %v5394_v45 = vpop.permute.xlu1 %5393 }
0x6ecf   :  { %v5349_v61 = vrot.slane %v5348_v22, 1 }
0x6ed1   :  { %vm5350_vm0 = vcmp.lt.s32.totalorder %v5348_v22, %v5349_v61 }
0x6ed2   :  { %v5351_v39 = vsel %vm5350_vm0, %v5348_v22, %v5349_v61 }
0x6ed3   :  { %6177 = vpush %v5351_v39 }
0x6f04   :  { %s6178_s26 = spop %6177 }
0x6f05   :  { %v9577_v0 = vstv %s6178_s26 }
0x6f06   :  { %vm5354_vm1 = vcmp.eq.s32.totalorder %v6557_v23, %v9577_v0  ;;  %vm5355_vm2 = vcmp.eq.s32.totalorder %v6560_v24, %v9577_v0  ;;  %vm5356_vm5 = vcmp.eq.s32.totalorder %v6563_v25, %v9577_v0  ;;  %vm5357_vm3 = vcmp.eq.s32.totalorder %v6566_v26, %v9577_v0 }
0x6f07   :  { %v5366_v30 = vsel %vm5354_vm1, %v9573_v3, 0.0  ;;  %v5367_v52 = vsel %vm5355_vm2, %v9575_v1, 0.0  ;;  %v5368_v4 = vsel %vm5356_vm5, %v9590_v51, 0.0  ;;  %v5369_v7 = vsel %vm5357_vm3, %v9531_v12, 0.0 }
0x6f08   :  { %v5370_v13 = vadd.f32 %v5367_v52, %v5366_v30  ;;  %v5413_v32 = vsel %vm5357_vm3, %v9620_v2, %v9531_v12 }
0x6f0a   :  { %v5371_v20 = vadd.f32 %v5370_v13, %v5368_v4 }
0x6f0c   :  { %v5372_v31 = vadd.f32 %v5371_v20, %v5369_v7 }
0x6f0e   :  { %v5373_v58 = vrot.slane %v5372_v31, 4 }
0x6f10   :  { %v5374_v55 = vadd.f32 %v5373_v58, %v5372_v31 }
0x6f12   :  { %v5375_v21 = vrot.slane %v5374_v55, 2 }
0x6f14   :  { %v5376_v10 = vadd.f32 %v5375_v21, %v5374_v55 }
0x6f16   :  { %v5377_v15 = vrot.slane %v5376_v10, 1 }
0x6f18   :  { %v5378_v57 = vadd.f32 %v5377_v15, %v5376_v10 }
0x6f1a   :  { %5381 = vrot.lane.b32.xlu0 %v5378_v57, %s6509_s25 }
0x6f8c   :  { %v5382_v41 = vpop.permute.xlu0 %5381 }
0x6f8d   :  { %6179 = vpush %v5382_v41 }
0x6fbe   :  { %s6180_s27 = spop %6179 }
0x6fbf   :  { %v5385_v40 = vstv %s6180_s27 }
0x6fc0   :  { %6394 = vrcp.f32 %v5385_v40 }
0x6fca   :  { %v6395_v19 = vpop.eup %6394 }
0x6fcb   :  { %6181 = vpush %v6395_v19 }
0x6fcc   :  { %6183 = vpush %v5394_v45 }
0x6ffc   :  { %s6182_s28 = spop %6181 }
0x6ffd   :  { %s6184_s29 = spop %6183  ;;  %v5388_v37 = vstv %s6182_s28 }
0x6ffe   :  { %v5397_v62 = vstv %s6184_s29  ;;  %v9616_v36 = vmul.f32 %v5388_v37, %v5378_v57 }
0x6fff   :  { %v5401_v14 = vsel %vm5357_vm3, %v5397_v62, %v9531_v12  ;;  %v5398_v4 = vsel %vm5354_vm1, %v5397_v62, %v9573_v3  ;;  %v5399_v55 = vsel %vm5355_vm2, %v5397_v62, %v9575_v1  ;;  %v5400_v21 = vsel %vm5356_vm5, %v5397_v62, %v9590_v51 }
0x7000   :  { %v5405_v6 = vsel %vm5276_vm4, 0.0, %v5401_v14 }
0x7001   :  { %5431 = vperm.xlu0 %6330, %v5405_v6  }
0x7080   :  { %v5432_v9 = vpop.permute.xlu0 %5431 }
0x7081   :  { %v5437_v5 = vmul.f32 %v5432_v9, %v9616_v36 }
0x7083   :  { %v5441_v8 = vsub.f32 %v5413_v32, %v5437_v5 }
0x7085   :  { %v9629_v63 = vsel %vm5276_vm4, %v9616_v36, %v5441_v8  ;;  %vm5457_vm4 = vcmp.eq.s32.totalorder %v6566_v26, 30 }
0x7086   :  { %v5469_v43 = vand.u32 2147483647, %v9629_v63  ;;  %v5573_v10 = vrot.slane %v9629_v63, 6 }
0x7088   :  { %v5473_v53 = vsel %vm5461_vm7, %v5469_v43, -1.0  ;;  %vm5642_vm7 = vcmp.ge.s32.totalorder %v6566_v26, 31 }
0x7089   :  { %v5478_v50 = vsel %vm5474_vm6, %v5473_v53, -inf }
0x708a   :  { %v5480_v38 = vmax.f32 %v5475_v56, %v5478_v50  ;;  %v5411_v50 = vsel %vm5355_vm2, %v9620_v2, %v9575_v1 }
0x708c   :  { %v5481_v47 = vmax.f32 %v5475_v56, %v5480_v38 }
0x708e   :  { %5482 = vmax.xlane.f32.xlu1 %v5481_v47 }
0x711b   :  { %v5483_v42 = vpop.xlane.xlu1 %5482 }
0x711c   :  { %v5484_v12 = vrot.slane %v5483_v42, 4 }
0x711e   :  { %v5485_v16 = vmax.f32 %v5483_v42, %v5484_v12 }
0x7120   :  { %v5486_v44 = vrot.slane %v5485_v16, 2 }
0x7122   :  { %v5487_v28 = vmax.f32 %v5485_v16, %v5486_v44 }
0x7124   :  { %v5488_v33 = vrot.slane %v5487_v28, 1 }
0x7126   :  { %v5489_v22 = vmax.f32 %v5487_v28, %v5488_v33 }
0x7128   :  { %6185 = vpush %v5489_v22 }
0x7159   :  { %s6186_s30 = spop %6185 }
0x715a   :  { %v5491_v61 = vstv %s6186_s30 }
0x715b   :  { %vm5879_vm8 = vcmp.eq.f32.partialorder %v5491_v61, -1.0  ;;  %vm5495_vm9 = vcmp.eq.f32.partialorder %v5473_v53, %v5491_v61  ;;  %v5410_v53 = vsel %vm5354_vm1, %v9620_v2, %v9573_v3 }
0x715c   :  { %v5496_v39 = vsel %vm5879_vm8, %v6557_v23, 32  ;;  %v5497_v11 = vsel %vm5879_vm8, %v6560_v24, 32  ;;  %v5498_v49 = vsel %vm5879_vm8, %v6563_v25, 32  ;;  %v5499_v60 = vsel %vm5495_vm9, %v6566_v26, 32 }
0x715d   :  { %v5500_v29 = vsel %vm5474_vm6, %v5496_v39, 2147483647  ;;  %v5501_v17 = vsel %vm5474_vm6, %v5497_v11, 2147483647  ;;  %v5502_v18 = vsel %vm5474_vm6, %v5498_v49, 2147483647 }
0x715e   :  { %v5503_v48 = vsel %vm5474_vm6, %v5499_v60, 2147483647  ;;  %vm5504_vm11 = vcmp.lt.s32.totalorder %v5500_v29, %v5501_v17  ;;  %v6512_v49 = vmov 30   ;;  %vm5655_vm6 = vcmask 261368  }
0x715f   :  { %v5505_v54 = vsel %vm5504_vm11, %v5500_v29, %v5501_v17  ;;  %vm5506_vm12 = vcmp.lt.s32.totalorder %v5502_v18, %v5503_v48 }
0x7160   :  { %v5507_v35 = vsel %vm5506_vm12, %v5502_v18, %v5503_v48 }
0x7161   :  { %vm5508_vm13 = vcmp.lt.s32.totalorder %v5505_v54, %v5507_v35 }
0x7162   :  { %v5509_v30 = vsel %vm5508_vm13, %v5505_v54, %v5507_v35 }
0x7163   :  { %v5511_v52 = vshra.s32 %v5509_v30, 16  ;;  %v5510_v20 = vand.u32 65535, %v5509_v30 }
0x7165   :  { %v5513_v13 = vcvt.s32.f32 %v5511_v52  ;;  %v5512_v31 = vcvt.s32.f32 %v5510_v20 }
0x7167   :  { %5514 = vmin.xlane.f32.xlu0 %v5513_v13 }
0x717d   :  { %5416 = vperm.xlu0 %6330, %v5398_v4  }
0x7181   :  { %6332 = vset.pattern.permute.xlu0 %v6512_v49 }
0x71f4   :  { %v5515_v7 = vpop.xlane.xlu0 %5514 }
0x71f5   :  { %vm5516_vm10 = vcmp.eq.f32.partialorder %v5513_v13, %v5515_v7  ;;  %v5521_v15 = vcvt.f32.s32 %v5515_v7  ;;  %v9718_v13 = vrot.slane %v9629_v63, %v7199_v46  ;;  %v5656_v46 = vsel %vm5655_vm6, -1.0, %v6466_v59 }
0x71f6   :  { %v5517_v58 = vsel %vm5516_vm10, %v5512_v31, inf }
0x71f7   :  { %5518 = vmin.xlane.f32.xlu1 %v5517_v58  ;;  %v5522_v27 = vshll.u32 %v5521_v15, 16 }
0x71fc   :  { %v5417_v5 = vpop.permute.xlu0 %5416 }
0x71fd   :  { %v5434_v8 = vmul.f32 %v5417_v5, %v9616_v36 }
0x71ff   :  { %v9671_v38 = vsub.f32 %v5410_v53, %v5434_v8 }
0x7208   :  { %5421 = vperm.xlu1 %6331, %v5399_v55  }
0x720c   :  { %5426 = vperm.xlu1 %6331, %v5400_v21  }
0x7210   :  { %5574 = vrot.lane.b32.xlu1 %v5573_v10, %s6511_s2 }
0x7211   :  { %6333 = vset.pattern.permute.xlu1 %v6512_v49 }
0x7284   :  { %v5519_v57 = vpop.xlane.xlu1 %5518 }
0x7285   :  { %v5520_v41 = vcvt.f32.s32 %v5519_v57 }
0x7287   :  { %v5523_v40 = vadd.s32 %v5522_v27, %v5520_v41 }
0x7288   :  { %v5422_v9 = vpop.permute.xlu1 %5421 }
0x7289   :  { %v5524_v19 = vrot.slane %v5523_v40, 4  ;;  %v5435_v43 = vmul.f32 %v5422_v9, %v9616_v36 }
0x728b   :  { %vm5525_vm14 = vcmp.lt.s32.totalorder %v5523_v40, %v5524_v19  ;;  %v9673_v47 = vsub.f32 %v5411_v50, %v5435_v43 }
0x728c   :  { %v5526_v45 = vsel %vm5525_vm14, %v5523_v40, %v5524_v19  ;;  %v5427_v32 = vpop.permute.xlu1 %5426 }
0x728d   :  { %v5527_v14 = vrot.slane %v5526_v45, 2  ;;  %v5436_v56 = vmul.f32 %v5427_v32, %v9616_v36  ;;  %v5412_v36 = vsel %vm5356_vm5, %v9620_v2, %v9590_v51 }
0x728f   :  { %vm5528_vm15 = vcmp.lt.s32.totalorder %v5526_v45, %v5527_v14  ;;  %v9688_v3 = vsub.f32 %v5412_v36, %v5436_v56 }
0x7290   :  { %v5529_v6 = vsel %vm5528_vm15, %v5526_v45, %v5527_v14  ;;  %v5575_v18 = vpop.permute.xlu1 %5574 }
0x7291   :  { %v5530_v37 = vrot.slane %v5529_v6, 1 }
0x7293   :  { %vm5531_vm0 = vcmp.lt.s32.totalorder %v5529_v6, %v5530_v37 }
0x7294   :  { %v5532_v62 = vsel %vm5531_vm0, %v5529_v6, %v5530_v37 }
0x7295   :  { %6187 = vpush %v5532_v62 }
0x72c6   :  { %s6188_s3 = spop %6187 }
0x72c7   :  { %v9675_v42 = vstv %s6188_s3 }
0x72c8   :  { %vm5535_vm1 = vcmp.eq.s32.totalorder %v6557_v23, %v9675_v42  ;;  %vm5536_vm3 = vcmp.eq.s32.totalorder %v6560_v24, %v9675_v42  ;;  %vm5537_vm2 = vcmp.eq.s32.totalorder %v6563_v25, %v9675_v42  ;;  %vm5538_vm5 = vcmp.eq.s32.totalorder %v6566_v26, %v9675_v42 }
0x72c9   :  { %v5547_v1 = vsel %vm5535_vm1, %v9671_v38, 0.0  ;;  %v5548_v0 = vsel %vm5536_vm3, %v9673_v47, 0.0  ;;  %v5549_v2 = vsel %vm5537_vm2, %v9688_v3, 0.0  ;;  %v5550_v16 = vsel %vm5538_vm5, %v9629_v63, 0.0 }
0x72ca   :  { %v5551_v51 = vadd.f32 %v5548_v0, %v5547_v1  ;;  %v5594_v7 = vsel %vm5538_vm5, %v9718_v13, %v9629_v63 }
0x72cc   :  { %v5552_v12 = vadd.f32 %v5551_v51, %v5549_v2 }
0x72ce   :  { %v5553_v44 = vadd.f32 %v5552_v12, %v5550_v16 }
0x72d0   :  { %v5554_v28 = vrot.slane %v5553_v44, 4 }
0x72d2   :  { %v5555_v33 = vadd.f32 %v5554_v28, %v5553_v44 }
0x72d4   :  { %v5556_v22 = vrot.slane %v5555_v33, 2 }
0x72d6   :  { %v5557_v61 = vadd.f32 %v5556_v22, %v5555_v33 }
0x72d8   :  { %v5558_v39 = vrot.slane %v5557_v61, 1 }
0x72da   :  { %v5559_v11 = vadd.f32 %v5558_v39, %v5557_v61 }
0x72dc   :  { %5562 = vrot.lane.b32.xlu0 %v5559_v11, %s6511_s2 }
0x734e   :  { %v5563_v60 = vpop.permute.xlu0 %5562 }
0x734f   :  { %6189 = vpush %v5563_v60 }
0x7380   :  { %s6190_s4 = spop %6189 }
0x7381   :  { %v5566_v29 = vstv %s6190_s4 }
0x7382   :  { %6396 = vrcp.f32 %v5566_v29 }
0x738c   :  { %v6397_v17 = vpop.eup %6396 }
0x738d   :  { %6191 = vpush %v6397_v17 }
0x738e   :  { %6193 = vpush %v5575_v18 }
0x73be   :  { %s6192_s5 = spop %6191 }
0x73bf   :  { %s6194_s6 = spop %6193  ;;  %v5569_v30 = vstv %s6192_s5 }
0x73c0   :  { %v5578_v48 = vstv %s6194_s6  ;;  %v9714_v52 = vmul.f32 %v5569_v30, %v5559_v11 }
0x73c1   :  { %v5582_v54 = vsel %vm5538_vm5, %v5578_v48, %v9629_v63  ;;  %v5579_v0 = vsel %vm5535_vm1, %v5578_v48, %v9671_v38  ;;  %v5580_v44 = vsel %vm5536_vm3, %v5578_v48, %v9673_v47  ;;  %v5581_v28 = vsel %vm5537_vm2, %v5578_v48, %v9688_v3 }
0x73c2   :  { %v5586_v35 = vsel %vm5457_vm4, 0.0, %v5582_v54 }
0x73c3   :  { %5612 = vperm.xlu0 %6332, %v5586_v35  }
0x7442   :  { %v5613_v4 = vpop.permute.xlu0 %5612 }
0x7443   :  { %v5618_v20 = vmul.f32 %v5613_v4, %v9714_v52 }
0x7445   :  { %v5622_v31 = vsub.f32 %v5594_v7, %v5618_v20 }
0x7447   :  { %v9727_v58 = vsel %vm5457_vm4, %v9714_v52, %v5622_v31  ;;  %vm5638_vm4 = vcmp.eq.s32.totalorder %v6566_v26, 31 }
0x7448   :  { %v5650_v55 = vand.u32 2147483647, %v9727_v58  ;;  %v5754_v33 = vrot.slane %v9727_v58, 7 }
0x744a   :  { %v5654_v21 = vsel %vm5642_vm7, %v5650_v55, -1.0  ;;  %v5591_v55 = vsel %vm5535_vm1, %v9718_v13, %v9671_v38 }
0x744b   :  { %v5659_v10 = vsel %vm5655_vm6, %v5654_v21, -inf }
0x744c   :  { %v5661_v15 = vmax.f32 %v5656_v46, %v5659_v10 }
0x744e   :  { %v5662_v57 = vmax.f32 %v5656_v46, %v5661_v15  ;;  %v5592_v46 = vsel %vm5536_vm3, %v9718_v13, %v9673_v47 }
0x7450   :  { %5663 = vmax.xlane.f32.xlu1 %v5662_v57 }
0x74dd   :  { %v5664_v27 = vpop.xlane.xlu1 %5663 }
0x74de   :  { %v5665_v63 = vrot.slane %v5664_v27, 4 }
0x74e0   :  { %v5666_v41 = vmax.f32 %v5664_v27, %v5665_v63 }
0x74e2   :  { %v5667_v40 = vrot.slane %v5666_v41, 2 }
0x74e4   :  { %v5668_v19 = vmax.f32 %v5666_v41, %v5667_v40 }
0x74e6   :  { %v5669_v45 = vrot.slane %v5668_v19, 1 }
0x74e8   :  { %v5670_v14 = vmax.f32 %v5668_v19, %v5669_v45 }
0x74ea   :  { %6195 = vpush %v5670_v14 }
0x751b   :  { %s6196_s7 = spop %6195 }
0x751c   :  { %v5672_v6 = vstv %s6196_s7 }
0x751d   :  { %vm5882_vm8 = vcmp.eq.f32.partialorder %v5672_v6, -1.0  ;;  %vm5676_vm9 = vcmp.eq.f32.partialorder %v5654_v21, %v5672_v6 }
0x751e   :  { %v5677_v59 = vsel %vm5882_vm8, %v6557_v23, 32  ;;  %v5678_v37 = vsel %vm5882_vm8, %v6560_v24, 32  ;;  %v5679_v62 = vsel %vm5882_vm8, %v6563_v25, 32  ;;  %v5680_v9 = vsel %vm5676_vm9, %v6566_v26, 32 }
0x751f   :  { %v5681_v5 = vsel %vm5655_vm6, %v5677_v59, 2147483647  ;;  %v5682_v32 = vsel %vm5655_vm6, %v5678_v37, 2147483647  ;;  %v5683_v8 = vsel %vm5655_vm6, %v5679_v62, 2147483647 }
0x7520   :  { %v5684_v43 = vsel %vm5655_vm6, %v5680_v9, 2147483647  ;;  %vm5685_vm11 = vcmp.lt.s32.totalorder %v5681_v5, %v5682_v32  ;;  %v6514_v59 = vmov 31  }
0x7521   :  { %v5686_v56 = vsel %vm5685_vm11, %v5681_v5, %v5682_v32  ;;  %vm5687_vm12 = vcmp.lt.s32.totalorder %v5683_v8, %v5684_v43 }
0x7522   :  { %v5688_v53 = vsel %vm5687_vm12, %v5683_v8, %v5684_v43 }
0x7523   :  { %vm5689_vm13 = vcmp.lt.s32.totalorder %v5686_v56, %v5688_v53 }
0x7524   :  { %v5690_v50 = vsel %vm5689_vm13, %v5686_v56, %v5688_v53 }
0x7525   :  { %v5692_v36 = vshra.s32 %v5690_v50, 16  ;;  %v5691_v51 = vand.u32 65535, %v5690_v50 }
0x7527   :  { %v5694_v1 = vcvt.s32.f32 %v5692_v36  ;;  %v5693_v12 = vcvt.s32.f32 %v5691_v51 }
0x7529   :  { %5695 = vmin.xlane.f32.xlu0 %v5694_v1 }
0x753f   :  { %5597 = vperm.xlu0 %6332, %v5579_v0   ;;  %v5771_v0 = vrot.slane %v9727_v58, %v7293_v34 }
0x7543   :  { %6335 = vset.pattern.permute.xlu0 %v6514_v59 }
0x75b6   :  { %v5696_v2 = vpop.xlane.xlu0 %5695 }
0x75b7   :  { %vm5697_vm10 = vcmp.eq.f32.partialorder %v5694_v1, %v5696_v2  ;;  %v5702_v22 = vcvt.f32.s32 %v5696_v2 }
0x75b8   :  { %v5698_v16 = vsel %vm5697_vm10, %v5693_v12, inf }
0x75b9   :  { %5699 = vmin.xlane.f32.xlu1 %v5698_v16  ;;  %v5703_v39 = vshll.u32 %v5702_v22, 16 }
0x75be   :  { %v5598_v30 = vpop.permute.xlu0 %5597 }
0x75bf   :  { %v5615_v20 = vmul.f32 %v5598_v30, %v9714_v52 }
0x75c1   :  { %v5619_v21 = vsub.f32 %v5591_v55, %v5615_v20 }
0x75ca   :  { %5602 = vperm.xlu1 %6333, %v5580_v44  }
0x75ce   :  { %5607 = vperm.xlu1 %6333, %v5581_v28  }
0x75d2   :  { %5755 = vrot.lane.b32.xlu1 %v5754_v33, %s6513_s8 }
0x75d3   :  { %6334 = vset.pattern.permute.xlu1 %v6514_v59 }
0x7646   :  { %v5700_v61 = vpop.xlane.xlu1 %5699 }
0x7647   :  { %v5701_v11 = vcvt.f32.s32 %v5700_v61 }
0x7649   :  { %v5704_v49 = vadd.s32 %v5703_v39, %v5701_v11 }
0x764a   :  { %v5603_v35 = vpop.permute.xlu1 %5602 }
0x764b   :  { %v5705_v60 = vrot.slane %v5704_v49, 4  ;;  %v5616_v7 = vmul.f32 %v5603_v35, %v9714_v52 }
0x764d   :  { %vm5706_vm14 = vcmp.lt.s32.totalorder %v5704_v49, %v5705_v60  ;;  %v9769_v10 = vsub.f32 %v5592_v46, %v5616_v7 }
0x764e   :  { %v5707_v29 = vsel %vm5706_vm14, %v5704_v49, %v5705_v60  ;;  %v5608_v4 = vpop.permute.xlu1 %5607 }
0x764f   :  { %v5708_v17 = vrot.slane %v5707_v29, 2  ;;  %v5617_v31 = vmul.f32 %v5608_v4, %v9714_v52  ;;  %v5593_v52 = vsel %vm5537_vm2, %v9718_v13, %v9688_v3 }
0x7651   :  { %vm5709_vm15 = vcmp.lt.s32.totalorder %v5707_v29, %v5708_v17  ;;  %v9784_v38 = vsub.f32 %v5593_v52, %v5617_v31 }
0x7652   :  { %v5710_v18 = vsel %vm5709_vm15, %v5707_v29, %v5708_v17  ;;  %v5756_v5 = vpop.permute.xlu1 %5755 }
0x7653   :  { %v5711_v54 = vrot.slane %v5710_v18, 1 }
0x7655   :  { %vm5712_vm0 = vcmp.lt.s32.totalorder %v5710_v18, %v5711_v54 }
0x7656   :  { %v5713_v48 = vsel %vm5712_vm0, %v5710_v18, %v5711_v54 }
0x7657   :  { %6197 = vpush %v5713_v48 }
0x7688   :  { %s6198_s9 = spop %6197 }
0x7689   :  { %v9771_v15 = vstv %s6198_s9 }
0x768a   :  { %vm5716_vm1 = vcmp.eq.s32.totalorder %v6557_v23, %v9771_v15  ;;  %vm5717_vm5 = vcmp.eq.s32.totalorder %v6560_v24, %v9771_v15  ;;  %vm5718_vm3 = vcmp.eq.s32.totalorder %v6563_v25, %v9771_v15  ;;  %vm5719_vm2 = vcmp.eq.s32.totalorder %v6566_v26, %v9771_v15 }
0x768b   :  { %v5728_v47 = vsel %vm5716_vm1, %v5619_v21, 0.0  ;;  %v5729_v42 = vsel %vm5717_vm5, %v9769_v10, 0.0  ;;  %v5730_v13 = vsel %vm5718_vm3, %v9784_v38, 0.0  ;;  %v5731_v27 = vsel %vm5719_vm2, %v9727_v58, 0.0 }
0x768c   :  { %v5732_v3 = vadd.f32 %v5729_v42, %v5728_v47  ;;  %v5772_v16 = vsel %vm5716_vm1, %v5771_v0, %v5619_v21  ;;  %v5775_v33 = vsel %vm5719_vm2, %v5771_v0, %v9727_v58  ;;  %v5773_v23 = vsel %vm5717_vm5, %v5771_v0, %v9769_v10 }
0x768e   :  { %v5733_v57 = vadd.f32 %v5732_v3, %v5730_v13 }
0x7690   :  { %v5734_v63 = vadd.f32 %v5733_v57, %v5731_v27 }
0x7692   :  { %v5735_v41 = vrot.slane %v5734_v63, 4 }
0x7694   :  { %v5736_v40 = vadd.f32 %v5735_v41, %v5734_v63 }
0x7696   :  { %v5737_v19 = vrot.slane %v5736_v40, 2 }
0x7698   :  { %v5738_v45 = vadd.f32 %v5737_v19, %v5736_v40 }
0x769a   :  { %v5739_v14 = vrot.slane %v5738_v45, 1 }
0x769c   :  { %v5740_v6 = vadd.f32 %v5739_v14, %v5738_v45 }
0x769e   :  { %5743 = vrot.lane.b32.xlu0 %v5740_v6, %s6513_s8 }
0x7710   :  { %v5744_v37 = vpop.permute.xlu0 %5743 }
0x7711   :  { %6199 = vpush %v5744_v37 }
0x7742   :  { %s6200_s10 = spop %6199 }
0x7743   :  { %v5747_v62 = vstv %s6200_s10 }
0x7744   :  { %6398 = vrcp.f32 %v5747_v62 }
0x774e   :  { %v6399_v9 = vpop.eup %6398 }
0x774f   :  { %6201 = vpush %v6399_v9 }
0x7750   :  { %6203 = vpush %v5756_v5 }
0x7780   :  { %s6202_s11 = spop %6201 }
0x7781   :  { %s6204_s12 = spop %6203  ;;  %v5750_v36 = vstv %s6202_s11 }
0x7782   :  { %v5759_v32 = vstv %s6204_s12  ;;  %v5751_v1 = vmul.f32 %v5750_v36, %v5740_v6 }
0x7783   :  { %v5763_v8 = vsel %vm5719_vm2, %v5759_v32, %v9727_v58  ;;  %v5760_v43 = vsel %vm5716_vm1, %v5759_v32, %v5619_v21  ;;  %v5761_v53 = vsel %vm5717_vm5, %v5759_v32, %v9769_v10  ;;  %v5762_v50 = vsel %vm5718_vm3, %v5759_v32, %v9784_v38 }
0x7784   :  { %5778 = vperm.xlu1 %6334, %v5760_v43   ;;  %v5767_v56 = vsel %vm5638_vm4, 0.0, %v5763_v8  ;;  %v5774_v58 = vsel %vm5718_vm3, %v5771_v0, %v9784_v38 }
0x7785   :  { %5793 = vperm.xlu0 %6335, %v5767_v56  }
0x7788   :  { %5783 = vperm.xlu1 %6334, %v5761_v53  }
0x7789   :  { %5788 = vperm.xlu0 %6335, %v5762_v50  }
0x7803   :  { %v5779_v51 = vpop.permute.xlu1 %5778 }
0x7804   :  { %v5796_v2 = vmul.f32 %v5779_v51, %v5751_v1  ;;  %v5794_v12 = vpop.permute.xlu0 %5793 }
0x7805   :  { %v5799_v44 = vmul.f32 %v5794_v12, %v5751_v1 }
0x7806   :  { %v5800_v28 = vsub.f32 %v5772_v16, %v5796_v2 }
0x7807   :  { %v5803_v22 = vsub.f32 %v5775_v33, %v5799_v44  ;;  %v5784_v61 = vpop.permute.xlu1 %5783 }
0x7808   :  { %5816 = vst [vmem:[#allocation5] sm:$0xff] %v5800_v28  ;;  %v5797_v39 = vmul.f32 %v5784_v61, %v5751_v1  ;;  %v5789_v11 = vpop.permute.xlu0 %5788 }
0x7809   :  { %v5815_v34 = vsel %vm5638_vm4, %v5751_v1, %v5803_v22  ;;  %v5798_v49 = vmul.f32 %v5789_v11, %v5751_v1 }
0x780a   :  { %5819 = vst [vmem:[#allocation5 + $0x18] sm:$0xff] %v5815_v34  ;;  %v5801_v60 = vsub.f32 %v5773_v23, %v5797_v39 }
0x780b   :  { %v5802_v29 = vsub.f32 %v5774_v58, %v5798_v49 }
0x780c   :  { %5817 = vst [vmem:[#allocation5 + $0x8] sm:$0xff] %v5801_v60 }
0x780d   :  { %5818 = vst [vmem:[#allocation5 + $0x10] sm:$0xff] %v5802_v29 }
0x780e   :  { %6433 = shalt.err (!%p6430_p12)
}
0x780f   :  { %s6434_s0 = scalar_lea.hbm %s9857_s1, 512 }
0x7810   :  { %p6435_p13 = scmp.ne.s32.totalorder %s9857_s1, %s6434_s0  ;;  %p6438_p0 = scmp.lt.u32.totalorder %s6434_s0, %s9857_s1 }
0x7812   :  { %p6440_p1 = pnand %p6438_p0, %p6435_p13 }
0x7814   :  { %6443 = shalt.err (!%p6440_p1)
}
0x7815   :  { %5831 = dma.vmem_to_hbm [thread:$0]  %s5826_s14, 512, %s9857_s1, [#allocation4], %s6449_s16, %s6449_s16, %s6450_s17  }
0x7816   :  { %6446 = dma.done.wait [#allocation4], 512  }
0x7817   :  { %6447 = vsyncadd [#allocation4], 4294966784 }
0x7818   :  { %5835 = vsyncpa [#allocation3], 1 }
0x7819   :  { %5836 = vsyncpa [#allocation4], 1 }

</bundles_post_ra>
